<compile_context>
chip_gen: v7x
topology: tpu7x:2x2x1
jax: 0.10.0
libtpu: 0.0.40
codegen_flags: <defaults>
</compile_context>

<pallas_src>
import jax
import jax.numpy as jnp
from jax.experimental import pallas as pl
from jax.experimental.pallas import tpu as pltpu


# -----------------------------------------------------------------------------
# Path 1 (default, best on v5e/v6e single-TensorCore): fully fused MLP.
# Grid = (K // tk,) over the fc1 reduction; fc2/fc3 run in the k==last
# epilogue on the resident f32 accumulator.
# -----------------------------------------------------------------------------
def _fused_mlp_kernel(x_ref, w1_ref, b1_ref, w2_ref, b2_ref, w3_ref, b3_ref,
                      o_ref, acc_ref):
    k = pl.program_id(0)

    @pl.when(k == 0)
    def _():
        acc_ref[...] = jnp.zeros_like(acc_ref)

    # fc1 partial product: (B, tk) @ (tk, 1024), bf16 operands, f32 accumulate.
    acc_ref[...] += jnp.dot(
        x_ref[...].astype(jnp.bfloat16),
        w1_ref[...],
        preferred_element_type=jnp.float32,
    )

    # Epilogue on the last K step: bias+ReLU, then fc2 and fc3 (whole-array
    # VMEM residents), store the (B, 2) logits.
    @pl.when(k == pl.num_programs(0) - 1)
    def _():
        h1 = jnp.maximum(acc_ref[...] + b1_ref[...], 0.0)            # (B, 1024) f32
        h2 = jnp.dot(h1.astype(jnp.bfloat16), w2_ref[...],
                     preferred_element_type=jnp.float32) + b2_ref[...]
        h2 = jnp.maximum(h2, 0.0)                                     # (B, 256) f32
        out = jnp.dot(h2.astype(jnp.bfloat16), w3_ref[...],
                      preferred_element_type=jnp.float32) + b3_ref[...]
        o_ref[...] = out.astype(o_ref.dtype)                          # (B, 2)


# -----------------------------------------------------------------------------
# Path 2 (v7x megacore): split fc1 output columns (and matching fc2 rows) over
# a leading "parallel" grid axis of size 2 so each core streams only half of
# W1.  Each grid column emits its partial fc2 product relu(h1_half) @ W2_half;
# the halves are summed and fc3 applied outside (trivially small).
# -----------------------------------------------------------------------------
def _split_fc1_fc2_kernel(x_ref, w1_ref, b1_ref, w2_ref, o_ref, acc_ref):
    k = pl.program_id(1)

    @pl.when(k == 0)
    def _():
        acc_ref[...] = jnp.zeros_like(acc_ref)

    acc_ref[...] += jnp.dot(
        x_ref[...].astype(jnp.bfloat16),
        w1_ref[...],
        preferred_element_type=jnp.float32,
    )

    @pl.when(k == pl.num_programs(1) - 1)
    def _():
        h1 = jnp.maximum(acc_ref[...] + b1_ref[...], 0.0)            # (B, 512) f32
        o_ref[0, :, :] = jnp.dot(h1.astype(jnp.bfloat16), w2_ref[...],
                                 preferred_element_type=jnp.float32)  # (B, 256)


def binary_classifier_forward(x, params, *, tk=2048, split_across_cores=False):
    """BinaryClassifier forward.

    x: (B, 4096) f32; params: ((w1,b1),(w2,b2),(w3,b3)) with w_i bf16, (in, out).
    split_across_cores=True selects the v7x two-TensorCore variant.
    """
    (w1, b1), (w2, b2), (w3, b3) = params
    B, K = x.shape
    K1, N1 = w1.shape
    N2 = w2.shape[1]
    N3 = w3.shape[1]
    assert K == K1 and w2.shape[0] == N1 and w3.shape[0] == N2
    assert B % 8 == 0, "batch must be a multiple of the f32 sublane tile (8)"
    tk = min(tk, K)
    assert K % tk == 0
    kt = K // tk

    if not split_across_cores:
        return pl.pallas_call(
            _fused_mlp_kernel,
            out_shape=jax.ShapeDtypeStruct((B, N3), jnp.float32),
            grid_spec=pltpu.PrefetchScalarGridSpec(
                num_scalar_prefetch=0,
                grid=(kt,),
                in_specs=[
                    pl.BlockSpec((B, tk), lambda k: (0, k)),   # x (streamed over K)
                    pl.BlockSpec((tk, N1), lambda k: (k, 0)),  # W1 (streamed over K)
                    pl.BlockSpec((1, N1), lambda k: (0, 0)),   # b1 (resident)
                    pl.BlockSpec((N1, N2), lambda k: (0, 0)),  # W2 (resident)
                    pl.BlockSpec((1, N2), lambda k: (0, 0)),   # b2 (resident)
                    pl.BlockSpec((N2, N3), lambda k: (0, 0)),  # W3 (resident)
                    pl.BlockSpec((1, N3), lambda k: (0, 0)),   # b3 (resident)
                ],
                out_specs=pl.BlockSpec((B, N3), lambda k: (0, 0)),
                scratch_shapes=[pltpu.VMEM((B, N1), jnp.float32)],  # fc1 accumulator
            ),
            compiler_params=pltpu.CompilerParams(
                dimension_semantics=("arbitrary",),     # reduction axis
                vmem_limit_bytes=32 * 1024 * 1024,
            ),
        )(x, w1, b1.reshape(1, N1), w2, b2.reshape(1, N2), w3, b3.reshape(1, N3))

    # ---- v7x megacore path: 2-way split of fc1 output columns -------------
    n_split = 2
    assert N1 % n_split == 0
    nh = N1 // n_split
    partial = pl.pallas_call(
        _split_fc1_fc2_kernel,
        out_shape=jax.ShapeDtypeStruct((n_split, B, N2), jnp.float32),
        grid_spec=pltpu.PrefetchScalarGridSpec(
            num_scalar_prefetch=0,
            grid=(n_split, kt),
            in_specs=[
                pl.BlockSpec((B, tk), lambda n, k: (0, k)),    # x tile
                pl.BlockSpec((tk, nh), lambda n, k: (k, n)),   # W1 column half
                pl.BlockSpec((1, nh), lambda n, k: (0, n)),    # b1 half
                pl.BlockSpec((nh, N2), lambda n, k: (n, 0)),   # W2 row half
            ],
            out_specs=pl.BlockSpec((1, B, N2), lambda n, k: (n, 0, 0)),
            scratch_shapes=[pltpu.VMEM((B, nh), jnp.float32)],
        ),
        compiler_params=pltpu.CompilerParams(
            dimension_semantics=("parallel", "arbitrary"),
            vmem_limit_bytes=32 * 1024 * 1024,
        ),
    )(x, w1, b1.reshape(1, N1), w2)

    # Tiny epilogue ((B,256) elementwise + (256,2) matmul) in plain XLA.
    h2 = jnp.maximum(partial[0] + partial[1] + b2, 0.0)
    return jnp.dot(h2.astype(jnp.bfloat16), w3,
                   preferred_element_type=jnp.float32) + b3


def init_linear_params(key, in_features, out_features,
                       weight_dtype=jnp.bfloat16, bias_dtype=jnp.float32):
    """PyTorch-style uniform(-1/sqrt(in), 1/sqrt(in)); weight stored (in, out)."""
    kw, kb = jax.random.split(key)
    bound = 1.0 / (in_features ** 0.5)
    w = jax.random.uniform(kw, (in_features, out_features), jnp.float32,
                           minval=-bound, maxval=bound).astype(weight_dtype)
    b = jax.random.uniform(kb, (out_features,), jnp.float32,
                           minval=-bound, maxval=bound).astype(bias_dtype)
    return w, b


def reference_forward(x, params):
    """Same math / precision policy (bf16 operands, f32 accumulate) in plain XLA."""
    (w1, b1), (w2, b2), (w3, b3) = params
    h1 = jnp.dot(x.astype(jnp.bfloat16), w1,
                 preferred_element_type=jnp.float32) + b1
    h1 = jnp.maximum(h1, 0.0)
    h2 = jnp.dot(h1.astype(jnp.bfloat16), w2,
                 preferred_element_type=jnp.float32) + b2
    h2 = jnp.maximum(h2, 0.0)
    return jnp.dot(h2.astype(jnp.bfloat16), w3,
                   preferred_element_type=jnp.float32) + b3


if __name__ == "__main__":
    key = jax.random.PRNGKey(0)
    kx, k1, k2, k3 = jax.random.split(key, 4)

    # Feature dim 4096 is fixed by the module.  Batch raised per perf review:
    # the kernel is weight-stream bound, so runtime is nearly flat in B.
    B = 128
    x = jax.random.normal(kx, (B, 4096), jnp.float32)

    params = (
        init_linear_params(k1, 4096, 1024),
        init_linear_params(k2, 1024, 256),
        init_linear_params(k3, 256, 2),
    )

    ref = reference_forward(x, params)

    # Default fused single-launch path (preferred on v5e/v6e: 1 TensorCore).
    out = jax.block_until_ready(binary_classifier_forward(x, params))
    assert out.shape == (B, 2) and out.dtype == jnp.float32
    assert jnp.allclose(out, ref, atol=1e-3, rtol=1e-3), (
        float(jnp.max(jnp.abs(out - ref))))

    # Two-core split path (select this on v7x: 2 TensorCores per chip).
    out_split = jax.block_until_ready(
        binary_classifier_forward(x, params, split_across_cores=True))
    assert out_split.shape == (B, 2) and out_split.dtype == jnp.float32
    assert jnp.allclose(out_split, ref, atol=1e-3, rtol=1e-3), (
        float(jnp.max(jnp.abs(out_split - ref))))

    print("KERNEL_OK")
</pallas_src>

<mosaic_0001>
module attributes {stable_mosaic.version = 11 : i64} {
  func.func @_fused_mlp_kernel(%arg0: i32, %arg1: memref<128x2048xf32, #tpu.memory_space<vmem>>, %arg2: memref<2048x1024xbf16, #tpu.memory_space<vmem>>, %arg3: memref<1x1024xf32, #tpu.memory_space<vmem>>, %arg4: memref<1024x256xbf16, #tpu.memory_space<vmem>>, %arg5: memref<1x256xf32, #tpu.memory_space<vmem>>, %arg6: memref<256x2xbf16, #tpu.memory_space<vmem>>, %arg7: memref<1x2xf32, #tpu.memory_space<vmem>>, %arg8: memref<128x2xf32, #tpu.memory_space<vmem>>, %arg9: memref<128x1024xf32, #tpu.memory_space<vmem>>) attributes {dimension_semantics = [#tpu.dimension_semantics<arbitrary>], iteration_bounds = array<i64: 2>, scalar_prefetch = 0 : i64, scratch_operands = 1 : i64, tpu.core_type = #tpu.core_type<tc>, window_params = [{transform_indices = @transform_0, window_bounds = array<i64: 128, 2048>}, {transform_indices = @transform_1, window_bounds = array<i64: 2048, 1024>}, {pipeline_mode = #tpu.pipeline_mode<synchronous>, transform_indices = @transform_2, window_bounds = array<i64: 1, 1024>}, {pipeline_mode = #tpu.pipeline_mode<synchronous>, transform_indices = @transform_3, window_bounds = array<i64: 1024, 256>}, {pipeline_mode = #tpu.pipeline_mode<synchronous>, transform_indices = @transform_4, window_bounds = array<i64: 1, 256>}, {pipeline_mode = #tpu.pipeline_mode<synchronous>, transform_indices = @transform_5, window_bounds = array<i64: 256, 2>}, {pipeline_mode = #tpu.pipeline_mode<synchronous>, transform_indices = @transform_6, window_bounds = array<i64: 1, 2>}, {pipeline_mode = #tpu.pipeline_mode<synchronous>, transform_indices = @transform_7, window_bounds = array<i64: 128, 2>}]} {
    %c0_i32 = arith.constant 0 : i32
    %0 = arith.cmpi eq, %arg0, %c0_i32 : i32
    %1 = arith.extui %0 : i1 to i32
    %c0_i32_0 = arith.constant 0 : i32
    %2 = arith.cmpi ne, %1, %c0_i32_0 : i32
    scf.if %2 {
      %cst_9 = arith.constant 0.000000e+00 : f32
      %13 = vector.broadcast %cst_9 : f32 to vector<128x1024xf32>
      %c0_10 = arith.constant 0 : index
      %c0_11 = arith.constant 0 : index
      %14 = vector.load %arg9[%c0_10, %c0_11] : memref<128x1024xf32, #tpu.memory_space<vmem>>, vector<128x1024xf32>
      tpu.vector_store %arg9[%c0_10, %c0_11], %13 {strides = array<i32>} : memref<128x1024xf32, #tpu.memory_space<vmem>>, vector<128x1024xf32>,
    } else {
    }
    %c0 = arith.constant 0 : index
    %c0_1 = arith.constant 0 : index
    %3 = vector.load %arg9[%c0, %c0_1] : memref<128x1024xf32, #tpu.memory_space<vmem>>, vector<128x1024xf32>
    %c0_2 = arith.constant 0 : index
    %c0_3 = arith.constant 0 : index
    %4 = vector.load %arg1[%c0_2, %c0_3] : memref<128x2048xf32, #tpu.memory_space<vmem>>, vector<128x2048xf32>
    %5 = arith.truncf %4 : vector<128x2048xf32> to vector<128x2048xbf16>
    %c0_4 = arith.constant 0 : index
    %c0_5 = arith.constant 0 : index
    %6 = vector.load %arg2[%c0_4, %c0_5] : memref<2048x1024xbf16, #tpu.memory_space<vmem>>, vector<2048x1024xbf16>
    %cst = arith.constant dense<0.000000e+00> : vector<128x1024xf32>
    %7 = tpu.matmul %5, %6, %cst {dimension_numbers = #tpu.dot_dimension_numbers<[1], [0], [0], [1], [0, 0, 1, 1], [], []>} : vector<128x2048xbf16>, vector<2048x1024xbf16>, vector<128x1024xf32> -> vector<128x1024xf32>
    %8 = arith.addf %3, %7 : vector<128x1024xf32>
    %c0_6 = arith.constant 0 : index
    %c0_7 = arith.constant 0 : index
    %9 = vector.load %arg9[%c0_6, %c0_7] : memref<128x1024xf32, #tpu.memory_space<vmem>>, vector<128x1024xf32>
    tpu.vector_store %arg9[%c0_6, %c0_7], %8 {strides = array<i32>} : memref<128x1024xf32, #tpu.memory_space<vmem>>, vector<128x1024xf32>,
    %c1_i32 = arith.constant 1 : i32
    %10 = arith.cmpi eq, %arg0, %c1_i32 : i32
    %11 = arith.extui %10 : i1 to i32
    %c0_i32_8 = arith.constant 0 : i32
    %12 = arith.cmpi ne, %11, %c0_i32_8 : i32
    scf.if %12 {
      %c0_9 = arith.constant 0 : index
      %c0_10 = arith.constant 0 : index
      %13 = vector.load %arg9[%c0_9, %c0_10] : memref<128x1024xf32, #tpu.memory_space<vmem>>, vector<128x1024xf32>
      %c0_11 = arith.constant 0 : index
      %c0_12 = arith.constant 0 : index
      %14 = vector.load %arg3[%c0_11, %c0_12] : memref<1x1024xf32, #tpu.memory_space<vmem>>, vector<1x1024xf32>
      %15 = vector.broadcast %14 : vector<1x1024xf32> to vector<128x1024xf32>
      %16 = arith.addf %13, %15 : vector<128x1024xf32>
      %cst_13 = arith.constant 0.000000e+00 : f32
      %17 = vector.broadcast %cst_13 : f32 to vector<128x1024xf32>
      %18 = arith.maximumf %16, %17 : vector<128x1024xf32>
      %19 = arith.truncf %18 : vector<128x1024xf32> to vector<128x1024xbf16>
      %c0_14 = arith.constant 0 : index
      %c0_15 = arith.constant 0 : index
      %20 = vector.load %arg4[%c0_14, %c0_15] : memref<1024x256xbf16, #tpu.memory_space<vmem>>, vector<1024x256xbf16>
      %cst_16 = arith.constant dense<0.000000e+00> : vector<128x256xf32>
      %21 = tpu.matmul %19, %20, %cst_16 {dimension_numbers = #tpu.dot_dimension_numbers<[1], [0], [0], [1], [0, 0, 1, 1], [], []>} : vector<128x1024xbf16>, vector<1024x256xbf16>, vector<128x256xf32> -> vector<128x256xf32>
      %c0_17 = arith.constant 0 : index
      %c0_18 = arith.constant 0 : index
      %22 = vector.load %arg5[%c0_17, %c0_18] : memref<1x256xf32, #tpu.memory_space<vmem>>, vector<1x256xf32>
      %23 = vector.broadcast %22 : vector<1x256xf32> to vector<128x256xf32>
      %24 = arith.addf %21, %23 : vector<128x256xf32>
      %cst_19 = arith.constant 0.000000e+00 : f32
      %25 = vector.broadcast %cst_19 : f32 to vector<128x256xf32>
      %26 = arith.maximumf %24, %25 : vector<128x256xf32>
      %27 = arith.truncf %26 : vector<128x256xf32> to vector<128x256xbf16>
      %c0_20 = arith.constant 0 : index
      %c0_21 = arith.constant 0 : index
      %28 = vector.load %arg6[%c0_20, %c0_21] : memref<256x2xbf16, #tpu.memory_space<vmem>>, vector<256x2xbf16>
      %cst_22 = arith.constant dense<0.000000e+00> : vector<128x2xf32>
      %29 = tpu.matmul %27, %28, %cst_22 {dimension_numbers = #tpu.dot_dimension_numbers<[1], [0], [0], [1], [0, 0, 1, 1], [], []>} : vector<128x256xbf16>, vector<256x2xbf16>, vector<128x2xf32> -> vector<128x2xf32>
      %c0_23 = arith.constant 0 : index
      %c0_24 = arith.constant 0 : index
      %30 = vector.load %arg7[%c0_23, %c0_24] : memref<1x2xf32, #tpu.memory_space<vmem>>, vector<1x2xf32>
      %31 = vector.broadcast %30 : vector<1x2xf32> to vector<128x2xf32>
      %32 = arith.addf %29, %31 : vector<128x2xf32>
      %c0_25 = arith.constant 0 : index
      %c0_26 = arith.constant 0 : index
      %33 = vector.load %arg8[%c0_25, %c0_26] : memref<128x2xf32, #tpu.memory_space<vmem>>, vector<128x2xf32>
      tpu.vector_store %arg8[%c0_25, %c0_26], %32 {strides = array<i32>} : memref<128x2xf32, #tpu.memory_space<vmem>>, vector<128x2xf32>,
    } else {
    }
    return
  }
  func.func @transform_0(%arg0: i32) -> (i32, i32) {
    %c0_i32 = arith.constant 0 : i32
    %c0_i32_0 = arith.constant 0 : i32
    return %c0_i32, %arg0 : i32, i32
  }
  func.func @transform_1(%arg0: i32) -> (i32, i32) {
    %c0_i32 = arith.constant 0 : i32
    %c0_i32_0 = arith.constant 0 : i32
    return %arg0, %c0_i32 : i32, i32
  }
  func.func @transform_2(%arg0: i32) -> (i32, i32) {
    %c0_i32 = arith.constant 0 : i32
    %c0_i32_0 = arith.constant 0 : i32
    %c0_i32_1 = arith.constant 0 : i32
    return %c0_i32, %c0_i32_0 : i32, i32
  }
  func.func @transform_3(%arg0: i32) -> (i32, i32) {
    %c0_i32 = arith.constant 0 : i32
    %c0_i32_0 = arith.constant 0 : i32
    %c0_i32_1 = arith.constant 0 : i32
    return %c0_i32, %c0_i32_0 : i32, i32
  }
  func.func @transform_4(%arg0: i32) -> (i32, i32) {
    %c0_i32 = arith.constant 0 : i32
    %c0_i32_0 = arith.constant 0 : i32
    %c0_i32_1 = arith.constant 0 : i32
    return %c0_i32, %c0_i32_0 : i32, i32
  }
  func.func @transform_5(%arg0: i32) -> (i32, i32) {
    %c0_i32 = arith.constant 0 : i32
    %c0_i32_0 = arith.constant 0 : i32
    %c0_i32_1 = arith.constant 0 : i32
    return %c0_i32, %c0_i32_0 : i32, i32
  }
  func.func @transform_6(%arg0: i32) -> (i32, i32) {
    %c0_i32 = arith.constant 0 : i32
    %c0_i32_0 = arith.constant 0 : i32
    %c0_i32_1 = arith.constant 0 : i32
    return %c0_i32, %c0_i32_0 : i32, i32
  }
  func.func @transform_7(%arg0: i32) -> (i32, i32) {
    %c0_i32 = arith.constant 0 : i32
    %c0_i32_0 = arith.constant 0 : i32
    %c0_i32_1 = arith.constant 0 : i32
    return %c0_i32, %c0_i32_0 : i32, i32
  }
}

</mosaic_0001>

<bundles_post_ra>
// kernel: tpu_custom_call.1
= control target key start
LH: loop header
LB: loop body
LE: loop exit
PB: predicated region body
PF: predicated region fallthrough
CT: control target
= control target key end

     0   :  { %s19316_s0 = inlined_call_operand.hbm [shape: f32[128,4096], index: 0, kind: input, shape index: {}]   ;;  %s19317_s1 = inlined_call_operand.hbm [shape: bf16[4096,1024], index: 1, kind: input, shape index: {}]   ;;  %s19318_s2 = inlined_call_operand.hbm [shape: f32[1,1024], index: 2, kind: input, shape index: {}]   ;;  %s19319_s3 = inlined_call_operand.hbm [shape: bf16[1024,256], index: 3, kind: input, shape index: {}]   ;;  %s19320_s4 = inlined_call_operand.hbm [shape: f32[1,256], index: 4, kind: input, shape index: {}]   ;;  %s19321_s5 = inlined_call_operand.vmem [shape: bf16[256,2], index: 5, kind: input, shape index: {}]   ;;  %s19322_s6 = inlined_call_operand.hbm [shape: f32[1,2], index: 6, kind: input, shape index: {}]   ;;  %s19323_s7 = inlined_call_operand.vmem [shape: f32[128,2], index: 7, kind: output, shape index: {}]  }
   0x1   :  { %19497 = sst [smem:[#allocation103_spill]] %s19316_s0 }
   0x2   :  { %19498 = sst [smem:[#allocation104_spill]] %s19318_s2 }
   0x3   :  { %19499 = sst [smem:[#allocation105_spill]] %s19319_s3 }
   0x4   :  { %12 = vsyncpa [#allocation4], 0 }
   0x5   :  { %14 = vsyncpa [#allocation4 + $0x1], 0 }
   0x6   :  { %15 = vsyncpa [#allocation6], 0 }
   0x7   :  { %17 = vsyncpa [#allocation6 + $0x1], 0 }
   0x8   :  { %18 = vsyncpa [#allocation9], 0 }
   0x9   :  { %19 = vsyncpa [#allocation12], 0  ;;  %s16057_s24 = smov 0   ;;  %s16059_s25 = smov 0  }
   0xa   :  { %s16061_s26 = smov 0   ;;  %s16063_s27 = smov 0  }
   0xb LB: > { %s16076_s28 = sadd.s32 4294967295, %s16002_s27   ;;  %p45_p0 = scmp.ne.s32.totalorder %s15994_s25, %s15990_s24  ;;  %s16002_s27 = sphi %s16063_s27, %s19691_s27   ;;  %s15998_s26 = sphi %s16061_s26, %s19690_s26   ;;  %s15994_s25 = sphi %s16059_s25, %s19689_s25   ;;  %s15990_s24 = sphi %s16057_s24, %s19688_s24  }
   0xc   : > { %p19324_p1 = scmp.eq.s32.totalorder %s16076_s28, 0  ;;  %p13164_p2 = scmp.ge.s32.totalorder %s16002_s27, 1 }
   0xd   : > { %p208_p3 = scmp.lt.s32.totalorder %s16002_s27, 3  ;;  %s16004_s8 = smov [#allocation7]  }
   0xe   : > { %p16085_p5 = por %p19324_p1, %p45_p0  ;;  %s221_s9 = sshll.u32 %s16004_s8, 4  ;;  %s222_s9 = int_to_ptr.vmem [resolvable:$true] %s221_s9 }
   0xf   : > { %p16089_p6 = pnand %p13164_p2, %p208_p3  ;;  %s16005_s10 = smov [#allocation8]  }
  0x10   : > { %s19500_s29 = scalar_select %p16085_p5, 1, 0 }
  0x11   : > { %s19501_s30 = scalar_select %p16089_p6, 1, 0 }
  0x12   : > { %p15500_p7 = pneg %p16089_p6  ;;  %s231_s11 = sshll.u32 %s16005_s10, 4  ;;  %s16101_s11 = int_to_ptr.vmem [resolvable:$true] %s231_s11 }
  0x13   : > { %s16006_s13 = smov [#allocation10]   ;;  %s19503_s2 = sld [smem:[#allocation104_spill]] }
  0x14   : > { %p16097_p8 = pnand %p15500_p7, %p19324_p1  ;;  %s16103_s14 = sshll.u32 %s16006_s13, 4  ;;  %s246_s14 = int_to_ptr.vmem [resolvable:$true] %s16103_s14 }
  0x16   : > { %p16113_p10 = pneg %p16097_p8 }
  0x19   : > { %s15780_s17 = scalar_lea.hbm %s19503_s2, 128 }
  0x1a   : > { %p15781_p9 = scmp.ne.s32.totalorder %s19503_s2, %s15780_s17  ;;  %p15787_p13 = scmp.lt.u32.totalorder %s15780_s17, %s19503_s2 }
  0x1c   : > { %p15783_p11 = pnand %p16113_p10, %p15781_p9 }
  0x1e   : > { %p15784_p12 = pneg %p15783_p11 }
  0x20   : > { %p15789_p0 = pnand %p15787_p13, %p15784_p12 }
  0x22   : > { %15792 = shalt.err (!%p15789_p0)
}
  0x23   : > { %s15793_s23 = scalar_lea.vmem %s222_s9, 128  ;;  %p15801_p4 = scmp.lt.s32.totalorder %s222_s9, %s222_s9 }
  0x24   : > { %p15794_p2 = scmp.ne.s32.totalorder %s222_s9, %s15793_s23  ;;  %p15802_p1 = scmp.lt.s32.totalorder %s15793_s23, %s15793_s23 }
  0x26   : > { %p15796_p3 = pnand %p15794_p2, %p16113_p10  ;;  %p15803_p5 = por %p15802_p1, %p15801_p4 }
  0x28   : > { %p15797_p7 = pneg %p15796_p3 }
  0x2a   : > { %p15804_p6 = pnand %p15803_p5, %p15797_p7 }
  0x2c   : > { %15807 = shalt.err (!%p15804_p6)
}
  0x2d   : > { %15503 = dma.hbm_to_vmem [thread:$0]  (!%p16097_p8), %s19503_s2, 128, %s222_s9, [#allocation6]  }
  0x2e   : > { %s19505_s3 = sld [smem:[#allocation105_spill]] }
  0x34   : > { %s15808_s15 = scalar_lea.hbm %s19505_s3, 16384 }
  0x35   : > { %p15809_p9 = scmp.ne.s32.totalorder %s19505_s3, %s15808_s15  ;;  %p15815_p4 = scmp.lt.u32.totalorder %s15808_s15, %s19505_s3 }
  0x37   : > { %p15811_p11 = pnand %p15809_p9, %p16113_p10 }
  0x39   : > { %p15812_p1 = pneg %p15811_p11 }
  0x3b   : > { %p15817_p5 = pnand %p15815_p4, %p15812_p1 }
  0x3d   : > { %15820 = shalt.err (!%p15817_p5)
}
  0x3e   : > { %s15821_s9 = scalar_lea.vmem %s16101_s11, 16384  ;;  %p15829_p0 = scmp.lt.s32.totalorder %s16101_s11, %s16101_s11 }
  0x3f   : > { %p15822_p6 = scmp.ne.s32.totalorder %s16101_s11, %s15821_s9  ;;  %p15830_p2 = scmp.lt.s32.totalorder %s15821_s9, %s15821_s9 }
  0x41   : > { %p15824_p12 = pnand %p15822_p6, %p16113_p10  ;;  %p15831_p3 = por %p15830_p2, %p15829_p0 }
  0x43   : > { %p15825_p13 = pneg %p15824_p12 }
  0x45   : > { %p15832_p7 = pnand %p15831_p3, %p15825_p13 }
  0x47   : > { %15835 = shalt.err (!%p15832_p7)
}
  0x48   : > { %s16007_s21 = smov 128   ;;  %s16008_s22 = smov 8  }
  0x49   : > { %15506 = dma.hbm_to_vmem [thread:$0]  (!%p16097_p8), %s19505_s3, 16384, %s16101_s11, [#allocation9], %s16007_s21, %s16007_s21, %s16008_s22  }
  0x4a   : > { %s15836_s13 = scalar_lea.hbm %s19320_s4, 32 }
  0x4b   : > { %p15837_p9 = scmp.ne.s32.totalorder %s19320_s4, %s15836_s13  ;;  %p15843_p4 = scmp.lt.u32.totalorder %s15836_s13, %s19320_s4 }
  0x4d   : > { %p15839_p11 = pnand %p15837_p9, %p16113_p10 }
  0x4f   : > { %p15840_p1 = pneg %p15839_p11 }
  0x51   : > { %p15845_p5 = pnand %p15843_p4, %p15840_p1 }
  0x53   : > { %15848 = shalt.err (!%p15845_p5)
}
  0x54   : > { %s15849_s19 = scalar_lea.vmem %s246_s14, 32  ;;  %p15857_p0 = scmp.lt.s32.totalorder %s246_s14, %s246_s14 }
  0x55   : > { %p15850_p6 = scmp.ne.s32.totalorder %s246_s14, %s15849_s19  ;;  %p15858_p2 = scmp.lt.s32.totalorder %s15849_s19, %s15849_s19 }
  0x57   : > { %p15852_p12 = pnand %p15850_p6, %p16113_p10  ;;  %p15859_p3 = por %p15858_p2, %p15857_p0 }
  0x59   : > { %p15853_p13 = pneg %p15852_p12 }
  0x5b   : > { %p15860_p7 = pnand %p15859_p3, %p15853_p13 }
  0x5d   : > { %15863 = shalt.err (!%p15860_p7)
}
  0x5e   : > { %15509 = dma.hbm_to_vmem [thread:$0]  (!%p16097_p8), %s19320_s4, 32, %s246_s14, [#allocation9]  }
  0x5f   : > { %s16009_s22 = smov [#allocation11]   ;;  %s15864_s10 = scalar_lea.hbm %s19322_s6, 16 }
  0x60   : > { %s259_s23 = sshll.u32 %s16009_s22, 4  ;;  %p15865_p9 = scmp.ne.s32.totalorder %s19322_s6, %s15864_s10  ;;  %s260_s23 = int_to_ptr.vmem [resolvable:$true] %s259_s23 }
  0x61   : > { %p15871_p4 = scmp.lt.u32.totalorder %s15864_s10, %s19322_s6 }
  0x62   : > { %p15867_p11 = pnand %p15865_p9, %p16113_p10 }
  0x64   : > { %p15868_p1 = pneg %p15867_p11 }
  0x66   : > { %p15873_p5 = pnand %p15871_p4, %p15868_p1 }
  0x68   : > { %15876 = shalt.err (!%p15873_p5)
}
  0x69   : > { %s15877_s14 = scalar_lea.vmem %s260_s23, 16  ;;  %s15884_s18 = scalar_lea.vmem %s260_s23, 32 }
  0x6a   : > { %p15878_p6 = scmp.ne.s32.totalorder %s260_s23, %s15877_s14  ;;  %p15885_p0 = scmp.lt.s32.totalorder %s260_s23, %s260_s23 }
  0x6b   : > { %p15886_p2 = scmp.lt.s32.totalorder %s15884_s18, %s15877_s14 }
  0x6c   : > { %p15880_p12 = pnand %p15878_p6, %p16113_p10 }
  0x6d   : > { %p15887_p3 = por %p15886_p2, %p15885_p0 }
  0x6e   : > { %p15881_p13 = pneg %p15880_p12 }
  0x70   : > { %p15888_p7 = pnand %p15887_p3, %p15881_p13 }
  0x72   : > { %15891 = shalt.err (!%p15888_p7)
}
  0x73   : > { %15512 = dma.hbm_to_vmem [thread:$0]  (!%p16097_p8), %s19322_s6, 16, %s260_s23, [#allocation12]  }
  0x74   : > { %s16192_s20 = sadd.s32 1, %s16002_s27   ;;  %s32_s9 = sadd.s32 1, %s15998_s26 }
  0x75   : > { %s29_s22 = ssub.s32 %s16002_s27, %s16192_s20  ;;  %p39_p10 = scmp.ne.s32.totalorder %s15998_s26, %s15994_s25 }
  0x76   : > { %p30_p9 = scmp.eq.s32.totalorder %s29_s22, 0  ;;  %p40_p11 = scmp.eq.s32.totalorder %s16002_s27, 0 }
  0x77   : > { %p15524_p1 = scmp.lt.s32.totalorder %s16002_s27, 2  ;;  %s16202_s12 = sand.u32 1, %s15998_s26  }
  0x78   : > { %s16205_s24 = scalar_select %p30_p9, %s15998_s26, %s32_s9  }
  0x79   : > { %p41_p4 = por %p40_p11, %p39_p10  ;;  %s13170_s8 = sshll.u32 %s16202_s12, 11 }
  0x7a   : > { %s14357_s10 = sshll.u32 %s16002_s27, 11  ;;  %s19506_s0 = sld [smem:[#allocation103_spill]] }
  0x7b   : > { %s274_s16 = scalar_lea.vmem [#allocation3], %s13170_s8  ;;  %p16214_p8 = pnand %p15524_p1, %p41_p4 }
  0x7c   : > { %s281_s17 = sshll.u32 %s274_s16, 4  ;;  %s271_s18 = scalar_lea.sflag [#allocation4], %s16202_s12  ;;  %s16218_s17 = int_to_ptr.vmem [resolvable:$true] %s281_s17 }
  0x7d   : > { %p15894_p6 = pneg %p16214_p8 }
  0x80   : > { %s16212_s15 = scalar_lea.hbm %s19506_s0, %s14357_s10  ;;  %s15897_s22 = scalar_lea.hbm %s19506_s0, 65536 }
  0x81   : > { %s15892_s19 = scalar_lea.hbm %s16212_s15, 32768  ;;  %p15898_p0 = scmp.lt.u32.totalorder %s16212_s15, %s19506_s0 }
  0x82   : > { %p15893_p5 = scmp.ne.s32.totalorder %s16212_s15, %s15892_s19  ;;  %p15899_p2 = scmp.lt.u32.totalorder %s15897_s22, %s15892_s19 }
  0x83   : > { %p15901_p7 = scmp.lt.u32.totalorder %s15892_s19, %s16212_s15 }
  0x84   : > { %p15895_p12 = pnand %p15894_p6, %p15893_p5  ;;  %p15900_p3 = por %p15899_p2, %p15898_p0 }
  0x86   : > { %p15896_p13 = pneg %p15895_p12  ;;  %p15902_p10 = por %p15901_p7, %p15900_p3 }
  0x88   : > { %p15903_p9 = pnand %p15902_p10, %p15896_p13 }
  0x8a   : > { %15906 = shalt.err (!%p15903_p9)
}
  0x8b   : > { %s15907_s13 = scalar_lea.vmem %s16218_s17, 32768  ;;  %s16010_s23 = smov [#allocation3]  }
  0x8c   : > { %p15908_p11 = scmp.ne.s32.totalorder %s16218_s17, %s15907_s13  ;;  %s15912_s16 = sshll.u32 %s16010_s23, 4  ;;  %s15913_s16 = int_to_ptr.vmem [resolvable:$false] %s15912_s16 }
  0x8d   : > { %s15914_s11 = scalar_lea.vmem %s15913_s16, 65536  ;;  %p15915_p5 = scmp.lt.s32.totalorder %s16218_s17, %s15913_s16 }
  0x8e   : > { %p15910_p1 = pnand %p15908_p11, %p15894_p6  ;;  %p15916_p12 = scmp.lt.s32.totalorder %s15914_s11, %s15907_s13 }
  0x90   : > { %p15911_p4 = pneg %p15910_p1  ;;  %p15917_p0 = por %p15916_p12, %p15915_p5 }
  0x92   : > { %p15918_p2 = pnand %p15917_p0, %p15911_p4 }
  0x94   : > { %15921 = shalt.err (!%p15918_p2)
}
  0x95   : > { %s16011_s19 = smov 4096   ;;  %s16012_s9 = smov 2048  }
  0x96   : > { %15516 = dma.hbm_to_vmem [thread:$0]  (!%p16214_p8), %s16212_s15, 32768, %s16218_s17, %s271_s18, %s16011_s19, %s16012_s9, %s16007_s21  }
  0x97   : > { %s291_s22 = sand.u32 1, %s16002_s27   ;;  %s13173_s8 = sshll.u32 %s16202_s12, 13 }
  0x98   : > { %s14359_s10 = sshll.u32 %s16002_s27, 17  ;;  %s295_s13 = scalar_lea.vmem [#allocation5], %s13173_s8 }
  0x99   : > { %s303_s23 = sshll.u32 %s295_s13, 4  ;;  %s16255_s0 = scalar_lea.hbm %s19317_s1, %s14359_s10  ;;  %s16257_s23 = int_to_ptr.vmem [resolvable:$true] %s303_s23 }
  0x9a   : > { %s16259_s2 = scalar_lea.sflag [#allocation6], %s291_s22  ;;  %s15922_s3 = scalar_lea.hbm %s16255_s0, 131072 }
  0x9b   : > { %p15923_p13 = scmp.ne.s32.totalorder %s16255_s0, %s15922_s3  ;;  %s15927_s12 = scalar_lea.hbm %s19317_s1, 262144 }
  0x9c   : > { %p15928_p10 = scmp.lt.u32.totalorder %s16255_s0, %s19317_s1  ;;  %p15929_p9 = scmp.lt.u32.totalorder %s15927_s12, %s15922_s3 }
  0x9d   : > { %p15925_p3 = pnand %p15923_p13, %p15894_p6  ;;  %p15931_p1 = scmp.lt.u32.totalorder %s15922_s3, %s16255_s0 }
  0x9e   : > { %p15930_p11 = por %p15929_p9, %p15928_p10 }
  0x9f   : > { %p15926_p7 = pneg %p15925_p3 }
  0xa0   : > { %p15932_p4 = por %p15931_p1, %p15930_p11 }
  0xa2   : > { %p15933_p5 = pnand %p15932_p4, %p15926_p7 }
  0xa4   : > { %15936 = shalt.err (!%p15933_p5)
}
  0xa5   : > { %s15937_s18 = scalar_lea.vmem %s16257_s23, 131072  ;;  %s16013_s19 = smov [#allocation5]  }
  0xa6   : > { %p15938_p12 = scmp.ne.s32.totalorder %s16257_s23, %s15937_s18  ;;  %s15942_s9 = sshll.u32 %s16013_s19, 4  ;;  %s15943_s9 = int_to_ptr.vmem [resolvable:$false] %s15942_s9 }
  0xa7   : > { %s15944_s22 = scalar_lea.vmem %s15943_s9, 262144  ;;  %p15945_p13 = scmp.lt.s32.totalorder %s16257_s23, %s15943_s9 }
  0xa8   : > { %p15940_p0 = pnand %p15938_p12, %p15894_p6  ;;  %p15946_p3 = scmp.lt.s32.totalorder %s15944_s22, %s15937_s18 }
  0xaa   : > { %p15941_p2 = pneg %p15940_p0  ;;  %p15947_p10 = por %p15946_p3, %p15945_p13 }
  0xac   : > { %p15948_p9 = pnand %p15947_p10, %p15941_p2 }
  0xae   : > { %15951 = shalt.err (!%p15948_p9)
}
  0xaf   : > { %s16014_s3 = smov 512   ;;  %s16015_s8 = smov 32  }
  0xb0   : > { %15519 = dma.hbm_to_vmem [thread:$0]  (!%p16214_p8), %s16255_s0, 131072, %s16257_s23, %s16259_s2, %s16014_s3, %s16014_s3, %s16015_s8  }
  0xb1   : > { %p19508_p6 = scmp.ne.s32.totalorder %s19501_s30, 0 }
  0xb3   : > { %315 = sbr.rel (%p19508_p6) target bundleno = 2240 (0x8c0), region = 48 }
  0xba   : > { %s317_s10 = sand.u32 1, %s15994_s25   ;;  %p19509_p7 = scmp.ne.s32.totalorder %s19500_s29, 0 }
  0xbb   : > { %s13178_s13 = sshll.u32 %s317_s10, 11  ;;  %s318_s16 = scalar_lea.sflag [#allocation4], %s317_s10 }
  0xbc   : > { %s16288_s11 = scalar_lea.vmem [#allocation3], %s13178_s13 }
  0xbd   : > { %15969 = dma.done.wait (%p19509_p7), %s318_s16, 32768  }
  0xbe   : > { %15971 = vsyncadd (%p19509_p7), %s318_s16, 4294934528  ;;  %s326_s27 = sand.u32 1, %s16076_s28   ;;  %s13179_s14 = sshll.u32 %s317_s10, 13 }
  0xbf   : > { %s327_s0 = scalar_lea.sflag [#allocation6], %s326_s27  ;;  %s16295_s2 = scalar_lea.vmem [#allocation5], %s13179_s14 }
  0xc0   : > { %15973 = dma.done.wait (%p19509_p7), %s327_s0, 131072  }
  0xc1   : > { %15975 = vsyncadd (%p19509_p7), %s327_s0, 4294836224  ;;  %p19510_p8 = scmp.eq.s32.totalorder %s16076_s28, 0 }
  0xc3   : > { %15977 = dma.done.wait (%p19510_p8), [#allocation6], 128   ;;  %p19511_p11 = pmov %p19510_p8 }
  0xc4   : > { %p19512_p1 = pmov %p19510_p8 }
  0xc5   : > { %15979 = vsyncadd (%p19511_p11), [#allocation6], 4294967168 }
  0xc6   : > { %15981 = dma.done.wait (%p19512_p1), [#allocation9], 16416   ;;  %p19513_p4 = pmov %p19512_p1 }
  0xc7   : > { %p19514_p5 = pmov %p19512_p1 }
  0xc8   : > { %15983 = vsyncadd (%p19513_p4), [#allocation9], 4294950880 }
  0xc9   : > { %15985 = dma.done.wait (%p19514_p5), [#allocation12], 16   ;;  %p19515_p12 = pmov %p19512_p1 }
  0xca   : > { %p19516_p0 = scmp.ne.s32.totalorder %s16076_s28, 0 }
  0xcb   : > { %15987 = vsyncadd (%p19515_p12), [#allocation12], 4294967280  ;;  %v16016_v0 = vmov (!%p19516_p0), 0.0  }
  0xcc   : > { %383 = sbr.rel (%p19516_p0) target bundleno = 268 (0x10c), region = 76  ;;  %384 = vst [vmem:[#allocation2] sm:$0xff] (!%p19516_p0), %v16016_v0  ;;  %385 = vst [vmem:[#allocation2 + $0x8] sm:$0xff] (!%p19516_p0), %v16016_v0 }
  0xcd   : > { %386 = vst [vmem:[#allocation2 + $0x10] sm:$0xff] (!%p19516_p0), %v16016_v0  ;;  %387 = vst [vmem:[#allocation2 + $0x18] sm:$0xff] (!%p19516_p0), %v16016_v0 }
  0xce   : > { %388 = vst [vmem:[#allocation2 + $0x20] sm:$0xff] (!%p19516_p0), %v16016_v0  ;;  %389 = vst [vmem:[#allocation2 + $0x28] sm:$0xff] (!%p19516_p0), %v16016_v0 }
  0xcf   : > { %390 = vst [vmem:[#allocation2 + $0x30] sm:$0xff] (!%p19516_p0), %v16016_v0  ;;  %391 = vst [vmem:[#allocation2 + $0x38] sm:$0xff] (!%p19516_p0), %v16016_v0 }
  0xd0   : > { %392 = vst [vmem:[#allocation2 + $0x40] sm:$0xff] (!%p19516_p0), %v16016_v0  ;;  %393 = vst [vmem:[#allocation2 + $0x48] sm:$0xff] (!%p19516_p0), %v16016_v0 }
  0xd1   : > { %394 = vst [vmem:[#allocation2 + $0x50] sm:$0xff] (!%p19516_p0), %v16016_v0  ;;  %395 = vst [vmem:[#allocation2 + $0x58] sm:$0xff] (!%p19516_p0), %v16016_v0 }
  0xd2   : > { %396 = vst [vmem:[#allocation2 + $0x60] sm:$0xff] (!%p19516_p0), %v16016_v0  ;;  %397 = vst [vmem:[#allocation2 + $0x68] sm:$0xff] (!%p19516_p0), %v16016_v0 }
  0xd3   : > { %398 = vst [vmem:[#allocation2 + $0x70] sm:$0xff] %v16016_v0  ;;  %399 = vst [vmem:[#allocation2 + $0x78] sm:$0xff] %v16016_v0 }
  0xd4   : > { %400 = vst [vmem:[#allocation2 + $0x80] sm:$0xff] %v16016_v0  ;;  %401 = vst [vmem:[#allocation2 + $0x88] sm:$0xff] %v16016_v0 }
  0xd5   : > { %402 = vst [vmem:[#allocation2 + $0x90] sm:$0xff] %v16016_v0  ;;  %403 = vst [vmem:[#allocation2 + $0x98] sm:$0xff] %v16016_v0 }
  0xd6   : > { %404 = vst [vmem:[#allocation2 + $0xa0] sm:$0xff] %v16016_v0  ;;  %405 = vst [vmem:[#allocation2 + $0xa8] sm:$0xff] %v16016_v0 }
  0xd7   : > { %406 = vst [vmem:[#allocation2 + $0xb0] sm:$0xff] %v16016_v0  ;;  %407 = vst [vmem:[#allocation2 + $0xb8] sm:$0xff] %v16016_v0 }
  0xd8   : > { %408 = vst [vmem:[#allocation2 + $0xc0] sm:$0xff] %v16016_v0  ;;  %409 = vst [vmem:[#allocation2 + $0xc8] sm:$0xff] %v16016_v0 }
  0xd9   : > { %410 = vst [vmem:[#allocation2 + $0xd0] sm:$0xff] %v16016_v0  ;;  %411 = vst [vmem:[#allocation2 + $0xd8] sm:$0xff] %v16016_v0 }
  0xda   : > { %412 = vst [vmem:[#allocation2 + $0xe0] sm:$0xff] %v16016_v0  ;;  %413 = vst [vmem:[#allocation2 + $0xe8] sm:$0xff] %v16016_v0 }
  0xdb   : > { %414 = vst [vmem:[#allocation2 + $0xf0] sm:$0xff] %v16016_v0  ;;  %415 = vst [vmem:[#allocation2 + $0xf8] sm:$0xff] %v16016_v0 }
  0xdc   : > { %416 = vst [vmem:[#allocation2 + $0x100] sm:$0xff] %v16016_v0  ;;  %417 = vst [vmem:[#allocation2 + $0x108] sm:$0xff] %v16016_v0 }
  0xdd   : > { %418 = vst [vmem:[#allocation2 + $0x110] sm:$0xff] %v16016_v0  ;;  %419 = vst [vmem:[#allocation2 + $0x118] sm:$0xff] %v16016_v0 }
  0xde   : > { %420 = vst [vmem:[#allocation2 + $0x120] sm:$0xff] %v16016_v0  ;;  %421 = vst [vmem:[#allocation2 + $0x128] sm:$0xff] %v16016_v0 }
  0xdf   : > { %422 = vst [vmem:[#allocation2 + $0x130] sm:$0xff] %v16016_v0  ;;  %423 = vst [vmem:[#allocation2 + $0x138] sm:$0xff] %v16016_v0 }
  0xe0   : > { %424 = vst [vmem:[#allocation2 + $0x140] sm:$0xff] %v16016_v0  ;;  %425 = vst [vmem:[#allocation2 + $0x148] sm:$0xff] %v16016_v0 }
  0xe1   : > { %426 = vst [vmem:[#allocation2 + $0x150] sm:$0xff] %v16016_v0  ;;  %427 = vst [vmem:[#allocation2 + $0x158] sm:$0xff] %v16016_v0 }
  0xe2   : > { %428 = vst [vmem:[#allocation2 + $0x160] sm:$0xff] %v16016_v0  ;;  %429 = vst [vmem:[#allocation2 + $0x168] sm:$0xff] %v16016_v0 }
  0xe3   : > { %430 = vst [vmem:[#allocation2 + $0x170] sm:$0xff] %v16016_v0  ;;  %431 = vst [vmem:[#allocation2 + $0x178] sm:$0xff] %v16016_v0 }
  0xe4   : > { %432 = vst [vmem:[#allocation2 + $0x180] sm:$0xff] %v16016_v0  ;;  %433 = vst [vmem:[#allocation2 + $0x188] sm:$0xff] %v16016_v0 }
  0xe5   : > { %434 = vst [vmem:[#allocation2 + $0x190] sm:$0xff] %v16016_v0  ;;  %435 = vst [vmem:[#allocation2 + $0x198] sm:$0xff] %v16016_v0 }
  0xe6   : > { %436 = vst [vmem:[#allocation2 + $0x1a0] sm:$0xff] %v16016_v0  ;;  %437 = vst [vmem:[#allocation2 + $0x1a8] sm:$0xff] %v16016_v0 }
  0xe7   : > { %438 = vst [vmem:[#allocation2 + $0x1b0] sm:$0xff] %v16016_v0  ;;  %439 = vst [vmem:[#allocation2 + $0x1b8] sm:$0xff] %v16016_v0 }
  0xe8   : > { %440 = vst [vmem:[#allocation2 + $0x1c0] sm:$0xff] %v16016_v0  ;;  %441 = vst [vmem:[#allocation2 + $0x1c8] sm:$0xff] %v16016_v0 }
  0xe9   : > { %442 = vst [vmem:[#allocation2 + $0x1d0] sm:$0xff] %v16016_v0  ;;  %443 = vst [vmem:[#allocation2 + $0x1d8] sm:$0xff] %v16016_v0 }
  0xea   : > { %444 = vst [vmem:[#allocation2 + $0x1e0] sm:$0xff] %v16016_v0  ;;  %445 = vst [vmem:[#allocation2 + $0x1e8] sm:$0xff] %v16016_v0 }
  0xeb   : > { %446 = vst [vmem:[#allocation2 + $0x1f0] sm:$0xff] %v16016_v0  ;;  %447 = vst [vmem:[#allocation2 + $0x1f8] sm:$0xff] %v16016_v0 }
  0xec   : > { %448 = vst [vmem:[#allocation2 + $0x200] sm:$0xff] %v16016_v0  ;;  %449 = vst [vmem:[#allocation2 + $0x208] sm:$0xff] %v16016_v0 }
  0xed   : > { %450 = vst [vmem:[#allocation2 + $0x210] sm:$0xff] %v16016_v0  ;;  %451 = vst [vmem:[#allocation2 + $0x218] sm:$0xff] %v16016_v0 }
  0xee   : > { %452 = vst [vmem:[#allocation2 + $0x220] sm:$0xff] %v16016_v0  ;;  %453 = vst [vmem:[#allocation2 + $0x228] sm:$0xff] %v16016_v0 }
  0xef   : > { %454 = vst [vmem:[#allocation2 + $0x230] sm:$0xff] %v16016_v0  ;;  %455 = vst [vmem:[#allocation2 + $0x238] sm:$0xff] %v16016_v0 }
  0xf0   : > { %456 = vst [vmem:[#allocation2 + $0x240] sm:$0xff] %v16016_v0  ;;  %457 = vst [vmem:[#allocation2 + $0x248] sm:$0xff] %v16016_v0 }
  0xf1   : > { %458 = vst [vmem:[#allocation2 + $0x250] sm:$0xff] %v16016_v0  ;;  %459 = vst [vmem:[#allocation2 + $0x258] sm:$0xff] %v16016_v0 }
  0xf2   : > { %460 = vst [vmem:[#allocation2 + $0x260] sm:$0xff] %v16016_v0  ;;  %461 = vst [vmem:[#allocation2 + $0x268] sm:$0xff] %v16016_v0 }
  0xf3   : > { %462 = vst [vmem:[#allocation2 + $0x270] sm:$0xff] %v16016_v0  ;;  %463 = vst [vmem:[#allocation2 + $0x278] sm:$0xff] %v16016_v0 }
  0xf4   : > { %464 = vst [vmem:[#allocation2 + $0x280] sm:$0xff] %v16016_v0  ;;  %465 = vst [vmem:[#allocation2 + $0x288] sm:$0xff] %v16016_v0 }
  0xf5   : > { %466 = vst [vmem:[#allocation2 + $0x290] sm:$0xff] %v16016_v0  ;;  %467 = vst [vmem:[#allocation2 + $0x298] sm:$0xff] %v16016_v0 }
  0xf6   : > { %468 = vst [vmem:[#allocation2 + $0x2a0] sm:$0xff] %v16016_v0  ;;  %469 = vst [vmem:[#allocation2 + $0x2a8] sm:$0xff] %v16016_v0 }
  0xf7   : > { %470 = vst [vmem:[#allocation2 + $0x2b0] sm:$0xff] %v16016_v0  ;;  %471 = vst [vmem:[#allocation2 + $0x2b8] sm:$0xff] %v16016_v0 }
  0xf8   : > { %472 = vst [vmem:[#allocation2 + $0x2c0] sm:$0xff] %v16016_v0  ;;  %473 = vst [vmem:[#allocation2 + $0x2c8] sm:$0xff] %v16016_v0 }
  0xf9   : > { %474 = vst [vmem:[#allocation2 + $0x2d0] sm:$0xff] %v16016_v0  ;;  %475 = vst [vmem:[#allocation2 + $0x2d8] sm:$0xff] %v16016_v0 }
  0xfa   : > { %476 = vst [vmem:[#allocation2 + $0x2e0] sm:$0xff] %v16016_v0  ;;  %477 = vst [vmem:[#allocation2 + $0x2e8] sm:$0xff] %v16016_v0 }
  0xfb   : > { %478 = vst [vmem:[#allocation2 + $0x2f0] sm:$0xff] %v16016_v0  ;;  %479 = vst [vmem:[#allocation2 + $0x2f8] sm:$0xff] %v16016_v0 }
  0xfc   : > { %480 = vst [vmem:[#allocation2 + $0x300] sm:$0xff] %v16016_v0  ;;  %481 = vst [vmem:[#allocation2 + $0x308] sm:$0xff] %v16016_v0 }
  0xfd   : > { %482 = vst [vmem:[#allocation2 + $0x310] sm:$0xff] %v16016_v0  ;;  %483 = vst [vmem:[#allocation2 + $0x318] sm:$0xff] %v16016_v0 }
  0xfe   : > { %484 = vst [vmem:[#allocation2 + $0x320] sm:$0xff] %v16016_v0  ;;  %485 = vst [vmem:[#allocation2 + $0x328] sm:$0xff] %v16016_v0 }
  0xff   : > { %486 = vst [vmem:[#allocation2 + $0x330] sm:$0xff] %v16016_v0  ;;  %487 = vst [vmem:[#allocation2 + $0x338] sm:$0xff] %v16016_v0 }
 0x100   : > { %488 = vst [vmem:[#allocation2 + $0x340] sm:$0xff] %v16016_v0  ;;  %489 = vst [vmem:[#allocation2 + $0x348] sm:$0xff] %v16016_v0 }
 0x101   : > { %490 = vst [vmem:[#allocation2 + $0x350] sm:$0xff] %v16016_v0  ;;  %491 = vst [vmem:[#allocation2 + $0x358] sm:$0xff] %v16016_v0 }
 0x102   : > { %492 = vst [vmem:[#allocation2 + $0x360] sm:$0xff] %v16016_v0  ;;  %493 = vst [vmem:[#allocation2 + $0x368] sm:$0xff] %v16016_v0 }
 0x103   : > { %494 = vst [vmem:[#allocation2 + $0x370] sm:$0xff] %v16016_v0  ;;  %495 = vst [vmem:[#allocation2 + $0x378] sm:$0xff] %v16016_v0 }
 0x104   : > { %496 = vst [vmem:[#allocation2 + $0x380] sm:$0xff] %v16016_v0  ;;  %497 = vst [vmem:[#allocation2 + $0x388] sm:$0xff] %v16016_v0 }
 0x105   : > { %498 = vst [vmem:[#allocation2 + $0x390] sm:$0xff] %v16016_v0  ;;  %499 = vst [vmem:[#allocation2 + $0x398] sm:$0xff] %v16016_v0 }
 0x106   : > { %500 = vst [vmem:[#allocation2 + $0x3a0] sm:$0xff] %v16016_v0  ;;  %501 = vst [vmem:[#allocation2 + $0x3a8] sm:$0xff] %v16016_v0 }
 0x107   : > { %502 = vst [vmem:[#allocation2 + $0x3b0] sm:$0xff] %v16016_v0  ;;  %503 = vst [vmem:[#allocation2 + $0x3b8] sm:$0xff] %v16016_v0 }
 0x108   : > { %504 = vst [vmem:[#allocation2 + $0x3c0] sm:$0xff] %v16016_v0  ;;  %505 = vst [vmem:[#allocation2 + $0x3c8] sm:$0xff] %v16016_v0 }
 0x109   : > { %506 = vst [vmem:[#allocation2 + $0x3d0] sm:$0xff] %v16016_v0  ;;  %507 = vst [vmem:[#allocation2 + $0x3d8] sm:$0xff] %v16016_v0 }
 0x10a   : > { %508 = vst [vmem:[#allocation2 + $0x3e0] sm:$0xff] %v16016_v0  ;;  %509 = vst [vmem:[#allocation2 + $0x3e8] sm:$0xff] %v16016_v0 }
 0x10b   : > { %510 = vst [vmem:[#allocation2 + $0x3f0] sm:$0xff] %v16016_v0  ;;  %511 = vst [vmem:[#allocation2 + $0x3f8] sm:$0xff] %v16016_v0 }
 0x10c PF: > { %v1024_v1 = vld [vmem:[%s16295_s2] sm:$0xff]  ;;  %v1025_v3 = vld [vmem:[%s16295_s2 + $0x8] sm:$0xff]  ;;  %p14209_p2 = scmp.ne.s32.totalorder %s16076_s28, 1 }
 0x10d   : > { %v1028_v2 = vld [vmem:[%s16295_s2 + $0x20] sm:$0xff]  ;;  %v1029_v5 = vld [vmem:[%s16295_s2 + $0x28] sm:$0xff]  ;;  %vm13046_vm0 = vcmask (!%p14209_p2), 15360  }
 0x10e   : > { %v13186_v4 = vcombine.high %v1024_v1, %v1028_v2  ;;  %v13185_v6 = vcombine.low %v1024_v1, %v1028_v2  ;;  %v1032_v7 = vld [vmem:[%s16295_s2 + $0x40] sm:$0xff]  ;;  %v13188_v9 = vcombine.high %v1025_v3, %v1029_v5  ;;  %v13187_v10 = vcombine.low %v1025_v3, %v1029_v5  ;;  %v1033_v12 = vld [vmem:[%s16295_s2 + $0x48] sm:$0xff] }
 0x10f   : > { %v1036_v8 = vld [vmem:[%s16295_s2 + $0x60] sm:$0xff]  ;;  %v1037_v13 = vld [vmem:[%s16295_s2 + $0x68] sm:$0xff] }
 0x110   : > { %v13194_v11 = vcombine.high %v1032_v7, %v1036_v8  ;;  %v1040_v14 = vld [vmem:[%s16295_s2 + $0x80] sm:$0xff]  ;;  %7168 = vmatprep.subr.bf16.mxu0 %v13186_v4  ;;  %v13196_v15 = vcombine.high %v1033_v12, %v1037_v13  ;;  %v1041_v17 = vld [vmem:[%s16295_s2 + $0x88] sm:$0xff]  ;;  %8072 = vmatprep.subr.bf16.mxu1 %v13188_v9  ;;  %v13193_v19 = vcombine.low %v1032_v7, %v1036_v8 }
 0x111   : > { %v1044_v16 = vld [vmem:[%s16295_s2 + $0xa0] sm:$0xff]  ;;  %v1045_v18 = vld [vmem:[%s16295_s2 + $0xa8] sm:$0xff]  ;;  %7169 = vmatpush1.bf16.msra.mxu0 %v13185_v6  ;;  %8073 = vmatpush1.bf16.msra.mxu1 %v13187_v10  ;;  %v13195_v20 = vcombine.low %v1033_v12, %v1037_v13 }
 0x112   : > { %7170 = vmatprep.subr.bf16.mxu0 %v13194_v11  ;;  %v13202_v21 = vcombine.high %v1040_v14, %v1044_v16  ;;  %8074 = vmatprep.subr.bf16.mxu1 %v13196_v15  ;;  %v13204_v22 = vcombine.high %v1041_v17, %v1045_v18  ;;  %v1048_v23 = vld [vmem:[%s16295_s2 + $0xc0] sm:$0xff]  ;;  %v1049_v25 = vld [vmem:[%s16295_s2 + $0xc8] sm:$0xff]  ;;  %v13201_v27 = vcombine.low %v1040_v14, %v1044_v16 }
 0x113   : > { %v1052_v24 = vld [vmem:[%s16295_s2 + $0xe0] sm:$0xff]  ;;  %v1053_v26 = vld [vmem:[%s16295_s2 + $0xe8] sm:$0xff]  ;;  %v13203_v28 = vcombine.low %v1041_v17, %v1045_v18 }
 0x114   : > { %v13210_v29 = vcombine.high %v1048_v23, %v1052_v24  ;;  %v13212_v30 = vcombine.high %v1049_v25, %v1053_v26  ;;  %v1056_v31 = vld [vmem:[%s16295_s2 + $0x100] sm:$0xff]  ;;  %v1057_v33 = vld [vmem:[%s16295_s2 + $0x108] sm:$0xff]  ;;  %v13209_v35 = vcombine.low %v1048_v23, %v1052_v24  ;;  %v13211_v36 = vcombine.low %v1049_v25, %v1053_v26 }
 0x115   : > { %7171 = vmatpush1.bf16.msra.mxu0 %v13193_v19  ;;  %8075 = vmatpush1.bf16.msra.mxu1 %v13195_v20  ;;  %v1060_v32 = vld [vmem:[%s16295_s2 + $0x120] sm:$0xff]  ;;  %v1061_v34 = vld [vmem:[%s16295_s2 + $0x128] sm:$0xff] }
 0x116   : > { %7172 = vmatprep.subr.bf16.mxu0 %v13202_v21  ;;  %8076 = vmatprep.subr.bf16.mxu1 %v13204_v22  ;;  %v13218_v37 = vcombine.high %v1056_v31, %v1060_v32  ;;  %v13220_v38 = vcombine.high %v1057_v33, %v1061_v34  ;;  %v1064_v39 = vld [vmem:[%s16295_s2 + $0x140] sm:$0xff]  ;;  %v1065_v41 = vld [vmem:[%s16295_s2 + $0x148] sm:$0xff]  ;;  %v13217_v43 = vcombine.low %v1056_v31, %v1060_v32 }
 0x117   : > { %v1068_v40 = vld [vmem:[%s16295_s2 + $0x160] sm:$0xff]  ;;  %v1069_v42 = vld [vmem:[%s16295_s2 + $0x168] sm:$0xff]  ;;  %v13219_v44 = vcombine.low %v1057_v33, %v1061_v34 }
 0x118   : > { %v13226_v45 = vcombine.high %v1064_v39, %v1068_v40  ;;  %v13228_v46 = vcombine.high %v1065_v41, %v1069_v42  ;;  %v1072_v47 = vld [vmem:[%s16295_s2 + $0x180] sm:$0xff]  ;;  %v1073_v49 = vld [vmem:[%s16295_s2 + $0x188] sm:$0xff]  ;;  %v13225_v51 = vcombine.low %v1064_v39, %v1068_v40  ;;  %v13227_v52 = vcombine.low %v1065_v41, %v1069_v42 }
 0x119   : > { %7173 = vmatpush1.bf16.msra.mxu0 %v13201_v27  ;;  %8077 = vmatpush1.bf16.msra.mxu1 %v13203_v28  ;;  %v1076_v48 = vld [vmem:[%s16295_s2 + $0x1a0] sm:$0xff]  ;;  %v1077_v50 = vld [vmem:[%s16295_s2 + $0x1a8] sm:$0xff] }
 0x11a   : > { %7174 = vmatprep.subr.bf16.mxu0 %v13210_v29  ;;  %8078 = vmatprep.subr.bf16.mxu1 %v13212_v30  ;;  %v13234_v53 = vcombine.high %v1072_v47, %v1076_v48  ;;  %v641_v54 = vld [vmem:[%s16288_s11 + $0x8] sm:$0xff]  ;;  %v13236_v56 = vcombine.high %v1073_v49, %v1077_v50  ;;  %v1080_v57 = vld [vmem:[%s16295_s2 + $0x1c0] sm:$0xff]  ;;  %v13233_v62 = vcombine.low %v1072_v47, %v1076_v48 }
 0x11b   : > { %v657_v55 = vld [vmem:[%s16288_s11 + $0x88] sm:$0xff]  ;;  %v1084_v58 = vld [vmem:[%s16295_s2 + $0x1e0] sm:$0xff]  ;;  %v13235_v63 = vcombine.low %v1073_v49, %v1077_v50 }
 0x11c   : > { %v16475_v59 = vpack.c.bf16 %v657_v55, %v641_v54  ;;  %v1081_v60 = vld [vmem:[%s16295_s2 + $0x1c8] sm:$0xff]  ;;  %v13242_v0 = vcombine.high %v1080_v57, %v1084_v58  ;;  %v1088_v2 = vld [vmem:[%s16295_s2 + $0x200] sm:$0xff]  ;;  %v13241_v6 = vcombine.low %v1080_v57, %v1084_v58 }
 0x11d   : > { %7175 = vmatpush1.bf16.msra.mxu0 %v13209_v35  ;;  %8079 = vmatpush1.bf16.msra.mxu1 %v13211_v36  ;;  %v1085_v61 = vld [vmem:[%s16295_s2 + $0x1e8] sm:$0xff]  ;;  %v1092_v3 = vld [vmem:[%s16295_s2 + $0x220] sm:$0xff] }
 0x11e   : > { %7176 = vmatprep.subr.bf16.mxu0 %v13218_v37  ;;  %8080 = vmatprep.subr.bf16.mxu1 %v13220_v38  ;;  %v13244_v1 = vcombine.high %v1081_v60, %v1085_v61  ;;  %v1089_v4 = vld [vmem:[%s16295_s2 + $0x208] sm:$0xff]  ;;  %v13243_v7 = vcombine.low %v1081_v60, %v1085_v61  ;;  %v13250_v8 = vcombine.high %v1088_v2, %v1092_v3  ;;  %v1096_v10 = vld [vmem:[%s16295_s2 + $0x240] sm:$0xff] }
 0x11f   : > { %7200 = vmatprep.mubr.bf16.mxu0 %v16475_v59  ;;  %8104 = vmatprep.mubr.bf16.mxu1 %v16475_v59  ;;  %v1093_v5 = vld [vmem:[%s16295_s2 + $0x228] sm:$0xff]  ;;  %v1100_v11 = vld [vmem:[%s16295_s2 + $0x260] sm:$0xff]  ;;  %v13249_v14 = vcombine.low %v1088_v2, %v1092_v3 }
 0x120   : > { %v13252_v9 = vcombine.high %v1089_v4, %v1093_v5  ;;  %v1097_v12 = vld [vmem:[%s16295_s2 + $0x248] sm:$0xff]  ;;  %v13251_v15 = vcombine.low %v1089_v4, %v1093_v5  ;;  %v13258_v16 = vcombine.high %v1096_v10, %v1100_v11  ;;  %v1104_v18 = vld [vmem:[%s16295_s2 + $0x280] sm:$0xff]  ;;  %v13257_v22 = vcombine.low %v1096_v10, %v1100_v11 }
 0x121   : > { %7177 = vmatpush1.bf16.msra.mxu0 %v13217_v43  ;;  %8081 = vmatpush1.bf16.msra.mxu1 %v13219_v44  ;;  %v1101_v13 = vld [vmem:[%s16295_s2 + $0x268] sm:$0xff]  ;;  %v1108_v19 = vld [vmem:[%s16295_s2 + $0x2a0] sm:$0xff] }
 0x122   : > { %7178 = vmatprep.subr.bf16.mxu0 %v13226_v45  ;;  %8082 = vmatprep.subr.bf16.mxu1 %v13228_v46  ;;  %v13260_v17 = vcombine.high %v1097_v12, %v1101_v13  ;;  %v1105_v20 = vld [vmem:[%s16295_s2 + $0x288] sm:$0xff]  ;;  %v13259_v23 = vcombine.low %v1097_v12, %v1101_v13  ;;  %v13266_v24 = vcombine.high %v1104_v18, %v1108_v19  ;;  %v1112_v26 = vld [vmem:[%s16295_s2 + $0x2c0] sm:$0xff] }
 0x123   : > { %v1109_v21 = vld [vmem:[%s16295_s2 + $0x2a8] sm:$0xff]  ;;  %v1116_v27 = vld [vmem:[%s16295_s2 + $0x2e0] sm:$0xff]  ;;  %v13265_v30 = vcombine.low %v1104_v18, %v1108_v19 }
 0x124   : > { %v13268_v25 = vcombine.high %v1105_v20, %v1109_v21  ;;  %v1113_v28 = vld [vmem:[%s16295_s2 + $0x2c8] sm:$0xff]  ;;  %v13267_v31 = vcombine.low %v1105_v20, %v1109_v21  ;;  %v13274_v32 = vcombine.high %v1112_v26, %v1116_v27  ;;  %v1120_v34 = vld [vmem:[%s16295_s2 + $0x300] sm:$0xff]  ;;  %v13273_v38 = vcombine.low %v1112_v26, %v1116_v27 }
 0x125   : > { %7179 = vmatpush1.bf16.msra.mxu0 %v13225_v51  ;;  %8083 = vmatpush1.bf16.msra.mxu1 %v13227_v52  ;;  %v1117_v29 = vld [vmem:[%s16295_s2 + $0x2e8] sm:$0xff]  ;;  %v1124_v35 = vld [vmem:[%s16295_s2 + $0x320] sm:$0xff] }
 0x126   : > { %7180 = vmatprep.subr.bf16.mxu0 %v13234_v53  ;;  %8084 = vmatprep.subr.bf16.mxu1 %v13236_v56  ;;  %v13276_v33 = vcombine.high %v1113_v28, %v1117_v29  ;;  %v1121_v36 = vld [vmem:[%s16295_s2 + $0x308] sm:$0xff]  ;;  %v13275_v39 = vcombine.low %v1113_v28, %v1117_v29  ;;  %v13282_v40 = vcombine.high %v1120_v34, %v1124_v35  ;;  %v1128_v42 = vld [vmem:[%s16295_s2 + $0x340] sm:$0xff] }
 0x127   : > { %v1125_v37 = vld [vmem:[%s16295_s2 + $0x328] sm:$0xff]  ;;  %v1132_v43 = vld [vmem:[%s16295_s2 + $0x360] sm:$0xff]  ;;  %v13281_v46 = vcombine.low %v1120_v34, %v1124_v35 }
 0x128   : > { %v13284_v41 = vcombine.high %v1121_v36, %v1125_v37  ;;  %v1129_v44 = vld [vmem:[%s16295_s2 + $0x348] sm:$0xff]  ;;  %v13283_v47 = vcombine.low %v1121_v36, %v1125_v37  ;;  %v13290_v48 = vcombine.high %v1128_v42, %v1132_v43  ;;  %v1136_v50 = vld [vmem:[%s16295_s2 + $0x380] sm:$0xff]  ;;  %v13289_v54 = vcombine.low %v1128_v42, %v1132_v43 }
 0x129   : > { %7181 = vmatpush1.bf16.msra.mxu0 %v13233_v62  ;;  %8085 = vmatpush1.bf16.msra.mxu1 %v13235_v63  ;;  %v1133_v45 = vld [vmem:[%s16295_s2 + $0x368] sm:$0xff]  ;;  %v1140_v51 = vld [vmem:[%s16295_s2 + $0x3a0] sm:$0xff] }
 0x12a   : > { %7182 = vmatprep.subr.bf16.mxu0 %v13242_v0  ;;  %8086 = vmatprep.subr.bf16.mxu1 %v13244_v1  ;;  %v13292_v49 = vcombine.high %v1129_v44, %v1133_v45  ;;  %v1137_v52 = vld [vmem:[%s16295_s2 + $0x388] sm:$0xff]  ;;  %v13291_v55 = vcombine.low %v1129_v44, %v1133_v45  ;;  %v13298_v56 = vcombine.high %v1136_v50, %v1140_v51  ;;  %v1144_v58 = vld [vmem:[%s16295_s2 + $0x3c0] sm:$0xff] }
 0x12b   : > { %v1141_v53 = vld [vmem:[%s16295_s2 + $0x3a8] sm:$0xff]  ;;  %v1148_v60 = vld [vmem:[%s16295_s2 + $0x3e0] sm:$0xff]  ;;  %v13297_v63 = vcombine.low %v1136_v50, %v1140_v51 }
 0x12c   : > { %v13300_v57 = vcombine.high %v1137_v52, %v1141_v53  ;;  %v1145_v61 = vld [vmem:[%s16295_s2 + $0x3c8] sm:$0xff]  ;;  %v13299_v0 = vcombine.low %v1137_v52, %v1141_v53  ;;  %v13306_v1 = vcombine.high %v1144_v58, %v1148_v60  ;;  %v1152_v3 = vld [vmem:[%s16295_s2 + $0x400] sm:$0xff] }
 0x12d   : > { %7183 = vmatpush1.bf16.msra.mxu0 %v13241_v6  ;;  %8087 = vmatpush1.bf16.msra.mxu1 %v13243_v7  ;;  %v1149_v62 = vld [vmem:[%s16295_s2 + $0x3e8] sm:$0xff]  ;;  %v1156_v4 = vld [vmem:[%s16295_s2 + $0x420] sm:$0xff]  ;;  %v13305_v7 = vcombine.low %v1144_v58, %v1148_v60 }
 0x12e   : > { %7184 = vmatprep.subr.bf16.mxu0 %v13250_v8  ;;  %8088 = vmatprep.subr.bf16.mxu1 %v13252_v9  ;;  %v13308_v2 = vcombine.high %v1145_v61, %v1149_v62  ;;  %v1153_v5 = vld [vmem:[%s16295_s2 + $0x408] sm:$0xff]  ;;  %v640_v8 = vld [vmem:[%s16288_s11] sm:$0xff]  ;;  %v13307_v10 = vcombine.low %v1145_v61, %v1149_v62  ;;  %v13314_v11 = vcombine.high %v1152_v3, %v1156_v4 }
 0x12f   : > { %v1157_v6 = vld [vmem:[%s16295_s2 + $0x428] sm:$0xff]  ;;  %v656_v9 = vld [vmem:[%s16288_s11 + $0x80] sm:$0xff]  ;;  %v13313_v20 = vcombine.low %v1152_v3, %v1156_v4 }
 0x130   : > { %v13316_v12 = vcombine.high %v1153_v5, %v1157_v6  ;;  %v1160_v13 = vld [vmem:[%s16295_s2 + $0x440] sm:$0xff]  ;;  %v673_v18 = vld [vmem:[%s16288_s11 + $0x108] sm:$0xff]  ;;  %v13315_v21 = vcombine.low %v1153_v5, %v1157_v6 }
 0x131   : > { %7185 = vmatpush1.bf16.msra.mxu0 %v13249_v14  ;;  %8089 = vmatpush1.bf16.msra.mxu1 %v13251_v15  ;;  %v1164_v14 = vld [vmem:[%s16295_s2 + $0x460] sm:$0xff]  ;;  %v1161_v15 = vld [vmem:[%s16295_s2 + $0x448] sm:$0xff] }
 0x132   : > { %7186 = vmatprep.subr.bf16.mxu0 %v13258_v16  ;;  %8090 = vmatprep.subr.bf16.mxu1 %v13260_v17  ;;  %v16522_v16 = vpack.c.bf16 %v656_v9, %v640_v8  ;;  %v1165_v17 = vld [vmem:[%s16295_s2 + $0x468] sm:$0xff]  ;;  %v1172_v26 = vld [vmem:[%s16295_s2 + $0x4a0] sm:$0xff]  ;;  %v13321_v29 = vcombine.low %v1160_v13, %v1164_v14 }
 0x133   : > { %v689_v19 = vld [vmem:[%s16288_s11 + $0x188] sm:$0xff]  ;;  %v1176_v35 = vld [vmem:[%s16295_s2 + $0x4c0] sm:$0xff] }
 0x134   : > { %v1169_v27 = vld [vmem:[%s16295_s2 + $0x488] sm:$0xff]  ;;  %v1180_v36 = vld [vmem:[%s16295_s2 + $0x4e0] sm:$0xff] }
 0x135   : > { %7187 = vmatpush1.bf16.msra.mxu0 %v13257_v22  ;;  %8091 = vmatpush1.bf16.msra.mxu1 %v13259_v23  ;;  %v13322_v22 = vcombine.high %v1160_v13, %v1164_v14  ;;  %v13324_v23 = vcombine.high %v1161_v15, %v1165_v17  ;;  %v1173_v28 = vld [vmem:[%s16295_s2 + $0x4a8] sm:$0xff]  ;;  %v13338_v44 = vcombine.high %v1176_v35, %v1180_v36  ;;  %v704_v52 = vld [vmem:[%s16288_s11 + $0x200] sm:$0xff] }
 0x136   : > { %7188 = vmatprep.subr.bf16.mxu0 %v13266_v24  ;;  %8092 = vmatprep.subr.bf16.mxu1 %v13268_v25  ;;  %v16527_v24 = vpack.c.bf16 %v689_v19, %v673_v18  ;;  %v1168_v25 = vld [vmem:[%s16295_s2 + $0x480] sm:$0xff]  ;;  %v13332_v34 = vcombine.high %v1169_v27, %v1173_v28  ;;  %v1177_v37 = vld [vmem:[%s16295_s2 + $0x4c8] sm:$0xff]  ;;  %v13331_v43 = vcombine.low %v1169_v27, %v1173_v28 }
 0x137   : > { %v13329_v42 = vcombine.low %v1168_v25, %v1172_v26  ;;  %v1189_v50 = vld [vmem:[%s16295_s2 + $0x528] sm:$0xff]  ;;  %v13337_v51 = vcombine.low %v1176_v35, %v1180_v36  ;;  %v720_v53 = vld [vmem:[%s16288_s11 + $0x280] sm:$0xff] }
 0x138   : > { %v1196_v58 = vld [vmem:[%s16295_s2 + $0x560] sm:$0xff]  ;;  %v1193_v60 = vld [vmem:[%s16295_s2 + $0x548] sm:$0xff]  ;;  %v16562_v61 = vpack.c.bf16 %v720_v53, %v704_v52 }
 0x139   : > { %7189 = vmatpush1.bf16.msra.mxu0 %v13265_v30  ;;  %8093 = vmatpush1.bf16.msra.mxu1 %v13267_v31  ;;  %v672_v30 = vld [vmem:[%s16288_s11 + $0x100] sm:$0xff]  ;;  %v1197_v62 = vld [vmem:[%s16295_s2 + $0x568] sm:$0xff] }
 0x13a   : > { %7190 = vmatprep.subr.bf16.mxu0 %v13274_v32  ;;  %8094 = vmatprep.subr.bf16.mxu1 %v13276_v33  ;;  %v688_v31 = vld [vmem:[%s16288_s11 + $0x180] sm:$0xff]  ;;  %v13323_v32 = vcombine.low %v1161_v15, %v1165_v17  ;;  %v13330_v33 = vcombine.high %v1168_v25, %v1172_v26  ;;  %v13356_v4 = vcombine.high %v1193_v60, %v1197_v62  ;;  %v1201_v8 = vld [vmem:[%s16295_s2 + $0x588] sm:$0xff] }
 0x13b   : > { %v1200_v6 = vld [vmem:[%s16295_s2 + $0x580] sm:$0xff]  ;;  %v1205_v9 = vld [vmem:[%s16295_s2 + $0x5a8] sm:$0xff]  ;;  %v13355_v13 = vcombine.low %v1193_v60, %v1197_v62 }
 0x13c   : > { %v13364_v15 = vcombine.high %v1201_v8, %v1205_v9  ;;  %v1208_v17 = vld [vmem:[%s16295_s2 + $0x5c0] sm:$0xff]  ;;  %v1209_v19 = vld [vmem:[%s16295_s2 + $0x5c8] sm:$0xff]  ;;  %v13363_v26 = vcombine.low %v1201_v8, %v1205_v9 }
 0x13d   : > { %7191 = vmatpush1.bf16.msra.mxu0 %v13273_v38  ;;  %8095 = vmatpush1.bf16.msra.mxu1 %v13275_v39  ;;  %v16542_v38 = vpack.c.bf16 %v688_v31, %v672_v30  ;;  %v1181_v39 = vld [vmem:[%s16295_s2 + $0x4e8] sm:$0xff]  ;;  %v1212_v18 = vld [vmem:[%s16295_s2 + $0x5e0] sm:$0xff] }
 0x13e   : > { %7192 = vmatprep.subr.bf16.mxu0 %v13282_v40  ;;  %8096 = vmatprep.subr.bf16.mxu1 %v13284_v41  ;;  %v705_v40 = vld [vmem:[%s16288_s11 + $0x208] sm:$0xff]  ;;  %v13340_v45 = vcombine.high %v1177_v37, %v1181_v39  ;;  %v13370_v27 = vcombine.high %v1208_v17, %v1212_v18  ;;  %v1216_v30 = vld [vmem:[%s16295_s2 + $0x600] sm:$0xff] }
 0x13f   : > { %v721_v41 = vld [vmem:[%s16288_s11 + $0x288] sm:$0xff]  ;;  %v1220_v31 = vld [vmem:[%s16295_s2 + $0x620] sm:$0xff] }
 0x140   : > { %v768_v35 = vld [vmem:[%s16288_s11 + $0x400] sm:$0xff]  ;;  %v833_v8 = vld [vmem:[%s16288_s11 + $0x608] sm:$0xff] }
 0x141   : > { %7193 = vmatpush1.bf16.msra.mxu0 %v13281_v46  ;;  %8097 = vmatpush1.bf16.msra.mxu1 %v13283_v47  ;;  %v16547_v46 = vpack.c.bf16 %v721_v41, %v705_v40  ;;  %v1184_v47 = vld [vmem:[%s16295_s2 + $0x500] sm:$0xff]  ;;  %v849_v9 = vld [vmem:[%s16288_s11 + $0x688] sm:$0xff] }
 0x142   : > { %7194 = vmatprep.subr.bf16.mxu0 %v13290_v48  ;;  %8098 = vmatprep.subr.bf16.mxu1 %v13292_v49  ;;  %v1188_v48 = vld [vmem:[%s16295_s2 + $0x520] sm:$0xff]  ;;  %v1185_v49 = vld [vmem:[%s16295_s2 + $0x508] sm:$0xff] }
 0x143   : > { %v784_v36 = vld [vmem:[%s16288_s11 + $0x480] sm:$0xff] }
 0x144   : > { %v1224_v41 = vld [vmem:[%s16295_s2 + $0x640] sm:$0xff] }
 0x145   : > { %7195 = vmatpush1.bf16.msra.mxu0 %v13289_v54  ;;  %8099 = vmatpush1.bf16.msra.mxu1 %v13291_v55  ;;  %v13339_v54 = vcombine.low %v1177_v37, %v1181_v39  ;;  %v13346_v55 = vcombine.high %v1184_v47, %v1188_v48  ;;  %v13378_v39 = vcombine.high %v1216_v30, %v1220_v31  ;;  %v800_v60 = vld [vmem:[%s16288_s11 + $0x500] sm:$0xff] }
 0x146   : > { %7196 = vmatprep.subr.bf16.mxu0 %v13298_v56  ;;  %8100 = vmatprep.subr.bf16.mxu1 %v13300_v57  ;;  %v13348_v56 = vcombine.high %v1185_v49, %v1189_v50  ;;  %v1192_v57 = vld [vmem:[%s16295_s2 + $0x540] sm:$0xff] }
 0x147   : > { %v13354_v3 = vcombine.high %v1192_v57, %v1196_v58  ;;  %v816_v62 = vld [vmem:[%s16288_s11 + $0x580] sm:$0xff] }
 0x149   : > { %7197 = vmatpush1.bf16.msra.mxu0 %v13297_v63  ;;  %8101 = vmatpush1.bf16.msra.mxu1 %v13299_v0  ;;  %v737_v63 = vld [vmem:[%s16288_s11 + $0x308] sm:$0xff] }
 0x14a   : > { %7198 = vmatprep.subr.bf16.mxu0 %v13306_v1  ;;  %8102 = vmatprep.subr.bf16.mxu1 %v13308_v2  ;;  %v753_v0 = vld [vmem:[%s16288_s11 + $0x388] sm:$0xff]  ;;  %v13345_v1 = vcombine.low %v1184_v47, %v1188_v48  ;;  %v13347_v2 = vcombine.low %v1185_v49, %v1189_v50  ;;  %v13377_v49 = vcombine.low %v1216_v30, %v1220_v31  ;;  %v1260_v30 = vld [vmem:[%s16295_s2 + $0x760] sm:$0xff] }
 0x14b   : > { %v16567_v5 = vpack.c.bf16 %v753_v0, %v737_v63  ;;  %v801_v47 = vld [vmem:[%s16288_s11 + $0x508] sm:$0xff] }
 0x14c   : > { %v817_v48 = vld [vmem:[%s16288_s11 + $0x588] sm:$0xff] }
 0x14d   : > { %7199 = vmatpush1.bf16.msra.mxu0 %v13305_v7  ;;  %8103 = vmatpush1.bf16.msra.mxu1 %v13307_v10  ;;  %v1204_v7 = vld [vmem:[%s16295_s2 + $0x5a0] sm:$0xff]  ;;  %v13353_v10 = vcombine.low %v1192_v57, %v1196_v58  ;;  %v16607_v53 = vpack.c.bf16 %v817_v48, %v801_v47  ;;  %v1237_v57 = vld [vmem:[%s16295_s2 + $0x6a8] sm:$0xff] }
 0x14e   : > { %7281 = vmatprep.subr.bf16.mxu0 %v13314_v11  ;;  %8185 = vmatprep.subr.bf16.mxu1 %v13316_v12  ;;  %v736_v11 = vld [vmem:[%s16288_s11 + $0x300] sm:$0xff]  ;;  %v13362_v14 = vcombine.high %v1200_v6, %v1204_v7  ;;  %v13361_v25 = vcombine.low %v1200_v6, %v1204_v7  ;;  %v16622_v6 = vpack.c.bf16 %v816_v62, %v800_v60  ;;  %v1245_v7 = vld [vmem:[%s16295_s2 + $0x6e8] sm:$0xff]  ;;  %v643_v62 = vld [vmem:[%s16288_s11 + $0x18] sm:$0xff] }
 0x14f   : > { %v752_v12 = vld [vmem:[%s16288_s11 + $0x380] sm:$0xff]  ;;  %v1257_v31 = vld [vmem:[%s16295_s2 + $0x748] sm:$0xff] }
 0x150   : > { %7201 = vmatmul.mubr.bf16.vlgmr.msra.gmra.mrb[0].mxu0 %v16522_v16  ;;  %8105 = vmatmul.mubr.bf16.vlgmr.msra.gmra.mrb[0].mxu1 %v16522_v16  ;;  %v1269_v47 = vld [vmem:[%s16295_s2 + $0x7a8] sm:$0xff] }
 0x151   : > { %7282 = vmatpush1.bf16.msra.mxu0 %v13313_v20  ;;  %8186 = vmatpush1.bf16.msra.mxu1 %v13315_v21  ;;  %v16582_v20 = vpack.c.bf16 %v752_v12, %v736_v11  ;;  %v1213_v21 = vld [vmem:[%s16295_s2 + $0x5e8] sm:$0xff] }
 0x152   : > { %7283 = vmatprep.subr.bf16.mxu0 %v13322_v22  ;;  %8187 = vmatprep.subr.bf16.mxu1 %v13324_v23  ;;  %v769_v22 = vld [vmem:[%s16288_s11 + $0x408] sm:$0xff]  ;;  %v13372_v28 = vcombine.high %v1209_v19, %v1213_v21  ;;  %v13371_v37 = vcombine.low %v1209_v19, %v1213_v21 }
 0x153   : > { %7210 = vmatprep.mubr.bf16.mxu0 %v16527_v24  ;;  %8114 = vmatprep.mubr.bf16.mxu1 %v16527_v24  ;;  %v785_v23 = vld [vmem:[%s16288_s11 + $0x488] sm:$0xff] }
 0x154   : > { %v1253_v19 = vld [vmem:[%s16295_s2 + $0x728] sm:$0xff] }
 0x155   : > { %7284 = vmatpush1.bf16.msra.mxu0 %v13321_v29  ;;  %8188 = vmatpush1.bf16.msra.mxu1 %v13323_v32  ;;  %v16587_v29 = vpack.c.bf16 %v785_v23, %v769_v22  ;;  %v1217_v32 = vld [vmem:[%s16295_s2 + $0x608] sm:$0xff]  ;;  %v832_v22 = vld [vmem:[%s16288_s11 + $0x600] sm:$0xff] }
 0x156   : > { %7285 = vmatprep.subr.bf16.mxu0 %v13330_v33  ;;  %8189 = vmatprep.subr.bf16.mxu1 %v13332_v34  ;;  %v1221_v33 = vld [vmem:[%s16295_s2 + $0x628] sm:$0xff]  ;;  %v13369_v34 = vcombine.low %v1208_v17, %v1212_v18  ;;  %v1252_v17 = vld [vmem:[%s16295_s2 + $0x720] sm:$0xff] }
 0x157   : > { %v13380_v40 = vcombine.high %v1217_v32, %v1221_v33  ;;  %v13379_v50 = vcombine.low %v1217_v32, %v1221_v33  ;;  %v1249_v18 = vld [vmem:[%s16295_s2 + $0x708] sm:$0xff]  ;;  %v848_v23 = vld [vmem:[%s16288_s11 + $0x680] sm:$0xff] }
 0x158   : > { %7211 = vmatmul.mubr.bf16.gmra.mrb[4].mxu0 %v16542_v38  ;;  %8115 = vmatmul.mubr.bf16.gmra.mrb[4].mxu1 %v16542_v38  ;;  %v16642_v32 = vpack.c.bf16 %v848_v23, %v832_v22  ;;  %v1261_v33 = vld [vmem:[%s16295_s2 + $0x768] sm:$0xff] }
 0x159   : > { %7286 = vmatpush1.bf16.msra.mxu0 %v13329_v42  ;;  %8190 = vmatpush1.bf16.msra.mxu1 %v13331_v43  ;;  %v1228_v42 = vld [vmem:[%s16295_s2 + $0x660] sm:$0xff]  ;;  %v1225_v43 = vld [vmem:[%s16295_s2 + $0x648] sm:$0xff] }
 0x15a   : > { %7287 = vmatprep.subr.bf16.mxu0 %v13338_v44  ;;  %8191 = vmatprep.subr.bf16.mxu1 %v13340_v45  ;;  %v16602_v44 = vpack.c.bf16 %v784_v36, %v768_v35  ;;  %v1229_v45 = vld [vmem:[%s16295_s2 + $0x668] sm:$0xff]  ;;  %v13385_v58 = vcombine.low %v1224_v41, %v1228_v42 }
 0x15b   : > { %7220 = vmatprep.mubr.bf16.mxu0 %v16547_v46  ;;  %8124 = vmatprep.mubr.bf16.mxu1 %v16547_v46  ;;  %v13388_v52 = vcombine.high %v1225_v43, %v1229_v45  ;;  %v13387_v63 = vcombine.low %v1225_v43, %v1229_v45  ;;  %v881_v35 = vld [vmem:[%s16288_s11 + $0x788] sm:$0xff]  ;;  %v1268_v43 = vld [vmem:[%s16295_s2 + $0x7a0] sm:$0xff] }
 0x15c   : > { %v1265_v45 = vld [vmem:[%s16295_s2 + $0x788] sm:$0xff] }
 0x15d   : > { %7288 = vmatpush1.bf16.msra.mxu0 %v13337_v51  ;;  %8192 = vmatpush1.bf16.msra.mxu1 %v13339_v54  ;;  %v13386_v51 = vcombine.high %v1224_v41, %v1228_v42  ;;  %v1232_v54 = vld [vmem:[%s16295_s2 + $0x680] sm:$0xff]  ;;  %v1277_v60 = vld [vmem:[%s16295_s2 + $0x7e8] sm:$0xff] }
 0x15e   : > { %7289 = vmatprep.subr.bf16.mxu0 %v13346_v55  ;;  %8193 = vmatprep.subr.bf16.mxu1 %v13348_v56  ;;  %v1236_v55 = vld [vmem:[%s16295_s2 + $0x6a0] sm:$0xff]  ;;  %v1233_v56 = vld [vmem:[%s16295_s2 + $0x688] sm:$0xff] }
 0x15f   : > { %v13394_v0 = vcombine.high %v1232_v54, %v1236_v55  ;;  %v13395_v11 = vcombine.low %v1233_v56, %v1237_v57  ;;  %v1264_v42 = vld [vmem:[%s16295_s2 + $0x780] sm:$0xff]  ;;  %v1289_v22 = vld [vmem:[%s16295_s2 + $0x848] sm:$0xff] }
 0x160   : > { %7221 = vmatmul.mubr.bf16.gmra.mrb[8].mxu0 %v16562_v61  ;;  %8125 = vmatmul.mubr.bf16.gmra.mrb[8].mxu1 %v16562_v61 }
 0x161   : > { %7290 = vmatpush1.bf16.msra.mxu0 %v13345_v1  ;;  %8194 = vmatpush1.bf16.msra.mxu1 %v13347_v2  ;;  %v13396_v1 = vcombine.high %v1233_v56, %v1237_v57  ;;  %v1240_v2 = vld [vmem:[%s16295_s2 + $0x6c0] sm:$0xff]  ;;  %v1273_v57 = vld [vmem:[%s16295_s2 + $0x7c8] sm:$0xff] }
 0x162   : > { %7291 = vmatprep.subr.bf16.mxu0 %v13354_v3  ;;  %8195 = vmatprep.subr.bf16.mxu1 %v13356_v4  ;;  %v1244_v3 = vld [vmem:[%s16295_s2 + $0x6e0] sm:$0xff]  ;;  %v1241_v4 = vld [vmem:[%s16295_s2 + $0x6c8] sm:$0xff] }
 0x163   : > { %7230 = vmatprep.mubr.bf16.mxu0 %v16567_v5  ;;  %8134 = vmatprep.mubr.bf16.mxu1 %v16567_v5  ;;  %v13402_v12 = vcombine.high %v1240_v2, %v1244_v3  ;;  %v13401_v21 = vcombine.low %v1240_v2, %v1244_v3  ;;  %v1276_v56 = vld [vmem:[%s16295_s2 + $0x7e0] sm:$0xff]  ;;  %v13436_v3 = vcombine.high %v1273_v57, %v1277_v60 }
 0x165   : > { %7292 = vmatpush1.bf16.msra.mxu0 %v13353_v10  ;;  %8196 = vmatpush1.bf16.msra.mxu1 %v13355_v13  ;;  %v13393_v10 = vcombine.low %v1232_v54, %v1236_v55  ;;  %v13404_v13 = vcombine.high %v1241_v4, %v1245_v7  ;;  %v13428_v54 = vcombine.high %v1265_v45, %v1269_v47  ;;  %v1272_v55 = vld [vmem:[%s16295_s2 + $0x7c0] sm:$0xff] }
 0x166   : > { %7293 = vmatprep.subr.bf16.mxu0 %v13362_v14  ;;  %8197 = vmatprep.subr.bf16.mxu1 %v13364_v15  ;;  %v16627_v14 = vpack.c.bf16 %v849_v9, %v833_v8  ;;  %v1248_v15 = vld [vmem:[%s16295_s2 + $0x700] sm:$0xff]  ;;  %v13434_v2 = vcombine.high %v1272_v55, %v1276_v56  ;;  %v1281_v9 = vld [vmem:[%s16295_s2 + $0x808] sm:$0xff] }
 0x167   : > { %v13409_v36 = vcombine.low %v1248_v15, %v1252_v17  ;;  %v1284_v8 = vld [vmem:[%s16295_s2 + $0x820] sm:$0xff] }
 0x168   : > { %7231 = vmatmul.mubr.bf16.gmra.mrb[12].mxu0 %v16582_v20  ;;  %8135 = vmatmul.mubr.bf16.gmra.mrb[12].mxu1 %v16582_v20 }
 0x169   : > { %7294 = vmatpush1.bf16.msra.mxu0 %v13361_v25  ;;  %8198 = vmatpush1.bf16.msra.mxu1 %v13363_v26  ;;  %v13403_v25 = vcombine.low %v1241_v4, %v1245_v7  ;;  %v13410_v26 = vcombine.high %v1248_v15, %v1252_v17  ;;  %v1280_v7 = vld [vmem:[%s16295_s2 + $0x800] sm:$0xff]  ;;  %v13435_v15 = vcombine.low %v1273_v57, %v1277_v60 }
 0x16a   : > { %7295 = vmatprep.subr.bf16.mxu0 %v13370_v27  ;;  %8199 = vmatprep.subr.bf16.mxu1 %v13372_v28  ;;  %v13412_v27 = vcombine.high %v1249_v18, %v1253_v19  ;;  %v1256_v28 = vld [vmem:[%s16295_s2 + $0x740] sm:$0xff]  ;;  %v13442_v17 = vcombine.high %v1280_v7, %v1284_v8 }
 0x16b   : > { %7240 = vmatprep.mubr.bf16.mxu0 %v16587_v29  ;;  %8144 = vmatprep.mubr.bf16.mxu1 %v16587_v29  ;;  %v13417_v48 = vcombine.low %v1256_v28, %v1260_v30 }
 0x16d   : > { %7296 = vmatpush1.bf16.msra.mxu0 %v13369_v34  ;;  %8200 = vmatpush1.bf16.msra.mxu1 %v13371_v37  ;;  %v865_v34 = vld [vmem:[%s16288_s11 + $0x708] sm:$0xff]  ;;  %v13411_v37 = vcombine.low %v1249_v18, %v1253_v19  ;;  %v1288_v19 = vld [vmem:[%s16295_s2 + $0x840] sm:$0xff] }
 0x16e   : > { %7297 = vmatprep.subr.bf16.mxu0 %v13378_v39  ;;  %8201 = vmatprep.subr.bf16.mxu1 %v13380_v40  ;;  %v13418_v39 = vcombine.high %v1256_v28, %v1260_v30  ;;  %v13420_v40 = vcombine.high %v1257_v31, %v1261_v33  ;;  %v16647_v41 = vpack.c.bf16 %v881_v35, %v865_v34  ;;  %v1296_v35 = vld [vmem:[%s16295_s2 + $0x880] sm:$0xff] }
 0x16f   : > { %v13441_v28 = vcombine.low %v1280_v7, %v1284_v8  ;;  %v1317_v7 = vld [vmem:[%s16295_s2 + $0x928] sm:$0xff] }
 0x170   : > { %7241 = vmatmul.mubr.bf16.gmra.mrb[16].mxu0 %v16602_v44  ;;  %8145 = vmatmul.mubr.bf16.gmra.mrb[16].mxu1 %v16602_v44 }
 0x171   : > { %7298 = vmatpush1.bf16.msra.mxu0 %v13377_v49  ;;  %8202 = vmatpush1.bf16.msra.mxu1 %v13379_v50  ;;  %v864_v49 = vld [vmem:[%s16288_s11 + $0x700] sm:$0xff] }
 0x172   : > { %7299 = vmatprep.subr.bf16.mxu0 %v13386_v51  ;;  %8203 = vmatprep.subr.bf16.mxu1 %v13388_v52  ;;  %v880_v50 = vld [vmem:[%s16288_s11 + $0x780] sm:$0xff]  ;;  %v13419_v51 = vcombine.low %v1257_v31, %v1261_v33  ;;  %v13426_v52 = vcombine.high %v1264_v42, %v1268_v43 }
 0x173   : > { %7250 = vmatprep.mubr.bf16.mxu0 %v16607_v53  ;;  %8154 = vmatprep.mubr.bf16.mxu1 %v16607_v53 }
 0x175   : > { %7300 = vmatpush1.bf16.msra.mxu0 %v13385_v58  ;;  %8204 = vmatpush1.bf16.msra.mxu1 %v13387_v63  ;;  %v16662_v58 = vpack.c.bf16 %v880_v50, %v864_v49  ;;  %v659_v63 = vld [vmem:[%s16288_s11 + $0x98] sm:$0xff]  ;;  %v1304_v49 = vld [vmem:[%s16295_s2 + $0x8c0] sm:$0xff] }
 0x176   : > { %7301 = vmatprep.subr.bf16.mxu0 %v13394_v0  ;;  %8205 = vmatprep.subr.bf16.mxu1 %v13396_v1  ;;  %v13425_v0 = vcombine.low %v1264_v42, %v1268_v43  ;;  %v13427_v1 = vcombine.low %v1265_v45, %v1269_v47  ;;  %v16667_v4 = vpack.c.bf16 %v659_v63, %v643_v62  ;;  %v674_v42 = vld [vmem:[%s16288_s11 + $0x110] sm:$0xff]  ;;  %v1308_v50 = vld [vmem:[%s16295_s2 + $0x8e0] sm:$0xff] }
 0x177   : > { %v690_v43 = vld [vmem:[%s16288_s11 + $0x190] sm:$0xff]  ;;  %v13466_v62 = vcombine.high %v1304_v49, %v1308_v50  ;;  %v13465_v8 = vcombine.low %v1304_v49, %v1308_v50  ;;  %v1340_v49 = vld [vmem:[%s16295_s2 + $0x9e0] sm:$0xff]  ;;  %v1337_v50 = vld [vmem:[%s16295_s2 + $0x9c8] sm:$0xff] }
 0x178   : > { %7251 = vmatmul.mubr.bf16.gmra.mrb[20].mxu0 %v16622_v6  ;;  %8155 = vmatmul.mubr.bf16.gmra.mrb[20].mxu1 %v16622_v6 }
 0x179   : > { %7302 = vmatpush1.bf16.msra.mxu0 %v13393_v10  ;;  %8206 = vmatpush1.bf16.msra.mxu1 %v13395_v11  ;;  %v1285_v10 = vld [vmem:[%s16295_s2 + $0x828] sm:$0xff]  ;;  %v13433_v11 = vcombine.low %v1272_v55, %v1276_v56  ;;  %v707_v55 = vld [vmem:[%s16288_s11 + $0x218] sm:$0xff] }
 0x17a   : > { %7303 = vmatprep.subr.bf16.mxu0 %v13402_v12  ;;  %8207 = vmatprep.subr.bf16.mxu1 %v13404_v13  ;;  %v642_v12 = vld [vmem:[%s16288_s11 + $0x10] sm:$0xff]  ;;  %v13444_v18 = vcombine.high %v1281_v9, %v1285_v10  ;;  %v13443_v30 = vcombine.low %v1281_v9, %v1285_v10  ;;  %v723_v56 = vld [vmem:[%s16288_s11 + $0x298] sm:$0xff] }
 0x17b   : > { %7260 = vmatprep.mubr.bf16.mxu0 %v16627_v14  ;;  %8164 = vmatprep.mubr.bf16.mxu1 %v16627_v14  ;;  %v658_v13 = vld [vmem:[%s16288_s11 + $0x90] sm:$0xff] }
 0x17c   : > { %v16682_v23 = vpack.c.bf16 %v658_v13, %v642_v12  ;;  %v706_v9 = vld [vmem:[%s16288_s11 + $0x210] sm:$0xff] }
 0x17d   : > { %7304 = vmatpush1.bf16.msra.mxu0 %v13401_v21  ;;  %8208 = vmatpush1.bf16.msra.mxu1 %v13403_v25  ;;  %v1292_v21 = vld [vmem:[%s16295_s2 + $0x860] sm:$0xff]  ;;  %v1293_v25 = vld [vmem:[%s16295_s2 + $0x868] sm:$0xff]  ;;  %v722_v10 = vld [vmem:[%s16288_s11 + $0x290] sm:$0xff] }
 0x17e   : > { %7305 = vmatprep.subr.bf16.mxu0 %v13410_v26  ;;  %8209 = vmatprep.subr.bf16.mxu1 %v13412_v27  ;;  %v675_v26 = vld [vmem:[%s16288_s11 + $0x118] sm:$0xff]  ;;  %v13450_v31 = vcombine.high %v1288_v19, %v1292_v21  ;;  %v13452_v33 = vcombine.high %v1289_v22, %v1293_v25  ;;  %v13451_v45 = vcombine.low %v1289_v22, %v1293_v25 }
 0x17f   : > { %v691_v27 = vld [vmem:[%s16288_s11 + $0x198] sm:$0xff] }
 0x180   : > { %7261 = vmatmul.mubr.bf16.gmra.mrb[24].mxu0 %v16642_v32  ;;  %8165 = vmatmul.mubr.bf16.gmra.mrb[24].mxu1 %v16642_v32  ;;  %v16687_v34 = vpack.c.bf16 %v691_v27, %v675_v26  ;;  %v739_v22 = vld [vmem:[%s16288_s11 + $0x318] sm:$0xff] }
 0x181   : > { %7306 = vmatpush1.bf16.msra.mxu0 %v13409_v36  ;;  %8210 = vmatpush1.bf16.msra.mxu1 %v13411_v37  ;;  %v1300_v36 = vld [vmem:[%s16295_s2 + $0x8a0] sm:$0xff]  ;;  %v1297_v37 = vld [vmem:[%s16295_s2 + $0x888] sm:$0xff]  ;;  %v755_v25 = vld [vmem:[%s16288_s11 + $0x398] sm:$0xff] }
 0x182   : > { %7307 = vmatprep.subr.bf16.mxu0 %v13418_v39  ;;  %8211 = vmatprep.subr.bf16.mxu1 %v13420_v40  ;;  %v1301_v39 = vld [vmem:[%s16295_s2 + $0x8a8] sm:$0xff]  ;;  %v13449_v40 = vcombine.low %v1288_v19, %v1292_v21  ;;  %v13458_v47 = vcombine.high %v1296_v35, %v1300_v36  ;;  %v13457_v57 = vcombine.low %v1296_v35, %v1300_v36  ;;  %v1332_v35 = vld [vmem:[%s16295_s2 + $0x9a0] sm:$0xff] }
 0x183   : > { %7270 = vmatprep.mubr.bf16.mxu0 %v16647_v41  ;;  %8174 = vmatprep.mubr.bf16.mxu1 %v16647_v41  ;;  %v13459_v60 = vcombine.low %v1297_v37, %v1301_v39  ;;  %v16722_v19 = vpack.c.bf16 %v722_v10, %v706_v9  ;;  %v1325_v21 = vld [vmem:[%s16295_s2 + $0x968] sm:$0xff]  ;;  %v770_v10 = vld [vmem:[%s16288_s11 + $0x410] sm:$0xff] }
 0x184   : > { %v1329_v36 = vld [vmem:[%s16295_s2 + $0x988] sm:$0xff] }
 0x185   : > { %7308 = vmatpush1.bf16.msra.mxu0 %v13417_v48  ;;  %8212 = vmatpush1.bf16.msra.mxu1 %v13419_v51  ;;  %v13460_v48 = vcombine.high %v1297_v37, %v1301_v39  ;;  %v1305_v51 = vld [vmem:[%s16295_s2 + $0x8c8] sm:$0xff] }
 0x186   : > { %7309 = vmatprep.subr.bf16.mxu0 %v13426_v52  ;;  %8213 = vmatprep.subr.bf16.mxu1 %v13428_v54  ;;  %v16702_v52 = vpack.c.bf16 %v690_v43, %v674_v42  ;;  %v1309_v54 = vld [vmem:[%s16295_s2 + $0x8e8] sm:$0xff]  ;;  %v754_v42 = vld [vmem:[%s16288_s11 + $0x390] sm:$0xff] }
 0x187   : > { %v13468_v63 = vcombine.high %v1305_v51, %v1309_v54  ;;  %v1333_v37 = vld [vmem:[%s16295_s2 + $0x9a8] sm:$0xff] }
 0x188   : > { %7271 = vmatmul.mubr.bf16.gmra.mrb[28].mxu0 %v16662_v58  ;;  %8175 = vmatmul.mubr.bf16.gmra.mrb[28].mxu1 %v16662_v58 }
 0x189   : > { %7310 = vmatpush1.bf16.msra.mxu0 %v13425_v0  ;;  %8214 = vmatpush1.bf16.msra.mxu1 %v13427_v1  ;;  %v16707_v0 = vpack.c.bf16 %v723_v56, %v707_v55  ;;  %v1312_v1 = vld [vmem:[%s16295_s2 + $0x900] sm:$0xff]  ;;  %v771_v55 = vld [vmem:[%s16288_s11 + $0x418] sm:$0xff] }
 0x18a   : > { %7311 = vmatprep.subr.bf16.mxu0 %v13434_v2  ;;  %8215 = vmatprep.subr.bf16.mxu1 %v13436_v3  ;;  %v1316_v2 = vld [vmem:[%s16295_s2 + $0x920] sm:$0xff]  ;;  %v1313_v3 = vld [vmem:[%s16295_s2 + $0x908] sm:$0xff]  ;;  %v787_v56 = vld [vmem:[%s16288_s11 + $0x498] sm:$0xff] }
 0x18b   : > { %7313 = vmatprep.mubr.bf16.mxu0 %v16667_v4  ;;  %8217 = vmatprep.mubr.bf16.mxu1 %v16667_v4  ;;  %v13474_v12 = vcombine.high %v1312_v1, %v1316_v2  ;;  %v13476_v13 = vcombine.high %v1313_v3, %v1317_v7  ;;  %v13473_v26 = vcombine.low %v1312_v1, %v1316_v2  ;;  %v1344_v2 = vld [vmem:[%s16295_s2 + $0xa00] sm:$0xff] }
 0x18c   : > { %v13475_v27 = vcombine.low %v1313_v3, %v1317_v7  ;;  %v16747_v1 = vpack.c.bf16 %v787_v56, %v771_v55  ;;  %v1348_v3 = vld [vmem:[%s16295_s2 + $0xa20] sm:$0xff]  ;;  %v1345_v7 = vld [vmem:[%s16295_s2 + $0xa08] sm:$0xff] }
 0x18d   : > { %7312 = vmatpush1.bf16.msra.mxu0 %v13433_v11  ;;  %8216 = vmatpush1.bf16.msra.mxu1 %v13435_v15  ;;  %v13467_v11 = vcombine.low %v1305_v51, %v1309_v54  ;;  %v1320_v15 = vld [vmem:[%s16295_s2 + $0x940] sm:$0xff]  ;;  %v1341_v54 = vld [vmem:[%s16295_s2 + $0x9e8] sm:$0xff] }
 0x18e   : > { %7394 = vmatprep.subr.bf16.mxu0 %v13442_v17  ;;  %8298 = vmatprep.subr.bf16.mxu1 %v13444_v18  ;;  %v1324_v17 = vld [vmem:[%s16295_s2 + $0x960] sm:$0xff]  ;;  %v1321_v18 = vld [vmem:[%s16295_s2 + $0x948] sm:$0xff] }
 0x18f   : > { %v13481_v39 = vcombine.low %v1320_v15, %v1324_v17  ;;  %v13483_v43 = vcombine.low %v1321_v18, %v1325_v21  ;;  %v1372_v55 = vld [vmem:[%s16295_s2 + $0xae0] sm:$0xff]  ;;  %v1369_v56 = vld [vmem:[%s16295_s2 + $0xac8] sm:$0xff] }
 0x190   : > { %7314 = vmatmul.mubr.bf16.vlgmr.msra.gmra.mrb[0].mxu0 %v16682_v23  ;;  %8218 = vmatmul.mubr.bf16.vlgmr.msra.gmra.mrb[0].mxu1 %v16682_v23 }
 0x191   : > { %7395 = vmatpush1.bf16.msra.mxu0 %v13441_v28  ;;  %8299 = vmatpush1.bf16.msra.mxu1 %v13443_v30  ;;  %v13482_v28 = vcombine.high %v1320_v15, %v1324_v17  ;;  %v13484_v30 = vcombine.high %v1321_v18, %v1325_v21  ;;  %v1352_v17 = vld [vmem:[%s16295_s2 + $0xa40] sm:$0xff]  ;;  %v1353_v21 = vld [vmem:[%s16295_s2 + $0xa48] sm:$0xff] }
 0x192   : > { %7396 = vmatprep.subr.bf16.mxu0 %v13450_v31  ;;  %8300 = vmatprep.subr.bf16.mxu1 %v13452_v33  ;;  %v16727_v31 = vpack.c.bf16 %v755_v25, %v739_v22  ;;  %v1328_v33 = vld [vmem:[%s16295_s2 + $0x980] sm:$0xff]  ;;  %v1357_v25 = vld [vmem:[%s16295_s2 + $0xa68] sm:$0xff] }
 0x193   : > { %7323 = vmatprep.mubr.bf16.mxu0 %v16687_v34  ;;  %8227 = vmatprep.mubr.bf16.mxu1 %v16687_v34  ;;  %v1356_v18 = vld [vmem:[%s16295_s2 + $0xa60] sm:$0xff] }
 0x195   : > { %7397 = vmatpush1.bf16.msra.mxu0 %v13449_v40  ;;  %8301 = vmatpush1.bf16.msra.mxu1 %v13451_v45  ;;  %v738_v40 = vld [vmem:[%s16288_s11 + $0x310] sm:$0xff]  ;;  %v13490_v45 = vcombine.high %v1328_v33, %v1332_v35 }
 0x196   : > { %7398 = vmatprep.subr.bf16.mxu0 %v13458_v47  ;;  %8302 = vmatprep.subr.bf16.mxu1 %v13460_v48  ;;  %v13492_v47 = vcombine.high %v1329_v36, %v1333_v37  ;;  %v1336_v48 = vld [vmem:[%s16295_s2 + $0x9c0] sm:$0xff]  ;;  %v16742_v51 = vpack.c.bf16 %v754_v42, %v738_v40  ;;  %v1361_v40 = vld [vmem:[%s16295_s2 + $0xa88] sm:$0xff] }
 0x197   : > { %v13497_v9 = vcombine.low %v1336_v48, %v1340_v49  ;;  %v1365_v42 = vld [vmem:[%s16295_s2 + $0xaa8] sm:$0xff] }
 0x198   : > { %7324 = vmatmul.mubr.bf16.gmra.mrb[4].mxu0 %v16702_v52  ;;  %8228 = vmatmul.mubr.bf16.gmra.mrb[4].mxu1 %v16702_v52 }
 0x199   : > { %7399 = vmatpush1.bf16.msra.mxu0 %v13457_v57  ;;  %8303 = vmatpush1.bf16.msra.mxu1 %v13459_v60  ;;  %v13489_v57 = vcombine.low %v1328_v33, %v1332_v35  ;;  %v13491_v60 = vcombine.low %v1329_v36, %v1333_v37  ;;  %v13514_v33 = vcombine.high %v1352_v17, %v1356_v18  ;;  %v1360_v37 = vld [vmem:[%s16295_s2 + $0xa80] sm:$0xff] }
 0x19a   : > { %7400 = vmatprep.subr.bf16.mxu0 %v13466_v62  ;;  %8304 = vmatprep.subr.bf16.mxu1 %v13468_v63  ;;  %v13498_v62 = vcombine.high %v1336_v48, %v1340_v49  ;;  %v13500_v63 = vcombine.high %v1337_v50, %v1341_v54  ;;  %v13516_v35 = vcombine.high %v1353_v21, %v1357_v25 }
 0x19b   : > { %7333 = vmatprep.mubr.bf16.mxu0 %v16707_v0  ;;  %8237 = vmatprep.mubr.bf16.mxu1 %v16707_v0  ;;  %v13515_v48 = vcombine.low %v1353_v21, %v1357_v25 }
 0x19d   : > { %7401 = vmatpush1.bf16.msra.mxu0 %v13465_v8  ;;  %8305 = vmatpush1.bf16.msra.mxu1 %v13467_v11  ;;  %v1349_v8 = vld [vmem:[%s16295_s2 + $0xa28] sm:$0xff]  ;;  %v786_v11 = vld [vmem:[%s16288_s11 + $0x490] sm:$0xff] }
 0x19e   : > { %7402 = vmatprep.subr.bf16.mxu0 %v13474_v12  ;;  %8306 = vmatprep.subr.bf16.mxu1 %v13476_v13  ;;  %v13499_v12 = vcombine.low %v1337_v50, %v1341_v54  ;;  %v13506_v13 = vcombine.high %v1344_v2, %v1348_v3  ;;  %v13508_v15 = vcombine.high %v1345_v7, %v1349_v8  ;;  %v1368_v54 = vld [vmem:[%s16295_s2 + $0xac0] sm:$0xff] }
 0x19f   : > { %v16762_v22 = vpack.c.bf16 %v786_v11, %v770_v10  ;;  %v13524_v50 = vcombine.high %v1361_v40, %v1365_v42  ;;  %v1376_v10 = vld [vmem:[%s16295_s2 + $0xb00] sm:$0xff] }
 0x1a0   : > { %7334 = vmatmul.mubr.bf16.gmra.mrb[8].mxu0 %v16722_v19  ;;  %8238 = vmatmul.mubr.bf16.gmra.mrb[8].mxu1 %v16722_v19  ;;  %v1380_v11 = vld [vmem:[%s16295_s2 + $0xb20] sm:$0xff] }
 0x1a1   : > { %7403 = vmatpush1.bf16.msra.mxu0 %v13473_v26  ;;  %8307 = vmatpush1.bf16.msra.mxu1 %v13475_v27  ;;  %v803_v26 = vld [vmem:[%s16288_s11 + $0x518] sm:$0xff]  ;;  %v13538_v25 = vcombine.high %v1376_v10, %v1380_v11 }
 0x1a2   : > { %7404 = vmatprep.subr.bf16.mxu0 %v13482_v28  ;;  %8308 = vmatprep.subr.bf16.mxu1 %v13484_v30  ;;  %v819_v27 = vld [vmem:[%s16288_s11 + $0x598] sm:$0xff]  ;;  %v13505_v28 = vcombine.low %v1344_v2, %v1348_v3  ;;  %v13507_v30 = vcombine.low %v1345_v7, %v1349_v8  ;;  %v13523_v3 = vcombine.low %v1361_v40, %v1365_v42 }
 0x1a3   : > { %7343 = vmatprep.mubr.bf16.mxu0 %v16727_v31  ;;  %8247 = vmatprep.mubr.bf16.mxu1 %v16727_v31  ;;  %v16767_v36 = vpack.c.bf16 %v819_v27, %v803_v26  ;;  %v13530_v7 = vcombine.high %v1368_v54, %v1372_v55  ;;  %v1384_v27 = vld [vmem:[%s16295_s2 + $0xb40] sm:$0xff]  ;;  %v13537_v40 = vcombine.low %v1376_v10, %v1380_v11  ;;  %v1405_v11 = vld [vmem:[%s16295_s2 + $0xbe8] sm:$0xff] }
 0x1a5   : > { %7405 = vmatpush1.bf16.msra.mxu0 %v13481_v39  ;;  %8309 = vmatpush1.bf16.msra.mxu1 %v13483_v43  ;;  %v1364_v39 = vld [vmem:[%s16295_s2 + $0xaa0] sm:$0xff]  ;;  %v13513_v43 = vcombine.low %v1352_v17, %v1356_v18  ;;  %v834_v17 = vld [vmem:[%s16288_s11 + $0x610] sm:$0xff] }
 0x1a6   : > { %7406 = vmatprep.subr.bf16.mxu0 %v13490_v45  ;;  %8310 = vmatprep.subr.bf16.mxu1 %v13492_v47  ;;  %v802_v45 = vld [vmem:[%s16288_s11 + $0x510] sm:$0xff]  ;;  %v13522_v49 = vcombine.high %v1360_v37, %v1364_v39  ;;  %v13521_v2 = vcombine.low %v1360_v37, %v1364_v39  ;;  %v867_v37 = vld [vmem:[%s16288_s11 + $0x718] sm:$0xff] }
 0x1a7   : > { %v818_v47 = vld [vmem:[%s16288_s11 + $0x590] sm:$0xff]  ;;  %v883_v39 = vld [vmem:[%s16288_s11 + $0x798] sm:$0xff] }
 0x1a8   : > { %7344 = vmatmul.mubr.bf16.gmra.mrb[12].mxu0 %v16742_v51  ;;  %8248 = vmatmul.mubr.bf16.gmra.mrb[12].mxu1 %v16742_v51  ;;  %v850_v18 = vld [vmem:[%s16288_s11 + $0x690] sm:$0xff] }
 0x1a9   : > { %7407 = vmatpush1.bf16.msra.mxu0 %v13489_v57  ;;  %8311 = vmatpush1.bf16.msra.mxu1 %v13491_v60  ;;  %v16782_v57 = vpack.c.bf16 %v818_v47, %v802_v45  ;;  %v1373_v60 = vld [vmem:[%s16295_s2 + $0xae8] sm:$0xff]  ;;  %v16807_v47 = vpack.c.bf16 %v883_v39, %v867_v37  ;;  %v644_v37 = vld [vmem:[%s16288_s11 + $0x20] sm:$0xff] }
 0x1aa   : > { %7408 = vmatprep.subr.bf16.mxu0 %v13498_v62  ;;  %8312 = vmatprep.subr.bf16.mxu1 %v13500_v63  ;;  %v835_v62 = vld [vmem:[%s16288_s11 + $0x618] sm:$0xff]  ;;  %v13532_v8 = vcombine.high %v1369_v56, %v1373_v60  ;;  %v13531_v21 = vcombine.low %v1369_v56, %v1373_v60  ;;  %v866_v56 = vld [vmem:[%s16288_s11 + $0x710] sm:$0xff]  ;;  %v660_v39 = vld [vmem:[%s16288_s11 + $0xa0] sm:$0xff] }
 0x1ab   : > { %7353 = vmatprep.mubr.bf16.mxu0 %v16747_v1  ;;  %8257 = vmatprep.mubr.bf16.mxu1 %v16747_v1  ;;  %v851_v63 = vld [vmem:[%s16288_s11 + $0x698] sm:$0xff]  ;;  %v882_v60 = vld [vmem:[%s16288_s11 + $0x790] sm:$0xff] }
 0x1ac   : > { %v16822_v10 = vpack.c.bf16 %v882_v60, %v866_v56  ;;  %v693_v56 = vld [vmem:[%s16288_s11 + $0x1a8] sm:$0xff] }
 0x1ad   : > { %7409 = vmatpush1.bf16.msra.mxu0 %v13497_v9  ;;  %8313 = vmatpush1.bf16.msra.mxu1 %v13499_v12  ;;  %v16787_v9 = vpack.c.bf16 %v851_v63, %v835_v62  ;;  %v1377_v12 = vld [vmem:[%s16295_s2 + $0xb08] sm:$0xff] }
 0x1ae   : > { %7410 = vmatprep.subr.bf16.mxu0 %v13506_v13  ;;  %8314 = vmatprep.subr.bf16.mxu1 %v13508_v15  ;;  %v1381_v13 = vld [vmem:[%s16295_s2 + $0xb28] sm:$0xff]  ;;  %v13529_v15 = vcombine.low %v1368_v54, %v1372_v55 }
 0x1af   : > { %v13540_v26 = vcombine.high %v1377_v12, %v1381_v13  ;;  %v13539_v42 = vcombine.low %v1377_v12, %v1381_v13  ;;  %v1397_v54 = vld [vmem:[%s16295_s2 + $0xba8] sm:$0xff] }
 0x1b0   : > { %7354 = vmatmul.mubr.bf16.gmra.mrb[16].mxu0 %v16762_v22  ;;  %8258 = vmatmul.mubr.bf16.gmra.mrb[16].mxu1 %v16762_v22  ;;  %v645_v12 = vld [vmem:[%s16288_s11 + $0x28] sm:$0xff] }
 0x1b1   : > { %7411 = vmatpush1.bf16.msra.mxu0 %v13505_v28  ;;  %8315 = vmatpush1.bf16.msra.mxu1 %v13507_v30  ;;  %v1388_v28 = vld [vmem:[%s16295_s2 + $0xb60] sm:$0xff]  ;;  %v1385_v30 = vld [vmem:[%s16295_s2 + $0xb48] sm:$0xff] }
 0x1b2   : > { %7412 = vmatprep.subr.bf16.mxu0 %v13514_v33  ;;  %8316 = vmatprep.subr.bf16.mxu1 %v13516_v35  ;;  %v16802_v33 = vpack.c.bf16 %v850_v18, %v834_v17  ;;  %v1389_v35 = vld [vmem:[%s16295_s2 + $0xb68] sm:$0xff]  ;;  %v13545_v55 = vcombine.low %v1384_v27, %v1388_v28 }
 0x1b3   : > { %7363 = vmatprep.mubr.bf16.mxu0 %v16767_v36  ;;  %8267 = vmatprep.mubr.bf16.mxu1 %v16767_v36  ;;  %v13548_v45 = vcombine.high %v1385_v30, %v1389_v35  ;;  %v13547_v62 = vcombine.low %v1385_v30, %v1389_v35  ;;  %v661_v13 = vld [vmem:[%s16288_s11 + $0xa8] sm:$0xff] }
 0x1b4   : > { %v1413_v30 = vld [vmem:[%s16295_s2 + $0xc28] sm:$0xff] }
 0x1b5   : > { %7413 = vmatpush1.bf16.msra.mxu0 %v13513_v43  ;;  %8317 = vmatpush1.bf16.msra.mxu1 %v13515_v48  ;;  %v13546_v43 = vcombine.high %v1384_v27, %v1388_v28  ;;  %v1392_v48 = vld [vmem:[%s16295_s2 + $0xb80] sm:$0xff]  ;;  %v1409_v28 = vld [vmem:[%s16295_s2 + $0xc08] sm:$0xff] }
 0x1b6   : > { %7414 = vmatprep.subr.bf16.mxu0 %v13522_v49  ;;  %8318 = vmatprep.subr.bf16.mxu1 %v13524_v50  ;;  %v1396_v49 = vld [vmem:[%s16295_s2 + $0xba0] sm:$0xff]  ;;  %v1393_v50 = vld [vmem:[%s16295_s2 + $0xb88] sm:$0xff] }
 0x1b7   : > { %v13554_v63 = vcombine.high %v1392_v48, %v1396_v49  ;;  %v13555_v17 = vcombine.low %v1393_v50, %v1397_v54  ;;  %v1412_v27 = vld [vmem:[%s16295_s2 + $0xc20] sm:$0xff] }
 0x1b8   : > { %7364 = vmatmul.mubr.bf16.gmra.mrb[20].mxu0 %v16782_v57  ;;  %8268 = vmatmul.mubr.bf16.gmra.mrb[20].mxu1 %v16782_v57 }
 0x1b9   : > { %7415 = vmatpush1.bf16.msra.mxu0 %v13521_v2  ;;  %8319 = vmatpush1.bf16.msra.mxu1 %v13523_v3  ;;  %v13556_v2 = vcombine.high %v1393_v50, %v1397_v54  ;;  %v1400_v3 = vld [vmem:[%s16295_s2 + $0xbc0] sm:$0xff]  ;;  %v16842_v50 = vpack.c.bf16 %v660_v39, %v644_v37  ;;  %v1421_v54 = vld [vmem:[%s16295_s2 + $0xc68] sm:$0xff] }
 0x1ba   : > { %7416 = vmatprep.subr.bf16.mxu0 %v13530_v7  ;;  %8320 = vmatprep.subr.bf16.mxu1 %v13532_v8  ;;  %v1404_v7 = vld [vmem:[%s16295_s2 + $0xbe0] sm:$0xff]  ;;  %v1401_v8 = vld [vmem:[%s16295_s2 + $0xbc8] sm:$0xff] }
 0x1bb   : > { %7373 = vmatprep.mubr.bf16.mxu0 %v16787_v9  ;;  %8277 = vmatprep.mubr.bf16.mxu1 %v16787_v9  ;;  %v13562_v18 = vcombine.high %v1400_v3, %v1404_v7  ;;  %v13561_v35 = vcombine.low %v1400_v3, %v1404_v7  ;;  %v1424_v7 = vld [vmem:[%s16295_s2 + $0xc80] sm:$0xff]  ;;  %v1437_v37 = vld [vmem:[%s16295_s2 + $0xce8] sm:$0xff] }
 0x1bc   : > { %v709_v39 = vld [vmem:[%s16288_s11 + $0x228] sm:$0xff] }
 0x1bd   : > { %7417 = vmatpush1.bf16.msra.mxu0 %v13529_v15  ;;  %8321 = vmatpush1.bf16.msra.mxu1 %v13531_v21  ;;  %v13553_v15 = vcombine.low %v1392_v48, %v1396_v49  ;;  %v13564_v21 = vcombine.high %v1401_v8, %v1405_v11  ;;  %v1420_v48 = vld [vmem:[%s16295_s2 + $0xc60] sm:$0xff]  ;;  %v1417_v49 = vld [vmem:[%s16295_s2 + $0xc48] sm:$0xff] }
 0x1be   : > { %7418 = vmatprep.subr.bf16.mxu0 %v13538_v25  ;;  %8322 = vmatprep.subr.bf16.mxu1 %v13540_v26  ;;  %v16827_v25 = vpack.c.bf16 %v661_v13, %v645_v12  ;;  %v1408_v26 = vld [vmem:[%s16295_s2 + $0xc00] sm:$0xff]  ;;  %v1429_v12 = vld [vmem:[%s16295_s2 + $0xca8] sm:$0xff] }
 0x1bf   : > { %v13569_v60 = vcombine.low %v1408_v26, %v1412_v27 }
 0x1c0   : > { %7374 = vmatmul.mubr.bf16.gmra.mrb[24].mxu0 %v16802_v33  ;;  %8278 = vmatmul.mubr.bf16.gmra.mrb[24].mxu1 %v16802_v33 }
 0x1c1   : > { %7419 = vmatpush1.bf16.msra.mxu0 %v13537_v40  ;;  %8323 = vmatpush1.bf16.msra.mxu1 %v13539_v42  ;;  %v13563_v40 = vcombine.low %v1401_v8, %v1405_v11  ;;  %v13570_v42 = vcombine.high %v1408_v26, %v1412_v27  ;;  %v1428_v8 = vld [vmem:[%s16295_s2 + $0xca0] sm:$0xff]  ;;  %v1425_v11 = vld [vmem:[%s16295_s2 + $0xc88] sm:$0xff] }
 0x1c2   : > { %7420 = vmatprep.subr.bf16.mxu0 %v13546_v43  ;;  %8324 = vmatprep.subr.bf16.mxu1 %v13548_v45  ;;  %v13572_v43 = vcombine.high %v1409_v28, %v1413_v30  ;;  %v1416_v45 = vld [vmem:[%s16295_s2 + $0xc40] sm:$0xff]  ;;  %v13588_v26 = vcombine.high %v1425_v11, %v1429_v12 }
 0x1c3   : > { %7383 = vmatprep.mubr.bf16.mxu0 %v16807_v47  ;;  %8287 = vmatprep.mubr.bf16.mxu1 %v16807_v47  ;;  %v13577_v13 = vcombine.low %v1416_v45, %v1420_v48  ;;  %v1432_v27 = vld [vmem:[%s16295_s2 + $0xcc0] sm:$0xff] }
 0x1c5   : > { %7421 = vmatpush1.bf16.msra.mxu0 %v13545_v55  ;;  %8325 = vmatpush1.bf16.msra.mxu1 %v13547_v62  ;;  %v677_v55 = vld [vmem:[%s16288_s11 + $0x128] sm:$0xff]  ;;  %v13571_v62 = vcombine.low %v1409_v28, %v1413_v30  ;;  %v1436_v28 = vld [vmem:[%s16295_s2 + $0xce0] sm:$0xff] }
 0x1c6   : > { %7422 = vmatprep.subr.bf16.mxu0 %v13554_v63  ;;  %8326 = vmatprep.subr.bf16.mxu1 %v13556_v2  ;;  %v13578_v63 = vcombine.high %v1416_v45, %v1420_v48  ;;  %v13580_v2 = vcombine.high %v1417_v49, %v1421_v54  ;;  %v16847_v3 = vpack.c.bf16 %v693_v56, %v677_v55  ;;  %v1433_v30 = vld [vmem:[%s16295_s2 + $0xcc8] sm:$0xff]  ;;  %v1444_v55 = vld [vmem:[%s16295_s2 + $0xd20] sm:$0xff] }
 0x1c7   : > { %v13594_v45 = vcombine.high %v1432_v27, %v1436_v28  ;;  %v13596_v48 = vcombine.high %v1433_v30, %v1437_v37  ;;  %v1441_v56 = vld [vmem:[%s16295_s2 + $0xd08] sm:$0xff] }
 0x1c8   : > { %7384 = vmatmul.mubr.bf16.gmra.mrb[28].mxu0 %v16822_v10  ;;  %8288 = vmatmul.mubr.bf16.gmra.mrb[28].mxu1 %v16822_v10 }
 0x1c9   : > { %7423 = vmatpush1.bf16.msra.mxu0 %v13553_v15  ;;  %8327 = vmatpush1.bf16.msra.mxu1 %v13555_v17  ;;  %v676_v15 = vld [vmem:[%s16288_s11 + $0x120] sm:$0xff] }
 0x1ca   : > { %7424 = vmatprep.subr.bf16.mxu0 %v13562_v18  ;;  %8328 = vmatprep.subr.bf16.mxu1 %v13564_v21  ;;  %v692_v17 = vld [vmem:[%s16288_s11 + $0x1a0] sm:$0xff]  ;;  %v13579_v18 = vcombine.low %v1417_v49, %v1421_v54  ;;  %v13586_v21 = vcombine.high %v1424_v7, %v1428_v8 }
 0x1cb   : > { %7426 = vmatprep.mubr.bf16.mxu0 %v16827_v25  ;;  %8330 = vmatprep.mubr.bf16.mxu1 %v16827_v25  ;;  %v1440_v54 = vld [vmem:[%s16295_s2 + $0xd00] sm:$0xff] }
 0x1cd   : > { %7425 = vmatpush1.bf16.msra.mxu0 %v13561_v35  ;;  %8329 = vmatpush1.bf16.msra.mxu1 %v13563_v40  ;;  %v16862_v35 = vpack.c.bf16 %v692_v17, %v676_v15  ;;  %v725_v40 = vld [vmem:[%s16288_s11 + $0x2a8] sm:$0xff] }
 0x1ce   : > { %7507 = vmatprep.subr.bf16.mxu0 %v13570_v42  ;;  %8411 = vmatprep.subr.bf16.mxu1 %v13572_v43  ;;  %v13585_v42 = vcombine.low %v1424_v7, %v1428_v8  ;;  %v13587_v43 = vcombine.low %v1425_v11, %v1429_v12  ;;  %v16867_v49 = vpack.c.bf16 %v725_v40, %v709_v39  ;;  %v1448_v12 = vld [vmem:[%s16295_s2 + $0xd40] sm:$0xff]  ;;  %v1449_v15 = vld [vmem:[%s16295_s2 + $0xd48] sm:$0xff] }
 0x1cf   : > { %v13595_v7 = vcombine.low %v1433_v30, %v1437_v37  ;;  %v13602_v8 = vcombine.high %v1440_v54, %v1444_v55  ;;  %v1456_v40 = vld [vmem:[%s16295_s2 + $0xd80] sm:$0xff] }
 0x1d0   : > { %7427 = vmatmul.mubr.bf16.vlgmr.msra.gmra.mrb[0].mxu0 %v16842_v50  ;;  %8331 = vmatmul.mubr.bf16.vlgmr.msra.gmra.mrb[0].mxu1 %v16842_v50 }
 0x1d1   : > { %7508 = vmatpush1.bf16.msra.mxu0 %v13569_v60  ;;  %8412 = vmatpush1.bf16.msra.mxu1 %v13571_v62  ;;  %v1445_v60 = vld [vmem:[%s16295_s2 + $0xd28] sm:$0xff]  ;;  %v13593_v62 = vcombine.low %v1432_v27, %v1436_v28  ;;  %v13601_v27 = vcombine.low %v1440_v54, %v1444_v55  ;;  %v740_v54 = vld [vmem:[%s16288_s11 + $0x320] sm:$0xff] }
 0x1d2   : > { %7509 = vmatprep.subr.bf16.mxu0 %v13578_v63  ;;  %8413 = vmatprep.subr.bf16.mxu1 %v13580_v2  ;;  %v708_v63 = vld [vmem:[%s16288_s11 + $0x220] sm:$0xff]  ;;  %v13604_v11 = vcombine.high %v1441_v56, %v1445_v60  ;;  %v13603_v28 = vcombine.low %v1441_v56, %v1445_v60 }
 0x1d3   : > { %7436 = vmatprep.mubr.bf16.mxu0 %v16847_v3  ;;  %8340 = vmatprep.mubr.bf16.mxu1 %v16847_v3  ;;  %v724_v2 = vld [vmem:[%s16288_s11 + $0x2a0] sm:$0xff] }
 0x1d4   : > { %v16882_v17 = vpack.c.bf16 %v724_v2, %v708_v63  ;;  %v756_v55 = vld [vmem:[%s16288_s11 + $0x3a0] sm:$0xff] }
 0x1d5   : > { %7510 = vmatpush1.bf16.msra.mxu0 %v13577_v13  ;;  %8414 = vmatpush1.bf16.msra.mxu1 %v13579_v18  ;;  %v1452_v13 = vld [vmem:[%s16295_s2 + $0xd60] sm:$0xff]  ;;  %v1453_v18 = vld [vmem:[%s16295_s2 + $0xd68] sm:$0xff] }
 0x1d6   : > { %7511 = vmatprep.subr.bf16.mxu0 %v13586_v21  ;;  %8415 = vmatprep.subr.bf16.mxu1 %v13588_v26  ;;  %v741_v21 = vld [vmem:[%s16288_s11 + $0x328] sm:$0xff]  ;;  %v13610_v30 = vcombine.high %v1448_v12, %v1452_v13  ;;  %v13612_v37 = vcombine.high %v1449_v15, %v1453_v18  ;;  %v13611_v56 = vcombine.low %v1449_v15, %v1453_v18  ;;  %v1464_v63 = vld [vmem:[%s16295_s2 + $0xdc0] sm:$0xff] }
 0x1d7   : > { %v757_v26 = vld [vmem:[%s16288_s11 + $0x3a8] sm:$0xff]  ;;  %v1468_v2 = vld [vmem:[%s16295_s2 + $0xde0] sm:$0xff] }
 0x1d8   : > { %7437 = vmatmul.mubr.bf16.gmra.mrb[4].mxu0 %v16862_v35  ;;  %8341 = vmatmul.mubr.bf16.gmra.mrb[4].mxu1 %v16862_v35  ;;  %v16887_v39 = vpack.c.bf16 %v757_v26, %v741_v21  ;;  %v13626_v21 = vcombine.high %v1464_v63, %v1468_v2 }
 0x1d9   : > { %7512 = vmatpush1.bf16.msra.mxu0 %v13585_v42  ;;  %8416 = vmatpush1.bf16.msra.mxu1 %v13587_v43  ;;  %v1460_v42 = vld [vmem:[%s16295_s2 + $0xda0] sm:$0xff]  ;;  %v1457_v43 = vld [vmem:[%s16295_s2 + $0xd88] sm:$0xff] }
 0x1da   : > { %7513 = vmatprep.subr.bf16.mxu0 %v13594_v45  ;;  %8417 = vmatprep.subr.bf16.mxu1 %v13596_v48  ;;  %v1461_v45 = vld [vmem:[%s16295_s2 + $0xda8] sm:$0xff]  ;;  %v13609_v48 = vcombine.low %v1448_v12, %v1452_v13  ;;  %v13618_v60 = vcombine.high %v1456_v40, %v1460_v42  ;;  %v13617_v15 = vcombine.low %v1456_v40, %v1460_v42  ;;  %v772_v42 = vld [vmem:[%s16288_s11 + $0x420] sm:$0xff] }
 0x1db   : > { %7446 = vmatprep.mubr.bf16.mxu0 %v16867_v49  ;;  %8350 = vmatprep.mubr.bf16.mxu1 %v16867_v49  ;;  %v773_v12 = vld [vmem:[%s16288_s11 + $0x428] sm:$0xff]  ;;  %v13619_v18 = vcombine.low %v1457_v43, %v1461_v45  ;;  %v13625_v40 = vcombine.low %v1464_v63, %v1468_v2 }
 0x1dc   : > { %v789_v13 = vld [vmem:[%s16288_s11 + $0x4a8] sm:$0xff] }
 0x1dd   : > { %7514 = vmatpush1.bf16.msra.mxu0 %v13593_v62  ;;  %8418 = vmatpush1.bf16.msra.mxu1 %v13595_v7  ;;  %v13620_v62 = vcombine.high %v1457_v43, %v1461_v45  ;;  %v1465_v7 = vld [vmem:[%s16295_s2 + $0xdc8] sm:$0xff]  ;;  %v788_v43 = vld [vmem:[%s16288_s11 + $0x4a0] sm:$0xff] }
 0x1de   : > { %7515 = vmatprep.subr.bf16.mxu0 %v13602_v8  ;;  %8419 = vmatprep.subr.bf16.mxu1 %v13604_v11  ;;  %v16902_v8 = vpack.c.bf16 %v756_v55, %v740_v54  ;;  %v1469_v11 = vld [vmem:[%s16295_s2 + $0xde8] sm:$0xff]  ;;  %v16922_v63 = vpack.c.bf16 %v788_v43, %v772_v42  ;;  %v1492_v42 = vld [vmem:[%s16295_s2 + $0xea0] sm:$0xff] }
 0x1df   : > { %v13628_v26 = vcombine.high %v1465_v7, %v1469_v11  ;;  %v13627_v45 = vcombine.low %v1465_v7, %v1469_v11  ;;  %v1485_v2 = vld [vmem:[%s16295_s2 + $0xe68] sm:$0xff] }
 0x1e0   : > { %7447 = vmatmul.mubr.bf16.gmra.mrb[8].mxu0 %v16882_v17  ;;  %8351 = vmatmul.mubr.bf16.gmra.mrb[8].mxu1 %v16882_v17  ;;  %19518 = vst [vmem:[#allocation19_spill] sm:$0xff] %v16922_v63  ;;  %v1489_v43 = vld [vmem:[%s16295_s2 + $0xe88] sm:$0xff] }
 0x1e1   : > { %7516 = vmatpush1.bf16.msra.mxu0 %v13601_v27  ;;  %8420 = vmatpush1.bf16.msra.mxu1 %v13603_v28  ;;  %v16907_v27 = vpack.c.bf16 %v789_v13, %v773_v12  ;;  %v1472_v28 = vld [vmem:[%s16295_s2 + $0xe00] sm:$0xff]  ;;  %v805_v12 = vld [vmem:[%s16288_s11 + $0x528] sm:$0xff] }
 0x1e2   : > { %7517 = vmatprep.subr.bf16.mxu0 %v13610_v30  ;;  %8421 = vmatprep.subr.bf16.mxu1 %v13612_v37  ;;  %v1476_v30 = vld [vmem:[%s16295_s2 + $0xe20] sm:$0xff]  ;;  %v1473_v37 = vld [vmem:[%s16295_s2 + $0xe08] sm:$0xff] }
 0x1e3   : > { %7456 = vmatprep.mubr.bf16.mxu0 %v16887_v39  ;;  %8360 = vmatprep.mubr.bf16.mxu1 %v16887_v39  ;;  %19517 = vst [vmem:[#allocation18_spill] sm:$0xff] %v16907_v27  ;;  %v13634_v54 = vcombine.high %v1472_v28, %v1476_v30  ;;  %v821_v13 = vld [vmem:[%s16288_s11 + $0x5a8] sm:$0xff]  ;;  %v13633_v7 = vcombine.low %v1472_v28, %v1476_v30  ;;  %v804_v30 = vld [vmem:[%s16288_s11 + $0x520] sm:$0xff] }
 0x1e5   : > { %7518 = vmatpush1.bf16.msra.mxu0 %v13609_v48  ;;  %8422 = vmatpush1.bf16.msra.mxu1 %v13611_v56  ;;  %v1477_v48 = vld [vmem:[%s16295_s2 + $0xe28] sm:$0xff]  ;;  %v1480_v56 = vld [vmem:[%s16295_s2 + $0xe40] sm:$0xff] }
 0x1e6   : > { %7519 = vmatprep.subr.bf16.mxu0 %v13618_v60  ;;  %8423 = vmatprep.subr.bf16.mxu1 %v13620_v62  ;;  %v13636_v55 = vcombine.high %v1473_v37, %v1477_v48  ;;  %v1484_v60 = vld [vmem:[%s16295_s2 + $0xe60] sm:$0xff]  ;;  %v1481_v62 = vld [vmem:[%s16295_s2 + $0xe48] sm:$0xff]  ;;  %v13635_v11 = vcombine.low %v1473_v37, %v1477_v48 }
 0x1e7   : > { %v13641_v28 = vcombine.low %v1480_v56, %v1484_v60  ;;  %v820_v37 = vld [vmem:[%s16288_s11 + $0x5a0] sm:$0xff]  ;;  %v13643_v48 = vcombine.low %v1481_v62, %v1485_v2 }
 0x1e8   : > { %7457 = vmatmul.mubr.bf16.gmra.mrb[12].mxu0 %v16902_v8  ;;  %8361 = vmatmul.mubr.bf16.gmra.mrb[12].mxu1 %v16902_v8 }
 0x1e9   : > { %7520 = vmatpush1.bf16.msra.mxu0 %v13617_v15  ;;  %8424 = vmatpush1.bf16.msra.mxu1 %v13619_v18  ;;  %v13642_v15 = vcombine.high %v1480_v56, %v1484_v60  ;;  %v13644_v18 = vcombine.high %v1481_v62, %v1485_v2  ;;  %v16942_v56 = vpack.c.bf16 %v820_v37, %v804_v30  ;;  %v1501_v60 = vld [vmem:[%s16295_s2 + $0xee8] sm:$0xff]  ;;  %v1508_v30 = vld [vmem:[%s16295_s2 + $0xf20] sm:$0xff] }
 0x1ea   : > { %7521 = vmatprep.subr.bf16.mxu0 %v13626_v21  ;;  %8425 = vmatprep.subr.bf16.mxu1 %v13628_v26  ;;  %v16927_v21 = vpack.c.bf16 %v821_v13, %v805_v12  ;;  %v1488_v26 = vld [vmem:[%s16295_s2 + $0xe80] sm:$0xff]  ;;  %v1497_v13 = vld [vmem:[%s16295_s2 + $0xec8] sm:$0xff] }
 0x1eb   : > { %7466 = vmatprep.mubr.bf16.mxu0 %v16907_v27  ;;  %8370 = vmatprep.mubr.bf16.mxu1 %v16907_v27  ;;  %v1500_v12 = vld [vmem:[%s16295_s2 + $0xee0] sm:$0xff]  ;;  %19520 = vst [vmem:[#allocation21_spill] sm:$0xff] %v16942_v56  ;;  %v13649_v62 = vcombine.low %v1488_v26, %v1492_v42  ;;  %v1505_v37 = vld [vmem:[%s16295_s2 + $0xf08] sm:$0xff]  ;;  %v1143_v27 = vld [vmem:[%s16295_s2 + $0x3b8] sm:$0xff] }
 0x1ec   : > { %19519 = vst [vmem:[#allocation20_spill] sm:$0xff] %v16927_v21 }
 0x1ed   : > { %7522 = vmatpush1.bf16.msra.mxu0 %v13625_v40  ;;  %8426 = vmatpush1.bf16.msra.mxu1 %v13627_v45  ;;  %v1493_v40 = vld [vmem:[%s16295_s2 + $0xea8] sm:$0xff]  ;;  %v13650_v45 = vcombine.high %v1488_v26, %v1492_v42  ;;  %v836_v42 = vld [vmem:[%s16288_s11 + $0x620] sm:$0xff] }
 0x1ee   : > { %7523 = vmatprep.subr.bf16.mxu0 %v13634_v54  ;;  %8427 = vmatprep.subr.bf16.mxu1 %v13636_v55  ;;  %v13652_v54 = vcombine.high %v1489_v43, %v1493_v40  ;;  %v1496_v55 = vld [vmem:[%s16295_s2 + $0xec0] sm:$0xff]  ;;  %v13651_v2 = vcombine.low %v1489_v43, %v1493_v40  ;;  %v13659_v40 = vcombine.low %v1497_v13, %v1501_v60 }
 0x1ef   : > { %v13657_v26 = vcombine.low %v1496_v55, %v1500_v12  ;;  %v852_v43 = vld [vmem:[%s16288_s11 + $0x6a0] sm:$0xff] }
 0x1f0   : > { %7467 = vmatmul.mubr.bf16.gmra.mrb[16].mxu0 %v16922_v63  ;;  %8371 = vmatmul.mubr.bf16.gmra.mrb[16].mxu1 %v16922_v63 }
 0x1f1   : > { %7524 = vmatpush1.bf16.msra.mxu0 %v13633_v7  ;;  %8428 = vmatpush1.bf16.msra.mxu1 %v13635_v11  ;;  %v837_v7 = vld [vmem:[%s16288_s11 + $0x628] sm:$0xff] }
 0x1f2   : > { %7525 = vmatprep.subr.bf16.mxu0 %v13642_v15  ;;  %8429 = vmatprep.subr.bf16.mxu1 %v13644_v18  ;;  %v853_v11 = vld [vmem:[%s16288_s11 + $0x6a8] sm:$0xff]  ;;  %v13658_v15 = vcombine.high %v1496_v55, %v1500_v12  ;;  %v13660_v18 = vcombine.high %v1497_v13, %v1501_v60  ;;  %v16962_v55 = vpack.c.bf16 %v852_v43, %v836_v42  ;;  %v1524_v42 = vld [vmem:[%s16295_s2 + $0xfa0] sm:$0xff] }
 0x1f3   : > { %7476 = vmatprep.mubr.bf16.mxu0 %v16927_v21  ;;  %8380 = vmatprep.mubr.bf16.mxu1 %v16927_v21  ;;  %v16947_v63 = vpack.c.bf16 %v853_v11, %v837_v7  ;;  %v1504_v21 = vld [vmem:[%s16295_s2 + $0xf00] sm:$0xff]  ;;  %v1513_v11 = vld [vmem:[%s16295_s2 + $0xf48] sm:$0xff] }
 0x1f4   : > { %v1516_v7 = vld [vmem:[%s16295_s2 + $0xf60] sm:$0xff]  ;;  %19522 = vst [vmem:[#allocation23_spill] sm:$0xff] %v16962_v55  ;;  %v1517_v12 = vld [vmem:[%s16295_s2 + $0xf68] sm:$0xff]  ;;  %v13665_v13 = vcombine.low %v1504_v21, %v1508_v30 }
 0x1f5   : > { %7526 = vmatpush1.bf16.msra.mxu0 %v13641_v28  ;;  %8430 = vmatpush1.bf16.msra.mxu1 %v13643_v48  ;;  %19521 = vst [vmem:[#allocation22_spill] sm:$0xff] %v16947_v63  ;;  %v1509_v28 = vld [vmem:[%s16295_s2 + $0xf28] sm:$0xff]  ;;  %v13666_v48 = vcombine.high %v1504_v21, %v1508_v30  ;;  %v868_v30 = vld [vmem:[%s16288_s11 + $0x720] sm:$0xff] }
 0x1f6   : > { %7527 = vmatprep.subr.bf16.mxu0 %v13650_v45  ;;  %8431 = vmatprep.subr.bf16.mxu1 %v13652_v54  ;;  %v13668_v45 = vcombine.high %v1505_v37, %v1509_v28  ;;  %v1512_v54 = vld [vmem:[%s16295_s2 + $0xf40] sm:$0xff]  ;;  %v13667_v60 = vcombine.low %v1505_v37, %v1509_v28  ;;  %v1521_v43 = vld [vmem:[%s16295_s2 + $0xf88] sm:$0xff]  ;;  %v13675_v28 = vcombine.low %v1513_v11, %v1517_v12 }
 0x1f7   : > { %v13673_v21 = vcombine.low %v1512_v54, %v1516_v7  ;;  %v884_v37 = vld [vmem:[%s16288_s11 + $0x7a0] sm:$0xff] }
 0x1f8   : > { %7477 = vmatmul.mubr.bf16.gmra.mrb[20].mxu0 %v16942_v56  ;;  %8381 = vmatmul.mubr.bf16.gmra.mrb[20].mxu1 %v16942_v56 }
 0x1f9   : > { %7528 = vmatpush1.bf16.msra.mxu0 %v13649_v62  ;;  %8432 = vmatpush1.bf16.msra.mxu1 %v13651_v2  ;;  %v869_v62 = vld [vmem:[%s16288_s11 + $0x728] sm:$0xff] }
 0x1fa   : > { %7529 = vmatprep.subr.bf16.mxu0 %v13658_v15  ;;  %8433 = vmatprep.subr.bf16.mxu1 %v13660_v18  ;;  %v885_v2 = vld [vmem:[%s16288_s11 + $0x7a8] sm:$0xff]  ;;  %v13674_v15 = vcombine.high %v1512_v54, %v1516_v7  ;;  %v13676_v18 = vcombine.high %v1513_v11, %v1517_v12  ;;  %v16982_v54 = vpack.c.bf16 %v884_v37, %v868_v30  ;;  %v1540_v30 = vld [vmem:[%s16295_s2 + $0x1020] sm:$0xff] }
 0x1fb   : > { %7486 = vmatprep.mubr.bf16.mxu0 %v16947_v63  ;;  %8390 = vmatprep.mubr.bf16.mxu1 %v16947_v63  ;;  %v16967_v56 = vpack.c.bf16 %v885_v2, %v869_v62  ;;  %v1520_v63 = vld [vmem:[%s16295_s2 + $0xf80] sm:$0xff]  ;;  %v1529_v2 = vld [vmem:[%s16295_s2 + $0xfc8] sm:$0xff] }
 0x1fc   : > { %v1532_v62 = vld [vmem:[%s16295_s2 + $0xfe0] sm:$0xff]  ;;  %19524 = vst [vmem:[#allocation25_spill] sm:$0xff] %v16982_v54  ;;  %v1533_v7 = vld [vmem:[%s16295_s2 + $0xfe8] sm:$0xff]  ;;  %v13681_v11 = vcombine.low %v1520_v63, %v1524_v42 }
 0x1fd   : > { %7530 = vmatpush1.bf16.msra.mxu0 %v13657_v26  ;;  %8434 = vmatpush1.bf16.msra.mxu1 %v13659_v40  ;;  %19523 = vst [vmem:[#allocation24_spill] sm:$0xff] %v16967_v56  ;;  %v1525_v26 = vld [vmem:[%s16295_s2 + $0xfa8] sm:$0xff]  ;;  %v13682_v40 = vcombine.high %v1520_v63, %v1524_v42  ;;  %v646_v42 = vld [vmem:[%s16288_s11 + $0x30] sm:$0xff] }
 0x1fe   : > { %7531 = vmatprep.subr.bf16.mxu0 %v13666_v48  ;;  %8435 = vmatprep.subr.bf16.mxu1 %v13668_v45  ;;  %v13684_v48 = vcombine.high %v1521_v43, %v1525_v26  ;;  %v1528_v45 = vld [vmem:[%s16295_s2 + $0xfc0] sm:$0xff]  ;;  %v13683_v12 = vcombine.low %v1521_v43, %v1525_v26  ;;  %v1537_v37 = vld [vmem:[%s16295_s2 + $0x1008] sm:$0xff]  ;;  %v662_v43 = vld [vmem:[%s16288_s11 + $0xb0] sm:$0xff]  ;;  %v13691_v26 = vcombine.low %v1529_v2, %v1533_v7 }
 0x1ff   : > { %v13689_v63 = vcombine.low %v1528_v45, %v1532_v62 }
 0x200   : > { %7487 = vmatmul.mubr.bf16.gmra.mrb[24].mxu0 %v16962_v55  ;;  %8391 = vmatmul.mubr.bf16.gmra.mrb[24].mxu1 %v16962_v55 }
 0x201   : > { %7532 = vmatpush1.bf16.msra.mxu0 %v13665_v13  ;;  %8436 = vmatpush1.bf16.msra.mxu1 %v13667_v60  ;;  %v647_v13 = vld [vmem:[%s16288_s11 + $0x38] sm:$0xff] }
 0x202   : > { %7533 = vmatprep.subr.bf16.mxu0 %v13674_v15  ;;  %8437 = vmatprep.subr.bf16.mxu1 %v13676_v18  ;;  %v663_v60 = vld [vmem:[%s16288_s11 + $0xb8] sm:$0xff]  ;;  %v13690_v15 = vcombine.high %v1528_v45, %v1532_v62  ;;  %v13692_v18 = vcombine.high %v1529_v2, %v1533_v7  ;;  %v17002_v45 = vpack.c.bf16 %v662_v43, %v646_v42  ;;  %v1549_v62 = vld [vmem:[%s16295_s2 + $0x1068] sm:$0xff]  ;;  %v1556_v42 = vld [vmem:[%s16295_s2 + $0x10a0] sm:$0xff] }
 0x203   : > { %7496 = vmatprep.mubr.bf16.mxu0 %v16967_v56  ;;  %8400 = vmatprep.mubr.bf16.mxu1 %v16967_v56  ;;  %v16987_v55 = vpack.c.bf16 %v663_v60, %v647_v13  ;;  %v1536_v56 = vld [vmem:[%s16295_s2 + $0x1000] sm:$0xff]  ;;  %v1545_v60 = vld [vmem:[%s16295_s2 + $0x1048] sm:$0xff] }
 0x204   : > { %v1548_v13 = vld [vmem:[%s16295_s2 + $0x1060] sm:$0xff]  ;;  %19526 = vst [vmem:[#allocation27_spill] sm:$0xff] %v17002_v45  ;;  %v13697_v2 = vcombine.low %v1536_v56, %v1540_v30  ;;  %v1553_v43 = vld [vmem:[%s16295_s2 + $0x1088] sm:$0xff] }
 0x205   : > { %7534 = vmatpush1.bf16.msra.mxu0 %v13673_v21  ;;  %8438 = vmatpush1.bf16.msra.mxu1 %v13675_v28  ;;  %19525 = vst [vmem:[#allocation26_spill] sm:$0xff] %v16987_v55  ;;  %v1541_v21 = vld [vmem:[%s16295_s2 + $0x1028] sm:$0xff]  ;;  %v13698_v28 = vcombine.high %v1536_v56, %v1540_v30  ;;  %v678_v30 = vld [vmem:[%s16288_s11 + $0x130] sm:$0xff] }
 0x206   : > { %7535 = vmatprep.subr.bf16.mxu0 %v13682_v40  ;;  %8439 = vmatprep.subr.bf16.mxu1 %v13684_v48  ;;  %v13700_v40 = vcombine.high %v1537_v37, %v1541_v21  ;;  %v1544_v48 = vld [vmem:[%s16295_s2 + $0x1040] sm:$0xff]  ;;  %v13699_v7 = vcombine.low %v1537_v37, %v1541_v21  ;;  %v694_v37 = vld [vmem:[%s16288_s11 + $0x1b0] sm:$0xff]  ;;  %v13707_v21 = vcombine.low %v1545_v60, %v1549_v62 }
 0x207   : > { %v13705_v56 = vcombine.low %v1544_v48, %v1548_v13 }
 0x208   : > { %7497 = vmatmul.mubr.bf16.gmra.mrb[28].mxu0 %v16982_v54  ;;  %8401 = vmatmul.mubr.bf16.gmra.mrb[28].mxu1 %v16982_v54 }
 0x209   : > { %7536 = vmatpush1.bf16.msra.mxu0 %v13681_v11  ;;  %8440 = vmatpush1.bf16.msra.mxu1 %v13683_v12  ;;  %v679_v11 = vld [vmem:[%s16288_s11 + $0x138] sm:$0xff] }
 0x20a   : > { %7537 = vmatprep.subr.bf16.mxu0 %v13690_v15  ;;  %8441 = vmatprep.subr.bf16.mxu1 %v13692_v18  ;;  %v695_v12 = vld [vmem:[%s16288_s11 + $0x1b8] sm:$0xff]  ;;  %v13706_v15 = vcombine.high %v1544_v48, %v1548_v13  ;;  %v13708_v18 = vcombine.high %v1545_v60, %v1549_v62  ;;  %v17022_v48 = vpack.c.bf16 %v694_v37, %v678_v30  ;;  %v1565_v13 = vld [vmem:[%s16295_s2 + $0x10e8] sm:$0xff]  ;;  %v1572_v30 = vld [vmem:[%s16295_s2 + $0x1120] sm:$0xff] }
 0x20b   : > { %7539 = vmatprep.mubr.bf16.mxu0 %v16987_v55  ;;  %8443 = vmatprep.mubr.bf16.mxu1 %v16987_v55  ;;  %v17007_v54 = vpack.c.bf16 %v695_v12, %v679_v11  ;;  %v1552_v55 = vld [vmem:[%s16295_s2 + $0x1080] sm:$0xff]  ;;  %v1561_v12 = vld [vmem:[%s16295_s2 + $0x10c8] sm:$0xff] }
 0x20c   : > { %v1564_v11 = vld [vmem:[%s16295_s2 + $0x10e0] sm:$0xff]  ;;  %19528 = vst [vmem:[#allocation29_spill] sm:$0xff] %v17022_v48  ;;  %v13713_v60 = vcombine.low %v1552_v55, %v1556_v42  ;;  %v1569_v37 = vld [vmem:[%s16295_s2 + $0x1108] sm:$0xff] }
 0x20d   : > { %7538 = vmatpush1.bf16.msra.mxu0 %v13689_v63  ;;  %8442 = vmatpush1.bf16.msra.mxu1 %v13691_v26  ;;  %19527 = vst [vmem:[#allocation28_spill] sm:$0xff] %v17007_v54  ;;  %v1557_v63 = vld [vmem:[%s16295_s2 + $0x10a8] sm:$0xff]  ;;  %v13714_v26 = vcombine.high %v1552_v55, %v1556_v42  ;;  %v710_v42 = vld [vmem:[%s16288_s11 + $0x230] sm:$0xff] }
 0x20e   : > { %7620 = vmatprep.subr.bf16.mxu0 %v13698_v28  ;;  %8524 = vmatprep.subr.bf16.mxu1 %v13700_v40  ;;  %v13716_v28 = vcombine.high %v1553_v43, %v1557_v63  ;;  %v1560_v40 = vld [vmem:[%s16295_s2 + $0x10c0] sm:$0xff]  ;;  %v13715_v62 = vcombine.low %v1553_v43, %v1557_v63  ;;  %v726_v43 = vld [vmem:[%s16288_s11 + $0x2b0] sm:$0xff]  ;;  %v13723_v63 = vcombine.low %v1561_v12, %v1565_v13 }
 0x20f   : > { %v13721_v55 = vcombine.low %v1560_v40, %v1564_v11 }
 0x210   : > { %7540 = vmatmul.mubr.bf16.vlgmr.msra.gmra.mrb[0].mxu0 %v17002_v45  ;;  %8444 = vmatmul.mubr.bf16.vlgmr.msra.gmra.mrb[0].mxu1 %v17002_v45 }
 0x211   : > { %7621 = vmatpush1.bf16.msra.mxu0 %v13697_v2  ;;  %8525 = vmatpush1.bf16.msra.mxu1 %v13699_v7  ;;  %v711_v2 = vld [vmem:[%s16288_s11 + $0x238] sm:$0xff] }
 0x212   : > { %7622 = vmatprep.subr.bf16.mxu0 %v13706_v15  ;;  %8526 = vmatprep.subr.bf16.mxu1 %v13708_v18  ;;  %v727_v7 = vld [vmem:[%s16288_s11 + $0x2b8] sm:$0xff]  ;;  %v13722_v15 = vcombine.high %v1560_v40, %v1564_v11  ;;  %v13724_v18 = vcombine.high %v1561_v12, %v1565_v13  ;;  %v17042_v40 = vpack.c.bf16 %v726_v43, %v710_v42  ;;  %v1581_v11 = vld [vmem:[%s16295_s2 + $0x1168] sm:$0xff]  ;;  %v1588_v42 = vld [vmem:[%s16295_s2 + $0x11a0] sm:$0xff] }
 0x213   : > { %7549 = vmatprep.mubr.bf16.mxu0 %v17007_v54  ;;  %8453 = vmatprep.mubr.bf16.mxu1 %v17007_v54  ;;  %v17027_v45 = vpack.c.bf16 %v727_v7, %v711_v2  ;;  %v1568_v54 = vld [vmem:[%s16295_s2 + $0x1100] sm:$0xff]  ;;  %v1577_v7 = vld [vmem:[%s16295_s2 + $0x1148] sm:$0xff] }
 0x214   : > { %v1580_v2 = vld [vmem:[%s16295_s2 + $0x1160] sm:$0xff]  ;;  %19530 = vst [vmem:[#allocation31_spill] sm:$0xff] %v17042_v40  ;;  %v13729_v12 = vcombine.low %v1568_v54, %v1572_v30  ;;  %v1585_v43 = vld [vmem:[%s16295_s2 + $0x1188] sm:$0xff] }
 0x215   : > { %7623 = vmatpush1.bf16.msra.mxu0 %v13705_v56  ;;  %8527 = vmatpush1.bf16.msra.mxu1 %v13707_v21  ;;  %19529 = vst [vmem:[#allocation30_spill] sm:$0xff] %v17027_v45  ;;  %v1573_v56 = vld [vmem:[%s16295_s2 + $0x1128] sm:$0xff]  ;;  %v13730_v21 = vcombine.high %v1568_v54, %v1572_v30  ;;  %v742_v30 = vld [vmem:[%s16288_s11 + $0x330] sm:$0xff] }
 0x216   : > { %7624 = vmatprep.subr.bf16.mxu0 %v13714_v26  ;;  %8528 = vmatprep.subr.bf16.mxu1 %v13716_v28  ;;  %v13732_v26 = vcombine.high %v1569_v37, %v1573_v56  ;;  %v1576_v28 = vld [vmem:[%s16295_s2 + $0x1140] sm:$0xff]  ;;  %v13731_v13 = vcombine.low %v1569_v37, %v1573_v56  ;;  %v758_v37 = vld [vmem:[%s16288_s11 + $0x3b0] sm:$0xff]  ;;  %v13739_v56 = vcombine.low %v1577_v7, %v1581_v11 }
 0x217   : > { %v13737_v54 = vcombine.low %v1576_v28, %v1580_v2 }
 0x218   : > { %7550 = vmatmul.mubr.bf16.gmra.mrb[4].mxu0 %v17022_v48  ;;  %8454 = vmatmul.mubr.bf16.gmra.mrb[4].mxu1 %v17022_v48 }
 0x219   : > { %7625 = vmatpush1.bf16.msra.mxu0 %v13713_v60  ;;  %8529 = vmatpush1.bf16.msra.mxu1 %v13715_v62  ;;  %v743_v60 = vld [vmem:[%s16288_s11 + $0x338] sm:$0xff] }
 0x21a   : > { %7626 = vmatprep.subr.bf16.mxu0 %v13722_v15  ;;  %8530 = vmatprep.subr.bf16.mxu1 %v13724_v18  ;;  %v759_v62 = vld [vmem:[%s16288_s11 + $0x3b8] sm:$0xff]  ;;  %v13738_v15 = vcombine.high %v1576_v28, %v1580_v2  ;;  %v13740_v18 = vcombine.high %v1577_v7, %v1581_v11  ;;  %v17062_v28 = vpack.c.bf16 %v758_v37, %v742_v30  ;;  %v1597_v2 = vld [vmem:[%s16295_s2 + $0x11e8] sm:$0xff]  ;;  %v1604_v30 = vld [vmem:[%s16295_s2 + $0x1220] sm:$0xff] }
 0x21b   : > { %7559 = vmatprep.mubr.bf16.mxu0 %v17027_v45  ;;  %8463 = vmatprep.mubr.bf16.mxu1 %v17027_v45  ;;  %v17047_v48 = vpack.c.bf16 %v759_v62, %v743_v60  ;;  %v1584_v45 = vld [vmem:[%s16295_s2 + $0x1180] sm:$0xff]  ;;  %v1593_v62 = vld [vmem:[%s16295_s2 + $0x11c8] sm:$0xff] }
 0x21c   : > { %v1596_v60 = vld [vmem:[%s16295_s2 + $0x11e0] sm:$0xff]  ;;  %19532 = vst [vmem:[#allocation33_spill] sm:$0xff] %v17062_v28  ;;  %v13745_v7 = vcombine.low %v1584_v45, %v1588_v42  ;;  %v1601_v37 = vld [vmem:[%s16295_s2 + $0x1208] sm:$0xff] }
 0x21d   : > { %7627 = vmatpush1.bf16.msra.mxu0 %v13721_v55  ;;  %8531 = vmatpush1.bf16.msra.mxu1 %v13723_v63  ;;  %19531 = vst [vmem:[#allocation32_spill] sm:$0xff] %v17047_v48  ;;  %v1589_v55 = vld [vmem:[%s16295_s2 + $0x11a8] sm:$0xff]  ;;  %v13746_v63 = vcombine.high %v1584_v45, %v1588_v42  ;;  %v774_v42 = vld [vmem:[%s16288_s11 + $0x430] sm:$0xff] }
 0x21e   : > { %7628 = vmatprep.subr.bf16.mxu0 %v13730_v21  ;;  %8532 = vmatprep.subr.bf16.mxu1 %v13732_v26  ;;  %v13748_v21 = vcombine.high %v1585_v43, %v1589_v55  ;;  %v1592_v26 = vld [vmem:[%s16295_s2 + $0x11c0] sm:$0xff]  ;;  %v13747_v11 = vcombine.low %v1585_v43, %v1589_v55  ;;  %v790_v43 = vld [vmem:[%s16288_s11 + $0x4b0] sm:$0xff]  ;;  %v13755_v55 = vcombine.low %v1593_v62, %v1597_v2 }
 0x21f   : > { %v13753_v45 = vcombine.low %v1592_v26, %v1596_v60 }
 0x220   : > { %7560 = vmatmul.mubr.bf16.gmra.mrb[8].mxu0 %v17042_v40  ;;  %8464 = vmatmul.mubr.bf16.gmra.mrb[8].mxu1 %v17042_v40 }
 0x221   : > { %7629 = vmatpush1.bf16.msra.mxu0 %v13729_v12  ;;  %8533 = vmatpush1.bf16.msra.mxu1 %v13731_v13  ;;  %v775_v12 = vld [vmem:[%s16288_s11 + $0x438] sm:$0xff] }
 0x222   : > { %7630 = vmatprep.subr.bf16.mxu0 %v13738_v15  ;;  %8534 = vmatprep.subr.bf16.mxu1 %v13740_v18  ;;  %v791_v13 = vld [vmem:[%s16288_s11 + $0x4b8] sm:$0xff]  ;;  %v13754_v15 = vcombine.high %v1592_v26, %v1596_v60  ;;  %v13756_v18 = vcombine.high %v1593_v62, %v1597_v2  ;;  %v17082_v26 = vpack.c.bf16 %v790_v43, %v774_v42  ;;  %v1613_v60 = vld [vmem:[%s16295_s2 + $0x1268] sm:$0xff]  ;;  %v1620_v42 = vld [vmem:[%s16295_s2 + $0x12a0] sm:$0xff] }
 0x223   : > { %7569 = vmatprep.mubr.bf16.mxu0 %v17047_v48  ;;  %8473 = vmatprep.mubr.bf16.mxu1 %v17047_v48  ;;  %v17067_v40 = vpack.c.bf16 %v791_v13, %v775_v12  ;;  %v1600_v48 = vld [vmem:[%s16295_s2 + $0x1200] sm:$0xff]  ;;  %v1609_v13 = vld [vmem:[%s16295_s2 + $0x1248] sm:$0xff] }
 0x224   : > { %v1612_v12 = vld [vmem:[%s16295_s2 + $0x1260] sm:$0xff]  ;;  %19534 = vst [vmem:[#allocation35_spill] sm:$0xff] %v17082_v26  ;;  %v13761_v62 = vcombine.low %v1600_v48, %v1604_v30  ;;  %v1617_v43 = vld [vmem:[%s16295_s2 + $0x1288] sm:$0xff] }
 0x225   : > { %7631 = vmatpush1.bf16.msra.mxu0 %v13737_v54  ;;  %8535 = vmatpush1.bf16.msra.mxu1 %v13739_v56  ;;  %19533 = vst [vmem:[#allocation34_spill] sm:$0xff] %v17067_v40  ;;  %v1605_v54 = vld [vmem:[%s16295_s2 + $0x1228] sm:$0xff]  ;;  %v13762_v56 = vcombine.high %v1600_v48, %v1604_v30  ;;  %v806_v30 = vld [vmem:[%s16288_s11 + $0x530] sm:$0xff] }
 0x226   : > { %7632 = vmatprep.subr.bf16.mxu0 %v13746_v63  ;;  %8536 = vmatprep.subr.bf16.mxu1 %v13748_v21  ;;  %v13764_v63 = vcombine.high %v1601_v37, %v1605_v54  ;;  %v1608_v21 = vld [vmem:[%s16295_s2 + $0x1240] sm:$0xff]  ;;  %v13763_v2 = vcombine.low %v1601_v37, %v1605_v54  ;;  %v822_v37 = vld [vmem:[%s16288_s11 + $0x5b0] sm:$0xff]  ;;  %v13771_v54 = vcombine.low %v1609_v13, %v1613_v60 }
 0x227   : > { %v13769_v48 = vcombine.low %v1608_v21, %v1612_v12 }
 0x228   : > { %7570 = vmatmul.mubr.bf16.gmra.mrb[12].mxu0 %v17062_v28  ;;  %8474 = vmatmul.mubr.bf16.gmra.mrb[12].mxu1 %v17062_v28 }
 0x229   : > { %7633 = vmatpush1.bf16.msra.mxu0 %v13745_v7  ;;  %8537 = vmatpush1.bf16.msra.mxu1 %v13747_v11  ;;  %v807_v7 = vld [vmem:[%s16288_s11 + $0x538] sm:$0xff] }
 0x22a   : > { %7634 = vmatprep.subr.bf16.mxu0 %v13754_v15  ;;  %8538 = vmatprep.subr.bf16.mxu1 %v13756_v18  ;;  %v823_v11 = vld [vmem:[%s16288_s11 + $0x5b8] sm:$0xff]  ;;  %v13770_v15 = vcombine.high %v1608_v21, %v1612_v12  ;;  %v13772_v18 = vcombine.high %v1609_v13, %v1613_v60  ;;  %v17102_v21 = vpack.c.bf16 %v822_v37, %v806_v30  ;;  %v1629_v12 = vld [vmem:[%s16295_s2 + $0x12e8] sm:$0xff]  ;;  %v1636_v30 = vld [vmem:[%s16295_s2 + $0x1320] sm:$0xff] }
 0x22b   : > { %7579 = vmatprep.mubr.bf16.mxu0 %v17067_v40  ;;  %8483 = vmatprep.mubr.bf16.mxu1 %v17067_v40  ;;  %v17087_v28 = vpack.c.bf16 %v823_v11, %v807_v7  ;;  %v1616_v40 = vld [vmem:[%s16295_s2 + $0x1280] sm:$0xff]  ;;  %v1625_v11 = vld [vmem:[%s16295_s2 + $0x12c8] sm:$0xff] }
 0x22c   : > { %v1628_v7 = vld [vmem:[%s16295_s2 + $0x12e0] sm:$0xff]  ;;  %19536 = vst [vmem:[#allocation37_spill] sm:$0xff] %v17102_v21  ;;  %v13777_v13 = vcombine.low %v1616_v40, %v1620_v42  ;;  %v1633_v37 = vld [vmem:[%s16295_s2 + $0x1308] sm:$0xff] }
 0x22d   : > { %7635 = vmatpush1.bf16.msra.mxu0 %v13753_v45  ;;  %8539 = vmatpush1.bf16.msra.mxu1 %v13755_v55  ;;  %19535 = vst [vmem:[#allocation36_spill] sm:$0xff] %v17087_v28  ;;  %v1621_v45 = vld [vmem:[%s16295_s2 + $0x12a8] sm:$0xff]  ;;  %v13778_v55 = vcombine.high %v1616_v40, %v1620_v42  ;;  %v838_v42 = vld [vmem:[%s16288_s11 + $0x630] sm:$0xff] }
 0x22e   : > { %7636 = vmatprep.subr.bf16.mxu0 %v13762_v56  ;;  %8540 = vmatprep.subr.bf16.mxu1 %v13764_v63  ;;  %v13780_v56 = vcombine.high %v1617_v43, %v1621_v45  ;;  %v1624_v63 = vld [vmem:[%s16295_s2 + $0x12c0] sm:$0xff]  ;;  %v13779_v60 = vcombine.low %v1617_v43, %v1621_v45  ;;  %v854_v43 = vld [vmem:[%s16288_s11 + $0x6b0] sm:$0xff]  ;;  %v13787_v45 = vcombine.low %v1625_v11, %v1629_v12 }
 0x22f   : > { %v13785_v40 = vcombine.low %v1624_v63, %v1628_v7 }
 0x230   : > { %7580 = vmatmul.mubr.bf16.gmra.mrb[16].mxu0 %v17082_v26  ;;  %8484 = vmatmul.mubr.bf16.gmra.mrb[16].mxu1 %v17082_v26 }
 0x231   : > { %7637 = vmatpush1.bf16.msra.mxu0 %v13761_v62  ;;  %8541 = vmatpush1.bf16.msra.mxu1 %v13763_v2  ;;  %v839_v62 = vld [vmem:[%s16288_s11 + $0x638] sm:$0xff] }
 0x232   : > { %7638 = vmatprep.subr.bf16.mxu0 %v13770_v15  ;;  %8542 = vmatprep.subr.bf16.mxu1 %v13772_v18  ;;  %v855_v2 = vld [vmem:[%s16288_s11 + $0x6b8] sm:$0xff]  ;;  %v13786_v15 = vcombine.high %v1624_v63, %v1628_v7  ;;  %v13788_v18 = vcombine.high %v1625_v11, %v1629_v12  ;;  %v17122_v63 = vpack.c.bf16 %v854_v43, %v838_v42  ;;  %v1645_v7 = vld [vmem:[%s16295_s2 + $0x1368] sm:$0xff]  ;;  %v1652_v42 = vld [vmem:[%s16295_s2 + $0x13a0] sm:$0xff] }
 0x233   : > { %7589 = vmatprep.mubr.bf16.mxu0 %v17087_v28  ;;  %8493 = vmatprep.mubr.bf16.mxu1 %v17087_v28  ;;  %v17107_v26 = vpack.c.bf16 %v855_v2, %v839_v62  ;;  %v1632_v28 = vld [vmem:[%s16295_s2 + $0x1300] sm:$0xff]  ;;  %v1641_v2 = vld [vmem:[%s16295_s2 + $0x1348] sm:$0xff] }
 0x234   : > { %v1644_v62 = vld [vmem:[%s16295_s2 + $0x1360] sm:$0xff]  ;;  %19538 = vst [vmem:[#allocation39_spill] sm:$0xff] %v17122_v63  ;;  %v13793_v11 = vcombine.low %v1632_v28, %v1636_v30  ;;  %v1649_v43 = vld [vmem:[%s16295_s2 + $0x1388] sm:$0xff] }
 0x235   : > { %7639 = vmatpush1.bf16.msra.mxu0 %v13769_v48  ;;  %8543 = vmatpush1.bf16.msra.mxu1 %v13771_v54  ;;  %19537 = vst [vmem:[#allocation38_spill] sm:$0xff] %v17107_v26  ;;  %v1637_v48 = vld [vmem:[%s16295_s2 + $0x1328] sm:$0xff]  ;;  %v13794_v54 = vcombine.high %v1632_v28, %v1636_v30  ;;  %v870_v30 = vld [vmem:[%s16288_s11 + $0x730] sm:$0xff] }
 0x236   : > { %7640 = vmatprep.subr.bf16.mxu0 %v13778_v55  ;;  %8544 = vmatprep.subr.bf16.mxu1 %v13780_v56  ;;  %v13796_v55 = vcombine.high %v1633_v37, %v1637_v48  ;;  %v1640_v56 = vld [vmem:[%s16295_s2 + $0x1340] sm:$0xff]  ;;  %v13795_v12 = vcombine.low %v1633_v37, %v1637_v48  ;;  %v886_v37 = vld [vmem:[%s16288_s11 + $0x7b0] sm:$0xff]  ;;  %v13803_v48 = vcombine.low %v1641_v2, %v1645_v7 }
 0x237   : > { %v13801_v28 = vcombine.low %v1640_v56, %v1644_v62 }
 0x238   : > { %7590 = vmatmul.mubr.bf16.gmra.mrb[20].mxu0 %v17102_v21  ;;  %8494 = vmatmul.mubr.bf16.gmra.mrb[20].mxu1 %v17102_v21 }
 0x239   : > { %7641 = vmatpush1.bf16.msra.mxu0 %v13777_v13  ;;  %8545 = vmatpush1.bf16.msra.mxu1 %v13779_v60  ;;  %v871_v13 = vld [vmem:[%s16288_s11 + $0x738] sm:$0xff] }
 0x23a   : > { %7642 = vmatprep.subr.bf16.mxu0 %v13786_v15  ;;  %8546 = vmatprep.subr.bf16.mxu1 %v13788_v18  ;;  %v887_v60 = vld [vmem:[%s16288_s11 + $0x7b8] sm:$0xff]  ;;  %v13802_v15 = vcombine.high %v1640_v56, %v1644_v62  ;;  %v13804_v18 = vcombine.high %v1641_v2, %v1645_v7  ;;  %v17142_v56 = vpack.c.bf16 %v886_v37, %v870_v30  ;;  %v1661_v62 = vld [vmem:[%s16295_s2 + $0x13e8] sm:$0xff]  ;;  %v1668_v30 = vld [vmem:[%s16295_s2 + $0x1420] sm:$0xff] }
 0x23b   : > { %7599 = vmatprep.mubr.bf16.mxu0 %v17107_v26  ;;  %8503 = vmatprep.mubr.bf16.mxu1 %v17107_v26  ;;  %v17127_v21 = vpack.c.bf16 %v887_v60, %v871_v13  ;;  %v1648_v26 = vld [vmem:[%s16295_s2 + $0x1380] sm:$0xff]  ;;  %v1657_v60 = vld [vmem:[%s16295_s2 + $0x13c8] sm:$0xff] }
 0x23c   : > { %v1660_v13 = vld [vmem:[%s16295_s2 + $0x13e0] sm:$0xff]  ;;  %19540 = vst [vmem:[#allocation41_spill] sm:$0xff] %v17142_v56  ;;  %v13809_v2 = vcombine.low %v1648_v26, %v1652_v42  ;;  %v1665_v37 = vld [vmem:[%s16295_s2 + $0x1408] sm:$0xff] }
 0x23d   : > { %7643 = vmatpush1.bf16.msra.mxu0 %v13785_v40  ;;  %8547 = vmatpush1.bf16.msra.mxu1 %v13787_v45  ;;  %19539 = vst [vmem:[#allocation40_spill] sm:$0xff] %v17127_v21  ;;  %v1653_v40 = vld [vmem:[%s16295_s2 + $0x13a8] sm:$0xff]  ;;  %v13810_v45 = vcombine.high %v1648_v26, %v1652_v42  ;;  %v648_v42 = vld [vmem:[%s16288_s11 + $0x40] sm:$0xff] }
 0x23e   : > { %7644 = vmatprep.subr.bf16.mxu0 %v13794_v54  ;;  %8548 = vmatprep.subr.bf16.mxu1 %v13796_v55  ;;  %v13812_v54 = vcombine.high %v1649_v43, %v1653_v40  ;;  %v1656_v55 = vld [vmem:[%s16295_s2 + $0x13c0] sm:$0xff]  ;;  %v13811_v7 = vcombine.low %v1649_v43, %v1653_v40  ;;  %v13819_v40 = vcombine.low %v1657_v60, %v1661_v62 }
 0x23f   : > { %v13817_v26 = vcombine.low %v1656_v55, %v1660_v13  ;;  %v664_v43 = vld [vmem:[%s16288_s11 + $0xc0] sm:$0xff] }
 0x240   : > { %7600 = vmatmul.mubr.bf16.gmra.mrb[24].mxu0 %v17122_v63  ;;  %8504 = vmatmul.mubr.bf16.gmra.mrb[24].mxu1 %v17122_v63 }
 0x241   : > { %7645 = vmatpush1.bf16.msra.mxu0 %v13793_v11  ;;  %8549 = vmatpush1.bf16.msra.mxu1 %v13795_v12  ;;  %v649_v11 = vld [vmem:[%s16288_s11 + $0x48] sm:$0xff] }
 0x242   : > { %7646 = vmatprep.subr.bf16.mxu0 %v13802_v15  ;;  %8550 = vmatprep.subr.bf16.mxu1 %v13804_v18  ;;  %v665_v12 = vld [vmem:[%s16288_s11 + $0xc8] sm:$0xff]  ;;  %v13818_v15 = vcombine.high %v1656_v55, %v1660_v13  ;;  %v13820_v18 = vcombine.high %v1657_v60, %v1661_v62  ;;  %v17162_v55 = vpack.c.bf16 %v664_v43, %v648_v42  ;;  %v1684_v42 = vld [vmem:[%s16295_s2 + $0x14a0] sm:$0xff] }
 0x243   : > { %7609 = vmatprep.mubr.bf16.mxu0 %v17127_v21  ;;  %8513 = vmatprep.mubr.bf16.mxu1 %v17127_v21  ;;  %v17147_v63 = vpack.c.bf16 %v665_v12, %v649_v11  ;;  %v1664_v21 = vld [vmem:[%s16295_s2 + $0x1400] sm:$0xff]  ;;  %v1673_v12 = vld [vmem:[%s16295_s2 + $0x1448] sm:$0xff] }
 0x244   : > { %v1676_v11 = vld [vmem:[%s16295_s2 + $0x1460] sm:$0xff]  ;;  %19542 = vst [vmem:[#allocation43_spill] sm:$0xff] %v17162_v55  ;;  %v1677_v13 = vld [vmem:[%s16295_s2 + $0x1468] sm:$0xff]  ;;  %v13825_v60 = vcombine.low %v1664_v21, %v1668_v30 }
 0x245   : > { %7647 = vmatpush1.bf16.msra.mxu0 %v13801_v28  ;;  %8551 = vmatpush1.bf16.msra.mxu1 %v13803_v48  ;;  %19541 = vst [vmem:[#allocation42_spill] sm:$0xff] %v17147_v63  ;;  %v1669_v28 = vld [vmem:[%s16295_s2 + $0x1428] sm:$0xff]  ;;  %v13826_v48 = vcombine.high %v1664_v21, %v1668_v30  ;;  %v680_v30 = vld [vmem:[%s16288_s11 + $0x140] sm:$0xff] }
 0x246   : > { %7648 = vmatprep.subr.bf16.mxu0 %v13810_v45  ;;  %8552 = vmatprep.subr.bf16.mxu1 %v13812_v54  ;;  %v13828_v45 = vcombine.high %v1665_v37, %v1669_v28  ;;  %v1672_v54 = vld [vmem:[%s16295_s2 + $0x1440] sm:$0xff]  ;;  %v13827_v62 = vcombine.low %v1665_v37, %v1669_v28  ;;  %v1681_v43 = vld [vmem:[%s16295_s2 + $0x1488] sm:$0xff]  ;;  %v13835_v28 = vcombine.low %v1673_v12, %v1677_v13 }
 0x247   : > { %v13833_v21 = vcombine.low %v1672_v54, %v1676_v11  ;;  %v696_v37 = vld [vmem:[%s16288_s11 + $0x1c0] sm:$0xff] }
 0x248   : > { %7610 = vmatmul.mubr.bf16.gmra.mrb[28].mxu0 %v17142_v56  ;;  %8514 = vmatmul.mubr.bf16.gmra.mrb[28].mxu1 %v17142_v56 }
 0x249   : > { %7649 = vmatpush1.bf16.msra.mxu0 %v13809_v2  ;;  %8553 = vmatpush1.bf16.msra.mxu1 %v13811_v7  ;;  %v681_v2 = vld [vmem:[%s16288_s11 + $0x148] sm:$0xff] }
 0x24a   : > { %7650 = vmatprep.subr.bf16.mxu0 %v13818_v15  ;;  %8554 = vmatprep.subr.bf16.mxu1 %v13820_v18  ;;  %v697_v7 = vld [vmem:[%s16288_s11 + $0x1c8] sm:$0xff]  ;;  %v13834_v15 = vcombine.high %v1672_v54, %v1676_v11  ;;  %v13836_v18 = vcombine.high %v1673_v12, %v1677_v13  ;;  %v17182_v54 = vpack.c.bf16 %v696_v37, %v680_v30  ;;  %v1700_v30 = vld [vmem:[%s16295_s2 + $0x1520] sm:$0xff] }
 0x24b   : > { %7652 = vmatprep.mubr.bf16.mxu0 %v17147_v63  ;;  %8556 = vmatprep.mubr.bf16.mxu1 %v17147_v63  ;;  %v17167_v56 = vpack.c.bf16 %v697_v7, %v681_v2  ;;  %v1680_v63 = vld [vmem:[%s16295_s2 + $0x1480] sm:$0xff]  ;;  %v1689_v7 = vld [vmem:[%s16295_s2 + $0x14c8] sm:$0xff] }
 0x24c   : > { %v1692_v2 = vld [vmem:[%s16295_s2 + $0x14e0] sm:$0xff]  ;;  %19544 = vst [vmem:[#allocation45_spill] sm:$0xff] %v17182_v54  ;;  %v1693_v11 = vld [vmem:[%s16295_s2 + $0x14e8] sm:$0xff]  ;;  %v13841_v12 = vcombine.low %v1680_v63, %v1684_v42 }
 0x24d   : > { %7651 = vmatpush1.bf16.msra.mxu0 %v13817_v26  ;;  %8555 = vmatpush1.bf16.msra.mxu1 %v13819_v40  ;;  %19543 = vst [vmem:[#allocation44_spill] sm:$0xff] %v17167_v56  ;;  %v1685_v26 = vld [vmem:[%s16295_s2 + $0x14a8] sm:$0xff]  ;;  %v13842_v40 = vcombine.high %v1680_v63, %v1684_v42  ;;  %v712_v42 = vld [vmem:[%s16288_s11 + $0x240] sm:$0xff] }
 0x24e   : > { %7733 = vmatprep.subr.bf16.mxu0 %v13826_v48  ;;  %8637 = vmatprep.subr.bf16.mxu1 %v13828_v45  ;;  %v13844_v48 = vcombine.high %v1681_v43, %v1685_v26  ;;  %v1688_v45 = vld [vmem:[%s16295_s2 + $0x14c0] sm:$0xff]  ;;  %v13843_v13 = vcombine.low %v1681_v43, %v1685_v26  ;;  %v1697_v37 = vld [vmem:[%s16295_s2 + $0x1508] sm:$0xff]  ;;  %v13851_v26 = vcombine.low %v1689_v7, %v1693_v11 }
 0x24f   : > { %v13849_v63 = vcombine.low %v1688_v45, %v1692_v2  ;;  %v728_v43 = vld [vmem:[%s16288_s11 + $0x2c0] sm:$0xff] }
 0x250   : > { %7653 = vmatmul.mubr.bf16.vlgmr.msra.gmra.mrb[0].mxu0 %v17162_v55  ;;  %8557 = vmatmul.mubr.bf16.vlgmr.msra.gmra.mrb[0].mxu1 %v17162_v55 }
 0x251   : > { %7734 = vmatpush1.bf16.msra.mxu0 %v13825_v60  ;;  %8638 = vmatpush1.bf16.msra.mxu1 %v13827_v62  ;;  %v713_v60 = vld [vmem:[%s16288_s11 + $0x248] sm:$0xff] }
 0x252   : > { %7735 = vmatprep.subr.bf16.mxu0 %v13834_v15  ;;  %8639 = vmatprep.subr.bf16.mxu1 %v13836_v18  ;;  %v729_v62 = vld [vmem:[%s16288_s11 + $0x2c8] sm:$0xff]  ;;  %v13850_v15 = vcombine.high %v1688_v45, %v1692_v2  ;;  %v13852_v18 = vcombine.high %v1689_v7, %v1693_v11  ;;  %v17202_v45 = vpack.c.bf16 %v728_v43, %v712_v42  ;;  %v1716_v42 = vld [vmem:[%s16295_s2 + $0x15a0] sm:$0xff] }
 0x253   : > { %7662 = vmatprep.mubr.bf16.mxu0 %v17167_v56  ;;  %8566 = vmatprep.mubr.bf16.mxu1 %v17167_v56  ;;  %v17187_v55 = vpack.c.bf16 %v729_v62, %v713_v60  ;;  %v1696_v56 = vld [vmem:[%s16295_s2 + $0x1500] sm:$0xff]  ;;  %v1705_v62 = vld [vmem:[%s16295_s2 + $0x1548] sm:$0xff] }
 0x254   : > { %v1708_v60 = vld [vmem:[%s16295_s2 + $0x1560] sm:$0xff]  ;;  %19546 = vst [vmem:[#allocation47_spill] sm:$0xff] %v17202_v45  ;;  %v1709_v2 = vld [vmem:[%s16295_s2 + $0x1568] sm:$0xff]  ;;  %v13857_v7 = vcombine.low %v1696_v56, %v1700_v30 }
 0x255   : > { %7736 = vmatpush1.bf16.msra.mxu0 %v13833_v21  ;;  %8640 = vmatpush1.bf16.msra.mxu1 %v13835_v28  ;;  %19545 = vst [vmem:[#allocation46_spill] sm:$0xff] %v17187_v55  ;;  %v1701_v21 = vld [vmem:[%s16295_s2 + $0x1528] sm:$0xff]  ;;  %v13858_v28 = vcombine.high %v1696_v56, %v1700_v30  ;;  %v744_v30 = vld [vmem:[%s16288_s11 + $0x340] sm:$0xff] }
 0x256   : > { %7737 = vmatprep.subr.bf16.mxu0 %v13842_v40  ;;  %8641 = vmatprep.subr.bf16.mxu1 %v13844_v48  ;;  %v13860_v40 = vcombine.high %v1697_v37, %v1701_v21  ;;  %v1704_v48 = vld [vmem:[%s16295_s2 + $0x1540] sm:$0xff]  ;;  %v13859_v11 = vcombine.low %v1697_v37, %v1701_v21  ;;  %v1713_v43 = vld [vmem:[%s16295_s2 + $0x1588] sm:$0xff]  ;;  %v13867_v21 = vcombine.low %v1705_v62, %v1709_v2 }
 0x257   : > { %v13865_v56 = vcombine.low %v1704_v48, %v1708_v60  ;;  %v760_v37 = vld [vmem:[%s16288_s11 + $0x3c0] sm:$0xff] }
 0x258   : > { %7663 = vmatmul.mubr.bf16.gmra.mrb[4].mxu0 %v17182_v54  ;;  %8567 = vmatmul.mubr.bf16.gmra.mrb[4].mxu1 %v17182_v54 }
 0x259   : > { %7738 = vmatpush1.bf16.msra.mxu0 %v13841_v12  ;;  %8642 = vmatpush1.bf16.msra.mxu1 %v13843_v13  ;;  %v745_v12 = vld [vmem:[%s16288_s11 + $0x348] sm:$0xff] }
 0x25a   : > { %7739 = vmatprep.subr.bf16.mxu0 %v13850_v15  ;;  %8643 = vmatprep.subr.bf16.mxu1 %v13852_v18  ;;  %v761_v13 = vld [vmem:[%s16288_s11 + $0x3c8] sm:$0xff]  ;;  %v13866_v15 = vcombine.high %v1704_v48, %v1708_v60  ;;  %v13868_v18 = vcombine.high %v1705_v62, %v1709_v2  ;;  %v17222_v48 = vpack.c.bf16 %v760_v37, %v744_v30  ;;  %v1732_v30 = vld [vmem:[%s16295_s2 + $0x1620] sm:$0xff] }
 0x25b   : > { %7672 = vmatprep.mubr.bf16.mxu0 %v17187_v55  ;;  %8576 = vmatprep.mubr.bf16.mxu1 %v17187_v55  ;;  %v17207_v54 = vpack.c.bf16 %v761_v13, %v745_v12  ;;  %v1712_v55 = vld [vmem:[%s16295_s2 + $0x1580] sm:$0xff]  ;;  %v1721_v13 = vld [vmem:[%s16295_s2 + $0x15c8] sm:$0xff] }
 0x25c   : > { %v1724_v12 = vld [vmem:[%s16295_s2 + $0x15e0] sm:$0xff]  ;;  %19548 = vst [vmem:[#allocation49_spill] sm:$0xff] %v17222_v48  ;;  %v1725_v60 = vld [vmem:[%s16295_s2 + $0x15e8] sm:$0xff]  ;;  %v13873_v62 = vcombine.low %v1712_v55, %v1716_v42 }
 0x25d   : > { %7740 = vmatpush1.bf16.msra.mxu0 %v13849_v63  ;;  %8644 = vmatpush1.bf16.msra.mxu1 %v13851_v26  ;;  %19547 = vst [vmem:[#allocation48_spill] sm:$0xff] %v17207_v54  ;;  %v1717_v63 = vld [vmem:[%s16295_s2 + $0x15a8] sm:$0xff]  ;;  %v13874_v26 = vcombine.high %v1712_v55, %v1716_v42  ;;  %v776_v42 = vld [vmem:[%s16288_s11 + $0x440] sm:$0xff] }
 0x25e   : > { %7741 = vmatprep.subr.bf16.mxu0 %v13858_v28  ;;  %8645 = vmatprep.subr.bf16.mxu1 %v13860_v40  ;;  %v13876_v28 = vcombine.high %v1713_v43, %v1717_v63  ;;  %v1720_v40 = vld [vmem:[%s16295_s2 + $0x15c0] sm:$0xff]  ;;  %v13875_v2 = vcombine.low %v1713_v43, %v1717_v63  ;;  %v1729_v37 = vld [vmem:[%s16295_s2 + $0x1608] sm:$0xff]  ;;  %v13883_v63 = vcombine.low %v1721_v13, %v1725_v60 }
 0x25f   : > { %v13881_v55 = vcombine.low %v1720_v40, %v1724_v12  ;;  %v792_v43 = vld [vmem:[%s16288_s11 + $0x4c0] sm:$0xff] }
 0x260   : > { %7673 = vmatmul.mubr.bf16.gmra.mrb[8].mxu0 %v17202_v45  ;;  %8577 = vmatmul.mubr.bf16.gmra.mrb[8].mxu1 %v17202_v45 }
 0x261   : > { %7742 = vmatpush1.bf16.msra.mxu0 %v13857_v7  ;;  %8646 = vmatpush1.bf16.msra.mxu1 %v13859_v11  ;;  %v777_v7 = vld [vmem:[%s16288_s11 + $0x448] sm:$0xff] }
 0x262   : > { %7743 = vmatprep.subr.bf16.mxu0 %v13866_v15  ;;  %8647 = vmatprep.subr.bf16.mxu1 %v13868_v18  ;;  %v793_v11 = vld [vmem:[%s16288_s11 + $0x4c8] sm:$0xff]  ;;  %v13882_v15 = vcombine.high %v1720_v40, %v1724_v12  ;;  %v13884_v18 = vcombine.high %v1721_v13, %v1725_v60  ;;  %v17242_v40 = vpack.c.bf16 %v792_v43, %v776_v42  ;;  %v1748_v42 = vld [vmem:[%s16295_s2 + $0x16a0] sm:$0xff] }
 0x263   : > { %7682 = vmatprep.mubr.bf16.mxu0 %v17207_v54  ;;  %8586 = vmatprep.mubr.bf16.mxu1 %v17207_v54  ;;  %v17227_v45 = vpack.c.bf16 %v793_v11, %v777_v7  ;;  %v1728_v54 = vld [vmem:[%s16295_s2 + $0x1600] sm:$0xff]  ;;  %v1737_v11 = vld [vmem:[%s16295_s2 + $0x1648] sm:$0xff] }
 0x264   : > { %v1740_v7 = vld [vmem:[%s16295_s2 + $0x1660] sm:$0xff]  ;;  %19550 = vst [vmem:[#allocation51_spill] sm:$0xff] %v17242_v40  ;;  %v1741_v12 = vld [vmem:[%s16295_s2 + $0x1668] sm:$0xff]  ;;  %v13889_v13 = vcombine.low %v1728_v54, %v1732_v30 }
 0x265   : > { %7744 = vmatpush1.bf16.msra.mxu0 %v13865_v56  ;;  %8648 = vmatpush1.bf16.msra.mxu1 %v13867_v21  ;;  %19549 = vst [vmem:[#allocation50_spill] sm:$0xff] %v17227_v45  ;;  %v1733_v56 = vld [vmem:[%s16295_s2 + $0x1628] sm:$0xff]  ;;  %v13890_v21 = vcombine.high %v1728_v54, %v1732_v30  ;;  %v808_v30 = vld [vmem:[%s16288_s11 + $0x540] sm:$0xff] }
 0x266   : > { %7745 = vmatprep.subr.bf16.mxu0 %v13874_v26  ;;  %8649 = vmatprep.subr.bf16.mxu1 %v13876_v28  ;;  %v13892_v26 = vcombine.high %v1729_v37, %v1733_v56  ;;  %v1736_v28 = vld [vmem:[%s16295_s2 + $0x1640] sm:$0xff]  ;;  %v13891_v60 = vcombine.low %v1729_v37, %v1733_v56  ;;  %v1745_v43 = vld [vmem:[%s16295_s2 + $0x1688] sm:$0xff]  ;;  %v13899_v56 = vcombine.low %v1737_v11, %v1741_v12 }
 0x267   : > { %v13897_v54 = vcombine.low %v1736_v28, %v1740_v7  ;;  %v824_v37 = vld [vmem:[%s16288_s11 + $0x5c0] sm:$0xff] }
 0x268   : > { %7683 = vmatmul.mubr.bf16.gmra.mrb[12].mxu0 %v17222_v48  ;;  %8587 = vmatmul.mubr.bf16.gmra.mrb[12].mxu1 %v17222_v48 }
 0x269   : > { %7746 = vmatpush1.bf16.msra.mxu0 %v13873_v62  ;;  %8650 = vmatpush1.bf16.msra.mxu1 %v13875_v2  ;;  %v809_v62 = vld [vmem:[%s16288_s11 + $0x548] sm:$0xff] }
 0x26a   : > { %7747 = vmatprep.subr.bf16.mxu0 %v13882_v15  ;;  %8651 = vmatprep.subr.bf16.mxu1 %v13884_v18  ;;  %v825_v2 = vld [vmem:[%s16288_s11 + $0x5c8] sm:$0xff]  ;;  %v13898_v15 = vcombine.high %v1736_v28, %v1740_v7  ;;  %v13900_v18 = vcombine.high %v1737_v11, %v1741_v12  ;;  %v17262_v28 = vpack.c.bf16 %v824_v37, %v808_v30  ;;  %v1764_v30 = vld [vmem:[%s16295_s2 + $0x1720] sm:$0xff] }
 0x26b   : > { %7692 = vmatprep.mubr.bf16.mxu0 %v17227_v45  ;;  %8596 = vmatprep.mubr.bf16.mxu1 %v17227_v45  ;;  %v17247_v48 = vpack.c.bf16 %v825_v2, %v809_v62  ;;  %v1744_v45 = vld [vmem:[%s16295_s2 + $0x1680] sm:$0xff]  ;;  %v1753_v2 = vld [vmem:[%s16295_s2 + $0x16c8] sm:$0xff] }
 0x26c   : > { %v1756_v62 = vld [vmem:[%s16295_s2 + $0x16e0] sm:$0xff]  ;;  %19552 = vst [vmem:[#allocation53_spill] sm:$0xff] %v17262_v28  ;;  %v1757_v7 = vld [vmem:[%s16295_s2 + $0x16e8] sm:$0xff]  ;;  %v13905_v11 = vcombine.low %v1744_v45, %v1748_v42 }
 0x26d   : > { %7748 = vmatpush1.bf16.msra.mxu0 %v13881_v55  ;;  %8652 = vmatpush1.bf16.msra.mxu1 %v13883_v63  ;;  %19551 = vst [vmem:[#allocation52_spill] sm:$0xff] %v17247_v48  ;;  %v1749_v55 = vld [vmem:[%s16295_s2 + $0x16a8] sm:$0xff]  ;;  %v13906_v63 = vcombine.high %v1744_v45, %v1748_v42  ;;  %v840_v42 = vld [vmem:[%s16288_s11 + $0x640] sm:$0xff] }
 0x26e   : > { %7749 = vmatprep.subr.bf16.mxu0 %v13890_v21  ;;  %8653 = vmatprep.subr.bf16.mxu1 %v13892_v26  ;;  %v13908_v21 = vcombine.high %v1745_v43, %v1749_v55  ;;  %v1752_v26 = vld [vmem:[%s16295_s2 + $0x16c0] sm:$0xff]  ;;  %v13907_v12 = vcombine.low %v1745_v43, %v1749_v55  ;;  %v1761_v37 = vld [vmem:[%s16295_s2 + $0x1708] sm:$0xff]  ;;  %v13915_v55 = vcombine.low %v1753_v2, %v1757_v7 }
 0x26f   : > { %v13913_v45 = vcombine.low %v1752_v26, %v1756_v62  ;;  %v856_v43 = vld [vmem:[%s16288_s11 + $0x6c0] sm:$0xff] }
 0x270   : > { %7693 = vmatmul.mubr.bf16.gmra.mrb[16].mxu0 %v17242_v40  ;;  %8597 = vmatmul.mubr.bf16.gmra.mrb[16].mxu1 %v17242_v40 }
 0x271   : > { %7750 = vmatpush1.bf16.msra.mxu0 %v13889_v13  ;;  %8654 = vmatpush1.bf16.msra.mxu1 %v13891_v60  ;;  %v841_v13 = vld [vmem:[%s16288_s11 + $0x648] sm:$0xff] }
 0x272   : > { %7751 = vmatprep.subr.bf16.mxu0 %v13898_v15  ;;  %8655 = vmatprep.subr.bf16.mxu1 %v13900_v18  ;;  %v857_v60 = vld [vmem:[%s16288_s11 + $0x6c8] sm:$0xff]  ;;  %v13914_v15 = vcombine.high %v1752_v26, %v1756_v62  ;;  %v13916_v18 = vcombine.high %v1753_v2, %v1757_v7  ;;  %v17282_v26 = vpack.c.bf16 %v856_v43, %v840_v42  ;;  %v1780_v42 = vld [vmem:[%s16295_s2 + $0x17a0] sm:$0xff] }
 0x273   : > { %7702 = vmatprep.mubr.bf16.mxu0 %v17247_v48  ;;  %8606 = vmatprep.mubr.bf16.mxu1 %v17247_v48  ;;  %v17267_v40 = vpack.c.bf16 %v857_v60, %v841_v13  ;;  %v1760_v48 = vld [vmem:[%s16295_s2 + $0x1700] sm:$0xff]  ;;  %v1769_v60 = vld [vmem:[%s16295_s2 + $0x1748] sm:$0xff] }
 0x274   : > { %v1772_v13 = vld [vmem:[%s16295_s2 + $0x1760] sm:$0xff]  ;;  %19554 = vst [vmem:[#allocation55_spill] sm:$0xff] %v17282_v26  ;;  %v1773_v62 = vld [vmem:[%s16295_s2 + $0x1768] sm:$0xff]  ;;  %v13921_v2 = vcombine.low %v1760_v48, %v1764_v30 }
 0x275   : > { %7752 = vmatpush1.bf16.msra.mxu0 %v13897_v54  ;;  %8656 = vmatpush1.bf16.msra.mxu1 %v13899_v56  ;;  %19553 = vst [vmem:[#allocation54_spill] sm:$0xff] %v17267_v40  ;;  %v1765_v54 = vld [vmem:[%s16295_s2 + $0x1728] sm:$0xff]  ;;  %v13922_v56 = vcombine.high %v1760_v48, %v1764_v30  ;;  %v872_v30 = vld [vmem:[%s16288_s11 + $0x740] sm:$0xff] }
 0x276   : > { %7753 = vmatprep.subr.bf16.mxu0 %v13906_v63  ;;  %8657 = vmatprep.subr.bf16.mxu1 %v13908_v21  ;;  %v13924_v63 = vcombine.high %v1761_v37, %v1765_v54  ;;  %v1768_v21 = vld [vmem:[%s16295_s2 + $0x1740] sm:$0xff]  ;;  %v13923_v7 = vcombine.low %v1761_v37, %v1765_v54  ;;  %v1777_v43 = vld [vmem:[%s16295_s2 + $0x1788] sm:$0xff]  ;;  %v13931_v54 = vcombine.low %v1769_v60, %v1773_v62 }
 0x277   : > { %v13929_v48 = vcombine.low %v1768_v21, %v1772_v13  ;;  %v888_v37 = vld [vmem:[%s16288_s11 + $0x7c0] sm:$0xff] }
 0x278   : > { %7703 = vmatmul.mubr.bf16.gmra.mrb[20].mxu0 %v17262_v28  ;;  %8607 = vmatmul.mubr.bf16.gmra.mrb[20].mxu1 %v17262_v28 }
 0x279   : > { %7754 = vmatpush1.bf16.msra.mxu0 %v13905_v11  ;;  %8658 = vmatpush1.bf16.msra.mxu1 %v13907_v12  ;;  %v873_v11 = vld [vmem:[%s16288_s11 + $0x748] sm:$0xff] }
 0x27a   : > { %7755 = vmatprep.subr.bf16.mxu0 %v13914_v15  ;;  %8659 = vmatprep.subr.bf16.mxu1 %v13916_v18  ;;  %v889_v12 = vld [vmem:[%s16288_s11 + $0x7c8] sm:$0xff]  ;;  %v13930_v15 = vcombine.high %v1768_v21, %v1772_v13  ;;  %v13932_v18 = vcombine.high %v1769_v60, %v1773_v62  ;;  %v17302_v21 = vpack.c.bf16 %v888_v37, %v872_v30  ;;  %v1796_v30 = vld [vmem:[%s16295_s2 + $0x1820] sm:$0xff] }
 0x27b   : > { %7712 = vmatprep.mubr.bf16.mxu0 %v17267_v40  ;;  %8616 = vmatprep.mubr.bf16.mxu1 %v17267_v40  ;;  %v17287_v28 = vpack.c.bf16 %v889_v12, %v873_v11  ;;  %v1776_v40 = vld [vmem:[%s16295_s2 + $0x1780] sm:$0xff]  ;;  %v1785_v12 = vld [vmem:[%s16295_s2 + $0x17c8] sm:$0xff] }
 0x27c   : > { %v1788_v11 = vld [vmem:[%s16295_s2 + $0x17e0] sm:$0xff]  ;;  %19556 = vst [vmem:[#allocation57_spill] sm:$0xff] %v17302_v21  ;;  %v1789_v13 = vld [vmem:[%s16295_s2 + $0x17e8] sm:$0xff]  ;;  %v13937_v60 = vcombine.low %v1776_v40, %v1780_v42 }
 0x27d   : > { %7756 = vmatpush1.bf16.msra.mxu0 %v13913_v45  ;;  %8660 = vmatpush1.bf16.msra.mxu1 %v13915_v55  ;;  %19555 = vst [vmem:[#allocation56_spill] sm:$0xff] %v17287_v28  ;;  %v1781_v45 = vld [vmem:[%s16295_s2 + $0x17a8] sm:$0xff]  ;;  %v13938_v55 = vcombine.high %v1776_v40, %v1780_v42  ;;  %v650_v42 = vld [vmem:[%s16288_s11 + $0x50] sm:$0xff] }
 0x27e   : > { %7757 = vmatprep.subr.bf16.mxu0 %v13922_v56  ;;  %8661 = vmatprep.subr.bf16.mxu1 %v13924_v63  ;;  %v13940_v56 = vcombine.high %v1777_v43, %v1781_v45  ;;  %v1784_v63 = vld [vmem:[%s16295_s2 + $0x17c0] sm:$0xff]  ;;  %v13939_v62 = vcombine.low %v1777_v43, %v1781_v45  ;;  %v1793_v37 = vld [vmem:[%s16295_s2 + $0x1808] sm:$0xff]  ;;  %v666_v43 = vld [vmem:[%s16288_s11 + $0xd0] sm:$0xff]  ;;  %v13947_v45 = vcombine.low %v1785_v12, %v1789_v13 }
 0x27f   : > { %v13945_v40 = vcombine.low %v1784_v63, %v1788_v11 }
 0x280   : > { %7713 = vmatmul.mubr.bf16.gmra.mrb[24].mxu0 %v17282_v26  ;;  %8617 = vmatmul.mubr.bf16.gmra.mrb[24].mxu1 %v17282_v26 }
 0x281   : > { %7758 = vmatpush1.bf16.msra.mxu0 %v13921_v2  ;;  %8662 = vmatpush1.bf16.msra.mxu1 %v13923_v7  ;;  %v651_v2 = vld [vmem:[%s16288_s11 + $0x58] sm:$0xff] }
 0x282   : > { %7759 = vmatprep.subr.bf16.mxu0 %v13930_v15  ;;  %8663 = vmatprep.subr.bf16.mxu1 %v13932_v18  ;;  %v667_v7 = vld [vmem:[%s16288_s11 + $0xd8] sm:$0xff]  ;;  %v13946_v15 = vcombine.high %v1784_v63, %v1788_v11  ;;  %v13948_v18 = vcombine.high %v1785_v12, %v1789_v13  ;;  %v17322_v63 = vpack.c.bf16 %v666_v43, %v650_v42  ;;  %v1805_v11 = vld [vmem:[%s16295_s2 + $0x1868] sm:$0xff]  ;;  %v1812_v42 = vld [vmem:[%s16295_s2 + $0x18a0] sm:$0xff] }
 0x283   : > { %7722 = vmatprep.mubr.bf16.mxu0 %v17287_v28  ;;  %8626 = vmatprep.mubr.bf16.mxu1 %v17287_v28  ;;  %v17307_v26 = vpack.c.bf16 %v667_v7, %v651_v2  ;;  %v1792_v28 = vld [vmem:[%s16295_s2 + $0x1800] sm:$0xff]  ;;  %v1801_v7 = vld [vmem:[%s16295_s2 + $0x1848] sm:$0xff] }
 0x284   : > { %v1804_v2 = vld [vmem:[%s16295_s2 + $0x1860] sm:$0xff]  ;;  %19558 = vst [vmem:[#allocation59_spill] sm:$0xff] %v17322_v63  ;;  %v13953_v12 = vcombine.low %v1792_v28, %v1796_v30  ;;  %v1809_v43 = vld [vmem:[%s16295_s2 + $0x1888] sm:$0xff] }
 0x285   : > { %7760 = vmatpush1.bf16.msra.mxu0 %v13929_v48  ;;  %8664 = vmatpush1.bf16.msra.mxu1 %v13931_v54  ;;  %19557 = vst [vmem:[#allocation58_spill] sm:$0xff] %v17307_v26  ;;  %v1797_v48 = vld [vmem:[%s16295_s2 + $0x1828] sm:$0xff]  ;;  %v13954_v54 = vcombine.high %v1792_v28, %v1796_v30  ;;  %v682_v30 = vld [vmem:[%s16288_s11 + $0x150] sm:$0xff] }
 0x286   : > { %7761 = vmatprep.subr.bf16.mxu0 %v13938_v55  ;;  %8665 = vmatprep.subr.bf16.mxu1 %v13940_v56  ;;  %v13956_v55 = vcombine.high %v1793_v37, %v1797_v48  ;;  %v1800_v56 = vld [vmem:[%s16295_s2 + $0x1840] sm:$0xff]  ;;  %v13955_v13 = vcombine.low %v1793_v37, %v1797_v48  ;;  %v698_v37 = vld [vmem:[%s16288_s11 + $0x1d0] sm:$0xff]  ;;  %v13963_v48 = vcombine.low %v1801_v7, %v1805_v11 }
 0x287   : > { %v13961_v28 = vcombine.low %v1800_v56, %v1804_v2 }
 0x288   : > { %7723 = vmatmul.mubr.bf16.gmra.mrb[28].mxu0 %v17302_v21  ;;  %8627 = vmatmul.mubr.bf16.gmra.mrb[28].mxu1 %v17302_v21 }
 0x289   : > { %7762 = vmatpush1.bf16.msra.mxu0 %v13937_v60  ;;  %8666 = vmatpush1.bf16.msra.mxu1 %v13939_v62  ;;  %v683_v60 = vld [vmem:[%s16288_s11 + $0x158] sm:$0xff] }
 0x28a   : > { %7763 = vmatprep.subr.bf16.mxu0 %v13946_v15  ;;  %8667 = vmatprep.subr.bf16.mxu1 %v13948_v18  ;;  %v699_v62 = vld [vmem:[%s16288_s11 + $0x1d8] sm:$0xff]  ;;  %v13962_v15 = vcombine.high %v1800_v56, %v1804_v2  ;;  %v13964_v18 = vcombine.high %v1801_v7, %v1805_v11  ;;  %v17342_v56 = vpack.c.bf16 %v698_v37, %v682_v30  ;;  %v1821_v2 = vld [vmem:[%s16295_s2 + $0x18e8] sm:$0xff]  ;;  %v1828_v30 = vld [vmem:[%s16295_s2 + $0x1920] sm:$0xff] }
 0x28b   : > { %7765 = vmatprep.mubr.bf16.mxu0 %v17307_v26  ;;  %8669 = vmatprep.mubr.bf16.mxu1 %v17307_v26  ;;  %v17327_v21 = vpack.c.bf16 %v699_v62, %v683_v60  ;;  %v1808_v26 = vld [vmem:[%s16295_s2 + $0x1880] sm:$0xff]  ;;  %v1817_v62 = vld [vmem:[%s16295_s2 + $0x18c8] sm:$0xff] }
 0x28c   : > { %v1820_v60 = vld [vmem:[%s16295_s2 + $0x18e0] sm:$0xff]  ;;  %19560 = vst [vmem:[#allocation61_spill] sm:$0xff] %v17342_v56  ;;  %v13969_v7 = vcombine.low %v1808_v26, %v1812_v42  ;;  %v1825_v37 = vld [vmem:[%s16295_s2 + $0x1908] sm:$0xff] }
 0x28d   : > { %7764 = vmatpush1.bf16.msra.mxu0 %v13945_v40  ;;  %8668 = vmatpush1.bf16.msra.mxu1 %v13947_v45  ;;  %19559 = vst [vmem:[#allocation60_spill] sm:$0xff] %v17327_v21  ;;  %v1813_v40 = vld [vmem:[%s16295_s2 + $0x18a8] sm:$0xff]  ;;  %v13970_v45 = vcombine.high %v1808_v26, %v1812_v42  ;;  %v714_v42 = vld [vmem:[%s16288_s11 + $0x250] sm:$0xff] }
 0x28e   : > { %7846 = vmatprep.subr.bf16.mxu0 %v13954_v54  ;;  %8750 = vmatprep.subr.bf16.mxu1 %v13956_v55  ;;  %v13972_v54 = vcombine.high %v1809_v43, %v1813_v40  ;;  %v1816_v55 = vld [vmem:[%s16295_s2 + $0x18c0] sm:$0xff]  ;;  %v13971_v11 = vcombine.low %v1809_v43, %v1813_v40  ;;  %v730_v43 = vld [vmem:[%s16288_s11 + $0x2d0] sm:$0xff]  ;;  %v13979_v40 = vcombine.low %v1817_v62, %v1821_v2 }
 0x28f   : > { %v13977_v26 = vcombine.low %v1816_v55, %v1820_v60 }
 0x290   : > { %7766 = vmatmul.mubr.bf16.vlgmr.msra.gmra.mrb[0].mxu0 %v17322_v63  ;;  %8670 = vmatmul.mubr.bf16.vlgmr.msra.gmra.mrb[0].mxu1 %v17322_v63 }
 0x291   : > { %7847 = vmatpush1.bf16.msra.mxu0 %v13953_v12  ;;  %8751 = vmatpush1.bf16.msra.mxu1 %v13955_v13  ;;  %v715_v12 = vld [vmem:[%s16288_s11 + $0x258] sm:$0xff] }
 0x292   : > { %7848 = vmatprep.subr.bf16.mxu0 %v13962_v15  ;;  %8752 = vmatprep.subr.bf16.mxu1 %v13964_v18  ;;  %v731_v13 = vld [vmem:[%s16288_s11 + $0x2d8] sm:$0xff]  ;;  %v13978_v15 = vcombine.high %v1816_v55, %v1820_v60  ;;  %v13980_v18 = vcombine.high %v1817_v62, %v1821_v2  ;;  %v17362_v55 = vpack.c.bf16 %v730_v43, %v714_v42  ;;  %v1837_v60 = vld [vmem:[%s16295_s2 + $0x1968] sm:$0xff]  ;;  %v1844_v42 = vld [vmem:[%s16295_s2 + $0x19a0] sm:$0xff] }
 0x293   : > { %7775 = vmatprep.mubr.bf16.mxu0 %v17327_v21  ;;  %8679 = vmatprep.mubr.bf16.mxu1 %v17327_v21  ;;  %v17347_v63 = vpack.c.bf16 %v731_v13, %v715_v12  ;;  %v1824_v21 = vld [vmem:[%s16295_s2 + $0x1900] sm:$0xff]  ;;  %v1833_v13 = vld [vmem:[%s16295_s2 + $0x1948] sm:$0xff] }
 0x294   : > { %v1836_v12 = vld [vmem:[%s16295_s2 + $0x1960] sm:$0xff]  ;;  %19562 = vst [vmem:[#allocation63_spill] sm:$0xff] %v17362_v55  ;;  %v13985_v62 = vcombine.low %v1824_v21, %v1828_v30  ;;  %v1841_v43 = vld [vmem:[%s16295_s2 + $0x1988] sm:$0xff] }
 0x295   : > { %7849 = vmatpush1.bf16.msra.mxu0 %v13961_v28  ;;  %8753 = vmatpush1.bf16.msra.mxu1 %v13963_v48  ;;  %19561 = vst [vmem:[#allocation62_spill] sm:$0xff] %v17347_v63  ;;  %v1829_v28 = vld [vmem:[%s16295_s2 + $0x1928] sm:$0xff]  ;;  %v13986_v48 = vcombine.high %v1824_v21, %v1828_v30  ;;  %v746_v30 = vld [vmem:[%s16288_s11 + $0x350] sm:$0xff] }
 0x296   : > { %7850 = vmatprep.subr.bf16.mxu0 %v13970_v45  ;;  %8754 = vmatprep.subr.bf16.mxu1 %v13972_v54  ;;  %v13988_v45 = vcombine.high %v1825_v37, %v1829_v28  ;;  %v1832_v54 = vld [vmem:[%s16295_s2 + $0x1940] sm:$0xff]  ;;  %v13987_v2 = vcombine.low %v1825_v37, %v1829_v28  ;;  %v762_v37 = vld [vmem:[%s16288_s11 + $0x3d0] sm:$0xff]  ;;  %v13995_v28 = vcombine.low %v1833_v13, %v1837_v60 }
 0x297   : > { %v13993_v21 = vcombine.low %v1832_v54, %v1836_v12 }
 0x298   : > { %7776 = vmatmul.mubr.bf16.gmra.mrb[4].mxu0 %v17342_v56  ;;  %8680 = vmatmul.mubr.bf16.gmra.mrb[4].mxu1 %v17342_v56 }
 0x299   : > { %7851 = vmatpush1.bf16.msra.mxu0 %v13969_v7  ;;  %8755 = vmatpush1.bf16.msra.mxu1 %v13971_v11  ;;  %v747_v7 = vld [vmem:[%s16288_s11 + $0x358] sm:$0xff] }
 0x29a   : > { %7852 = vmatprep.subr.bf16.mxu0 %v13978_v15  ;;  %8756 = vmatprep.subr.bf16.mxu1 %v13980_v18  ;;  %v763_v11 = vld [vmem:[%s16288_s11 + $0x3d8] sm:$0xff]  ;;  %v13994_v15 = vcombine.high %v1832_v54, %v1836_v12  ;;  %v13996_v18 = vcombine.high %v1833_v13, %v1837_v60  ;;  %v17382_v54 = vpack.c.bf16 %v762_v37, %v746_v30  ;;  %v1853_v12 = vld [vmem:[%s16295_s2 + $0x19e8] sm:$0xff]  ;;  %v1860_v30 = vld [vmem:[%s16295_s2 + $0x1a20] sm:$0xff] }
 0x29b   : > { %7785 = vmatprep.mubr.bf16.mxu0 %v17347_v63  ;;  %8689 = vmatprep.mubr.bf16.mxu1 %v17347_v63  ;;  %v17367_v56 = vpack.c.bf16 %v763_v11, %v747_v7  ;;  %v1840_v63 = vld [vmem:[%s16295_s2 + $0x1980] sm:$0xff]  ;;  %v1849_v11 = vld [vmem:[%s16295_s2 + $0x19c8] sm:$0xff] }
 0x29c   : > { %v1852_v7 = vld [vmem:[%s16295_s2 + $0x19e0] sm:$0xff]  ;;  %19564 = vst [vmem:[#allocation65_spill] sm:$0xff] %v17382_v54  ;;  %v14001_v13 = vcombine.low %v1840_v63, %v1844_v42  ;;  %v1857_v37 = vld [vmem:[%s16295_s2 + $0x1a08] sm:$0xff] }
 0x29d   : > { %7853 = vmatpush1.bf16.msra.mxu0 %v13977_v26  ;;  %8757 = vmatpush1.bf16.msra.mxu1 %v13979_v40  ;;  %19563 = vst [vmem:[#allocation64_spill] sm:$0xff] %v17367_v56  ;;  %v1845_v26 = vld [vmem:[%s16295_s2 + $0x19a8] sm:$0xff]  ;;  %v14002_v40 = vcombine.high %v1840_v63, %v1844_v42  ;;  %v778_v42 = vld [vmem:[%s16288_s11 + $0x450] sm:$0xff] }
 0x29e   : > { %7854 = vmatprep.subr.bf16.mxu0 %v13986_v48  ;;  %8758 = vmatprep.subr.bf16.mxu1 %v13988_v45  ;;  %v14004_v48 = vcombine.high %v1841_v43, %v1845_v26  ;;  %v1848_v45 = vld [vmem:[%s16295_s2 + $0x19c0] sm:$0xff]  ;;  %v14003_v60 = vcombine.low %v1841_v43, %v1845_v26  ;;  %v794_v43 = vld [vmem:[%s16288_s11 + $0x4d0] sm:$0xff]  ;;  %v14011_v26 = vcombine.low %v1849_v11, %v1853_v12 }
 0x29f   : > { %v14009_v63 = vcombine.low %v1848_v45, %v1852_v7 }
 0x2a0   : > { %7786 = vmatmul.mubr.bf16.gmra.mrb[8].mxu0 %v17362_v55  ;;  %8690 = vmatmul.mubr.bf16.gmra.mrb[8].mxu1 %v17362_v55 }
 0x2a1   : > { %7855 = vmatpush1.bf16.msra.mxu0 %v13985_v62  ;;  %8759 = vmatpush1.bf16.msra.mxu1 %v13987_v2  ;;  %v779_v62 = vld [vmem:[%s16288_s11 + $0x458] sm:$0xff] }
 0x2a2   : > { %7856 = vmatprep.subr.bf16.mxu0 %v13994_v15  ;;  %8760 = vmatprep.subr.bf16.mxu1 %v13996_v18  ;;  %v795_v2 = vld [vmem:[%s16288_s11 + $0x4d8] sm:$0xff]  ;;  %v14010_v15 = vcombine.high %v1848_v45, %v1852_v7  ;;  %v14012_v18 = vcombine.high %v1849_v11, %v1853_v12  ;;  %v17402_v45 = vpack.c.bf16 %v794_v43, %v778_v42  ;;  %v1869_v7 = vld [vmem:[%s16295_s2 + $0x1a68] sm:$0xff]  ;;  %v1876_v42 = vld [vmem:[%s16295_s2 + $0x1aa0] sm:$0xff] }
 0x2a3   : > { %7795 = vmatprep.mubr.bf16.mxu0 %v17367_v56  ;;  %8699 = vmatprep.mubr.bf16.mxu1 %v17367_v56  ;;  %v17387_v55 = vpack.c.bf16 %v795_v2, %v779_v62  ;;  %v1856_v56 = vld [vmem:[%s16295_s2 + $0x1a00] sm:$0xff]  ;;  %v1865_v2 = vld [vmem:[%s16295_s2 + $0x1a48] sm:$0xff] }
 0x2a4   : > { %v1868_v62 = vld [vmem:[%s16295_s2 + $0x1a60] sm:$0xff]  ;;  %19566 = vst [vmem:[#allocation67_spill] sm:$0xff] %v17402_v45  ;;  %v14017_v11 = vcombine.low %v1856_v56, %v1860_v30  ;;  %v1873_v43 = vld [vmem:[%s16295_s2 + $0x1a88] sm:$0xff] }
 0x2a5   : > { %7857 = vmatpush1.bf16.msra.mxu0 %v13993_v21  ;;  %8761 = vmatpush1.bf16.msra.mxu1 %v13995_v28  ;;  %19565 = vst [vmem:[#allocation66_spill] sm:$0xff] %v17387_v55  ;;  %v1861_v21 = vld [vmem:[%s16295_s2 + $0x1a28] sm:$0xff]  ;;  %v14018_v28 = vcombine.high %v1856_v56, %v1860_v30  ;;  %v810_v30 = vld [vmem:[%s16288_s11 + $0x550] sm:$0xff] }
 0x2a6   : > { %7858 = vmatprep.subr.bf16.mxu0 %v14002_v40  ;;  %8762 = vmatprep.subr.bf16.mxu1 %v14004_v48  ;;  %v14020_v40 = vcombine.high %v1857_v37, %v1861_v21  ;;  %v1864_v48 = vld [vmem:[%s16295_s2 + $0x1a40] sm:$0xff]  ;;  %v14019_v12 = vcombine.low %v1857_v37, %v1861_v21  ;;  %v826_v37 = vld [vmem:[%s16288_s11 + $0x5d0] sm:$0xff]  ;;  %v14027_v21 = vcombine.low %v1865_v2, %v1869_v7 }
 0x2a7   : > { %v14025_v56 = vcombine.low %v1864_v48, %v1868_v62 }
 0x2a8   : > { %7796 = vmatmul.mubr.bf16.gmra.mrb[12].mxu0 %v17382_v54  ;;  %8700 = vmatmul.mubr.bf16.gmra.mrb[12].mxu1 %v17382_v54 }
 0x2a9   : > { %7859 = vmatpush1.bf16.msra.mxu0 %v14001_v13  ;;  %8763 = vmatpush1.bf16.msra.mxu1 %v14003_v60  ;;  %v811_v13 = vld [vmem:[%s16288_s11 + $0x558] sm:$0xff] }
 0x2aa   : > { %7860 = vmatprep.subr.bf16.mxu0 %v14010_v15  ;;  %8764 = vmatprep.subr.bf16.mxu1 %v14012_v18  ;;  %v827_v60 = vld [vmem:[%s16288_s11 + $0x5d8] sm:$0xff]  ;;  %v14026_v15 = vcombine.high %v1864_v48, %v1868_v62  ;;  %v14028_v18 = vcombine.high %v1865_v2, %v1869_v7  ;;  %v17422_v48 = vpack.c.bf16 %v826_v37, %v810_v30  ;;  %v1885_v62 = vld [vmem:[%s16295_s2 + $0x1ae8] sm:$0xff]  ;;  %v1892_v30 = vld [vmem:[%s16295_s2 + $0x1b20] sm:$0xff] }
 0x2ab   : > { %7805 = vmatprep.mubr.bf16.mxu0 %v17387_v55  ;;  %8709 = vmatprep.mubr.bf16.mxu1 %v17387_v55  ;;  %v17407_v54 = vpack.c.bf16 %v827_v60, %v811_v13  ;;  %v1872_v55 = vld [vmem:[%s16295_s2 + $0x1a80] sm:$0xff]  ;;  %v1881_v60 = vld [vmem:[%s16295_s2 + $0x1ac8] sm:$0xff] }
 0x2ac   : > { %v1884_v13 = vld [vmem:[%s16295_s2 + $0x1ae0] sm:$0xff]  ;;  %19568 = vst [vmem:[#allocation69_spill] sm:$0xff] %v17422_v48  ;;  %v14033_v2 = vcombine.low %v1872_v55, %v1876_v42  ;;  %v1889_v37 = vld [vmem:[%s16295_s2 + $0x1b08] sm:$0xff] }
 0x2ad   : > { %7861 = vmatpush1.bf16.msra.mxu0 %v14009_v63  ;;  %8765 = vmatpush1.bf16.msra.mxu1 %v14011_v26  ;;  %19567 = vst [vmem:[#allocation68_spill] sm:$0xff] %v17407_v54  ;;  %v1877_v63 = vld [vmem:[%s16295_s2 + $0x1aa8] sm:$0xff]  ;;  %v14034_v26 = vcombine.high %v1872_v55, %v1876_v42  ;;  %v842_v42 = vld [vmem:[%s16288_s11 + $0x650] sm:$0xff] }
 0x2ae   : > { %7862 = vmatprep.subr.bf16.mxu0 %v14018_v28  ;;  %8766 = vmatprep.subr.bf16.mxu1 %v14020_v40  ;;  %v14036_v28 = vcombine.high %v1873_v43, %v1877_v63  ;;  %v1880_v40 = vld [vmem:[%s16295_s2 + $0x1ac0] sm:$0xff]  ;;  %v14035_v7 = vcombine.low %v1873_v43, %v1877_v63  ;;  %v858_v43 = vld [vmem:[%s16288_s11 + $0x6d0] sm:$0xff]  ;;  %v14043_v63 = vcombine.low %v1881_v60, %v1885_v62 }
 0x2af   : > { %v14041_v55 = vcombine.low %v1880_v40, %v1884_v13 }
 0x2b0   : > { %7806 = vmatmul.mubr.bf16.gmra.mrb[16].mxu0 %v17402_v45  ;;  %8710 = vmatmul.mubr.bf16.gmra.mrb[16].mxu1 %v17402_v45 }
 0x2b1   : > { %7863 = vmatpush1.bf16.msra.mxu0 %v14017_v11  ;;  %8767 = vmatpush1.bf16.msra.mxu1 %v14019_v12  ;;  %v843_v11 = vld [vmem:[%s16288_s11 + $0x658] sm:$0xff] }
 0x2b2   : > { %7864 = vmatprep.subr.bf16.mxu0 %v14026_v15  ;;  %8768 = vmatprep.subr.bf16.mxu1 %v14028_v18  ;;  %v859_v12 = vld [vmem:[%s16288_s11 + $0x6d8] sm:$0xff]  ;;  %v14042_v15 = vcombine.high %v1880_v40, %v1884_v13  ;;  %v14044_v18 = vcombine.high %v1881_v60, %v1885_v62  ;;  %v17442_v40 = vpack.c.bf16 %v858_v43, %v842_v42  ;;  %v1901_v13 = vld [vmem:[%s16295_s2 + $0x1b68] sm:$0xff]  ;;  %v1908_v42 = vld [vmem:[%s16295_s2 + $0x1ba0] sm:$0xff] }
 0x2b3   : > { %7815 = vmatprep.mubr.bf16.mxu0 %v17407_v54  ;;  %8719 = vmatprep.mubr.bf16.mxu1 %v17407_v54  ;;  %v17427_v45 = vpack.c.bf16 %v859_v12, %v843_v11  ;;  %v1888_v54 = vld [vmem:[%s16295_s2 + $0x1b00] sm:$0xff]  ;;  %v1897_v12 = vld [vmem:[%s16295_s2 + $0x1b48] sm:$0xff] }
 0x2b4   : > { %v1900_v11 = vld [vmem:[%s16295_s2 + $0x1b60] sm:$0xff]  ;;  %19570 = vst [vmem:[#allocation71_spill] sm:$0xff] %v17442_v40  ;;  %v14049_v60 = vcombine.low %v1888_v54, %v1892_v30  ;;  %v1905_v43 = vld [vmem:[%s16295_s2 + $0x1b88] sm:$0xff] }
 0x2b5   : > { %7865 = vmatpush1.bf16.msra.mxu0 %v14025_v56  ;;  %8769 = vmatpush1.bf16.msra.mxu1 %v14027_v21  ;;  %19569 = vst [vmem:[#allocation70_spill] sm:$0xff] %v17427_v45  ;;  %v1893_v56 = vld [vmem:[%s16295_s2 + $0x1b28] sm:$0xff]  ;;  %v14050_v21 = vcombine.high %v1888_v54, %v1892_v30  ;;  %v874_v30 = vld [vmem:[%s16288_s11 + $0x750] sm:$0xff] }
 0x2b6   : > { %7866 = vmatprep.subr.bf16.mxu0 %v14034_v26  ;;  %8770 = vmatprep.subr.bf16.mxu1 %v14036_v28  ;;  %v14052_v26 = vcombine.high %v1889_v37, %v1893_v56  ;;  %v1896_v28 = vld [vmem:[%s16295_s2 + $0x1b40] sm:$0xff]  ;;  %v14051_v62 = vcombine.low %v1889_v37, %v1893_v56  ;;  %v890_v37 = vld [vmem:[%s16288_s11 + $0x7d0] sm:$0xff]  ;;  %v14059_v56 = vcombine.low %v1897_v12, %v1901_v13 }
 0x2b7   : > { %v14057_v54 = vcombine.low %v1896_v28, %v1900_v11 }
 0x2b8   : > { %7816 = vmatmul.mubr.bf16.gmra.mrb[20].mxu0 %v17422_v48  ;;  %8720 = vmatmul.mubr.bf16.gmra.mrb[20].mxu1 %v17422_v48 }
 0x2b9   : > { %7867 = vmatpush1.bf16.msra.mxu0 %v14033_v2  ;;  %8771 = vmatpush1.bf16.msra.mxu1 %v14035_v7  ;;  %v875_v2 = vld [vmem:[%s16288_s11 + $0x758] sm:$0xff] }
 0x2ba   : > { %7868 = vmatprep.subr.bf16.mxu0 %v14042_v15  ;;  %8772 = vmatprep.subr.bf16.mxu1 %v14044_v18  ;;  %v891_v7 = vld [vmem:[%s16288_s11 + $0x7d8] sm:$0xff]  ;;  %v14058_v15 = vcombine.high %v1896_v28, %v1900_v11  ;;  %v14060_v18 = vcombine.high %v1897_v12, %v1901_v13  ;;  %v17462_v28 = vpack.c.bf16 %v890_v37, %v874_v30  ;;  %v1917_v11 = vld [vmem:[%s16295_s2 + $0x1be8] sm:$0xff]  ;;  %v1924_v30 = vld [vmem:[%s16295_s2 + $0x1c20] sm:$0xff] }
 0x2bb   : > { %7825 = vmatprep.mubr.bf16.mxu0 %v17427_v45  ;;  %8729 = vmatprep.mubr.bf16.mxu1 %v17427_v45  ;;  %v17447_v48 = vpack.c.bf16 %v891_v7, %v875_v2  ;;  %v1904_v45 = vld [vmem:[%s16295_s2 + $0x1b80] sm:$0xff]  ;;  %v1913_v7 = vld [vmem:[%s16295_s2 + $0x1bc8] sm:$0xff] }
 0x2bc   : > { %v1916_v2 = vld [vmem:[%s16295_s2 + $0x1be0] sm:$0xff]  ;;  %19572 = vst [vmem:[#allocation73_spill] sm:$0xff] %v17462_v28  ;;  %v14065_v12 = vcombine.low %v1904_v45, %v1908_v42  ;;  %v1921_v37 = vld [vmem:[%s16295_s2 + $0x1c08] sm:$0xff] }
 0x2bd   : > { %7869 = vmatpush1.bf16.msra.mxu0 %v14041_v55  ;;  %8773 = vmatpush1.bf16.msra.mxu1 %v14043_v63  ;;  %19571 = vst [vmem:[#allocation72_spill] sm:$0xff] %v17447_v48  ;;  %v1909_v55 = vld [vmem:[%s16295_s2 + $0x1ba8] sm:$0xff]  ;;  %v14066_v63 = vcombine.high %v1904_v45, %v1908_v42  ;;  %v652_v42 = vld [vmem:[%s16288_s11 + $0x60] sm:$0xff] }
 0x2be   : > { %7870 = vmatprep.subr.bf16.mxu0 %v14050_v21  ;;  %8774 = vmatprep.subr.bf16.mxu1 %v14052_v26  ;;  %v14068_v21 = vcombine.high %v1905_v43, %v1909_v55  ;;  %v1912_v26 = vld [vmem:[%s16295_s2 + $0x1bc0] sm:$0xff]  ;;  %v14067_v13 = vcombine.low %v1905_v43, %v1909_v55  ;;  %v14075_v55 = vcombine.low %v1913_v7, %v1917_v11 }
 0x2bf   : > { %v14073_v45 = vcombine.low %v1912_v26, %v1916_v2  ;;  %v668_v43 = vld [vmem:[%s16288_s11 + $0xe0] sm:$0xff] }
 0x2c0   : > { %7826 = vmatmul.mubr.bf16.gmra.mrb[24].mxu0 %v17442_v40  ;;  %8730 = vmatmul.mubr.bf16.gmra.mrb[24].mxu1 %v17442_v40 }
 0x2c1   : > { %7871 = vmatpush1.bf16.msra.mxu0 %v14049_v60  ;;  %8775 = vmatpush1.bf16.msra.mxu1 %v14051_v62  ;;  %v653_v60 = vld [vmem:[%s16288_s11 + $0x68] sm:$0xff] }
 0x2c2   : > { %7872 = vmatprep.subr.bf16.mxu0 %v14058_v15  ;;  %8776 = vmatprep.subr.bf16.mxu1 %v14060_v18  ;;  %v669_v62 = vld [vmem:[%s16288_s11 + $0xe8] sm:$0xff]  ;;  %v14074_v15 = vcombine.high %v1912_v26, %v1916_v2  ;;  %v14076_v18 = vcombine.high %v1913_v7, %v1917_v11  ;;  %v17482_v26 = vpack.c.bf16 %v668_v43, %v652_v42  ;;  %v1940_v42 = vld [vmem:[%s16295_s2 + $0x1ca0] sm:$0xff] }
 0x2c3   : > { %7835 = vmatprep.mubr.bf16.mxu0 %v17447_v48  ;;  %8739 = vmatprep.mubr.bf16.mxu1 %v17447_v48  ;;  %v17467_v40 = vpack.c.bf16 %v669_v62, %v653_v60  ;;  %v1920_v48 = vld [vmem:[%s16295_s2 + $0x1c00] sm:$0xff]  ;;  %v1929_v62 = vld [vmem:[%s16295_s2 + $0x1c48] sm:$0xff] }
 0x2c4   : > { %v1932_v60 = vld [vmem:[%s16295_s2 + $0x1c60] sm:$0xff]  ;;  %19574 = vst [vmem:[#allocation75_spill] sm:$0xff] %v17482_v26  ;;  %v1933_v2 = vld [vmem:[%s16295_s2 + $0x1c68] sm:$0xff]  ;;  %v14081_v7 = vcombine.low %v1920_v48, %v1924_v30 }
 0x2c5   : > { %7873 = vmatpush1.bf16.msra.mxu0 %v14057_v54  ;;  %8777 = vmatpush1.bf16.msra.mxu1 %v14059_v56  ;;  %19573 = vst [vmem:[#allocation74_spill] sm:$0xff] %v17467_v40  ;;  %v1925_v54 = vld [vmem:[%s16295_s2 + $0x1c28] sm:$0xff]  ;;  %v14082_v56 = vcombine.high %v1920_v48, %v1924_v30  ;;  %v684_v30 = vld [vmem:[%s16288_s11 + $0x160] sm:$0xff] }
 0x2c6   : > { %7874 = vmatprep.subr.bf16.mxu0 %v14066_v63  ;;  %8778 = vmatprep.subr.bf16.mxu1 %v14068_v21  ;;  %v14084_v63 = vcombine.high %v1921_v37, %v1925_v54  ;;  %v1928_v21 = vld [vmem:[%s16295_s2 + $0x1c40] sm:$0xff]  ;;  %v14083_v11 = vcombine.low %v1921_v37, %v1925_v54  ;;  %v1937_v43 = vld [vmem:[%s16295_s2 + $0x1c88] sm:$0xff]  ;;  %v14091_v54 = vcombine.low %v1929_v62, %v1933_v2 }
 0x2c7   : > { %v14089_v48 = vcombine.low %v1928_v21, %v1932_v60  ;;  %v700_v37 = vld [vmem:[%s16288_s11 + $0x1e0] sm:$0xff] }
 0x2c8   : > { %7836 = vmatmul.mubr.bf16.gmra.mrb[28].mxu0 %v17462_v28  ;;  %8740 = vmatmul.mubr.bf16.gmra.mrb[28].mxu1 %v17462_v28 }
 0x2c9   : > { %7875 = vmatpush1.bf16.msra.mxu0 %v14065_v12  ;;  %8779 = vmatpush1.bf16.msra.mxu1 %v14067_v13  ;;  %v685_v12 = vld [vmem:[%s16288_s11 + $0x168] sm:$0xff] }
 0x2ca   : > { %7876 = vmatprep.subr.bf16.mxu0 %v14074_v15  ;;  %8780 = vmatprep.subr.bf16.mxu1 %v14076_v18  ;;  %v701_v13 = vld [vmem:[%s16288_s11 + $0x1e8] sm:$0xff]  ;;  %v14090_v15 = vcombine.high %v1928_v21, %v1932_v60  ;;  %v14092_v18 = vcombine.high %v1929_v62, %v1933_v2  ;;  %v17502_v21 = vpack.c.bf16 %v700_v37, %v684_v30  ;;  %v1956_v30 = vld [vmem:[%s16295_s2 + $0x1d20] sm:$0xff] }
 0x2cb   : > { %7878 = vmatprep.mubr.bf16.mxu0 %v17467_v40  ;;  %8782 = vmatprep.mubr.bf16.mxu1 %v17467_v40  ;;  %v17487_v28 = vpack.c.bf16 %v701_v13, %v685_v12  ;;  %v1936_v40 = vld [vmem:[%s16295_s2 + $0x1c80] sm:$0xff]  ;;  %v1945_v13 = vld [vmem:[%s16295_s2 + $0x1cc8] sm:$0xff] }
 0x2cc   : > { %v1948_v12 = vld [vmem:[%s16295_s2 + $0x1ce0] sm:$0xff]  ;;  %19576 = vst [vmem:[#allocation77_spill] sm:$0xff] %v17502_v21  ;;  %v1949_v60 = vld [vmem:[%s16295_s2 + $0x1ce8] sm:$0xff]  ;;  %v14097_v62 = vcombine.low %v1936_v40, %v1940_v42 }
 0x2cd   : > { %7877 = vmatpush1.bf16.msra.mxu0 %v14073_v45  ;;  %8781 = vmatpush1.bf16.msra.mxu1 %v14075_v55  ;;  %19575 = vst [vmem:[#allocation76_spill] sm:$0xff] %v17487_v28  ;;  %v1941_v45 = vld [vmem:[%s16295_s2 + $0x1ca8] sm:$0xff]  ;;  %v14098_v55 = vcombine.high %v1936_v40, %v1940_v42  ;;  %v716_v42 = vld [vmem:[%s16288_s11 + $0x260] sm:$0xff] }
 0x2ce   : > { %7959 = vmatprep.subr.bf16.mxu0 %v14082_v56  ;;  %8863 = vmatprep.subr.bf16.mxu1 %v14084_v63  ;;  %v14100_v56 = vcombine.high %v1937_v43, %v1941_v45  ;;  %v1944_v63 = vld [vmem:[%s16295_s2 + $0x1cc0] sm:$0xff]  ;;  %v14099_v2 = vcombine.low %v1937_v43, %v1941_v45  ;;  %v1953_v37 = vld [vmem:[%s16295_s2 + $0x1d08] sm:$0xff]  ;;  %v14107_v45 = vcombine.low %v1945_v13, %v1949_v60 }
 0x2cf   : > { %v14105_v40 = vcombine.low %v1944_v63, %v1948_v12  ;;  %v732_v43 = vld [vmem:[%s16288_s11 + $0x2e0] sm:$0xff] }
 0x2d0   : > { %7879 = vmatmul.mubr.bf16.vlgmr.msra.gmra.mrb[0].mxu0 %v17482_v26  ;;  %8783 = vmatmul.mubr.bf16.vlgmr.msra.gmra.mrb[0].mxu1 %v17482_v26 }
 0x2d1   : > { %7960 = vmatpush1.bf16.msra.mxu0 %v14081_v7  ;;  %8864 = vmatpush1.bf16.msra.mxu1 %v14083_v11  ;;  %v717_v7 = vld [vmem:[%s16288_s11 + $0x268] sm:$0xff] }
 0x2d2   : > { %7961 = vmatprep.subr.bf16.mxu0 %v14090_v15  ;;  %8865 = vmatprep.subr.bf16.mxu1 %v14092_v18  ;;  %v733_v11 = vld [vmem:[%s16288_s11 + $0x2e8] sm:$0xff]  ;;  %v14106_v15 = vcombine.high %v1944_v63, %v1948_v12  ;;  %v14108_v18 = vcombine.high %v1945_v13, %v1949_v60  ;;  %v17522_v63 = vpack.c.bf16 %v732_v43, %v716_v42  ;;  %v1972_v42 = vld [vmem:[%s16295_s2 + $0x1da0] sm:$0xff] }
 0x2d3   : > { %7888 = vmatprep.mubr.bf16.mxu0 %v17487_v28  ;;  %8792 = vmatprep.mubr.bf16.mxu1 %v17487_v28  ;;  %v17507_v26 = vpack.c.bf16 %v733_v11, %v717_v7  ;;  %v1952_v28 = vld [vmem:[%s16295_s2 + $0x1d00] sm:$0xff]  ;;  %v1961_v11 = vld [vmem:[%s16295_s2 + $0x1d48] sm:$0xff] }
 0x2d4   : > { %v1964_v7 = vld [vmem:[%s16295_s2 + $0x1d60] sm:$0xff]  ;;  %19578 = vst [vmem:[#allocation79_spill] sm:$0xff] %v17522_v63  ;;  %v1965_v12 = vld [vmem:[%s16295_s2 + $0x1d68] sm:$0xff]  ;;  %v14113_v13 = vcombine.low %v1952_v28, %v1956_v30 }
 0x2d5   : > { %7962 = vmatpush1.bf16.msra.mxu0 %v14089_v48  ;;  %8866 = vmatpush1.bf16.msra.mxu1 %v14091_v54  ;;  %19577 = vst [vmem:[#allocation78_spill] sm:$0xff] %v17507_v26  ;;  %v1957_v48 = vld [vmem:[%s16295_s2 + $0x1d28] sm:$0xff]  ;;  %v14114_v54 = vcombine.high %v1952_v28, %v1956_v30  ;;  %v748_v30 = vld [vmem:[%s16288_s11 + $0x360] sm:$0xff] }
 0x2d6   : > { %7963 = vmatprep.subr.bf16.mxu0 %v14098_v55  ;;  %8867 = vmatprep.subr.bf16.mxu1 %v14100_v56  ;;  %v14116_v55 = vcombine.high %v1953_v37, %v1957_v48  ;;  %v1960_v56 = vld [vmem:[%s16295_s2 + $0x1d40] sm:$0xff]  ;;  %v14115_v60 = vcombine.low %v1953_v37, %v1957_v48  ;;  %v1969_v43 = vld [vmem:[%s16295_s2 + $0x1d88] sm:$0xff]  ;;  %v14123_v48 = vcombine.low %v1961_v11, %v1965_v12 }
 0x2d7   : > { %v14121_v28 = vcombine.low %v1960_v56, %v1964_v7  ;;  %v764_v37 = vld [vmem:[%s16288_s11 + $0x3e0] sm:$0xff] }
 0x2d8   : > { %7889 = vmatmul.mubr.bf16.gmra.mrb[4].mxu0 %v17502_v21  ;;  %8793 = vmatmul.mubr.bf16.gmra.mrb[4].mxu1 %v17502_v21 }
 0x2d9   : > { %7964 = vmatpush1.bf16.msra.mxu0 %v14097_v62  ;;  %8868 = vmatpush1.bf16.msra.mxu1 %v14099_v2  ;;  %v749_v62 = vld [vmem:[%s16288_s11 + $0x368] sm:$0xff] }
 0x2da   : > { %7965 = vmatprep.subr.bf16.mxu0 %v14106_v15  ;;  %8869 = vmatprep.subr.bf16.mxu1 %v14108_v18  ;;  %v765_v2 = vld [vmem:[%s16288_s11 + $0x3e8] sm:$0xff]  ;;  %v14122_v15 = vcombine.high %v1960_v56, %v1964_v7  ;;  %v14124_v18 = vcombine.high %v1961_v11, %v1965_v12  ;;  %v17542_v56 = vpack.c.bf16 %v764_v37, %v748_v30  ;;  %v1988_v30 = vld [vmem:[%s16295_s2 + $0x1e20] sm:$0xff] }
 0x2db   : > { %7898 = vmatprep.mubr.bf16.mxu0 %v17507_v26  ;;  %8802 = vmatprep.mubr.bf16.mxu1 %v17507_v26  ;;  %v17527_v21 = vpack.c.bf16 %v765_v2, %v749_v62  ;;  %v1968_v26 = vld [vmem:[%s16295_s2 + $0x1d80] sm:$0xff]  ;;  %v1977_v2 = vld [vmem:[%s16295_s2 + $0x1dc8] sm:$0xff] }
 0x2dc   : > { %v1980_v62 = vld [vmem:[%s16295_s2 + $0x1de0] sm:$0xff]  ;;  %19580 = vst [vmem:[#allocation81_spill] sm:$0xff] %v17542_v56  ;;  %v1981_v7 = vld [vmem:[%s16295_s2 + $0x1de8] sm:$0xff]  ;;  %v14129_v11 = vcombine.low %v1968_v26, %v1972_v42 }
 0x2dd   : > { %7966 = vmatpush1.bf16.msra.mxu0 %v14105_v40  ;;  %8870 = vmatpush1.bf16.msra.mxu1 %v14107_v45  ;;  %19579 = vst [vmem:[#allocation80_spill] sm:$0xff] %v17527_v21  ;;  %v1973_v40 = vld [vmem:[%s16295_s2 + $0x1da8] sm:$0xff]  ;;  %v14130_v45 = vcombine.high %v1968_v26, %v1972_v42  ;;  %v780_v42 = vld [vmem:[%s16288_s11 + $0x460] sm:$0xff] }
 0x2de   : > { %7967 = vmatprep.subr.bf16.mxu0 %v14114_v54  ;;  %8871 = vmatprep.subr.bf16.mxu1 %v14116_v55  ;;  %v14132_v54 = vcombine.high %v1969_v43, %v1973_v40  ;;  %v1976_v55 = vld [vmem:[%s16295_s2 + $0x1dc0] sm:$0xff]  ;;  %v14131_v12 = vcombine.low %v1969_v43, %v1973_v40  ;;  %v1985_v37 = vld [vmem:[%s16295_s2 + $0x1e08] sm:$0xff]  ;;  %v14139_v40 = vcombine.low %v1977_v2, %v1981_v7 }
 0x2df   : > { %v14137_v26 = vcombine.low %v1976_v55, %v1980_v62  ;;  %v796_v43 = vld [vmem:[%s16288_s11 + $0x4e0] sm:$0xff] }
 0x2e0   : > { %7899 = vmatmul.mubr.bf16.gmra.mrb[8].mxu0 %v17522_v63  ;;  %8803 = vmatmul.mubr.bf16.gmra.mrb[8].mxu1 %v17522_v63 }
 0x2e1   : > { %7968 = vmatpush1.bf16.msra.mxu0 %v14113_v13  ;;  %8872 = vmatpush1.bf16.msra.mxu1 %v14115_v60  ;;  %v781_v13 = vld [vmem:[%s16288_s11 + $0x468] sm:$0xff] }
 0x2e2   : > { %7969 = vmatprep.subr.bf16.mxu0 %v14122_v15  ;;  %8873 = vmatprep.subr.bf16.mxu1 %v14124_v18  ;;  %v797_v60 = vld [vmem:[%s16288_s11 + $0x4e8] sm:$0xff]  ;;  %v14138_v15 = vcombine.high %v1976_v55, %v1980_v62  ;;  %v14140_v18 = vcombine.high %v1977_v2, %v1981_v7  ;;  %v17562_v55 = vpack.c.bf16 %v796_v43, %v780_v42  ;;  %v2004_v42 = vld [vmem:[%s16295_s2 + $0x1ea0] sm:$0xff] }
 0x2e3   : > { %7908 = vmatprep.mubr.bf16.mxu0 %v17527_v21  ;;  %8812 = vmatprep.mubr.bf16.mxu1 %v17527_v21  ;;  %v17547_v63 = vpack.c.bf16 %v797_v60, %v781_v13  ;;  %v1984_v21 = vld [vmem:[%s16295_s2 + $0x1e00] sm:$0xff]  ;;  %v1993_v60 = vld [vmem:[%s16295_s2 + $0x1e48] sm:$0xff] }
 0x2e4   : > { %v1996_v13 = vld [vmem:[%s16295_s2 + $0x1e60] sm:$0xff]  ;;  %19582 = vst [vmem:[#allocation83_spill] sm:$0xff] %v17562_v55  ;;  %v1997_v62 = vld [vmem:[%s16295_s2 + $0x1e68] sm:$0xff]  ;;  %v14145_v2 = vcombine.low %v1984_v21, %v1988_v30 }
 0x2e5   : > { %7970 = vmatpush1.bf16.msra.mxu0 %v14121_v28  ;;  %8874 = vmatpush1.bf16.msra.mxu1 %v14123_v48  ;;  %19581 = vst [vmem:[#allocation82_spill] sm:$0xff] %v17547_v63  ;;  %v1989_v28 = vld [vmem:[%s16295_s2 + $0x1e28] sm:$0xff]  ;;  %v14146_v48 = vcombine.high %v1984_v21, %v1988_v30  ;;  %v812_v30 = vld [vmem:[%s16288_s11 + $0x560] sm:$0xff] }
 0x2e6   : > { %7971 = vmatprep.subr.bf16.mxu0 %v14130_v45  ;;  %8875 = vmatprep.subr.bf16.mxu1 %v14132_v54  ;;  %v14148_v45 = vcombine.high %v1985_v37, %v1989_v28  ;;  %v1992_v54 = vld [vmem:[%s16295_s2 + $0x1e40] sm:$0xff]  ;;  %v14147_v7 = vcombine.low %v1985_v37, %v1989_v28  ;;  %v2001_v43 = vld [vmem:[%s16295_s2 + $0x1e88] sm:$0xff]  ;;  %v14155_v28 = vcombine.low %v1993_v60, %v1997_v62 }
 0x2e7   : > { %v14153_v21 = vcombine.low %v1992_v54, %v1996_v13  ;;  %v828_v37 = vld [vmem:[%s16288_s11 + $0x5e0] sm:$0xff] }
 0x2e8   : > { %7909 = vmatmul.mubr.bf16.gmra.mrb[12].mxu0 %v17542_v56  ;;  %8813 = vmatmul.mubr.bf16.gmra.mrb[12].mxu1 %v17542_v56 }
 0x2e9   : > { %7972 = vmatpush1.bf16.msra.mxu0 %v14129_v11  ;;  %8876 = vmatpush1.bf16.msra.mxu1 %v14131_v12  ;;  %v813_v11 = vld [vmem:[%s16288_s11 + $0x568] sm:$0xff] }
 0x2ea   : > { %7973 = vmatprep.subr.bf16.mxu0 %v14138_v15  ;;  %8877 = vmatprep.subr.bf16.mxu1 %v14140_v18  ;;  %v829_v12 = vld [vmem:[%s16288_s11 + $0x5e8] sm:$0xff]  ;;  %v14154_v15 = vcombine.high %v1992_v54, %v1996_v13  ;;  %v14156_v18 = vcombine.high %v1993_v60, %v1997_v62  ;;  %v17582_v54 = vpack.c.bf16 %v828_v37, %v812_v30  ;;  %v2020_v30 = vld [vmem:[%s16295_s2 + $0x1f20] sm:$0xff] }
 0x2eb   : > { %7918 = vmatprep.mubr.bf16.mxu0 %v17547_v63  ;;  %8822 = vmatprep.mubr.bf16.mxu1 %v17547_v63  ;;  %v17567_v56 = vpack.c.bf16 %v829_v12, %v813_v11  ;;  %v2000_v63 = vld [vmem:[%s16295_s2 + $0x1e80] sm:$0xff]  ;;  %v2009_v12 = vld [vmem:[%s16295_s2 + $0x1ec8] sm:$0xff] }
 0x2ec   : > { %v2012_v11 = vld [vmem:[%s16295_s2 + $0x1ee0] sm:$0xff]  ;;  %19584 = vst [vmem:[#allocation85_spill] sm:$0xff] %v17582_v54  ;;  %v2013_v13 = vld [vmem:[%s16295_s2 + $0x1ee8] sm:$0xff]  ;;  %v14161_v60 = vcombine.low %v2000_v63, %v2004_v42 }
 0x2ed   : > { %7974 = vmatpush1.bf16.msra.mxu0 %v14137_v26  ;;  %8878 = vmatpush1.bf16.msra.mxu1 %v14139_v40  ;;  %19583 = vst [vmem:[#allocation84_spill] sm:$0xff] %v17567_v56  ;;  %v2005_v26 = vld [vmem:[%s16295_s2 + $0x1ea8] sm:$0xff]  ;;  %v14162_v40 = vcombine.high %v2000_v63, %v2004_v42  ;;  %v844_v42 = vld [vmem:[%s16288_s11 + $0x660] sm:$0xff] }
 0x2ee   : > { %7975 = vmatprep.subr.bf16.mxu0 %v14146_v48  ;;  %8879 = vmatprep.subr.bf16.mxu1 %v14148_v45  ;;  %v14164_v48 = vcombine.high %v2001_v43, %v2005_v26  ;;  %v2008_v45 = vld [vmem:[%s16295_s2 + $0x1ec0] sm:$0xff]  ;;  %v14163_v62 = vcombine.low %v2001_v43, %v2005_v26  ;;  %v2017_v37 = vld [vmem:[%s16295_s2 + $0x1f08] sm:$0xff]  ;;  %v14171_v26 = vcombine.low %v2009_v12, %v2013_v13 }
 0x2ef   : > { %v14169_v63 = vcombine.low %v2008_v45, %v2012_v11  ;;  %v860_v43 = vld [vmem:[%s16288_s11 + $0x6e0] sm:$0xff] }
 0x2f0   : > { %7919 = vmatmul.mubr.bf16.gmra.mrb[16].mxu0 %v17562_v55  ;;  %8823 = vmatmul.mubr.bf16.gmra.mrb[16].mxu1 %v17562_v55 }
 0x2f1   : > { %7976 = vmatpush1.bf16.msra.mxu0 %v14145_v2  ;;  %8880 = vmatpush1.bf16.msra.mxu1 %v14147_v7  ;;  %v845_v2 = vld [vmem:[%s16288_s11 + $0x668] sm:$0xff] }
 0x2f2   : > { %7977 = vmatprep.subr.bf16.mxu0 %v14154_v15  ;;  %8881 = vmatprep.subr.bf16.mxu1 %v14156_v18  ;;  %v861_v7 = vld [vmem:[%s16288_s11 + $0x6e8] sm:$0xff]  ;;  %v14170_v15 = vcombine.high %v2008_v45, %v2012_v11  ;;  %v14172_v18 = vcombine.high %v2009_v12, %v2013_v13  ;;  %v17602_v45 = vpack.c.bf16 %v860_v43, %v844_v42  ;;  %v2036_v42 = vld [vmem:[%s16295_s2 + $0x1fa0] sm:$0xff] }
 0x2f3   : > { %7928 = vmatprep.mubr.bf16.mxu0 %v17567_v56  ;;  %8832 = vmatprep.mubr.bf16.mxu1 %v17567_v56  ;;  %v17587_v55 = vpack.c.bf16 %v861_v7, %v845_v2  ;;  %v2016_v56 = vld [vmem:[%s16295_s2 + $0x1f00] sm:$0xff]  ;;  %v2025_v7 = vld [vmem:[%s16295_s2 + $0x1f48] sm:$0xff] }
 0x2f4   : > { %v2028_v2 = vld [vmem:[%s16295_s2 + $0x1f60] sm:$0xff]  ;;  %19586 = vst [vmem:[#allocation87_spill] sm:$0xff] %v17602_v45  ;;  %v2029_v11 = vld [vmem:[%s16295_s2 + $0x1f68] sm:$0xff]  ;;  %v14177_v12 = vcombine.low %v2016_v56, %v2020_v30 }
 0x2f5   : > { %7978 = vmatpush1.bf16.msra.mxu0 %v14153_v21  ;;  %8882 = vmatpush1.bf16.msra.mxu1 %v14155_v28  ;;  %19585 = vst [vmem:[#allocation86_spill] sm:$0xff] %v17587_v55  ;;  %v2021_v21 = vld [vmem:[%s16295_s2 + $0x1f28] sm:$0xff]  ;;  %v14178_v28 = vcombine.high %v2016_v56, %v2020_v30  ;;  %v876_v30 = vld [vmem:[%s16288_s11 + $0x760] sm:$0xff] }
 0x2f6   : > { %7979 = vmatprep.subr.bf16.mxu0 %v14162_v40  ;;  %8883 = vmatprep.subr.bf16.mxu1 %v14164_v48  ;;  %v14180_v40 = vcombine.high %v2017_v37, %v2021_v21  ;;  %v2024_v48 = vld [vmem:[%s16295_s2 + $0x1f40] sm:$0xff]  ;;  %v14179_v13 = vcombine.low %v2017_v37, %v2021_v21  ;;  %v2033_v43 = vld [vmem:[%s16295_s2 + $0x1f88] sm:$0xff]  ;;  %v14187_v21 = vcombine.low %v2025_v7, %v2029_v11 }
 0x2f7   : > { %v14185_v56 = vcombine.low %v2024_v48, %v2028_v2  ;;  %v892_v37 = vld [vmem:[%s16288_s11 + $0x7e0] sm:$0xff] }
 0x2f8   : > { %7929 = vmatmul.mubr.bf16.gmra.mrb[20].mxu0 %v17582_v54  ;;  %8833 = vmatmul.mubr.bf16.gmra.mrb[20].mxu1 %v17582_v54 }
 0x2f9   : > { %7980 = vmatpush1.bf16.msra.mxu0 %v14161_v60  ;;  %8884 = vmatpush1.bf16.msra.mxu1 %v14163_v62  ;;  %v877_v60 = vld [vmem:[%s16288_s11 + $0x768] sm:$0xff] }
 0x2fa   : > { %7981 = vmatprep.subr.bf16.mxu0 %v14170_v15  ;;  %8885 = vmatprep.subr.bf16.mxu1 %v14172_v18  ;;  %v893_v62 = vld [vmem:[%s16288_s11 + $0x7e8] sm:$0xff]  ;;  %v14186_v15 = vcombine.high %v2024_v48, %v2028_v2  ;;  %v14188_v18 = vcombine.high %v2025_v7, %v2029_v11  ;;  %v17622_v48 = vpack.c.bf16 %v892_v37, %v876_v30  ;;  %v1030_v30 = vld [vmem:[%s16295_s2 + $0x30] sm:$0xff]  ;;  %v1027_v37 = vld [vmem:[%s16295_s2 + $0x18] sm:$0xff] }
 0x2fb   : > { %7938 = vmatprep.mubr.bf16.mxu0 %v17587_v55  ;;  %8842 = vmatprep.mubr.bf16.mxu1 %v17587_v55  ;;  %v17607_v54 = vpack.c.bf16 %v893_v62, %v877_v60  ;;  %v2032_v55 = vld [vmem:[%s16295_s2 + $0x1f80] sm:$0xff]  ;;  %v2041_v62 = vld [vmem:[%s16295_s2 + $0x1fc8] sm:$0xff] }
 0x2fc   : > { %v2044_v60 = vld [vmem:[%s16295_s2 + $0x1fe0] sm:$0xff]  ;;  %19588 = vst [vmem:[#allocation89_spill] sm:$0xff] %v17622_v48  ;;  %v2045_v2 = vld [vmem:[%s16295_s2 + $0x1fe8] sm:$0xff]  ;;  %v14193_v7 = vcombine.low %v2032_v55, %v2036_v42 }
 0x2fd   : > { %7982 = vmatpush1.bf16.msra.mxu0 %v14169_v63  ;;  %8886 = vmatpush1.bf16.msra.mxu1 %v14171_v26  ;;  %19587 = vst [vmem:[#allocation88_spill] sm:$0xff] %v17607_v54  ;;  %v2037_v63 = vld [vmem:[%s16295_s2 + $0x1fa8] sm:$0xff]  ;;  %v14194_v26 = vcombine.high %v2032_v55, %v2036_v42  ;;  %v654_v42 = vld [vmem:[%s16288_s11 + $0x70] sm:$0xff] }
 0x2fe   : > { %7983 = vmatprep.subr.bf16.mxu0 %v14178_v28  ;;  %8887 = vmatprep.subr.bf16.mxu1 %v14180_v40  ;;  %v14196_v28 = vcombine.high %v2033_v43, %v2037_v63  ;;  %v2040_v40 = vld [vmem:[%s16295_s2 + $0x1fc0] sm:$0xff]  ;;  %v14195_v11 = vcombine.low %v2033_v43, %v2037_v63  ;;  %v670_v43 = vld [vmem:[%s16288_s11 + $0xf0] sm:$0xff]  ;;  %v14203_v63 = vcombine.low %v2041_v62, %v2045_v2 }
 0x2ff   : > { %v14201_v55 = vcombine.low %v2040_v40, %v2044_v60 }
 0x300   : > { %7939 = vmatmul.mubr.bf16.gmra.mrb[24].mxu0 %v17602_v45  ;;  %8843 = vmatmul.mubr.bf16.gmra.mrb[24].mxu1 %v17602_v45 }
 0x301   : > { %7984 = vmatpush1.bf16.msra.mxu0 %v14177_v12  ;;  %8888 = vmatpush1.bf16.msra.mxu1 %v14179_v13  ;;  %v655_v12 = vld [vmem:[%s16288_s11 + $0x78] sm:$0xff] }
 0x302   : > { %7985 = vmatprep.subr.bf16.mxu0 %v14186_v15  ;;  %8889 = vmatprep.subr.bf16.mxu1 %v14188_v18  ;;  %v671_v13 = vld [vmem:[%s16288_s11 + $0xf8] sm:$0xff]  ;;  %v14202_v15 = vcombine.high %v2040_v40, %v2044_v60  ;;  %v14204_v18 = vcombine.high %v2041_v62, %v2045_v2  ;;  %v17642_v40 = vpack.c.bf16 %v670_v43, %v654_v42  ;;  %v1046_v42 = vld [vmem:[%s16295_s2 + $0xb0] sm:$0xff] }
 0x303   : > { %7948 = vmatprep.mubr.bf16.mxu0 %v17607_v54  ;;  %8852 = vmatprep.mubr.bf16.mxu1 %v17607_v54  ;;  %v17627_v45 = vpack.c.bf16 %v671_v13, %v655_v12  ;;  %v1026_v54 = vld [vmem:[%s16295_s2 + $0x10] sm:$0xff]  ;;  %v1035_v13 = vld [vmem:[%s16295_s2 + $0x58] sm:$0xff] }
 0x304   : > { %v1038_v12 = vld [vmem:[%s16295_s2 + $0x70] sm:$0xff]  ;;  %19590 = vst [vmem:[#allocation91_spill] sm:$0xff] %v17642_v40  ;;  %v1039_v60 = vld [vmem:[%s16295_s2 + $0x78] sm:$0xff]  ;;  %v13189_v62 = vcombine.low %v1026_v54, %v1030_v30 }
 0x305   : > { %7986 = vmatpush1.bf16.msra.mxu0 %v14185_v56  ;;  %8890 = vmatpush1.bf16.msra.mxu1 %v14187_v21  ;;  %19589 = vst [vmem:[#allocation90_spill] sm:$0xff] %v17627_v45  ;;  %v1031_v56 = vld [vmem:[%s16295_s2 + $0x38] sm:$0xff]  ;;  %v13190_v21 = vcombine.high %v1026_v54, %v1030_v30  ;;  %v686_v30 = vld [vmem:[%s16288_s11 + $0x170] sm:$0xff] }
 0x306   : > { %7987 = vmatprep.subr.bf16.mxu0 %v14194_v26  ;;  %8891 = vmatprep.subr.bf16.mxu1 %v14196_v28  ;;  %v13192_v26 = vcombine.high %v1027_v37, %v1031_v56  ;;  %v1034_v28 = vld [vmem:[%s16295_s2 + $0x50] sm:$0xff]  ;;  %v13191_v2 = vcombine.low %v1027_v37, %v1031_v56  ;;  %v1043_v43 = vld [vmem:[%s16295_s2 + $0x98] sm:$0xff]  ;;  %v13199_v56 = vcombine.low %v1035_v13, %v1039_v60 }
 0x307   : > { %v13197_v54 = vcombine.low %v1034_v28, %v1038_v12  ;;  %v702_v37 = vld [vmem:[%s16288_s11 + $0x1f0] sm:$0xff] }
 0x308   : > { %7949 = vmatmul.mubr.bf16.gmra.mrb[28].mxu0 %v17622_v48  ;;  %8853 = vmatmul.mubr.bf16.gmra.mrb[28].mxu1 %v17622_v48 }
 0x309   : > { %7988 = vmatpush1.bf16.msra.mxu0 %v14193_v7  ;;  %8892 = vmatpush1.bf16.msra.mxu1 %v14195_v11  ;;  %v687_v7 = vld [vmem:[%s16288_s11 + $0x178] sm:$0xff] }
 0x30a   : > { %7989 = vmatprep.subr.bf16.mxu0 %v14202_v15  ;;  %8893 = vmatprep.subr.bf16.mxu1 %v14204_v18  ;;  %v703_v11 = vld [vmem:[%s16288_s11 + $0x1f8] sm:$0xff]  ;;  %v13198_v15 = vcombine.high %v1034_v28, %v1038_v12  ;;  %v13200_v18 = vcombine.high %v1035_v13, %v1039_v60  ;;  %v17662_v28 = vpack.c.bf16 %v702_v37, %v686_v30  ;;  %v1062_v30 = vld [vmem:[%s16295_s2 + $0x130] sm:$0xff] }
 0x30b   : > { %7991 = vmatprep.mubr.bf16.mxu0 %v17627_v45  ;;  %8895 = vmatprep.mubr.bf16.mxu1 %v17627_v45  ;;  %v17647_v48 = vpack.c.bf16 %v703_v11, %v687_v7  ;;  %v1042_v45 = vld [vmem:[%s16295_s2 + $0x90] sm:$0xff]  ;;  %v1051_v11 = vld [vmem:[%s16295_s2 + $0xd8] sm:$0xff] }
 0x30c   : > { %v1054_v7 = vld [vmem:[%s16295_s2 + $0xf0] sm:$0xff]  ;;  %19592 = vst [vmem:[#allocation93_spill] sm:$0xff] %v17662_v28  ;;  %v1055_v12 = vld [vmem:[%s16295_s2 + $0xf8] sm:$0xff]  ;;  %v13205_v13 = vcombine.low %v1042_v45, %v1046_v42 }
 0x30d   : > { %7990 = vmatpush1.bf16.msra.mxu0 %v14201_v55  ;;  %8894 = vmatpush1.bf16.msra.mxu1 %v14203_v63  ;;  %19591 = vst [vmem:[#allocation92_spill] sm:$0xff] %v17647_v48  ;;  %v1047_v55 = vld [vmem:[%s16295_s2 + $0xb8] sm:$0xff]  ;;  %v13206_v63 = vcombine.high %v1042_v45, %v1046_v42  ;;  %v718_v42 = vld [vmem:[%s16288_s11 + $0x270] sm:$0xff] }
 0x30e   : > { %8976 = vmatprep.subr.bf16.mxu0 %v13190_v21  ;;  %9880 = vmatprep.subr.bf16.mxu1 %v13192_v26  ;;  %v13208_v21 = vcombine.high %v1043_v43, %v1047_v55  ;;  %v1050_v26 = vld [vmem:[%s16295_s2 + $0xd0] sm:$0xff]  ;;  %v13207_v60 = vcombine.low %v1043_v43, %v1047_v55  ;;  %v1059_v37 = vld [vmem:[%s16295_s2 + $0x118] sm:$0xff]  ;;  %v13215_v55 = vcombine.low %v1051_v11, %v1055_v12 }
 0x30f   : > { %v13213_v45 = vcombine.low %v1050_v26, %v1054_v7  ;;  %v734_v43 = vld [vmem:[%s16288_s11 + $0x2f0] sm:$0xff] }
 0x310   : > { %7992 = vmatmul.mubr.bf16.vlgmr.msra.gmra.mrb[0].mxu0 %v17642_v40  ;;  %8896 = vmatmul.mubr.bf16.vlgmr.msra.gmra.mrb[0].mxu1 %v17642_v40 }
 0x311   : > { %8977 = vmatpush1.bf16.msra.mxu0 %v13189_v62  ;;  %9881 = vmatpush1.bf16.msra.mxu1 %v13191_v2  ;;  %v719_v62 = vld [vmem:[%s16288_s11 + $0x278] sm:$0xff] }
 0x312   : > { %8978 = vmatprep.subr.bf16.mxu0 %v13198_v15  ;;  %9882 = vmatprep.subr.bf16.mxu1 %v13200_v18  ;;  %v735_v2 = vld [vmem:[%s16288_s11 + $0x2f8] sm:$0xff]  ;;  %v13214_v15 = vcombine.high %v1050_v26, %v1054_v7  ;;  %v13216_v18 = vcombine.high %v1051_v11, %v1055_v12  ;;  %v17682_v26 = vpack.c.bf16 %v734_v43, %v718_v42  ;;  %v1078_v42 = vld [vmem:[%s16295_s2 + $0x1b0] sm:$0xff] }
 0x313   : > { %8001 = vmatprep.mubr.bf16.mxu0 %v17647_v48  ;;  %8905 = vmatprep.mubr.bf16.mxu1 %v17647_v48  ;;  %v17667_v40 = vpack.c.bf16 %v735_v2, %v719_v62  ;;  %v1058_v48 = vld [vmem:[%s16295_s2 + $0x110] sm:$0xff]  ;;  %v1067_v2 = vld [vmem:[%s16295_s2 + $0x158] sm:$0xff] }
 0x314   : > { %v1070_v62 = vld [vmem:[%s16295_s2 + $0x170] sm:$0xff]  ;;  %19594 = vst [vmem:[#allocation95_spill] sm:$0xff] %v17682_v26  ;;  %v1071_v7 = vld [vmem:[%s16295_s2 + $0x178] sm:$0xff]  ;;  %v13221_v11 = vcombine.low %v1058_v48, %v1062_v30 }
 0x315   : > { %8979 = vmatpush1.bf16.msra.mxu0 %v13197_v54  ;;  %9883 = vmatpush1.bf16.msra.mxu1 %v13199_v56  ;;  %19593 = vst [vmem:[#allocation94_spill] sm:$0xff] %v17667_v40  ;;  %v1063_v54 = vld [vmem:[%s16295_s2 + $0x138] sm:$0xff]  ;;  %v13222_v56 = vcombine.high %v1058_v48, %v1062_v30  ;;  %v750_v30 = vld [vmem:[%s16288_s11 + $0x370] sm:$0xff] }
 0x316   : > { %8980 = vmatprep.subr.bf16.mxu0 %v13206_v63  ;;  %9884 = vmatprep.subr.bf16.mxu1 %v13208_v21  ;;  %v13224_v63 = vcombine.high %v1059_v37, %v1063_v54  ;;  %v1066_v21 = vld [vmem:[%s16295_s2 + $0x150] sm:$0xff]  ;;  %v13223_v12 = vcombine.low %v1059_v37, %v1063_v54  ;;  %v1075_v43 = vld [vmem:[%s16295_s2 + $0x198] sm:$0xff]  ;;  %v13231_v54 = vcombine.low %v1067_v2, %v1071_v7 }
 0x317   : > { %v13229_v48 = vcombine.low %v1066_v21, %v1070_v62  ;;  %v766_v37 = vld [vmem:[%s16288_s11 + $0x3f0] sm:$0xff] }
 0x318   : > { %8002 = vmatmul.mubr.bf16.gmra.mrb[4].mxu0 %v17662_v28  ;;  %8906 = vmatmul.mubr.bf16.gmra.mrb[4].mxu1 %v17662_v28 }
 0x319   : > { %8981 = vmatpush1.bf16.msra.mxu0 %v13205_v13  ;;  %9885 = vmatpush1.bf16.msra.mxu1 %v13207_v60  ;;  %v751_v13 = vld [vmem:[%s16288_s11 + $0x378] sm:$0xff] }
 0x31a   : > { %8982 = vmatprep.subr.bf16.mxu0 %v13214_v15  ;;  %9886 = vmatprep.subr.bf16.mxu1 %v13216_v18  ;;  %v767_v60 = vld [vmem:[%s16288_s11 + $0x3f8] sm:$0xff]  ;;  %v13230_v15 = vcombine.high %v1066_v21, %v1070_v62  ;;  %v13232_v18 = vcombine.high %v1067_v2, %v1071_v7  ;;  %v17702_v21 = vpack.c.bf16 %v766_v37, %v750_v30  ;;  %v1094_v30 = vld [vmem:[%s16295_s2 + $0x230] sm:$0xff] }
 0x31b   : > { %8011 = vmatprep.mubr.bf16.mxu0 %v17667_v40  ;;  %8915 = vmatprep.mubr.bf16.mxu1 %v17667_v40  ;;  %v17687_v28 = vpack.c.bf16 %v767_v60, %v751_v13  ;;  %v1074_v40 = vld [vmem:[%s16295_s2 + $0x190] sm:$0xff]  ;;  %v1083_v60 = vld [vmem:[%s16295_s2 + $0x1d8] sm:$0xff] }
 0x31c   : > { %v1086_v13 = vld [vmem:[%s16295_s2 + $0x1f0] sm:$0xff]  ;;  %19596 = vst [vmem:[#allocation97_spill] sm:$0xff] %v17702_v21  ;;  %v1087_v62 = vld [vmem:[%s16295_s2 + $0x1f8] sm:$0xff]  ;;  %v13237_v2 = vcombine.low %v1074_v40, %v1078_v42 }
 0x31d   : > { %8983 = vmatpush1.bf16.msra.mxu0 %v13213_v45  ;;  %9887 = vmatpush1.bf16.msra.mxu1 %v13215_v55  ;;  %19595 = vst [vmem:[#allocation96_spill] sm:$0xff] %v17687_v28  ;;  %v1079_v45 = vld [vmem:[%s16295_s2 + $0x1b8] sm:$0xff]  ;;  %v13238_v55 = vcombine.high %v1074_v40, %v1078_v42  ;;  %v782_v42 = vld [vmem:[%s16288_s11 + $0x470] sm:$0xff] }
 0x31e   : > { %8984 = vmatprep.subr.bf16.mxu0 %v13222_v56  ;;  %9888 = vmatprep.subr.bf16.mxu1 %v13224_v63  ;;  %v13240_v56 = vcombine.high %v1075_v43, %v1079_v45  ;;  %v1082_v63 = vld [vmem:[%s16295_s2 + $0x1d0] sm:$0xff]  ;;  %v13239_v7 = vcombine.low %v1075_v43, %v1079_v45  ;;  %v1091_v37 = vld [vmem:[%s16295_s2 + $0x218] sm:$0xff]  ;;  %v13247_v45 = vcombine.low %v1083_v60, %v1087_v62 }
 0x31f   : > { %v13245_v40 = vcombine.low %v1082_v63, %v1086_v13  ;;  %v798_v43 = vld [vmem:[%s16288_s11 + $0x4f0] sm:$0xff] }
 0x320   : > { %8012 = vmatmul.mubr.bf16.gmra.mrb[8].mxu0 %v17682_v26  ;;  %8916 = vmatmul.mubr.bf16.gmra.mrb[8].mxu1 %v17682_v26 }
 0x321   : > { %8985 = vmatpush1.bf16.msra.mxu0 %v13221_v11  ;;  %9889 = vmatpush1.bf16.msra.mxu1 %v13223_v12  ;;  %v783_v11 = vld [vmem:[%s16288_s11 + $0x478] sm:$0xff] }
 0x322   : > { %8986 = vmatprep.subr.bf16.mxu0 %v13230_v15  ;;  %9890 = vmatprep.subr.bf16.mxu1 %v13232_v18  ;;  %v799_v12 = vld [vmem:[%s16288_s11 + $0x4f8] sm:$0xff]  ;;  %v13246_v15 = vcombine.high %v1082_v63, %v1086_v13  ;;  %v13248_v18 = vcombine.high %v1083_v60, %v1087_v62  ;;  %v17722_v63 = vpack.c.bf16 %v798_v43, %v782_v42  ;;  %v1110_v42 = vld [vmem:[%s16295_s2 + $0x2b0] sm:$0xff] }
 0x323   : > { %8021 = vmatprep.mubr.bf16.mxu0 %v17687_v28  ;;  %8925 = vmatprep.mubr.bf16.mxu1 %v17687_v28  ;;  %v17707_v26 = vpack.c.bf16 %v799_v12, %v783_v11  ;;  %v1090_v28 = vld [vmem:[%s16295_s2 + $0x210] sm:$0xff]  ;;  %v1099_v12 = vld [vmem:[%s16295_s2 + $0x258] sm:$0xff] }
 0x324   : > { %v1102_v11 = vld [vmem:[%s16295_s2 + $0x270] sm:$0xff]  ;;  %19598 = vst [vmem:[#allocation99_spill] sm:$0xff] %v17722_v63  ;;  %v1103_v13 = vld [vmem:[%s16295_s2 + $0x278] sm:$0xff]  ;;  %v13253_v60 = vcombine.low %v1090_v28, %v1094_v30 }
 0x325   : > { %8987 = vmatpush1.bf16.msra.mxu0 %v13229_v48  ;;  %9891 = vmatpush1.bf16.msra.mxu1 %v13231_v54  ;;  %19597 = vst [vmem:[#allocation98_spill] sm:$0xff] %v17707_v26  ;;  %v1095_v48 = vld [vmem:[%s16295_s2 + $0x238] sm:$0xff]  ;;  %v13254_v54 = vcombine.high %v1090_v28, %v1094_v30  ;;  %v814_v30 = vld [vmem:[%s16288_s11 + $0x570] sm:$0xff] }
 0x326   : > { %8988 = vmatprep.subr.bf16.mxu0 %v13238_v55  ;;  %9892 = vmatprep.subr.bf16.mxu1 %v13240_v56  ;;  %v13256_v55 = vcombine.high %v1091_v37, %v1095_v48  ;;  %v1098_v56 = vld [vmem:[%s16295_s2 + $0x250] sm:$0xff]  ;;  %v13255_v62 = vcombine.low %v1091_v37, %v1095_v48  ;;  %v1107_v43 = vld [vmem:[%s16295_s2 + $0x298] sm:$0xff]  ;;  %v13263_v48 = vcombine.low %v1099_v12, %v1103_v13 }
 0x327   : > { %v13261_v28 = vcombine.low %v1098_v56, %v1102_v11  ;;  %v830_v37 = vld [vmem:[%s16288_s11 + $0x5f0] sm:$0xff] }
 0x328   : > { %8022 = vmatmul.mubr.bf16.gmra.mrb[12].mxu0 %v17702_v21  ;;  %8926 = vmatmul.mubr.bf16.gmra.mrb[12].mxu1 %v17702_v21 }
 0x329   : > { %8989 = vmatpush1.bf16.msra.mxu0 %v13237_v2  ;;  %9893 = vmatpush1.bf16.msra.mxu1 %v13239_v7  ;;  %v815_v2 = vld [vmem:[%s16288_s11 + $0x578] sm:$0xff] }
 0x32a   : > { %8990 = vmatprep.subr.bf16.mxu0 %v13246_v15  ;;  %9894 = vmatprep.subr.bf16.mxu1 %v13248_v18  ;;  %v831_v7 = vld [vmem:[%s16288_s11 + $0x5f8] sm:$0xff]  ;;  %v13262_v15 = vcombine.high %v1098_v56, %v1102_v11  ;;  %v13264_v18 = vcombine.high %v1099_v12, %v1103_v13  ;;  %v17742_v56 = vpack.c.bf16 %v830_v37, %v814_v30  ;;  %v1126_v30 = vld [vmem:[%s16295_s2 + $0x330] sm:$0xff] }
 0x32b   : > { %8031 = vmatprep.mubr.bf16.mxu0 %v17707_v26  ;;  %8935 = vmatprep.mubr.bf16.mxu1 %v17707_v26  ;;  %v17727_v21 = vpack.c.bf16 %v831_v7, %v815_v2  ;;  %v1106_v26 = vld [vmem:[%s16295_s2 + $0x290] sm:$0xff]  ;;  %v1115_v7 = vld [vmem:[%s16295_s2 + $0x2d8] sm:$0xff] }
 0x32c   : > { %v1118_v2 = vld [vmem:[%s16295_s2 + $0x2f0] sm:$0xff]  ;;  %19600 = vst [vmem:[#allocation101_spill] sm:$0xff] %v17742_v56  ;;  %v1119_v11 = vld [vmem:[%s16295_s2 + $0x2f8] sm:$0xff]  ;;  %v13269_v12 = vcombine.low %v1106_v26, %v1110_v42 }
 0x32d   : > { %8991 = vmatpush1.bf16.msra.mxu0 %v13245_v40  ;;  %9895 = vmatpush1.bf16.msra.mxu1 %v13247_v45  ;;  %19599 = vst [vmem:[#allocation100_spill] sm:$0xff] %v17727_v21  ;;  %v1111_v40 = vld [vmem:[%s16295_s2 + $0x2b8] sm:$0xff]  ;;  %v13270_v45 = vcombine.high %v1106_v26, %v1110_v42  ;;  %v846_v42 = vld [vmem:[%s16288_s11 + $0x670] sm:$0xff] }
 0x32e   : > { %8992 = vmatprep.subr.bf16.mxu0 %v13254_v54  ;;  %9896 = vmatprep.subr.bf16.mxu1 %v13256_v55  ;;  %v13272_v54 = vcombine.high %v1107_v43, %v1111_v40  ;;  %v1114_v55 = vld [vmem:[%s16295_s2 + $0x2d0] sm:$0xff]  ;;  %v13271_v13 = vcombine.low %v1107_v43, %v1111_v40  ;;  %v1123_v37 = vld [vmem:[%s16295_s2 + $0x318] sm:$0xff]  ;;  %v13279_v40 = vcombine.low %v1115_v7, %v1119_v11 }
 0x32f   : > { %v13277_v26 = vcombine.low %v1114_v55, %v1118_v2  ;;  %v862_v43 = vld [vmem:[%s16288_s11 + $0x6f0] sm:$0xff] }
 0x330   : > { %8032 = vmatmul.mubr.bf16.gmra.mrb[16].mxu0 %v17722_v63  ;;  %8936 = vmatmul.mubr.bf16.gmra.mrb[16].mxu1 %v17722_v63 }
 0x331   : > { %8993 = vmatpush1.bf16.msra.mxu0 %v13253_v60  ;;  %9897 = vmatpush1.bf16.msra.mxu1 %v13255_v62  ;;  %v847_v60 = vld [vmem:[%s16288_s11 + $0x678] sm:$0xff] }
 0x332   : > { %8994 = vmatprep.subr.bf16.mxu0 %v13262_v15  ;;  %9898 = vmatprep.subr.bf16.mxu1 %v13264_v18  ;;  %v863_v62 = vld [vmem:[%s16288_s11 + $0x6f8] sm:$0xff]  ;;  %v13278_v15 = vcombine.high %v1114_v55, %v1118_v2  ;;  %v13280_v18 = vcombine.high %v1115_v7, %v1119_v11  ;;  %v17762_v55 = vpack.c.bf16 %v862_v43, %v846_v42  ;;  %v1142_v42 = vld [vmem:[%s16295_s2 + $0x3b0] sm:$0xff] }
 0x333   : > { %8041 = vmatprep.mubr.bf16.mxu0 %v17727_v21  ;;  %8945 = vmatprep.mubr.bf16.mxu1 %v17727_v21  ;;  %v17747_v63 = vpack.c.bf16 %v863_v62, %v847_v60  ;;  %v1122_v21 = vld [vmem:[%s16295_s2 + $0x310] sm:$0xff]  ;;  %v1131_v62 = vld [vmem:[%s16295_s2 + $0x358] sm:$0xff] }
 0x334   : > { %v1134_v60 = vld [vmem:[%s16295_s2 + $0x370] sm:$0xff]  ;;  %v1135_v2 = vld [vmem:[%s16295_s2 + $0x378] sm:$0xff]  ;;  %v13285_v7 = vcombine.low %v1122_v21, %v1126_v30 }
 0x335   : > { %8995 = vmatpush1.bf16.msra.mxu0 %v13261_v28  ;;  %9899 = vmatpush1.bf16.msra.mxu1 %v13263_v48  ;;  %19601 = vst [vmem:[#allocation102_spill] sm:$0xff] %v17747_v63  ;;  %v1127_v28 = vld [vmem:[%s16295_s2 + $0x338] sm:$0xff]  ;;  %v13286_v48 = vcombine.high %v1122_v21, %v1126_v30  ;;  %v878_v30 = vld [vmem:[%s16288_s11 + $0x770] sm:$0xff] }
 0x336   : > { %8996 = vmatprep.subr.bf16.mxu0 %v13270_v45  ;;  %9900 = vmatprep.subr.bf16.mxu1 %v13272_v54  ;;  %v13288_v45 = vcombine.high %v1123_v37, %v1127_v28  ;;  %v1130_v54 = vld [vmem:[%s16295_s2 + $0x350] sm:$0xff]  ;;  %v13287_v11 = vcombine.low %v1123_v37, %v1127_v28  ;;  %v1139_v43 = vld [vmem:[%s16295_s2 + $0x398] sm:$0xff]  ;;  %v13295_v28 = vcombine.low %v1131_v62, %v1135_v2 }
 0x337   : > { %v13293_v21 = vcombine.low %v1130_v54, %v1134_v60  ;;  %v894_v37 = vld [vmem:[%s16288_s11 + $0x7f0] sm:$0xff] }
 0x338   : > { %8042 = vmatmul.mubr.bf16.gmra.mrb[20].mxu0 %v17742_v56  ;;  %8946 = vmatmul.mubr.bf16.gmra.mrb[20].mxu1 %v17742_v56 }
 0x339   : > { %8997 = vmatpush1.bf16.msra.mxu0 %v13269_v12  ;;  %9901 = vmatpush1.bf16.msra.mxu1 %v13271_v13  ;;  %v879_v12 = vld [vmem:[%s16288_s11 + $0x778] sm:$0xff] }
 0x33a   : > { %8998 = vmatprep.subr.bf16.mxu0 %v13278_v15  ;;  %9902 = vmatprep.subr.bf16.mxu1 %v13280_v18  ;;  %v895_v13 = vld [vmem:[%s16288_s11 + $0x7f8] sm:$0xff]  ;;  %v13294_v15 = vcombine.high %v1130_v54, %v1134_v60  ;;  %v13296_v18 = vcombine.high %v1131_v62, %v1135_v2  ;;  %v13303_v62 = vcombine.low %v1139_v43, %v1143_v27 }
 0x33b   : > { %8051 = vmatprep.mubr.bf16.mxu0 %v17747_v63  ;;  %8955 = vmatprep.mubr.bf16.mxu1 %v17747_v63  ;;  %v17767_v56 = vpack.c.bf16 %v895_v13, %v879_v12  ;;  %v1138_v63 = vld [vmem:[%s16295_s2 + $0x390] sm:$0xff]  ;;  %v17781_v12 = vpack.c.bf16 %v894_v37, %v878_v30  ;;  %v1147_v54 = vld [vmem:[%s16295_s2 + $0x3d8] sm:$0xff] }
 0x33c   : > { %v1151_v60 = vld [vmem:[%s16295_s2 + $0x3f8] sm:$0xff]  ;;  %v13301_v13 = vcombine.low %v1138_v63, %v1142_v42  ;;  %v1166_v37 = vld [vmem:[%s16295_s2 + $0x470] sm:$0xff] }
 0x33d   : > { %8999 = vmatpush1.bf16.msra.mxu0 %v13277_v26  ;;  %9903 = vmatpush1.bf16.msra.mxu1 %v13279_v40  ;;  %v13302_v26 = vcombine.high %v1138_v63, %v1142_v42  ;;  %v13304_v40 = vcombine.high %v1139_v43, %v1143_v27  ;;  %v1159_v30 = vld [vmem:[%s16295_s2 + $0x438] sm:$0xff]  ;;  %v13311_v27 = vcombine.low %v1147_v54, %v1151_v60 }
 0x33e   : > { %9000 = vmatprep.subr.bf16.mxu0 %v13286_v48  ;;  %9904 = vmatprep.subr.bf16.mxu1 %v13288_v45  ;;  %v1146_v48 = vld [vmem:[%s16295_s2 + $0x3d0] sm:$0xff] }
 0x33f   : > { %v1150_v45 = vld [vmem:[%s16295_s2 + $0x3f0] sm:$0xff] }
 0x340   : > { %8052 = vmatmul.mubr.bf16.gmra.mrb[24].mxu0 %v17762_v55  ;;  %8956 = vmatmul.mubr.bf16.gmra.mrb[24].mxu1 %v17762_v55  ;;  %v13310_v2 = vcombine.high %v1146_v48, %v1150_v45  ;;  %v13309_v63 = vcombine.low %v1146_v48, %v1150_v45 }
 0x341   : > { %9001 = vmatpush1.bf16.msra.mxu0 %v13285_v7  ;;  %9905 = vmatpush1.bf16.msra.mxu1 %v13287_v11  ;;  %v13312_v7 = vcombine.high %v1147_v54, %v1151_v60  ;;  %v1154_v11 = vld [vmem:[%s16295_s2 + $0x410] sm:$0xff] }
 0x342   : > { %9002 = vmatprep.subr.bf16.mxu0 %v13294_v15  ;;  %9906 = vmatprep.subr.bf16.mxu1 %v13296_v18  ;;  %v1158_v15 = vld [vmem:[%s16295_s2 + $0x430] sm:$0xff]  ;;  %v1155_v18 = vld [vmem:[%s16295_s2 + $0x418] sm:$0xff] }
 0x343   : > { %8061 = vmatprep.mubr.bf16.mxu0 %v17767_v56  ;;  %8965 = vmatprep.mubr.bf16.mxu1 %v17767_v56  ;;  %v13318_v42 = vcombine.high %v1154_v11, %v1158_v15  ;;  %v13320_v43 = vcombine.high %v1155_v18, %v1159_v30  ;;  %v13319_v48 = vcombine.low %v1155_v18, %v1159_v30  ;;  %v1170_v60 = vld [vmem:[%s16295_s2 + $0x490] sm:$0xff] }
 0x344   : > { %v1178_v18 = vld [vmem:[%s16295_s2 + $0x4d0] sm:$0xff] }
 0x345   : > { %9003 = vmatpush1.bf16.msra.mxu0 %v13293_v21  ;;  %9907 = vmatpush1.bf16.msra.mxu1 %v13295_v28  ;;  %v1162_v21 = vld [vmem:[%s16295_s2 + $0x450] sm:$0xff]  ;;  %v1163_v28 = vld [vmem:[%s16295_s2 + $0x458] sm:$0xff] }
 0x346   : > { %9004 = vmatprep.subr.bf16.mxu0 %v13302_v26  ;;  %9908 = vmatprep.subr.bf16.mxu1 %v13304_v40  ;;  %v1167_v26 = vld [vmem:[%s16295_s2 + $0x478] sm:$0xff]  ;;  %v13317_v40 = vcombine.low %v1154_v11, %v1158_v15  ;;  %v13326_v45 = vcombine.high %v1162_v21, %v1166_v37  ;;  %v1182_v30 = vld [vmem:[%s16295_s2 + $0x4f0] sm:$0xff] }
 0x347   : > { %v13328_v54 = vcombine.high %v1163_v28, %v1167_v26 }
 0x348   : > { %8062 = vmatmul.mubr.bf16.gmra.mrb[28].mxu0 %v17781_v12  ;;  %8966 = vmatmul.mubr.bf16.gmra.mrb[28].mxu1 %v17781_v12 }
 0x349   : > { %9005 = vmatpush1.bf16.msra.mxu0 %v13301_v13  ;;  %9909 = vmatpush1.bf16.msra.mxu1 %v13303_v62  ;;  %v1174_v13 = vld [vmem:[%s16295_s2 + $0x4b0] sm:$0xff]  ;;  %v1171_v62 = vld [vmem:[%s16295_s2 + $0x498] sm:$0xff] }
 0x34a   : > { %9006 = vmatprep.subr.bf16.mxu0 %v13310_v2  ;;  %9910 = vmatprep.subr.bf16.mxu1 %v13312_v7  ;;  %v13325_v2 = vcombine.low %v1162_v21, %v1166_v37  ;;  %v13327_v7 = vcombine.low %v1163_v28, %v1167_v26  ;;  %v13334_v11 = vcombine.high %v1170_v60, %v1174_v13  ;;  %v1186_v37 = vld [vmem:[%s16295_s2 + $0x510] sm:$0xff]  ;;  %v1187_v26 = vld [vmem:[%s16295_s2 + $0x518] sm:$0xff] }
 0x34b   : > { %9008 = vmatprep.mubr.bf16.mxu0 %v16475_v59  ;;  %9912 = vmatprep.mubr.bf16.mxu1 %v16475_v59  ;;  %v1175_v59 = vld [vmem:[%s16295_s2 + $0x4b8] sm:$0xff]  ;;  %v1190_v28 = vld [vmem:[%s16295_s2 + $0x530] sm:$0xff] }
 0x34c   : > { %v13336_v15 = vcombine.high %v1171_v62, %v1175_v59 }
 0x34d   : > { %9007 = vmatpush1.bf16.msra.mxu0 %v13309_v63  ;;  %9911 = vmatpush1.bf16.msra.mxu1 %v13311_v27  ;;  %v1179_v63 = vld [vmem:[%s16295_s2 + $0x4d8] sm:$0xff]  ;;  %v13333_v27 = vcombine.low %v1170_v60, %v1174_v13  ;;  %v1194_v60 = vld [vmem:[%s16295_s2 + $0x550] sm:$0xff] }
 0x34e   : > { %9089 = vmatprep.subr.bf16.mxu0 %v13318_v42  ;;  %9993 = vmatprep.subr.bf16.mxu1 %v13320_v43  ;;  %v13335_v42 = vcombine.low %v1171_v62, %v1175_v59  ;;  %v13342_v43 = vcombine.high %v1178_v18, %v1182_v30  ;;  %v1198_v13 = vld [vmem:[%s16295_s2 + $0x570] sm:$0xff]  ;;  %v1195_v62 = vld [vmem:[%s16295_s2 + $0x558] sm:$0xff]  ;;  %v13349_v59 = vcombine.low %v1186_v37, %v1190_v28 }
 0x350   : > { %9009 = vmatmul.mubr.bf16.vlgmr.msra.gmra.mrb[32].mxu0 %v16522_v16  ;;  %9913 = vmatmul.mubr.bf16.vlgmr.msra.gmra.mrb[32].mxu1 %v16522_v16  ;;  %v1183_v16 = vld [vmem:[%s16295_s2 + $0x4f8] sm:$0xff] }
 0x351   : > { %9090 = vmatpush1.bf16.msra.mxu0 %v13317_v40  ;;  %9994 = vmatpush1.bf16.msra.mxu1 %v13319_v48  ;;  %v13344_v21 = vcombine.high %v1179_v63, %v1183_v16  ;;  %v13341_v40 = vcombine.low %v1178_v18, %v1182_v30  ;;  %v13343_v48 = vcombine.low %v1179_v63, %v1183_v16  ;;  %v1206_v18 = vld [vmem:[%s16295_s2 + $0x5b0] sm:$0xff]  ;;  %v1203_v30 = vld [vmem:[%s16295_s2 + $0x598] sm:$0xff] }
 0x352   : > { %9091 = vmatprep.subr.bf16.mxu0 %v13326_v45  ;;  %9995 = vmatprep.subr.bf16.mxu1 %v13328_v54  ;;  %v13350_v45 = vcombine.high %v1186_v37, %v1190_v28  ;;  %v13357_v63 = vcombine.low %v1194_v60, %v1198_v13  ;;  %v1211_v37 = vld [vmem:[%s16295_s2 + $0x5d8] sm:$0xff] }
 0x353   : > { %9018 = vmatprep.mubr.bf16.mxu0 %v16527_v24  ;;  %9922 = vmatprep.mubr.bf16.mxu1 %v16527_v24  ;;  %v1191_v24 = vld [vmem:[%s16295_s2 + $0x538] sm:$0xff] }
 0x354   : > { %v13352_v54 = vcombine.high %v1187_v26, %v1191_v24 }
 0x355   : > { %9092 = vmatpush1.bf16.msra.mxu0 %v13325_v2  ;;  %9996 = vmatpush1.bf16.msra.mxu1 %v13327_v7  ;;  %v13351_v2 = vcombine.low %v1187_v26, %v1191_v24  ;;  %v13358_v7 = vcombine.high %v1194_v60, %v1198_v13 }
 0x356   : > { %9093 = vmatprep.subr.bf16.mxu0 %v13334_v11  ;;  %9997 = vmatprep.subr.bf16.mxu1 %v13336_v15  ;;  %v1202_v15 = vld [vmem:[%s16295_s2 + $0x590] sm:$0xff] }
 0x357   : > { %v13365_v28 = vcombine.low %v1202_v15, %v1206_v18 }
 0x358   : > { %9019 = vmatmul.mubr.bf16.gmra.mrb[36].mxu0 %v16542_v38  ;;  %9923 = vmatmul.mubr.bf16.gmra.mrb[36].mxu1 %v16542_v38  ;;  %v1199_v38 = vld [vmem:[%s16295_s2 + $0x578] sm:$0xff] }
 0x359   : > { %9094 = vmatpush1.bf16.msra.mxu0 %v13333_v27  ;;  %9998 = vmatpush1.bf16.msra.mxu1 %v13335_v42  ;;  %v13360_v11 = vcombine.high %v1195_v62, %v1199_v38  ;;  %v13359_v16 = vcombine.low %v1195_v62, %v1199_v38  ;;  %v13366_v27 = vcombine.high %v1202_v15, %v1206_v18 }
 0x35a   : > { %9095 = vmatprep.subr.bf16.mxu0 %v13342_v43  ;;  %9999 = vmatprep.subr.bf16.mxu1 %v13344_v21  ;;  %v1210_v43 = vld [vmem:[%s16295_s2 + $0x5d0] sm:$0xff] }
 0x35b   : > { %9028 = vmatprep.mubr.bf16.mxu0 %v16547_v46  ;;  %9932 = vmatprep.mubr.bf16.mxu1 %v16547_v46  ;;  %v1207_v46 = vld [vmem:[%s16295_s2 + $0x5b8] sm:$0xff]  ;;  %v1214_v21 = vld [vmem:[%s16295_s2 + $0x5f0] sm:$0xff] }
 0x35c   : > { %v13368_v42 = vcombine.high %v1203_v30, %v1207_v46  ;;  %v13367_v26 = vcombine.low %v1203_v30, %v1207_v46  ;;  %v13374_v24 = vcombine.high %v1210_v43, %v1214_v21  ;;  %v13373_v60 = vcombine.low %v1210_v43, %v1214_v21  ;;  %v1234_v46 = vld [vmem:[%s16295_s2 + $0x690] sm:$0xff] }
 0x35d   : > { %9096 = vmatpush1.bf16.msra.mxu0 %v13341_v40  ;;  %10000 = vmatpush1.bf16.msra.mxu1 %v13343_v48  ;;  %v1218_v48 = vld [vmem:[%s16295_s2 + $0x610] sm:$0xff] }
 0x35e   : > { %9097 = vmatprep.subr.bf16.mxu0 %v13350_v45  ;;  %10001 = vmatprep.subr.bf16.mxu1 %v13352_v54  ;;  %v1222_v45 = vld [vmem:[%s16295_s2 + $0x630] sm:$0xff]  ;;  %v1219_v54 = vld [vmem:[%s16295_s2 + $0x618] sm:$0xff] }
 0x35f   : > { %v13382_v62 = vcombine.high %v1218_v48, %v1222_v45 }
 0x360   : > { %9029 = vmatmul.mubr.bf16.gmra.mrb[40].mxu0 %v16562_v61  ;;  %9933 = vmatmul.mubr.bf16.gmra.mrb[40].mxu1 %v16562_v61  ;;  %v1215_v61 = vld [vmem:[%s16295_s2 + $0x5f8] sm:$0xff] }
 0x361   : > { %9098 = vmatpush1.bf16.msra.mxu0 %v13349_v59  ;;  %10002 = vmatpush1.bf16.msra.mxu1 %v13351_v2  ;;  %v13376_v40 = vcombine.high %v1211_v37, %v1215_v61  ;;  %v13375_v13 = vcombine.low %v1211_v37, %v1215_v61  ;;  %v1226_v59 = vld [vmem:[%s16295_s2 + $0x650] sm:$0xff] }
 0x362   : > { %9099 = vmatprep.subr.bf16.mxu0 %v13358_v7  ;;  %10003 = vmatprep.subr.bf16.mxu1 %v13360_v11  ;;  %v1230_v2 = vld [vmem:[%s16295_s2 + $0x670] sm:$0xff]  ;;  %v1227_v7 = vld [vmem:[%s16295_s2 + $0x658] sm:$0xff]  ;;  %v13381_v11 = vcombine.low %v1218_v48, %v1222_v45 }
 0x363   : > { %9038 = vmatprep.mubr.bf16.mxu0 %v16567_v5  ;;  %9942 = vmatprep.mubr.bf16.mxu1 %v16567_v5  ;;  %v1223_v5 = vld [vmem:[%s16295_s2 + $0x638] sm:$0xff]  ;;  %v13390_v18 = vcombine.high %v1226_v59, %v1230_v2  ;;  %v1242_v37 = vld [vmem:[%s16295_s2 + $0x6d0] sm:$0xff] }
 0x364   : > { %v13384_v38 = vcombine.high %v1219_v54, %v1223_v5  ;;  %v13383_v15 = vcombine.low %v1219_v54, %v1223_v5  ;;  %v1246_v61 = vld [vmem:[%s16295_s2 + $0x6f0] sm:$0xff]  ;;  %v1251_v5 = vld [vmem:[%s16295_s2 + $0x718] sm:$0xff] }
 0x365   : > { %9100 = vmatpush1.bf16.msra.mxu0 %v13357_v63  ;;  %10004 = vmatpush1.bf16.msra.mxu1 %v13359_v16  ;;  %v1238_v63 = vld [vmem:[%s16295_s2 + $0x6b0] sm:$0xff]  ;;  %v1235_v16 = vld [vmem:[%s16295_s2 + $0x698] sm:$0xff] }
 0x366   : > { %9101 = vmatprep.subr.bf16.mxu0 %v13366_v27  ;;  %10005 = vmatprep.subr.bf16.mxu1 %v13368_v42  ;;  %v13389_v27 = vcombine.low %v1226_v59, %v1230_v2  ;;  %v13398_v43 = vcombine.high %v1234_v46, %v1238_v63  ;;  %v1250_v45 = vld [vmem:[%s16295_s2 + $0x710] sm:$0xff] }
 0x367   : > { %v1254_v54 = vld [vmem:[%s16295_s2 + $0x730] sm:$0xff] }
 0x368   : > { %9039 = vmatmul.mubr.bf16.gmra.mrb[44].mxu0 %v16582_v20  ;;  %9943 = vmatmul.mubr.bf16.gmra.mrb[44].mxu1 %v16582_v20  ;;  %v1231_v20 = vld [vmem:[%s16295_s2 + $0x678] sm:$0xff]  ;;  %v1258_v59 = vld [vmem:[%s16295_s2 + $0x750] sm:$0xff] }
 0x369   : > { %9102 = vmatpush1.bf16.msra.mxu0 %v13365_v28  ;;  %10006 = vmatpush1.bf16.msra.mxu1 %v13367_v26  ;;  %v13392_v30 = vcombine.high %v1227_v7, %v1231_v20  ;;  %v13391_v42 = vcombine.low %v1227_v7, %v1231_v20  ;;  %v1243_v28 = vld [vmem:[%s16295_s2 + $0x6d8] sm:$0xff]  ;;  %v13397_v26 = vcombine.low %v1234_v46, %v1238_v63  ;;  %v1262_v2 = vld [vmem:[%s16295_s2 + $0x770] sm:$0xff] }
 0x36a   : > { %9103 = vmatprep.subr.bf16.mxu0 %v13374_v24  ;;  %10007 = vmatprep.subr.bf16.mxu1 %v13376_v40  ;;  %v13406_v40 = vcombine.high %v1242_v37, %v1246_v61  ;;  %v1259_v7 = vld [vmem:[%s16295_s2 + $0x758] sm:$0xff]  ;;  %v13413_v20 = vcombine.low %v1250_v45, %v1254_v54  ;;  %v1270_v46 = vld [vmem:[%s16295_s2 + $0x7b0] sm:$0xff] }
 0x36b   : > { %9048 = vmatprep.mubr.bf16.mxu0 %v16587_v29  ;;  %9952 = vmatprep.mubr.bf16.mxu1 %v16587_v29  ;;  %v1239_v29 = vld [vmem:[%s16295_s2 + $0x6b8] sm:$0xff] }
 0x36c   : > { %v13400_v21 = vcombine.high %v1235_v16, %v1239_v29  ;;  %v13399_v24 = vcombine.low %v1235_v16, %v1239_v29  ;;  %v1267_v63 = vld [vmem:[%s16295_s2 + $0x798] sm:$0xff]  ;;  %v13421_v16 = vcombine.low %v1258_v59, %v1262_v2 }
 0x36d   : > { %9104 = vmatpush1.bf16.msra.mxu0 %v13373_v60  ;;  %10008 = vmatpush1.bf16.msra.mxu1 %v13375_v13  ;;  %v13405_v60 = vcombine.low %v1242_v37, %v1246_v61  ;;  %v1275_v37 = vld [vmem:[%s16295_s2 + $0x7d8] sm:$0xff] }
 0x36e   : > { %9105 = vmatprep.subr.bf16.mxu0 %v13382_v62  ;;  %10009 = vmatprep.subr.bf16.mxu1 %v13384_v38  ;;  %v13414_v62 = vcombine.high %v1250_v45, %v1254_v54 }
 0x370   : > { %9049 = vmatmul.mubr.bf16.gmra.mrb[48].mxu0 %v16602_v44  ;;  %9953 = vmatmul.mubr.bf16.gmra.mrb[48].mxu1 %v16602_v44  ;;  %v1247_v44 = vld [vmem:[%s16295_s2 + $0x6f8] sm:$0xff] }
 0x371   : > { %9106 = vmatpush1.bf16.msra.mxu0 %v13381_v11  ;;  %10010 = vmatpush1.bf16.msra.mxu1 %v13383_v15  ;;  %v13408_v48 = vcombine.high %v1243_v28, %v1247_v44  ;;  %v13407_v13 = vcombine.low %v1243_v28, %v1247_v44  ;;  %v13422_v15 = vcombine.high %v1258_v59, %v1262_v2 }
 0x372   : > { %9107 = vmatprep.subr.bf16.mxu0 %v13390_v18  ;;  %10011 = vmatprep.subr.bf16.mxu1 %v13392_v30  ;;  %v1266_v30 = vld [vmem:[%s16295_s2 + $0x790] sm:$0xff] }
 0x373   : > { %9058 = vmatprep.mubr.bf16.mxu0 %v16607_v53  ;;  %9962 = vmatprep.mubr.bf16.mxu1 %v16607_v53  ;;  %v1255_v53 = vld [vmem:[%s16295_s2 + $0x738] sm:$0xff]  ;;  %v13429_v61 = vcombine.low %v1266_v30, %v1270_v46 }
 0x374   : > { %v13416_v38 = vcombine.high %v1251_v5, %v1255_v53  ;;  %v13415_v11 = vcombine.low %v1251_v5, %v1255_v53 }
 0x375   : > { %9108 = vmatpush1.bf16.msra.mxu0 %v13389_v27  ;;  %10012 = vmatpush1.bf16.msra.mxu1 %v13391_v42  ;;  %v13430_v27 = vcombine.high %v1266_v30, %v1270_v46 }
 0x376   : > { %9109 = vmatprep.subr.bf16.mxu0 %v13398_v43  ;;  %10013 = vmatprep.subr.bf16.mxu1 %v13400_v21  ;;  %v1274_v43 = vld [vmem:[%s16295_s2 + $0x7d0] sm:$0xff] }
 0x377   : > { %v1278_v21 = vld [vmem:[%s16295_s2 + $0x7f0] sm:$0xff] }
 0x378   : > { %9059 = vmatmul.mubr.bf16.gmra.mrb[52].mxu0 %v16622_v6  ;;  %9963 = vmatmul.mubr.bf16.gmra.mrb[52].mxu1 %v16622_v6  ;;  %v1263_v6 = vld [vmem:[%s16295_s2 + $0x778] sm:$0xff]  ;;  %v13438_v44 = vcombine.high %v1274_v43, %v1278_v21  ;;  %v13437_v45 = vcombine.low %v1274_v43, %v1278_v21  ;;  %v1314_v21 = vld [vmem:[%s16295_s2 + $0x910] sm:$0xff] }
 0x379   : > { %9110 = vmatpush1.bf16.msra.mxu0 %v13397_v26  ;;  %10014 = vmatpush1.bf16.msra.mxu1 %v13399_v24  ;;  %v13424_v18 = vcombine.high %v1259_v7, %v1263_v6  ;;  %v13423_v29 = vcombine.low %v1259_v7, %v1263_v6  ;;  %v1282_v24 = vld [vmem:[%s16295_s2 + $0x810] sm:$0xff] }
 0x37a   : > { %9111 = vmatprep.subr.bf16.mxu0 %v13406_v40  ;;  %10015 = vmatprep.subr.bf16.mxu1 %v13408_v48  ;;  %v1286_v40 = vld [vmem:[%s16295_s2 + $0x830] sm:$0xff]  ;;  %v1283_v48 = vld [vmem:[%s16295_s2 + $0x818] sm:$0xff] }
 0x37b   : > { %9068 = vmatprep.mubr.bf16.mxu0 %v16627_v14  ;;  %9972 = vmatprep.mubr.bf16.mxu1 %v16627_v14  ;;  %v1271_v14 = vld [vmem:[%s16295_s2 + $0x7b8] sm:$0xff]  ;;  %v13446_v5 = vcombine.high %v1282_v24, %v1286_v40  ;;  %v1298_v6 = vld [vmem:[%s16295_s2 + $0x890] sm:$0xff] }
 0x37c   : > { %v13432_v42 = vcombine.high %v1267_v63, %v1271_v14  ;;  %v13431_v28 = vcombine.low %v1267_v63, %v1271_v14  ;;  %v1306_v63 = vld [vmem:[%s16295_s2 + $0x8d0] sm:$0xff] }
 0x37d   : > { %9112 = vmatpush1.bf16.msra.mxu0 %v13405_v60  ;;  %10016 = vmatpush1.bf16.msra.mxu1 %v13407_v13  ;;  %v1290_v60 = vld [vmem:[%s16295_s2 + $0x850] sm:$0xff] }
 0x37e   : > { %9113 = vmatprep.subr.bf16.mxu0 %v13414_v62  ;;  %10017 = vmatprep.subr.bf16.mxu1 %v13416_v38  ;;  %v1294_v13 = vld [vmem:[%s16295_s2 + $0x870] sm:$0xff]  ;;  %v1291_v62 = vld [vmem:[%s16295_s2 + $0x858] sm:$0xff]  ;;  %v13445_v38 = vcombine.low %v1282_v24, %v1286_v40 }
 0x37f   : > { %v13454_v2 = vcombine.high %v1290_v60, %v1294_v13  ;;  %v1310_v14 = vld [vmem:[%s16295_s2 + $0x8f0] sm:$0xff] }
 0x380   : > { %9069 = vmatmul.mubr.bf16.gmra.mrb[56].mxu0 %v16642_v32  ;;  %9973 = vmatmul.mubr.bf16.gmra.mrb[56].mxu1 %v16642_v32  ;;  %v1279_v32 = vld [vmem:[%s16295_s2 + $0x7f8] sm:$0xff]  ;;  %v1322_v24 = vld [vmem:[%s16295_s2 + $0x950] sm:$0xff] }
 0x381   : > { %9114 = vmatpush1.bf16.msra.mxu0 %v13413_v20  ;;  %10018 = vmatpush1.bf16.msra.mxu1 %v13415_v11  ;;  %v13440_v26 = vcombine.high %v1275_v37, %v1279_v32  ;;  %v13439_v54 = vcombine.low %v1275_v37, %v1279_v32  ;;  %v1302_v20 = vld [vmem:[%s16295_s2 + $0x8b0] sm:$0xff]  ;;  %v1299_v11 = vld [vmem:[%s16295_s2 + $0x898] sm:$0xff] }
 0x382   : > { %9115 = vmatprep.subr.bf16.mxu0 %v13422_v15  ;;  %10019 = vmatprep.subr.bf16.mxu1 %v13424_v18  ;;  %v13453_v15 = vcombine.low %v1290_v60, %v1294_v13  ;;  %v13462_v30 = vcombine.high %v1298_v6, %v1302_v20  ;;  %v1318_v37 = vld [vmem:[%s16295_s2 + $0x930] sm:$0xff]  ;;  %v1315_v32 = vld [vmem:[%s16295_s2 + $0x918] sm:$0xff] }
 0x383   : > { %9078 = vmatprep.mubr.bf16.mxu0 %v16647_v41  ;;  %9982 = vmatprep.mubr.bf16.mxu1 %v16647_v41  ;;  %v1287_v41 = vld [vmem:[%s16295_s2 + $0x838] sm:$0xff]  ;;  %v1326_v40 = vld [vmem:[%s16295_s2 + $0x970] sm:$0xff] }
 0x384   : > { %v13448_v53 = vcombine.high %v1283_v48, %v1287_v41  ;;  %v13447_v59 = vcombine.low %v1283_v48, %v1287_v41  ;;  %v1323_v48 = vld [vmem:[%s16295_s2 + $0x958] sm:$0xff]  ;;  %v13477_v41 = vcombine.low %v1314_v21, %v1318_v37  ;;  %v1334_v60 = vld [vmem:[%s16295_s2 + $0x9b0] sm:$0xff] }
 0x385   : > { %9116 = vmatpush1.bf16.msra.mxu0 %v13421_v16  ;;  %10020 = vmatpush1.bf16.msra.mxu1 %v13423_v29  ;;  %v1307_v16 = vld [vmem:[%s16295_s2 + $0x8d8] sm:$0xff]  ;;  %v13461_v29 = vcombine.low %v1298_v6, %v1302_v20 }
 0x386   : > { %9117 = vmatprep.subr.bf16.mxu0 %v13430_v27  ;;  %10021 = vmatprep.subr.bf16.mxu1 %v13432_v42  ;;  %v13470_v42 = vcombine.high %v1306_v63, %v1310_v14  ;;  %v1331_v13 = vld [vmem:[%s16295_s2 + $0x998] sm:$0xff] }
 0x387   : > { %v1339_v6 = vld [vmem:[%s16295_s2 + $0x9d8] sm:$0xff] }
 0x388   : > { %9079 = vmatmul.mubr.bf16.gmra.mrb[60].mxu0 %v16662_v58  ;;  %9983 = vmatmul.mubr.bf16.gmra.mrb[60].mxu1 %v16662_v58  ;;  %v1295_v58 = vld [vmem:[%s16295_s2 + $0x878] sm:$0xff] }
 0x389   : > { %9118 = vmatpush1.bf16.msra.mxu0 %v13429_v61  ;;  %10022 = vmatpush1.bf16.msra.mxu1 %v13431_v28  ;;  %v13456_v7 = vcombine.high %v1291_v62, %v1295_v58  ;;  %v13455_v18 = vcombine.low %v1291_v62, %v1295_v58  ;;  %v13469_v61 = vcombine.low %v1306_v63, %v1310_v14 }
 0x38a   : > { %9119 = vmatprep.subr.bf16.mxu0 %v13438_v44  ;;  %10023 = vmatprep.subr.bf16.mxu1 %v13440_v26  ;;  %v13478_v44 = vcombine.high %v1314_v21, %v1318_v37  ;;  %v13485_v62 = vcombine.low %v1322_v24, %v1326_v40 }
 0x38b   : > { %9121 = vmatprep.mubr.bf16.mxu0 %v16667_v4  ;;  %10025 = vmatprep.mubr.bf16.mxu1 %v16667_v4  ;;  %v1303_v4 = vld [vmem:[%s16295_s2 + $0x8b8] sm:$0xff] }
 0x38c   : > { %v13464_v46 = vcombine.high %v1299_v11, %v1303_v4  ;;  %v13463_v27 = vcombine.low %v1299_v11, %v1303_v4 }
 0x38d   : > { %9120 = vmatpush1.bf16.msra.mxu0 %v13437_v45  ;;  %10024 = vmatpush1.bf16.msra.mxu1 %v13439_v54  ;;  %v13486_v54 = vcombine.high %v1322_v24, %v1326_v40 }
 0x38e   : > { %9202 = vmatprep.subr.bf16.mxu0 %v13446_v5  ;;  %10106 = vmatprep.subr.bf16.mxu1 %v13448_v53  ;;  %v1330_v53 = vld [vmem:[%s16295_s2 + $0x990] sm:$0xff] }
 0x38f   : > { %v13493_v20 = vcombine.low %v1330_v53, %v1334_v60 }
 0x390   : > { %9122 = vmatmul.mubr.bf16.vlgmr.msra.gmra.mrb[32].mxu0 %v16682_v23  ;;  %10026 = vmatmul.mubr.bf16.vlgmr.msra.gmra.mrb[32].mxu1 %v16682_v23  ;;  %v1311_v23 = vld [vmem:[%s16295_s2 + $0x8f8] sm:$0xff] }
 0x391   : > { %9203 = vmatpush1.bf16.msra.mxu0 %v13445_v38  ;;  %10107 = vmatpush1.bf16.msra.mxu1 %v13447_v59  ;;  %v13472_v43 = vcombine.high %v1307_v16, %v1311_v23  ;;  %v13471_v28 = vcombine.low %v1307_v16, %v1311_v23  ;;  %v13494_v38 = vcombine.high %v1330_v53, %v1334_v60  ;;  %v1378_v60 = vld [vmem:[%s16295_s2 + $0xb10] sm:$0xff] }
 0x392   : > { %9204 = vmatprep.subr.bf16.mxu0 %v13454_v2  ;;  %10108 = vmatprep.subr.bf16.mxu1 %v13456_v7  ;;  %v1338_v2 = vld [vmem:[%s16295_s2 + $0x9d0] sm:$0xff] }
 0x393   : > { %9131 = vmatprep.mubr.bf16.mxu0 %v16687_v34  ;;  %10035 = vmatprep.mubr.bf16.mxu1 %v16687_v34  ;;  %v1319_v34 = vld [vmem:[%s16295_s2 + $0x938] sm:$0xff]  ;;  %v1342_v7 = vld [vmem:[%s16295_s2 + $0x9f0] sm:$0xff] }
 0x394   : > { %v13480_v26 = vcombine.high %v1315_v32, %v1319_v34  ;;  %v13479_v45 = vcombine.low %v1315_v32, %v1319_v34  ;;  %v13502_v4 = vcombine.high %v1338_v2, %v1342_v7  ;;  %v13501_v63 = vcombine.low %v1338_v2, %v1342_v7  ;;  %v1362_v34 = vld [vmem:[%s16295_s2 + $0xa90] sm:$0xff] }
 0x395   : > { %9205 = vmatpush1.bf16.msra.mxu0 %v13453_v15  ;;  %10109 = vmatpush1.bf16.msra.mxu1 %v13455_v18  ;;  %v1346_v18 = vld [vmem:[%s16295_s2 + $0xa10] sm:$0xff] }
 0x396   : > { %9206 = vmatprep.subr.bf16.mxu0 %v13462_v30  ;;  %10110 = vmatprep.subr.bf16.mxu1 %v13464_v46  ;;  %v1350_v30 = vld [vmem:[%s16295_s2 + $0xa30] sm:$0xff]  ;;  %v1347_v46 = vld [vmem:[%s16295_s2 + $0xa18] sm:$0xff] }
 0x397   : > { %v13510_v16 = vcombine.high %v1346_v18, %v1350_v30  ;;  %v1386_v2 = vld [vmem:[%s16295_s2 + $0xb50] sm:$0xff] }
 0x398   : > { %9132 = vmatmul.mubr.bf16.gmra.mrb[36].mxu0 %v16702_v52  ;;  %10036 = vmatmul.mubr.bf16.gmra.mrb[36].mxu1 %v16702_v52  ;;  %v1327_v52 = vld [vmem:[%s16295_s2 + $0x978] sm:$0xff]  ;;  %v1390_v7 = vld [vmem:[%s16295_s2 + $0xb70] sm:$0xff] }
 0x399   : > { %9207 = vmatpush1.bf16.msra.mxu0 %v13461_v29  ;;  %10111 = vmatpush1.bf16.msra.mxu1 %v13463_v27  ;;  %v13488_v5 = vcombine.high %v1323_v48, %v1327_v52  ;;  %v13487_v58 = vcombine.low %v1323_v48, %v1327_v52  ;;  %v1354_v29 = vld [vmem:[%s16295_s2 + $0xa50] sm:$0xff] }
 0x39a   : > { %9208 = vmatprep.subr.bf16.mxu0 %v13470_v42  ;;  %10112 = vmatprep.subr.bf16.mxu1 %v13472_v43  ;;  %v1358_v27 = vld [vmem:[%s16295_s2 + $0xa70] sm:$0xff]  ;;  %v1355_v42 = vld [vmem:[%s16295_s2 + $0xa58] sm:$0xff]  ;;  %v13509_v43 = vcombine.low %v1346_v18, %v1350_v30 }
 0x39b   : > { %9141 = vmatprep.mubr.bf16.mxu0 %v16707_v0  ;;  %10045 = vmatprep.mubr.bf16.mxu1 %v16707_v0  ;;  %v1335_v0 = vld [vmem:[%s16295_s2 + $0x9b8] sm:$0xff]  ;;  %v13518_v37 = vcombine.high %v1354_v29, %v1358_v27  ;;  %v1370_v48 = vld [vmem:[%s16295_s2 + $0xad0] sm:$0xff] }
 0x39c   : > { %v13496_v59 = vcombine.high %v1331_v13, %v1335_v0  ;;  %v13495_v11 = vcombine.low %v1331_v13, %v1335_v0  ;;  %v1374_v52 = vld [vmem:[%s16295_s2 + $0xaf0] sm:$0xff]  ;;  %v1379_v0 = vld [vmem:[%s16295_s2 + $0xb18] sm:$0xff] }
 0x39d   : > { %9209 = vmatpush1.bf16.msra.mxu0 %v13469_v61  ;;  %10113 = vmatpush1.bf16.msra.mxu1 %v13471_v28  ;;  %v1366_v61 = vld [vmem:[%s16295_s2 + $0xab0] sm:$0xff]  ;;  %v1363_v28 = vld [vmem:[%s16295_s2 + $0xa98] sm:$0xff] }
 0x39e   : > { %9210 = vmatprep.subr.bf16.mxu0 %v13478_v44  ;;  %10114 = vmatprep.subr.bf16.mxu1 %v13480_v26  ;;  %v13517_v44 = vcombine.low %v1354_v29, %v1358_v27  ;;  %v13526_v24 = vcombine.high %v1362_v34, %v1366_v61  ;;  %v1382_v13 = vld [vmem:[%s16295_s2 + $0xb30] sm:$0xff]  ;;  %v1395_v30 = vld [vmem:[%s16295_s2 + $0xb98] sm:$0xff] }
 0x39f   : > { %v1398_v18 = vld [vmem:[%s16295_s2 + $0xbb0] sm:$0xff]  ;;  %v1403_v29 = vld [vmem:[%s16295_s2 + $0xbd8] sm:$0xff] }
 0x3a0   : > { %9142 = vmatmul.mubr.bf16.gmra.mrb[40].mxu0 %v16722_v19  ;;  %10046 = vmatmul.mubr.bf16.gmra.mrb[40].mxu1 %v16722_v19  ;;  %v1343_v19 = vld [vmem:[%s16295_s2 + $0x9f8] sm:$0xff] }
 0x3a1   : > { %9211 = vmatpush1.bf16.msra.mxu0 %v13477_v41  ;;  %10115 = vmatpush1.bf16.msra.mxu1 %v13479_v45  ;;  %v13504_v15 = vcombine.high %v1339_v6, %v1343_v19  ;;  %v13503_v14 = vcombine.low %v1339_v6, %v1343_v19  ;;  %v1371_v41 = vld [vmem:[%s16295_s2 + $0xad8] sm:$0xff]  ;;  %v13525_v45 = vcombine.low %v1362_v34, %v1366_v61 }
 0x3a2   : > { %9212 = vmatprep.subr.bf16.mxu0 %v13486_v54  ;;  %10116 = vmatprep.subr.bf16.mxu1 %v13488_v5  ;;  %v13534_v5 = vcombine.high %v1370_v48, %v1374_v52  ;;  %v1387_v6 = vld [vmem:[%s16295_s2 + $0xb58] sm:$0xff]  ;;  %v13541_v19 = vcombine.low %v1378_v60, %v1382_v13 }
 0x3a3   : > { %9151 = vmatprep.mubr.bf16.mxu0 %v16727_v31  ;;  %10055 = vmatprep.mubr.bf16.mxu1 %v16727_v31  ;;  %v1351_v31 = vld [vmem:[%s16295_s2 + $0xa38] sm:$0xff] }
 0x3a4   : > { %v13512_v23 = vcombine.high %v1347_v46, %v1351_v31  ;;  %v13511_v21 = vcombine.low %v1347_v46, %v1351_v31  ;;  %v13549_v46 = vcombine.low %v1386_v2, %v1390_v7 }
 0x3a5   : > { %9213 = vmatpush1.bf16.msra.mxu0 %v13485_v62  ;;  %10117 = vmatpush1.bf16.msra.mxu1 %v13487_v58  ;;  %v13533_v62 = vcombine.low %v1370_v48, %v1374_v52 }
 0x3a6   : > { %9214 = vmatprep.subr.bf16.mxu0 %v13494_v38  ;;  %10118 = vmatprep.subr.bf16.mxu1 %v13496_v59  ;;  %v13542_v38 = vcombine.high %v1378_v60, %v1382_v13 }
 0x3a8   : > { %9152 = vmatmul.mubr.bf16.gmra.mrb[44].mxu0 %v16742_v51  ;;  %10056 = vmatmul.mubr.bf16.gmra.mrb[44].mxu1 %v16742_v51  ;;  %v1359_v51 = vld [vmem:[%s16295_s2 + $0xa78] sm:$0xff] }
 0x3a9   : > { %9215 = vmatpush1.bf16.msra.mxu0 %v13493_v20  ;;  %10119 = vmatpush1.bf16.msra.mxu1 %v13495_v11  ;;  %v13520_v32 = vcombine.high %v1355_v42, %v1359_v51  ;;  %v13519_v26 = vcombine.low %v1355_v42, %v1359_v51  ;;  %v13550_v11 = vcombine.high %v1386_v2, %v1390_v7  ;;  %v1442_v7 = vld [vmem:[%s16295_s2 + $0xd10] sm:$0xff] }
 0x3aa   : > { %9216 = vmatprep.subr.bf16.mxu0 %v13502_v4  ;;  %10120 = vmatprep.subr.bf16.mxu1 %v13504_v15  ;;  %v1394_v15 = vld [vmem:[%s16295_s2 + $0xb90] sm:$0xff] }
 0x3ab   : > { %9161 = vmatprep.mubr.bf16.mxu0 %v16747_v1  ;;  %10065 = vmatprep.mubr.bf16.mxu1 %v16747_v1  ;;  %v1367_v1 = vld [vmem:[%s16295_s2 + $0xab8] sm:$0xff]  ;;  %v13557_v27 = vcombine.low %v1394_v15, %v1398_v18 }
 0x3ac   : > { %v13528_v40 = vcombine.high %v1363_v28, %v1367_v1  ;;  %v13527_v54 = vcombine.low %v1363_v28, %v1367_v1 }
 0x3ad   : > { %9217 = vmatpush1.bf16.msra.mxu0 %v13501_v63  ;;  %10121 = vmatpush1.bf16.msra.mxu1 %v13503_v14  ;;  %v13558_v63 = vcombine.high %v1394_v15, %v1398_v18  ;;  %v1450_v15 = vld [vmem:[%s16295_s2 + $0xd50] sm:$0xff] }
 0x3ae   : > { %9218 = vmatprep.subr.bf16.mxu0 %v13510_v16  ;;  %10122 = vmatprep.subr.bf16.mxu1 %v13512_v23  ;;  %v1402_v16 = vld [vmem:[%s16295_s2 + $0xbd0] sm:$0xff] }
 0x3af   : > { %v1406_v23 = vld [vmem:[%s16295_s2 + $0xbf0] sm:$0xff] }
 0x3b0   : > { %9162 = vmatmul.mubr.bf16.gmra.mrb[48].mxu0 %v16762_v22  ;;  %10066 = vmatmul.mubr.bf16.gmra.mrb[48].mxu1 %v16762_v22  ;;  %v1375_v22 = vld [vmem:[%s16295_s2 + $0xaf8] sm:$0xff]  ;;  %v13566_v51 = vcombine.high %v1402_v16, %v1406_v23  ;;  %v13565_v34 = vcombine.low %v1402_v16, %v1406_v23  ;;  %v1454_v18 = vld [vmem:[%s16295_s2 + $0xd70] sm:$0xff] }
 0x3b1   : > { %9219 = vmatpush1.bf16.msra.mxu0 %v13509_v43  ;;  %10123 = vmatpush1.bf16.msra.mxu1 %v13511_v21  ;;  %v13536_v53 = vcombine.high %v1371_v41, %v1375_v22  ;;  %v13535_v58 = vcombine.low %v1371_v41, %v1375_v22  ;;  %v1410_v21 = vld [vmem:[%s16295_s2 + $0xc10] sm:$0xff]  ;;  %v18021_v23 = vld [vmem:[%s16295_s2 + $0xd98] sm:$0xff] }
 0x3b2   : > { %9220 = vmatprep.subr.bf16.mxu0 %v13518_v37  ;;  %10124 = vmatprep.subr.bf16.mxu1 %v13520_v32  ;;  %v1414_v37 = vld [vmem:[%s16295_s2 + $0xc30] sm:$0xff]  ;;  %v1411_v32 = vld [vmem:[%s16295_s2 + $0xc18] sm:$0xff] }
 0x3b3   : > { %9171 = vmatprep.mubr.bf16.mxu0 %v16767_v36  ;;  %10075 = vmatprep.mubr.bf16.mxu1 %v16767_v36  ;;  %v1383_v36 = vld [vmem:[%s16295_s2 + $0xb38] sm:$0xff]  ;;  %v13574_v28 = vcombine.high %v1410_v21, %v1414_v37  ;;  %v1426_v22 = vld [vmem:[%s16295_s2 + $0xc90] sm:$0xff] }
 0x3b4   : > { %v13544_v59 = vcombine.high %v1379_v0, %v1383_v36  ;;  %v13543_v20 = vcombine.low %v1379_v0, %v1383_v36  ;;  %v1434_v0 = vld [vmem:[%s16295_s2 + $0xcd0] sm:$0xff] }
 0x3b5   : > { %9221 = vmatpush1.bf16.msra.mxu0 %v13517_v44  ;;  %10125 = vmatpush1.bf16.msra.mxu1 %v13519_v26  ;;  %v1418_v44 = vld [vmem:[%s16295_s2 + $0xc50] sm:$0xff] }
 0x3b6   : > { %9222 = vmatprep.subr.bf16.mxu0 %v13526_v24  ;;  %10126 = vmatprep.subr.bf16.mxu1 %v13528_v40  ;;  %v1422_v26 = vld [vmem:[%s16295_s2 + $0xc70] sm:$0xff]  ;;  %v1419_v24 = vld [vmem:[%s16295_s2 + $0xc58] sm:$0xff]  ;;  %v13573_v40 = vcombine.low %v1410_v21, %v1414_v37  ;;  %v520_v21 = vld [vmem:[#allocation2 + $0x40] sm:$0xff] }
 0x3b7   : > { %v13582_v52 = vcombine.high %v1418_v44, %v1422_v26  ;;  %v1438_v36 = vld [vmem:[%s16295_s2 + $0xcf0] sm:$0xff] }
 0x3b8   : > { %9172 = vmatmul.mubr.bf16.gmra.mrb[52].mxu0 %v16782_v57  ;;  %10076 = vmatmul.mubr.bf16.gmra.mrb[52].mxu1 %v16782_v57  ;;  %v1391_v57 = vld [vmem:[%s16295_s2 + $0xb78] sm:$0xff]  ;;  %v18017_v16 = vld [vmem:[%s16295_s2 + $0xdb0] sm:$0xff] }
 0x3b9   : > { %9223 = vmatpush1.bf16.msra.mxu0 %v13525_v45  ;;  %10127 = vmatpush1.bf16.msra.mxu1 %v13527_v54  ;;  %v13552_v4 = vcombine.high %v1387_v6, %v1391_v57  ;;  %v13551_v31 = vcombine.low %v1387_v6, %v1391_v57  ;;  %v1430_v45 = vld [vmem:[%s16295_s2 + $0xcb0] sm:$0xff]  ;;  %v1427_v54 = vld [vmem:[%s16295_s2 + $0xc98] sm:$0xff] }
 0x3ba   : > { %9224 = vmatprep.subr.bf16.mxu0 %v13534_v5  ;;  %10128 = vmatprep.subr.bf16.mxu1 %v13536_v53  ;;  %v13581_v5 = vcombine.low %v1418_v44, %v1422_v26  ;;  %v13590_v60 = vcombine.high %v1426_v22, %v1430_v45  ;;  %v1446_v6 = vld [vmem:[%s16295_s2 + $0xd30] sm:$0xff]  ;;  %v1443_v57 = vld [vmem:[%s16295_s2 + $0xd18] sm:$0xff]  ;;  %v521_v26 = vld [vmem:[#allocation2 + $0x48] sm:$0xff] }
 0x3bb   : > { %9181 = vmatprep.mubr.bf16.mxu0 %v16787_v9  ;;  %10085 = vmatprep.mubr.bf16.mxu1 %v16787_v9  ;;  %v1399_v9 = vld [vmem:[%s16295_s2 + $0xbb8] sm:$0xff] }
 0x3bc   : > { %v13560_v14 = vcombine.high %v1395_v30, %v1399_v9  ;;  %v13559_v42 = vcombine.low %v1395_v30, %v1399_v9  ;;  %v1451_v30 = vld [vmem:[%s16295_s2 + $0xd58] sm:$0xff]  ;;  %v13605_v9 = vcombine.low %v1442_v7, %v1446_v6 }
 0x3bd   : > { %9225 = vmatpush1.bf16.msra.mxu0 %v13533_v62  ;;  %10129 = vmatpush1.bf16.msra.mxu1 %v13535_v58  ;;  %v1435_v62 = vld [vmem:[%s16295_s2 + $0xcd8] sm:$0xff]  ;;  %v13589_v58 = vcombine.low %v1426_v22, %v1430_v45 }
 0x3be   : > { %9226 = vmatprep.subr.bf16.mxu0 %v13542_v38  ;;  %10130 = vmatprep.subr.bf16.mxu1 %v13544_v59  ;;  %v13598_v59 = vcombine.high %v1434_v0, %v1438_v36  ;;  %v523_v22 = vld [vmem:[#allocation2 + $0x58] sm:$0xff] }
 0x3c0   : > { %9182 = vmatmul.mubr.bf16.gmra.mrb[56].mxu0 %v16802_v33  ;;  %10086 = vmatmul.mubr.bf16.gmra.mrb[56].mxu1 %v16802_v33  ;;  %v1407_v33 = vld [vmem:[%s16295_s2 + $0xbf8] sm:$0xff] }
 0x3c1   : > { %9227 = vmatpush1.bf16.msra.mxu0 %v13541_v19  ;;  %10131 = vmatpush1.bf16.msra.mxu1 %v13543_v20  ;;  %v13568_v43 = vcombine.high %v1403_v29, %v1407_v33  ;;  %v13567_v61 = vcombine.low %v1403_v29, %v1407_v33  ;;  %v13597_v19 = vcombine.low %v1434_v0, %v1438_v36  ;;  %v18024_v29 = vld [vmem:[%s16295_s2 + $0xdb8] sm:$0xff]  ;;  %v514_v33 = vld [vmem:[#allocation2 + $0x10] sm:$0xff] }
 0x3c2   : > { %9228 = vmatprep.subr.bf16.mxu0 %v13550_v11  ;;  %10132 = vmatprep.subr.bf16.mxu1 %v13552_v4  ;;  %v13606_v11 = vcombine.high %v1442_v7, %v1446_v6  ;;  %v528_v7 = vld [vmem:[#allocation2 + $0x80] sm:$0xff]  ;;  %v530_v6 = vld [vmem:[#allocation2 + $0x90] sm:$0xff] }
 0x3c3   : > { %9191 = vmatprep.mubr.bf16.mxu0 %v16807_v47  ;;  %10095 = vmatprep.mubr.bf16.mxu1 %v16807_v47  ;;  %v1415_v47 = vld [vmem:[%s16295_s2 + $0xc38] sm:$0xff] }
 0x3c4   : > { %v13576_v1 = vcombine.high %v1411_v32, %v1415_v47  ;;  %v13575_v48 = vcombine.low %v1411_v32, %v1415_v47  ;;  %v13624_v47 = vcombine.high %v18021_v23, %v18024_v29 }
 0x3c5   : > { %9229 = vmatpush1.bf16.msra.mxu0 %v13549_v46  ;;  %10133 = vmatpush1.bf16.msra.mxu1 %v13551_v31  ;;  %v13614_v31 = vcombine.high %v1450_v15, %v1454_v18 }
 0x3c6   : > { %9230 = vmatprep.subr.bf16.mxu0 %v13558_v63  ;;  %10134 = vmatprep.subr.bf16.mxu1 %v13560_v14  ;;  %v18014_v14 = vld [vmem:[%s16295_s2 + $0xd90] sm:$0xff] }
 0x3c7   : > { %v13622_v37 = vcombine.high %v18014_v14, %v18017_v16  ;;  %v13621_v45 = vcombine.low %v18014_v14, %v18017_v16  ;;  %v537_v14 = vld [vmem:[#allocation2 + $0xc8] sm:$0xff]  ;;  %v18084_v16 = vld [vmem:[%s16295_s2 + $0xe58] sm:$0xff] }
 0x3c8   : > { %9192 = vmatmul.mubr.bf16.gmra.mrb[60].mxu0 %v16822_v10  ;;  %10096 = vmatmul.mubr.bf16.gmra.mrb[60].mxu1 %v16822_v10  ;;  %v1423_v10 = vld [vmem:[%s16295_s2 + $0xc78] sm:$0xff] }
 0x3c9   : > { %9231 = vmatpush1.bf16.msra.mxu0 %v13557_v27  ;;  %10135 = vmatpush1.bf16.msra.mxu1 %v13559_v42  ;;  %v13584_v41 = vcombine.high %v1419_v24, %v1423_v10  ;;  %v13583_v53 = vcombine.low %v1419_v24, %v1423_v10  ;;  %v13613_v27 = vcombine.low %v1450_v15, %v1454_v18  ;;  %v513_v42 = vld [vmem:[#allocation2 + $0x8] sm:$0xff]  ;;  %v18040_v24 = vld [vmem:[%s16295_s2 + $0xdd8] sm:$0xff]  ;;  %v538_v15 = vld [vmem:[#allocation2 + $0xd0] sm:$0xff] }
 0x3ca   : > { %9232 = vmatprep.subr.bf16.mxu0 %v13566_v51  ;;  %10136 = vmatprep.subr.bf16.mxu1 %v13568_v43  ;;  %v515_v51 = vld [vmem:[#allocation2 + $0x18] sm:$0xff]  ;;  %v19602_v18 = vld [vmem:[#allocation18_spill] sm:$0xff] }
 0x3cb   : > { %9234 = vmatprep.mubr.bf16.mxu0 %v16827_v25  ;;  %10138 = vmatprep.mubr.bf16.mxu1 %v16827_v25  ;;  %v1431_v25 = vld [vmem:[%s16295_s2 + $0xcb8] sm:$0xff] }
 0x3cc   : > { %v13592_v13 = vcombine.high %v1427_v54, %v1431_v25  ;;  %v13591_v38 = vcombine.low %v1427_v54, %v1431_v25  ;;  %v18043_v10 = vld [vmem:[%s16295_s2 + $0xdf8] sm:$0xff]  ;;  %v13623_v54 = vcombine.low %v18021_v23, %v18024_v29 }
 0x3cd   : > { %9233 = vmatpush1.bf16.msra.mxu0 %v13565_v34  ;;  %10137 = vmatpush1.bf16.msra.mxu1 %v13567_v61  ;;  %v18033_v34 = vld [vmem:[%s16295_s2 + $0xdd0] sm:$0xff]  ;;  %v18087_v23 = vld [vmem:[%s16295_s2 + $0xe78] sm:$0xff] }
 0x3ce   : > { %9315 = vmatprep.subr.bf16.mxu0 %v13574_v28  ;;  %10219 = vmatprep.subr.bf16.mxu1 %v13576_v1  ;;  %v18036_v61 = vld [vmem:[%s16295_s2 + $0xdf0] sm:$0xff] }
 0x3d0   : > { %9235 = vmatmul.mubr.bf16.vlgmr.msra.gmra.mrb[32].mxu0 %v16842_v50  ;;  %10139 = vmatmul.mubr.bf16.vlgmr.msra.gmra.mrb[32].mxu1 %v16842_v50  ;;  %v1439_v50 = vld [vmem:[%s16295_s2 + $0xcf8] sm:$0xff] }
 0x3d1   : > { %9316 = vmatpush1.bf16.msra.mxu0 %v13573_v40  ;;  %10220 = vmatpush1.bf16.msra.mxu1 %v13575_v48  ;;  %v13600_v2 = vcombine.high %v1435_v62, %v1439_v50  ;;  %v13599_v20 = vcombine.low %v1435_v62, %v1439_v50  ;;  %v13632_v62 = vcombine.high %v18040_v24, %v18043_v10  ;;  %v18054_v50 = vld [vmem:[%s16295_s2 + $0xe10] sm:$0xff] }
 0x3d2   : > { %9317 = vmatprep.subr.bf16.mxu0 %v13582_v52  ;;  %10221 = vmatprep.subr.bf16.mxu1 %v13584_v41 }
 0x3d3   : > { %9244 = vmatprep.mubr.bf16.mxu0 %v16847_v3  ;;  %10148 = vmatprep.mubr.bf16.mxu1 %v16847_v3  ;;  %v1447_v3 = vld [vmem:[%s16295_s2 + $0xd38] sm:$0xff] }
 0x3d4   : > { %v13608_v4 = vcombine.high %v1443_v57, %v1447_v3  ;;  %v13607_v46 = vcombine.low %v1443_v57, %v1447_v3  ;;  %v13629_v57 = vcombine.low %v18033_v34, %v18036_v61  ;;  %v529_v3 = vld [vmem:[#allocation2 + $0x88] sm:$0xff] }
 0x3d5   : > { %9318 = vmatpush1.bf16.msra.mxu0 %v13581_v5  ;;  %10222 = vmatpush1.bf16.msra.mxu1 %v13583_v53 }
 0x3d6   : > { %9319 = vmatprep.subr.bf16.mxu0 %v13590_v60  ;;  %10223 = vmatprep.subr.bf16.mxu1 %v13592_v13  ;;  %v13630_v60 = vcombine.high %v18033_v34, %v18036_v61 }
 0x3d8   : > { %9245 = vmatmul.mubr.bf16.gmra.mrb[36].mxu0 %v16862_v35  ;;  %10149 = vmatmul.mubr.bf16.gmra.mrb[36].mxu1 %v16862_v35  ;;  %v1455_v35 = vld [vmem:[%s16295_s2 + $0xd78] sm:$0xff] }
 0x3d9   : > { %9320 = vmatpush1.bf16.msra.mxu0 %v13589_v58  ;;  %10224 = vmatpush1.bf16.msra.mxu1 %v13591_v38  ;;  %v13616_v63 = vcombine.high %v1451_v30, %v1455_v35  ;;  %v13615_v43 = vcombine.low %v1451_v30, %v1455_v35  ;;  %v18057_v58 = vld [vmem:[%s16295_s2 + $0xe30] sm:$0xff] }
 0x3da   : > { %9321 = vmatprep.subr.bf16.mxu0 %v13598_v59  ;;  %10225 = vmatprep.subr.bf16.mxu1 %v13600_v2  ;;  %v18061_v59 = vld [vmem:[%s16295_s2 + $0xe18] sm:$0xff]  ;;  %v18077_v35 = vld [vmem:[%s16295_s2 + $0xe50] sm:$0xff] }
 0x3db   : > { %9254 = vmatprep.mubr.bf16.mxu0 %v16867_v49  ;;  %10158 = vmatprep.mubr.bf16.mxu1 %v16867_v49  ;;  %v512_v49 = vld [vmem:[#allocation2] sm:$0xff]  ;;  %v18064_v2 = vld [vmem:[%s16295_s2 + $0xe38] sm:$0xff] }
 0x3dc   : > { %v13640_v30 = vcombine.high %v18061_v59, %v18064_v2 }
 0x3dd   : > { %9322 = vmatpush1.bf16.msra.mxu0 %v13597_v19  ;;  %10226 = vmatpush1.bf16.msra.mxu1 %v13599_v20  ;;  %v531_v19 = vld [vmem:[#allocation2 + $0x98] sm:$0xff]  ;;  %v13631_v20 = vcombine.low %v18040_v24, %v18043_v10 }
 0x3de   : > { %9323 = vmatprep.subr.bf16.mxu0 %v13606_v11  ;;  %10227 = vmatprep.subr.bf16.mxu1 %v13608_v4  ;;  %v536_v11 = vld [vmem:[#allocation2 + $0xc0] sm:$0xff]  ;;  %v19603_v10 = vld [vmem:[#allocation19_spill] sm:$0xff] }
 0x3e0   : > { %9255 = vmatmul.mubr.bf16.gmra.mrb[40].mxu0 %v16882_v17  ;;  %10159 = vmatmul.mubr.bf16.gmra.mrb[40].mxu1 %v16882_v17  ;;  %v522_v17 = vld [vmem:[#allocation2 + $0x50] sm:$0xff] }
 0x3e1   : > { %9324 = vmatpush1.bf16.msra.mxu0 %v13605_v9  ;;  %10228 = vmatpush1.bf16.msra.mxu1 %v13607_v46  ;;  %v18080_v9 = vld [vmem:[%s16295_s2 + $0xe70] sm:$0xff] }
 0x3e2   : > { %9325 = vmatprep.subr.bf16.mxu0 %v13614_v31  ;;  %10229 = vmatprep.subr.bf16.mxu1 %v13616_v63 }
 0x3e3   : > { %v7993_v32 = vpop.f32.mrb[0].mxu0  ;;  %9264 = vmatprep.mubr.bf16.mxu0 %v16887_v39  ;;  %v8897_v1 = vpop.f32.mrb[0].mxu1  ;;  %10168 = vmatprep.mubr.bf16.mxu1 %v16887_v39 }
 0x3e4   : > { %v10784_v28 = vadd.f32 %v7993_v32, %v512_v49  ;;  %v7995_v44 = vpop.f32.mrb[1].mxu0  ;;  %v10786_v40 = vadd.f32 %v8897_v1, %v514_v33  ;;  %v8899_v52 = vpop.f32.mrb[1].mxu1  ;;  %v13648_v1 = vcombine.high %v18084_v16, %v18087_v23 }
 0x3e5   : > { %v10785_v48 = vadd.f32 %v7995_v44, %v513_v42  ;;  %v7997_v41 = vpop.f32.mrb[2].mxu0  ;;  %9326 = vmatpush1.bf16.msra.mxu0 %v13613_v27  ;;  %v10787_v39 = vadd.f32 %v8899_v52, %v515_v51  ;;  %v8901_v5 = vpop.f32.mrb[2].mxu1  ;;  %10230 = vmatpush1.bf16.msra.mxu1 %v13615_v43  ;;  %v539_v42 = vld [vmem:[#allocation2 + $0xd8] sm:$0xff]  ;;  %v13637_v51 = vcombine.low %v18054_v50, %v18057_v58  ;;  %v18098_v44 = vld [vmem:[%s16295_s2 + $0xe90] sm:$0xff]  ;;  %v544_v52 = vld [vmem:[#allocation2 + $0x100] sm:$0xff] }
 0x3e6   : > { %10912 = vst [vmem:[#allocation2] sm:$0xff] %v10784_v28  ;;  %v10792_v25 = vadd.f32 %v7997_v41, %v520_v21  ;;  %v7999_v53 = vpop.f32.mrb[3].mxu0  ;;  %9327 = vmatprep.subr.bf16.mxu0 %v13622_v37  ;;  %10914 = vst [vmem:[#allocation2 + $0x10] sm:$0xff] %v10786_v40  ;;  %v10794_v13 = vadd.f32 %v8901_v5, %v522_v17  ;;  %v8903_v36 = vpop.f32.mrb[3].mxu1  ;;  %10231 = vmatprep.subr.bf16.mxu1 %v13624_v47  ;;  %v18105_v40 = vld [vmem:[%s16295_s2 + $0xe98] sm:$0xff]  ;;  %v546_v41 = vld [vmem:[#allocation2 + $0x110] sm:$0xff] }
 0x3e7   : > { %10913 = vst [vmem:[#allocation2 + $0x8] sm:$0xff] %v10785_v48  ;;  %v10793_v0 = vadd.f32 %v7999_v53, %v521_v26  ;;  %10915 = vst [vmem:[#allocation2 + $0x18] sm:$0xff] %v10787_v39  ;;  %v10795_v38 = vadd.f32 %v8903_v36, %v523_v22  ;;  %v13639_v43 = vcombine.low %v18061_v59, %v18064_v2  ;;  %v18101_v26 = vld [vmem:[%s16295_s2 + $0xeb0] sm:$0xff]  ;;  %v18108_v48 = vld [vmem:[%s16295_s2 + $0xeb8] sm:$0xff] }
 0x3e8   : > { %10920 = vst [vmem:[#allocation2 + $0x40] sm:$0xff] %v10792_v25  ;;  %9265 = vmatmul.mubr.bf16.gmra.mrb[44].mxu0 %v16902_v8  ;;  %10922 = vst [vmem:[#allocation2 + $0x50] sm:$0xff] %v10794_v13  ;;  %10169 = vmatmul.mubr.bf16.gmra.mrb[44].mxu1 %v16902_v8  ;;  %v13638_v8 = vcombine.high %v18054_v50, %v18057_v58  ;;  %v13646_v47 = vcombine.high %v18077_v35, %v18080_v9  ;;  %v552_v25 = vld [vmem:[#allocation2 + $0x140] sm:$0xff]  ;;  %v18121_v36 = vld [vmem:[%s16295_s2 + $0xed0] sm:$0xff] }
 0x3e9   : > { %10921 = vst [vmem:[#allocation2 + $0x48] sm:$0xff] %v10793_v0  ;;  %9328 = vmatpush1.bf16.msra.mxu0 %v13621_v45  ;;  %10923 = vst [vmem:[#allocation2 + $0x58] sm:$0xff] %v10795_v38  ;;  %10232 = vmatpush1.bf16.msra.mxu1 %v13623_v54  ;;  %v13645_v22 = vcombine.low %v18077_v35, %v18080_v9  ;;  %v545_v45 = vld [vmem:[#allocation2 + $0x108] sm:$0xff]  ;;  %v547_v54 = vld [vmem:[#allocation2 + $0x118] sm:$0xff]  ;;  %v13647_v39 = vcombine.low %v18084_v16, %v18087_v23 }
 0x3ea   : > { %9329 = vmatprep.subr.bf16.mxu0 %v13630_v60  ;;  %10233 = vmatprep.subr.bf16.mxu1 %v13632_v62  ;;  %v13654_v5 = vcombine.high %v18098_v44, %v18101_v26  ;;  %v554_v60 = vld [vmem:[#allocation2 + $0x150] sm:$0xff]  ;;  %v19604_v13 = vld [vmem:[#allocation20_spill] sm:$0xff]  ;;  %v13656_v0 = vcombine.high %v18105_v40, %v18108_v48  ;;  %v553_v59 = vld [vmem:[#allocation2 + $0x148] sm:$0xff] }
 0x3eb   : > { %v8003_v4 = vpop.f32.mrb[4].mxu0  ;;  %9274 = vmatprep.mubr.bf16.mxu0 %v19602_v18  ;;  %v8907_v31 = vpop.f32.mrb[4].mxu1  ;;  %10178 = vmatprep.mubr.bf16.mxu1 %v19602_v18  ;;  %v18124_v62 = vld [vmem:[%s16295_s2 + $0xef0] sm:$0xff]  ;;  %v18128_v2 = vld [vmem:[%s16295_s2 + $0xed8] sm:$0xff] }
 0x3ec   : > { %v10800_v46 = vadd.f32 %v8003_v4, %v528_v7  ;;  %v8005_v63 = vpop.f32.mrb[5].mxu0  ;;  %v10802_v29 = vadd.f32 %v8907_v31, %v530_v6  ;;  %v8909_v33 = vpop.f32.mrb[5].mxu1  ;;  %v18131_v7 = vld [vmem:[%s16295_s2 + $0xef8] sm:$0xff]  ;;  %v13662_v35 = vcombine.high %v18121_v36, %v18124_v62  ;;  %v18145_v16 = vld [vmem:[%s16295_s2 + $0xf30] sm:$0xff] }
 0x3ed   : > { %v10801_v49 = vadd.f32 %v8005_v63, %v529_v3  ;;  %v8007_v27 = vpop.f32.mrb[6].mxu0  ;;  %9330 = vmatpush1.bf16.msra.mxu0 %v13629_v57  ;;  %v10803_v21 = vadd.f32 %v8909_v33, %v531_v19  ;;  %v8911_v32 = vpop.f32.mrb[6].mxu1  ;;  %10234 = vmatpush1.bf16.msra.mxu1 %v13631_v20  ;;  %v555_v20 = vld [vmem:[#allocation2 + $0x158] sm:$0xff]  ;;  %v13664_v63 = vcombine.high %v18128_v2, %v18131_v7 }
 0x3ee   : > { %10928 = vst [vmem:[#allocation2 + $0x80] sm:$0xff] %v10800_v46  ;;  %v10808_v37 = vadd.f32 %v8007_v27, %v536_v11  ;;  %v8009_v17 = vpop.f32.mrb[7].mxu0  ;;  %9331 = vmatprep.subr.bf16.mxu0 %v13638_v8  ;;  %10930 = vst [vmem:[#allocation2 + $0x90] sm:$0xff] %v10802_v29  ;;  %v10810_v34 = vadd.f32 %v8911_v32, %v538_v15  ;;  %v8913_v28 = vpop.f32.mrb[7].mxu1  ;;  %10235 = vmatprep.subr.bf16.mxu1 %v13640_v30  ;;  %v19605_v29 = vld [vmem:[#allocation21_spill] sm:$0xff]  ;;  %v18152_v33 = vld [vmem:[%s16295_s2 + $0xf38] sm:$0xff] }
 0x3ef   : > { %10929 = vst [vmem:[#allocation2 + $0x88] sm:$0xff] %v10801_v49  ;;  %v10809_v61 = vadd.f32 %v8009_v17, %v537_v14  ;;  %10931 = vst [vmem:[#allocation2 + $0x98] sm:$0xff] %v10803_v21  ;;  %v10811_v24 = vadd.f32 %v8913_v28, %v539_v42  ;;  %v13653_v11 = vcombine.low %v18098_v44, %v18101_v26  ;;  %v18142_v14 = vld [vmem:[%s16295_s2 + $0xf10] sm:$0xff]  ;;  %v18149_v49 = vld [vmem:[%s16295_s2 + $0xf18] sm:$0xff] }
 0x3f0   : > { %10936 = vst [vmem:[#allocation2 + $0xc0] sm:$0xff] %v10808_v37  ;;  %9275 = vmatmul.mubr.bf16.gmra.mrb[48].mxu0 %v19603_v10  ;;  %10938 = vst [vmem:[#allocation2 + $0xd0] sm:$0xff] %v10810_v34  ;;  %10179 = vmatmul.mubr.bf16.gmra.mrb[48].mxu1 %v19603_v10  ;;  %v13655_v8 = vcombine.low %v18105_v40, %v18108_v48  ;;  %v560_v27 = vld [vmem:[#allocation2 + $0x180] sm:$0xff]  ;;  %v562_v42 = vld [vmem:[#allocation2 + $0x190] sm:$0xff]  ;;  %v13663_v37 = vcombine.low %v18128_v2, %v18131_v7 }
 0x3f1   : > { %10937 = vst [vmem:[#allocation2 + $0xc8] sm:$0xff] %v10809_v61  ;;  %9332 = vmatpush1.bf16.msra.mxu0 %v13637_v51  ;;  %10939 = vst [vmem:[#allocation2 + $0xd8] sm:$0xff] %v10811_v24  ;;  %10236 = vmatpush1.bf16.msra.mxu1 %v13639_v43  ;;  %v13661_v51 = vcombine.low %v18121_v36, %v18124_v62  ;;  %v561_v43 = vld [vmem:[#allocation2 + $0x188] sm:$0xff]  ;;  %v563_v21 = vld [vmem:[#allocation2 + $0x198] sm:$0xff]  ;;  %v13670_v17 = vcombine.high %v18142_v14, %v18145_v16 }
 0x3f2   : > { %9333 = vmatprep.subr.bf16.mxu0 %v13646_v47  ;;  %10237 = vmatprep.subr.bf16.mxu1 %v13648_v1  ;;  %v568_v32 = vld [vmem:[#allocation2 + $0x1c0] sm:$0xff]  ;;  %v570_v34 = vld [vmem:[#allocation2 + $0x1d0] sm:$0xff]  ;;  %v13672_v28 = vcombine.high %v18149_v49, %v18152_v33  ;;  %v569_v40 = vld [vmem:[#allocation2 + $0x1c8] sm:$0xff] }
 0x3f3   : > { %v8013_v53 = vpop.f32.mrb[8].mxu0  ;;  %9284 = vmatprep.mubr.bf16.mxu0 %v19604_v13  ;;  %v8917_v58 = vpop.f32.mrb[8].mxu1  ;;  %10188 = vmatprep.mubr.bf16.mxu1 %v19604_v13  ;;  %v19606_v61 = vld [vmem:[#allocation22_spill] sm:$0xff]  ;;  %v18172_v48 = vld [vmem:[%s16295_s2 + $0xf58] sm:$0xff] }
 0x3f4   : > { %v10816_v50 = vadd.f32 %v8013_v53, %v544_v52  ;;  %v8015_v38 = vpop.f32.mrb[9].mxu0  ;;  %v10818_v6 = vadd.f32 %v8917_v58, %v546_v41  ;;  %v8919_v3 = vpop.f32.mrb[9].mxu1  ;;  %v18165_v1 = vld [vmem:[%s16295_s2 + $0xf50] sm:$0xff]  ;;  %v18175_v52 = vld [vmem:[%s16295_s2 + $0xf78] sm:$0xff] }
 0x3f5   : > { %v10817_v57 = vadd.f32 %v8015_v38, %v545_v45  ;;  %v8017_v19 = vpop.f32.mrb[10].mxu0  ;;  %9334 = vmatpush1.bf16.msra.mxu0 %v13645_v22  ;;  %v10819_v4 = vadd.f32 %v8919_v3, %v547_v54  ;;  %v8921_v18 = vpop.f32.mrb[10].mxu1  ;;  %10238 = vmatpush1.bf16.msra.mxu1 %v13647_v39  ;;  %v18168_v44 = vld [vmem:[%s16295_s2 + $0xf70] sm:$0xff]  ;;  %v571_v39 = vld [vmem:[#allocation2 + $0x1d8] sm:$0xff]  ;;  %v13680_v38 = vcombine.high %v18172_v48, %v18175_v52 }
 0x3f6   : > { %10944 = vst [vmem:[#allocation2 + $0x100] sm:$0xff] %v10816_v50  ;;  %v10824_v15 = vadd.f32 %v8017_v19, %v552_v25  ;;  %v8019_v30 = vpop.f32.mrb[11].mxu0  ;;  %9335 = vmatprep.subr.bf16.mxu0 %v13654_v5  ;;  %10946 = vst [vmem:[#allocation2 + $0x110] sm:$0xff] %v10818_v6  ;;  %v10826_v9 = vadd.f32 %v8921_v18, %v554_v60  ;;  %v8923_v31 = vpop.f32.mrb[11].mxu1  ;;  %10239 = vmatprep.subr.bf16.mxu1 %v13656_v0  ;;  %v18189_v2 = vld [vmem:[%s16295_s2 + $0xfb0] sm:$0xff]  ;;  %v18196_v3 = vld [vmem:[%s16295_s2 + $0xfb8] sm:$0xff] }
 0x3f7   : > { %10945 = vst [vmem:[#allocation2 + $0x108] sm:$0xff] %v10817_v57  ;;  %v10825_v46 = vadd.f32 %v8019_v30, %v553_v59  ;;  %10947 = vst [vmem:[#allocation2 + $0x118] sm:$0xff] %v10819_v4  ;;  %v10827_v23 = vadd.f32 %v8923_v31, %v555_v20  ;;  %v13669_v25 = vcombine.low %v18142_v14, %v18145_v16  ;;  %v18186_v59 = vld [vmem:[%s16295_s2 + $0xf90] sm:$0xff]  ;;  %v18193_v57 = vld [vmem:[%s16295_s2 + $0xf98] sm:$0xff] }
 0x3f8   : > { %10952 = vst [vmem:[#allocation2 + $0x140] sm:$0xff] %v10824_v15  ;;  %9285 = vmatmul.mubr.bf16.gmra.mrb[52].mxu0 %v19605_v29  ;;  %10954 = vst [vmem:[#allocation2 + $0x150] sm:$0xff] %v10826_v9  ;;  %10189 = vmatmul.mubr.bf16.gmra.mrb[52].mxu1 %v19605_v29  ;;  %v13671_v5 = vcombine.low %v18149_v49, %v18152_v33  ;;  %v13678_v36 = vcombine.high %v18165_v1, %v18168_v44  ;;  %v19607_v6 = vld [vmem:[#allocation23_spill] sm:$0xff]  ;;  %v576_v19 = vld [vmem:[#allocation2 + $0x200] sm:$0xff] }
 0x3f9   : > { %10953 = vst [vmem:[#allocation2 + $0x148] sm:$0xff] %v10825_v46  ;;  %9336 = vmatpush1.bf16.msra.mxu0 %v13653_v11  ;;  %10955 = vst [vmem:[#allocation2 + $0x158] sm:$0xff] %v10827_v23  ;;  %10240 = vmatpush1.bf16.msra.mxu1 %v13655_v8  ;;  %v578_v20 = vld [vmem:[#allocation2 + $0x210] sm:$0xff]  ;;  %v13677_v11 = vcombine.low %v18165_v1, %v18168_v44  ;;  %v577_v8 = vld [vmem:[#allocation2 + $0x208] sm:$0xff]  ;;  %v13679_v15 = vcombine.low %v18172_v48, %v18175_v52 }
 0x3fa   : > { %9337 = vmatprep.subr.bf16.mxu0 %v13662_v35  ;;  %10241 = vmatprep.subr.bf16.mxu1 %v13664_v63  ;;  %v579_v4 = vld [vmem:[#allocation2 + $0x218] sm:$0xff]  ;;  %v584_v18 = vld [vmem:[#allocation2 + $0x240] sm:$0xff]  ;;  %v13686_v30 = vcombine.high %v18186_v59, %v18189_v2  ;;  %v586_v9 = vld [vmem:[#allocation2 + $0x250] sm:$0xff]  ;;  %v13688_v31 = vcombine.high %v18193_v57, %v18196_v3 }
 0x3fb   : > { %v8023_v47 = vpop.f32.mrb[12].mxu0  ;;  %9294 = vmatprep.mubr.bf16.mxu0 %v19606_v61  ;;  %v8927_v24 = vpop.f32.mrb[12].mxu1  ;;  %10198 = vmatprep.mubr.bf16.mxu1 %v19606_v61  ;;  %v19608_v46 = vld [vmem:[#allocation24_spill] sm:$0xff]  ;;  %v18209_v63 = vld [vmem:[%s16295_s2 + $0xfd0] sm:$0xff]  ;;  %v585_v49 = vld [vmem:[#allocation2 + $0x248] sm:$0xff] }
 0x3fc   : > { %v10832_v26 = vadd.f32 %v8023_v47, %v560_v27  ;;  %v8025_v10 = vpop.f32.mrb[13].mxu0  ;;  %v10834_v41 = vadd.f32 %v8927_v24, %v562_v42  ;;  %v8929_v45 = vpop.f32.mrb[13].mxu1  ;;  %v18212_v14 = vld [vmem:[%s16295_s2 + $0xff0] sm:$0xff]  ;;  %v18216_v33 = vld [vmem:[%s16295_s2 + $0xfd8] sm:$0xff] }
 0x3fd   : > { %v10833_v22 = vadd.f32 %v8025_v10, %v561_v43  ;;  %v8027_v54 = vpop.f32.mrb[14].mxu0  ;;  %9338 = vmatpush1.bf16.msra.mxu0 %v13661_v51  ;;  %v10835_v53 = vadd.f32 %v8929_v45, %v563_v21  ;;  %v8931_v13 = vpop.f32.mrb[14].mxu1  ;;  %10242 = vmatpush1.bf16.msra.mxu1 %v13663_v37  ;;  %v18219_v27 = vld [vmem:[%s16295_s2 + $0xff8] sm:$0xff]  ;;  %v13694_v1 = vcombine.high %v18209_v63, %v18212_v14  ;;  %v18233_v48 = vld [vmem:[%s16295_s2 + $0x1030] sm:$0xff] }
 0x3fe   : > { %10960 = vst [vmem:[#allocation2 + $0x180] sm:$0xff] %v10832_v26  ;;  %v10840_v60 = vadd.f32 %v8027_v54, %v568_v32  ;;  %v8029_v0 = vpop.f32.mrb[15].mxu0  ;;  %9339 = vmatprep.subr.bf16.mxu0 %v13670_v17  ;;  %10962 = vst [vmem:[#allocation2 + $0x190] sm:$0xff] %v10834_v41  ;;  %v10842_v62 = vadd.f32 %v8931_v13, %v570_v34  ;;  %v8933_v58 = vpop.f32.mrb[15].mxu1  ;;  %10243 = vmatprep.subr.bf16.mxu1 %v13672_v28  ;;  %v587_v37 = vld [vmem:[#allocation2 + $0x258] sm:$0xff]  ;;  %v19609_v41 = vld [vmem:[#allocation25_spill] sm:$0xff] }
 0x3ff   : > { %10961 = vst [vmem:[#allocation2 + $0x188] sm:$0xff] %v10833_v22  ;;  %v10841_v50 = vadd.f32 %v8029_v0, %v569_v40  ;;  %10963 = vst [vmem:[#allocation2 + $0x198] sm:$0xff] %v10835_v53  ;;  %v10843_v7 = vadd.f32 %v8933_v58, %v571_v39  ;;  %v13685_v32 = vcombine.low %v18186_v59, %v18189_v2  ;;  %v18230_v40 = vld [vmem:[%s16295_s2 + $0x1010] sm:$0xff]  ;;  %v18237_v22 = vld [vmem:[%s16295_s2 + $0x1018] sm:$0xff] }
 0x400   : > { %10968 = vst [vmem:[#allocation2 + $0x1c0] sm:$0xff] %v10840_v60  ;;  %9295 = vmatmul.mubr.bf16.gmra.mrb[56].mxu0 %v19607_v6  ;;  %10970 = vst [vmem:[#allocation2 + $0x1d0] sm:$0xff] %v10842_v62  ;;  %10199 = vmatmul.mubr.bf16.gmra.mrb[56].mxu1 %v19607_v6  ;;  %v13687_v17 = vcombine.low %v18193_v57, %v18196_v3  ;;  %v13696_v10 = vcombine.high %v18216_v33, %v18219_v27  ;;  %v18240_v45 = vld [vmem:[%s16295_s2 + $0x1038] sm:$0xff]  ;;  %v592_v54 = vld [vmem:[#allocation2 + $0x280] sm:$0xff] }
 0x401   : > { %10969 = vst [vmem:[#allocation2 + $0x1c8] sm:$0xff] %v10841_v50  ;;  %9340 = vmatpush1.bf16.msra.mxu0 %v13669_v25  ;;  %10971 = vst [vmem:[#allocation2 + $0x1d8] sm:$0xff] %v10843_v7  ;;  %10244 = vmatpush1.bf16.msra.mxu1 %v13671_v5  ;;  %v594_v39 = vld [vmem:[#allocation2 + $0x290] sm:$0xff]  ;;  %v13693_v25 = vcombine.low %v18209_v63, %v18212_v14  ;;  %v593_v5 = vld [vmem:[#allocation2 + $0x288] sm:$0xff]  ;;  %v13695_v60 = vcombine.low %v18216_v33, %v18219_v27 }
 0x402   : > { %9341 = vmatprep.subr.bf16.mxu0 %v13678_v36  ;;  %10245 = vmatprep.subr.bf16.mxu1 %v13680_v38  ;;  %v595_v53 = vld [vmem:[#allocation2 + $0x298] sm:$0xff]  ;;  %v600_v13 = vld [vmem:[#allocation2 + $0x2c0] sm:$0xff]  ;;  %v13702_v0 = vcombine.high %v18230_v40, %v18233_v48  ;;  %v602_v62 = vld [vmem:[#allocation2 + $0x2d0] sm:$0xff]  ;;  %v13704_v58 = vcombine.high %v18237_v22, %v18240_v45 }
 0x403   : > { %v8033_v35 = vpop.f32.mrb[16].mxu0  ;;  %9304 = vmatprep.mubr.bf16.mxu0 %v19608_v46  ;;  %v8937_v23 = vpop.f32.mrb[16].mxu1  ;;  %10208 = vmatprep.mubr.bf16.mxu1 %v19608_v46  ;;  %v19610_v50 = vld [vmem:[#allocation26_spill] sm:$0xff]  ;;  %v18260_v3 = vld [vmem:[%s16295_s2 + $0x1058] sm:$0xff] }
 0x404   : > { %v10848_v16 = vadd.f32 %v8033_v35, %v576_v19  ;;  %v8035_v29 = vpop.f32.mrb[17].mxu0  ;;  %v10850_v42 = vadd.f32 %v8937_v23, %v578_v20  ;;  %v8939_v43 = vpop.f32.mrb[17].mxu1  ;;  %v18253_v38 = vld [vmem:[%s16295_s2 + $0x1050] sm:$0xff]  ;;  %v601_v57 = vld [vmem:[#allocation2 + $0x2c8] sm:$0xff]  ;;  %v18263_v19 = vld [vmem:[%s16295_s2 + $0x1078] sm:$0xff] }
 0x405   : > { %v10849_v51 = vadd.f32 %v8035_v29, %v577_v8  ;;  %v8037_v21 = vpop.f32.mrb[18].mxu0  ;;  %9342 = vmatpush1.bf16.msra.mxu0 %v13677_v11  ;;  %v10851_v47 = vadd.f32 %v8939_v43, %v579_v4  ;;  %v8941_v61 = vpop.f32.mrb[18].mxu1  ;;  %10246 = vmatpush1.bf16.msra.mxu1 %v13679_v15  ;;  %v18256_v59 = vld [vmem:[%s16295_s2 + $0x1070] sm:$0xff]  ;;  %v603_v15 = vld [vmem:[#allocation2 + $0x2d8] sm:$0xff]  ;;  %v13712_v29 = vcombine.high %v18260_v3, %v18263_v19 }
 0x406   : > { %10976 = vst [vmem:[#allocation2 + $0x200] sm:$0xff] %v10848_v16  ;;  %v10856_v34 = vadd.f32 %v8037_v21, %v584_v18  ;;  %v8039_v28 = vpop.f32.mrb[19].mxu0  ;;  %9343 = vmatprep.subr.bf16.mxu0 %v13686_v30  ;;  %10978 = vst [vmem:[#allocation2 + $0x210] sm:$0xff] %v10850_v42  ;;  %v10858_v44 = vadd.f32 %v8941_v61, %v586_v9  ;;  %v8943_v24 = vpop.f32.mrb[19].mxu1  ;;  %10247 = vmatprep.subr.bf16.mxu1 %v13688_v31  ;;  %v18277_v33 = vld [vmem:[%s16295_s2 + $0x10b0] sm:$0xff]  ;;  %v18284_v43 = vld [vmem:[%s16295_s2 + $0x10b8] sm:$0xff] }
 0x407   : > { %10977 = vst [vmem:[#allocation2 + $0x208] sm:$0xff] %v10849_v51  ;;  %v10857_v26 = vadd.f32 %v8039_v28, %v585_v49  ;;  %10979 = vst [vmem:[#allocation2 + $0x218] sm:$0xff] %v10851_v47  ;;  %v10859_v52 = vadd.f32 %v8943_v24, %v587_v37  ;;  %v13701_v18 = vcombine.low %v18230_v40, %v18233_v48  ;;  %v18274_v49 = vld [vmem:[%s16295_s2 + $0x1090] sm:$0xff]  ;;  %v18281_v51 = vld [vmem:[%s16295_s2 + $0x1098] sm:$0xff] }
 0x408   : > { %10984 = vst [vmem:[#allocation2 + $0x240] sm:$0xff] %v10856_v34  ;;  %9305 = vmatmul.mubr.bf16.gmra.mrb[60].mxu0 %v19609_v41  ;;  %10986 = vst [vmem:[#allocation2 + $0x250] sm:$0xff] %v10858_v44  ;;  %10209 = vmatmul.mubr.bf16.gmra.mrb[60].mxu1 %v19609_v41  ;;  %v13703_v30 = vcombine.low %v18237_v22, %v18240_v45  ;;  %v13710_v63 = vcombine.high %v18253_v38, %v18256_v59  ;;  %v19611_v42 = vld [vmem:[#allocation27_spill] sm:$0xff]  ;;  %v608_v21 = vld [vmem:[#allocation2 + $0x300] sm:$0xff] }
 0x409   : > { %10985 = vst [vmem:[#allocation2 + $0x248] sm:$0xff] %v10857_v26  ;;  %9344 = vmatpush1.bf16.msra.mxu0 %v13685_v32  ;;  %10987 = vst [vmem:[#allocation2 + $0x258] sm:$0xff] %v10859_v52  ;;  %10248 = vmatpush1.bf16.msra.mxu1 %v13687_v17  ;;  %v610_v37 = vld [vmem:[#allocation2 + $0x310] sm:$0xff]  ;;  %v13709_v32 = vcombine.low %v18253_v38, %v18256_v59  ;;  %v609_v17 = vld [vmem:[#allocation2 + $0x308] sm:$0xff]  ;;  %v13711_v34 = vcombine.low %v18260_v3, %v18263_v19 }
 0x40a   : > { %9345 = vmatprep.subr.bf16.mxu0 %v13694_v1  ;;  %10249 = vmatprep.subr.bf16.mxu1 %v13696_v10  ;;  %v611_v47 = vld [vmem:[#allocation2 + $0x318] sm:$0xff]  ;;  %v616_v61 = vld [vmem:[#allocation2 + $0x340] sm:$0xff]  ;;  %v13718_v28 = vcombine.high %v18274_v49, %v18277_v33  ;;  %v618_v44 = vld [vmem:[#allocation2 + $0x350] sm:$0xff]  ;;  %v13720_v24 = vcombine.high %v18281_v51, %v18284_v43 }
 0x40b   : > { %v8043_v36 = vpop.f32.mrb[20].mxu0  ;;  %9347 = vmatprep.mubr.bf16.mxu0 %v19610_v50  ;;  %v8947_v7 = vpop.f32.mrb[20].mxu1  ;;  %10251 = vmatprep.mubr.bf16.mxu1 %v19610_v50  ;;  %v19612_v26 = vld [vmem:[#allocation28_spill] sm:$0xff]  ;;  %v18297_v10 = vld [vmem:[%s16295_s2 + $0x10d0] sm:$0xff]  ;;  %v617_v22 = vld [vmem:[#allocation2 + $0x348] sm:$0xff] }
 0x40c   : > { %v10864_v2 = vadd.f32 %v8043_v36, %v592_v54  ;;  %v8045_v6 = vpop.f32.mrb[21].mxu0  ;;  %v10866_v20 = vadd.f32 %v8947_v7, %v594_v39  ;;  %v8949_v8 = vpop.f32.mrb[21].mxu1  ;;  %v18300_v40 = vld [vmem:[%s16295_s2 + $0x10f0] sm:$0xff]  ;;  %v18304_v45 = vld [vmem:[%s16295_s2 + $0x10d8] sm:$0xff] }
 0x40d   : > { %v10865_v11 = vadd.f32 %v8045_v6, %v593_v5  ;;  %v8047_v4 = vpop.f32.mrb[22].mxu0  ;;  %9346 = vmatpush1.bf16.msra.mxu0 %v13693_v25  ;;  %v10867_v35 = vadd.f32 %v8949_v8, %v595_v53  ;;  %v8951_v46 = vpop.f32.mrb[22].mxu1  ;;  %10250 = vmatpush1.bf16.msra.mxu1 %v13695_v60  ;;  %v18307_v54 = vld [vmem:[%s16295_s2 + $0x10f8] sm:$0xff]  ;;  %v13726_v38 = vcombine.high %v18297_v10, %v18300_v40  ;;  %v18321_v3 = vld [vmem:[%s16295_s2 + $0x1130] sm:$0xff] }
 0x40e   : > { %10992 = vst [vmem:[#allocation2 + $0x280] sm:$0xff] %v10864_v2  ;;  %v10872_v9 = vadd.f32 %v8047_v4, %v600_v13  ;;  %v8049_v31 = vpop.f32.mrb[23].mxu0  ;;  %9428 = vmatprep.subr.bf16.mxu0 %v13702_v0  ;;  %10994 = vst [vmem:[#allocation2 + $0x290] sm:$0xff] %v10866_v20  ;;  %v10874_v14 = vadd.f32 %v8951_v46, %v602_v62  ;;  %v8953_v23 = vpop.f32.mrb[23].mxu1  ;;  %10332 = vmatprep.subr.bf16.mxu1 %v13704_v58  ;;  %v619_v60 = vld [vmem:[#allocation2 + $0x358] sm:$0xff]  ;;  %v19613_v20 = vld [vmem:[#allocation29_spill] sm:$0xff] }
 0x40f   : > { %10993 = vst [vmem:[#allocation2 + $0x288] sm:$0xff] %v10865_v11  ;;  %v10873_v16 = vadd.f32 %v8049_v31, %v601_v57  ;;  %10995 = vst [vmem:[#allocation2 + $0x298] sm:$0xff] %v10867_v35  ;;  %v10875_v27 = vadd.f32 %v8953_v23, %v603_v15  ;;  %v13717_v13 = vcombine.low %v18274_v49, %v18277_v33  ;;  %v18318_v57 = vld [vmem:[%s16295_s2 + $0x1110] sm:$0xff]  ;;  %v18325_v11 = vld [vmem:[%s16295_s2 + $0x1118] sm:$0xff] }
 0x410   : > { %11000 = vst [vmem:[#allocation2 + $0x2c0] sm:$0xff] %v10872_v9  ;;  %9348 = vmatmul.mubr.bf16.vlgmr.msra.gmra.mrb[32].mxu0 %v19611_v42  ;;  %11002 = vst [vmem:[#allocation2 + $0x2d0] sm:$0xff] %v10874_v14  ;;  %10252 = vmatmul.mubr.bf16.vlgmr.msra.gmra.mrb[32].mxu1 %v19611_v42  ;;  %v13719_v0 = vcombine.low %v18281_v51, %v18284_v43  ;;  %v13728_v6 = vcombine.high %v18304_v45, %v18307_v54  ;;  %v18328_v8 = vld [vmem:[%s16295_s2 + $0x1138] sm:$0xff]  ;;  %v624_v4 = vld [vmem:[#allocation2 + $0x380] sm:$0xff] }
 0x411   : > { %11001 = vst [vmem:[#allocation2 + $0x2c8] sm:$0xff] %v10873_v16  ;;  %9429 = vmatpush1.bf16.msra.mxu0 %v13701_v18  ;;  %11003 = vst [vmem:[#allocation2 + $0x2d8] sm:$0xff] %v10875_v27  ;;  %10333 = vmatpush1.bf16.msra.mxu1 %v13703_v30  ;;  %v626_v15 = vld [vmem:[#allocation2 + $0x390] sm:$0xff]  ;;  %v13725_v18 = vcombine.low %v18297_v10, %v18300_v40  ;;  %v625_v30 = vld [vmem:[#allocation2 + $0x388] sm:$0xff]  ;;  %v13727_v9 = vcombine.low %v18304_v45, %v18307_v54 }
 0x412   : > { %9430 = vmatprep.subr.bf16.mxu0 %v13710_v63  ;;  %10334 = vmatprep.subr.bf16.mxu1 %v13712_v29  ;;  %v627_v35 = vld [vmem:[#allocation2 + $0x398] sm:$0xff]  ;;  %v632_v46 = vld [vmem:[#allocation2 + $0x3c0] sm:$0xff]  ;;  %v13734_v31 = vcombine.high %v18318_v57, %v18321_v3  ;;  %v634_v14 = vld [vmem:[#allocation2 + $0x3d0] sm:$0xff]  ;;  %v13736_v23 = vcombine.high %v18325_v11, %v18328_v8 }
 0x413   : > { %v8053_v1 = vpop.f32.mrb[24].mxu0  ;;  %9357 = vmatprep.mubr.bf16.mxu0 %v19612_v26  ;;  %v8957_v52 = vpop.f32.mrb[24].mxu1  ;;  %10261 = vmatprep.mubr.bf16.mxu1 %v19612_v26  ;;  %v19614_v16 = vld [vmem:[#allocation30_spill] sm:$0xff]  ;;  %v1579_v43 = vld [vmem:[%s16295_s2 + $0x1158] sm:$0xff] }
 0x414   : > { %v10880_v48 = vadd.f32 %v8053_v1, %v608_v21  ;;  %v8055_v41 = vpop.f32.mrb[25].mxu0  ;;  %v10882_v39 = vadd.f32 %v8957_v52, %v610_v37  ;;  %v8959_v5 = vpop.f32.mrb[25].mxu1  ;;  %v1578_v29 = vld [vmem:[%s16295_s2 + $0x1150] sm:$0xff]  ;;  %v633_v51 = vld [vmem:[#allocation2 + $0x3c8] sm:$0xff]  ;;  %v1583_v21 = vld [vmem:[%s16295_s2 + $0x1178] sm:$0xff] }
 0x415   : > { %v10881_v25 = vadd.f32 %v8055_v41, %v609_v17  ;;  %v8057_v53 = vpop.f32.mrb[26].mxu0  ;;  %9431 = vmatpush1.bf16.msra.mxu0 %v13709_v32  ;;  %v10883_v36 = vadd.f32 %v8959_v5, %v611_v47  ;;  %v8961_v50 = vpop.f32.mrb[26].mxu1  ;;  %10335 = vmatpush1.bf16.msra.mxu1 %v13711_v34  ;;  %v1582_v49 = vld [vmem:[%s16295_s2 + $0x1170] sm:$0xff]  ;;  %v635_v34 = vld [vmem:[#allocation2 + $0x3d8] sm:$0xff]  ;;  %v13744_v41 = vcombine.high %v1579_v43, %v1583_v21 }
 0x416   : > { %11008 = vst [vmem:[#allocation2 + $0x300] sm:$0xff] %v10880_v48  ;;  %v10888_v62 = vadd.f32 %v8057_v53, %v616_v61  ;;  %v8059_v58 = vpop.f32.mrb[27].mxu0  ;;  %9432 = vmatprep.subr.bf16.mxu0 %v13718_v28  ;;  %11010 = vst [vmem:[#allocation2 + $0x310] sm:$0xff] %v10882_v39  ;;  %v10890_v59 = vadd.f32 %v8961_v50, %v618_v44  ;;  %v8963_v7 = vpop.f32.mrb[27].mxu1  ;;  %10336 = vmatprep.subr.bf16.mxu1 %v13720_v24  ;;  %v1590_v45 = vld [vmem:[%s16295_s2 + $0x11b0] sm:$0xff]  ;;  %v1591_v5 = vld [vmem:[%s16295_s2 + $0x11b8] sm:$0xff] }
 0x417   : > { %11009 = vst [vmem:[#allocation2 + $0x308] sm:$0xff] %v10881_v25  ;;  %v10889_v2 = vadd.f32 %v8059_v58, %v617_v22  ;;  %11011 = vst [vmem:[#allocation2 + $0x318] sm:$0xff] %v10883_v36  ;;  %v10891_v19 = vadd.f32 %v8963_v7, %v619_v60  ;;  %v13733_v61 = vcombine.low %v18318_v57, %v18321_v3  ;;  %v1586_v22 = vld [vmem:[%s16295_s2 + $0x1190] sm:$0xff]  ;;  %v1587_v25 = vld [vmem:[%s16295_s2 + $0x1198] sm:$0xff] }
 0x418   : > { %11016 = vst [vmem:[#allocation2 + $0x340] sm:$0xff] %v10888_v62  ;;  %9358 = vmatmul.mubr.bf16.gmra.mrb[36].mxu0 %v19613_v20  ;;  %11018 = vst [vmem:[#allocation2 + $0x350] sm:$0xff] %v10890_v59  ;;  %10262 = vmatmul.mubr.bf16.gmra.mrb[36].mxu1 %v19613_v20  ;;  %v13735_v28 = vcombine.low %v18325_v11, %v18328_v8  ;;  %v13742_v10 = vcombine.high %v1578_v29, %v1582_v49  ;;  %v19615_v39 = vld [vmem:[#allocation31_spill] sm:$0xff] }
 0x419   : > { %11017 = vst [vmem:[#allocation2 + $0x348] sm:$0xff] %v10889_v2  ;;  %9433 = vmatpush1.bf16.msra.mxu0 %v13717_v13  ;;  %11019 = vst [vmem:[#allocation2 + $0x358] sm:$0xff] %v10891_v19  ;;  %10337 = vmatpush1.bf16.msra.mxu1 %v13719_v0  ;;  %v13741_v53 = vcombine.low %v1578_v29, %v1582_v49  ;;  %v13743_v60 = vcombine.low %v1579_v43, %v1583_v21  ;;  %v19616_v0 = vld [vmem:[#allocation32_spill] sm:$0xff]  ;;  %v1594_v62 = vld [vmem:[%s16295_s2 + $0x11d0] sm:$0xff] }
 0x41a   : > { %9434 = vmatprep.subr.bf16.mxu0 %v13726_v38  ;;  %10338 = vmatprep.subr.bf16.mxu1 %v13728_v6  ;;  %v13750_v13 = vcombine.high %v1586_v22, %v1590_v45  ;;  %v13752_v36 = vcombine.high %v1587_v25, %v1591_v5  ;;  %v1598_v50 = vld [vmem:[%s16295_s2 + $0x11f0] sm:$0xff]  ;;  %v1595_v58 = vld [vmem:[%s16295_s2 + $0x11d8] sm:$0xff]  ;;  %v13749_v59 = vcombine.low %v1586_v22, %v1590_v45  ;;  %v19617_v19 = vld [vmem:[#allocation33_spill] sm:$0xff] }
 0x41b   : > { %v8063_v63 = vpop.f32.mrb[28].mxu0  ;;  %9367 = vmatprep.mubr.bf16.mxu0 %v19614_v16  ;;  %v8967_v27 = vpop.f32.mrb[28].mxu1  ;;  %10271 = vmatprep.mubr.bf16.mxu1 %v19614_v16  ;;  %v1599_v38 = vld [vmem:[%s16295_s2 + $0x11f8] sm:$0xff]  ;;  %v13751_v2 = vcombine.low %v1587_v25, %v1591_v5  ;;  %v13758_v7 = vcombine.high %v1594_v62, %v1598_v50  ;;  %v1602_v57 = vld [vmem:[%s16295_s2 + $0x1210] sm:$0xff]  ;;  %v13757_v8 = vcombine.low %v1594_v62, %v1598_v50 }
 0x41c   : > { %v10896_v33 = vadd.f32 %v8063_v63, %v624_v4  ;;  %v8065_v42 = vpop.f32.mrb[29].mxu0  ;;  %v10898_v37 = vadd.f32 %v8967_v27, %v626_v15  ;;  %v8969_v17 = vpop.f32.mrb[29].mxu1  ;;  %v13760_v6 = vcombine.high %v1595_v58, %v1599_v38  ;;  %v1606_v3 = vld [vmem:[%s16295_s2 + $0x1230] sm:$0xff]  ;;  %v1603_v20 = vld [vmem:[%s16295_s2 + $0x1218] sm:$0xff]  ;;  %v13759_v4 = vcombine.low %v1595_v58, %v1599_v38 }
 0x41d   : > { %v10897_v32 = vadd.f32 %v8065_v42, %v625_v30  ;;  %v8067_v47 = vpop.f32.mrb[30].mxu0  ;;  %9435 = vmatpush1.bf16.msra.mxu0 %v13725_v18  ;;  %v10899_v1 = vadd.f32 %v8969_v17, %v627_v35  ;;  %v8971_v26 = vpop.f32.mrb[30].mxu1  ;;  %10339 = vmatpush1.bf16.msra.mxu1 %v13727_v9  ;;  %v1607_v11 = vld [vmem:[%s16295_s2 + $0x1238] sm:$0xff]  ;;  %v13766_v15 = vcombine.high %v1602_v57, %v1606_v3  ;;  %v19618_v18 = vld [vmem:[#allocation34_spill] sm:$0xff] }
 0x41e   : > { %11024 = vst [vmem:[#allocation2 + $0x380] sm:$0xff] %v10896_v33  ;;  %v10904_v44 = vadd.f32 %v8067_v47, %v632_v46  ;;  %v8069_v24 = vpop.f32.mrb[31].mxu0  ;;  %9436 = vmatprep.subr.bf16.mxu0 %v13734_v31  ;;  %11026 = vst [vmem:[#allocation2 + $0x390] sm:$0xff] %v10898_v37  ;;  %v10906_v40 = vadd.f32 %v8971_v26, %v634_v14  ;;  %v8973_v52 = vpop.f32.mrb[31].mxu1  ;;  %10340 = vmatprep.subr.bf16.mxu1 %v13736_v23  ;;  %v1610_v35 = vld [vmem:[%s16295_s2 + $0x1250] sm:$0xff]  ;;  %v1611_v46 = vld [vmem:[%s16295_s2 + $0x1258] sm:$0xff] }
 0x41f   : > { %11025 = vst [vmem:[#allocation2 + $0x388] sm:$0xff] %v10897_v32  ;;  %v10905_v48 = vadd.f32 %v8069_v24, %v633_v51  ;;  %11027 = vst [vmem:[#allocation2 + $0x398] sm:$0xff] %v10899_v1  ;;  %v10907_v54 = vadd.f32 %v8973_v52, %v635_v34  ;;  %v13768_v30 = vcombine.high %v1603_v20, %v1607_v11  ;;  %v1614_v9 = vld [vmem:[%s16295_s2 + $0x1270] sm:$0xff]  ;;  %v1615_v31 = vld [vmem:[%s16295_s2 + $0x1278] sm:$0xff] }
 0x420   : > { %11032 = vst [vmem:[#allocation2 + $0x3c0] sm:$0xff] %v10904_v44  ;;  %9368 = vmatmul.mubr.bf16.gmra.mrb[40].mxu0 %v19615_v39  ;;  %11034 = vst [vmem:[#allocation2 + $0x3d0] sm:$0xff] %v10906_v40  ;;  %10272 = vmatmul.mubr.bf16.gmra.mrb[40].mxu1 %v19615_v39  ;;  %v13765_v63 = vcombine.low %v1602_v57, %v1606_v3  ;;  %v13767_v14 = vcombine.low %v1603_v20, %v1607_v11  ;;  %v1618_v29 = vld [vmem:[%s16295_s2 + $0x1290] sm:$0xff]  ;;  %v1619_v27 = vld [vmem:[%s16295_s2 + $0x1298] sm:$0xff] }
 0x421   : > { %11033 = vst [vmem:[#allocation2 + $0x3c8] sm:$0xff] %v10905_v48  ;;  %9437 = vmatpush1.bf16.msra.mxu0 %v13733_v61  ;;  %11035 = vst [vmem:[#allocation2 + $0x3d8] sm:$0xff] %v10907_v54  ;;  %10341 = vmatpush1.bf16.msra.mxu1 %v13735_v28  ;;  %v13774_v16 = vcombine.high %v1610_v35, %v1614_v9  ;;  %v13776_v23 = vcombine.high %v1611_v46, %v1615_v31  ;;  %v1622_v49 = vld [vmem:[%s16295_s2 + $0x12b0] sm:$0xff]  ;;  %v1623_v42 = vld [vmem:[%s16295_s2 + $0x12b8] sm:$0xff] }
 0x422   : > { %9438 = vmatprep.subr.bf16.mxu0 %v13742_v10  ;;  %10342 = vmatprep.subr.bf16.mxu1 %v13744_v41  ;;  %v19619_v33 = vld [vmem:[#allocation35_spill] sm:$0xff]  ;;  %v13773_v51 = vcombine.low %v1610_v35, %v1614_v9  ;;  %v13775_v43 = vcombine.low %v1611_v46, %v1615_v31  ;;  %v13782_v21 = vcombine.high %v1618_v29, %v1622_v49  ;;  %v19620_v37 = vld [vmem:[#allocation36_spill] sm:$0xff]  ;;  %v19621_v40 = vld [vmem:[#allocation37_spill] sm:$0xff] }
 0x423   : > { %9377 = vmatprep.mubr.bf16.mxu0 %v19616_v0  ;;  %10281 = vmatprep.mubr.bf16.mxu1 %v19616_v0  ;;  %v13784_v32 = vcombine.high %v1619_v27, %v1623_v42  ;;  %v1626_v17 = vld [vmem:[%s16295_s2 + $0x12d0] sm:$0xff]  ;;  %v1627_v34 = vld [vmem:[%s16295_s2 + $0x12d8] sm:$0xff]  ;;  %v13781_v28 = vcombine.low %v1618_v29, %v1622_v49  ;;  %v13783_v1 = vcombine.low %v1619_v27, %v1623_v42  ;;  %v19625_v31 = vld [vmem:[#allocation41_spill] sm:$0xff] }
 0x424   : > { %v1630_v47 = vld [vmem:[%s16295_s2 + $0x12f0] sm:$0xff]  ;;  %v1631_v61 = vld [vmem:[%s16295_s2 + $0x12f8] sm:$0xff] }
 0x425   : > { %9439 = vmatpush1.bf16.msra.mxu0 %v13741_v53  ;;  %10343 = vmatpush1.bf16.msra.mxu1 %v13743_v60  ;;  %v13790_v44 = vcombine.high %v1626_v17, %v1630_v47  ;;  %v13792_v26 = vcombine.high %v1627_v34, %v1631_v61  ;;  %v1634_v24 = vld [vmem:[%s16295_s2 + $0x1310] sm:$0xff]  ;;  %v1635_v48 = vld [vmem:[%s16295_s2 + $0x1318] sm:$0xff]  ;;  %v13789_v41 = vcombine.low %v1626_v17, %v1630_v47 }
 0x426   : > { %9440 = vmatprep.subr.bf16.mxu0 %v13750_v13  ;;  %10344 = vmatprep.subr.bf16.mxu1 %v13752_v36  ;;  %v1638_v10 = vld [vmem:[%s16295_s2 + $0x1330] sm:$0xff]  ;;  %v1639_v52 = vld [vmem:[%s16295_s2 + $0x1338] sm:$0xff]  ;;  %v13791_v22 = vcombine.low %v1627_v34, %v1631_v61 }
 0x427   : > { %v13798_v45 = vcombine.high %v1634_v24, %v1638_v10  ;;  %v19622_v54 = vld [vmem:[#allocation38_spill] sm:$0xff]  ;;  %v13800_v39 = vcombine.high %v1635_v48, %v1639_v52  ;;  %v1643_v53 = vld [vmem:[%s16295_s2 + $0x1358] sm:$0xff]  ;;  %v13797_v13 = vcombine.low %v1634_v24, %v1638_v10  ;;  %v13799_v0 = vcombine.low %v1635_v48, %v1639_v52 }
 0x428   : > { %9378 = vmatmul.mubr.bf16.gmra.mrb[44].mxu0 %v19617_v19  ;;  %10282 = vmatmul.mubr.bf16.gmra.mrb[44].mxu1 %v19617_v19  ;;  %v1642_v25 = vld [vmem:[%s16295_s2 + $0x1350] sm:$0xff]  ;;  %v1647_v60 = vld [vmem:[%s16295_s2 + $0x1378] sm:$0xff] }
 0x429   : > { %9441 = vmatpush1.bf16.msra.mxu0 %v13749_v59  ;;  %10345 = vmatpush1.bf16.msra.mxu1 %v13751_v2  ;;  %v1646_v5 = vld [vmem:[%s16295_s2 + $0x1370] sm:$0xff]  ;;  %v13808_v62 = vcombine.high %v1643_v53, %v1647_v60  ;;  %v1651_v59 = vld [vmem:[%s16295_s2 + $0x1398] sm:$0xff] }
 0x42a   : > { %9442 = vmatprep.subr.bf16.mxu0 %v13758_v7  ;;  %10346 = vmatprep.subr.bf16.mxu1 %v13760_v6  ;;  %v13806_v36 = vcombine.high %v1642_v25, %v1646_v5  ;;  %v1650_v50 = vld [vmem:[%s16295_s2 + $0x1390] sm:$0xff]  ;;  %v1655_v2 = vld [vmem:[%s16295_s2 + $0x13b8] sm:$0xff]  ;;  %v13805_v7 = vcombine.low %v1642_v25, %v1646_v5  ;;  %v13807_v6 = vcombine.low %v1643_v53, %v1647_v60  ;;  %v19629_v60 = vld [vmem:[#allocation45_spill] sm:$0xff] }
 0x42b   : > { %9387 = vmatprep.mubr.bf16.mxu0 %v19618_v18  ;;  %10291 = vmatprep.mubr.bf16.mxu1 %v19618_v18  ;;  %v1654_v58 = vld [vmem:[%s16295_s2 + $0x13b0] sm:$0xff]  ;;  %v19624_v3 = vld [vmem:[#allocation40_spill] sm:$0xff]  ;;  %v13816_v19 = vcombine.high %v1651_v59, %v1655_v2  ;;  %v13815_v18 = vcombine.low %v1651_v59, %v1655_v2 }
 0x42c   : > { %v19623_v38 = vld [vmem:[#allocation39_spill] sm:$0xff]  ;;  %v13814_v57 = vcombine.high %v1650_v50, %v1654_v58  ;;  %v19626_v49 = vld [vmem:[#allocation42_spill] sm:$0xff]  ;;  %v19628_v10 = vld [vmem:[#allocation44_spill] sm:$0xff] }
 0x42d   : > { %9443 = vmatpush1.bf16.msra.mxu0 %v13757_v8  ;;  %10347 = vmatpush1.bf16.msra.mxu1 %v13759_v4  ;;  %v1658_v20 = vld [vmem:[%s16295_s2 + $0x13d0] sm:$0xff]  ;;  %v1659_v8 = vld [vmem:[%s16295_s2 + $0x13d8] sm:$0xff] }
 0x42e   : > { %9444 = vmatprep.subr.bf16.mxu0 %v13766_v15  ;;  %10348 = vmatprep.subr.bf16.mxu1 %v13768_v30  ;;  %v1662_v11 = vld [vmem:[%s16295_s2 + $0x13f0] sm:$0xff]  ;;  %v1663_v4 = vld [vmem:[%s16295_s2 + $0x13f8] sm:$0xff]  ;;  %v13813_v15 = vcombine.low %v1650_v50, %v1654_v58 }
 0x42f   : > { %v13822_v30 = vcombine.high %v1658_v20, %v1662_v11  ;;  %v13824_v35 = vcombine.high %v1659_v8, %v1663_v4  ;;  %v1666_v9 = vld [vmem:[%s16295_s2 + $0x1410] sm:$0xff] }
 0x430   : > { %9388 = vmatmul.mubr.bf16.gmra.mrb[48].mxu0 %v19619_v33  ;;  %10292 = vmatmul.mubr.bf16.gmra.mrb[48].mxu1 %v19619_v33  ;;  %v1670_v46 = vld [vmem:[%s16295_s2 + $0x1430] sm:$0xff] }
 0x431   : > { %9445 = vmatpush1.bf16.msra.mxu0 %v13765_v63  ;;  %10349 = vmatpush1.bf16.msra.mxu1 %v13767_v14  ;;  %v1667_v63 = vld [vmem:[%s16295_s2 + $0x1418] sm:$0xff]  ;;  %v13830_v29 = vcombine.high %v1666_v9, %v1670_v46  ;;  %v1674_v27 = vld [vmem:[%s16295_s2 + $0x1450] sm:$0xff] }
 0x432   : > { %9446 = vmatprep.subr.bf16.mxu0 %v13774_v16  ;;  %10350 = vmatprep.subr.bf16.mxu1 %v13776_v23  ;;  %v1671_v14 = vld [vmem:[%s16295_s2 + $0x1438] sm:$0xff]  ;;  %v13821_v16 = vcombine.low %v1658_v20, %v1662_v11  ;;  %v13823_v23 = vcombine.low %v1659_v8, %v1663_v4  ;;  %v1678_v42 = vld [vmem:[%s16295_s2 + $0x1470] sm:$0xff] }
 0x433   : > { %9397 = vmatprep.mubr.bf16.mxu0 %v19620_v37  ;;  %10301 = vmatprep.mubr.bf16.mxu1 %v19620_v37  ;;  %v13832_v33 = vcombine.high %v1667_v63, %v1671_v14  ;;  %v13831_v37 = vcombine.low %v1667_v63, %v1671_v14  ;;  %v1682_v47 = vld [vmem:[%s16295_s2 + $0x1490] sm:$0xff] }
 0x434   : > { %v1686_v34 = vld [vmem:[%s16295_s2 + $0x14b0] sm:$0xff] }
 0x435   : > { %9447 = vmatpush1.bf16.msra.mxu0 %v13773_v51  ;;  %10351 = vmatpush1.bf16.msra.mxu1 %v13775_v43  ;;  %v1675_v51 = vld [vmem:[%s16295_s2 + $0x1458] sm:$0xff]  ;;  %v13846_v24 = vcombine.high %v1682_v47, %v1686_v34  ;;  %v1690_v48 = vld [vmem:[%s16295_s2 + $0x14d0] sm:$0xff] }
 0x436   : > { %9448 = vmatprep.subr.bf16.mxu0 %v13782_v21  ;;  %10352 = vmatprep.subr.bf16.mxu1 %v13784_v32  ;;  %v1679_v43 = vld [vmem:[%s16295_s2 + $0x1478] sm:$0xff]  ;;  %v13829_v21 = vcombine.low %v1666_v9, %v1670_v46  ;;  %v13838_v32 = vcombine.high %v1674_v27, %v1678_v42  ;;  %v1694_v52 = vld [vmem:[%s16295_s2 + $0x14f0] sm:$0xff] }
 0x437   : > { %v13840_v17 = vcombine.high %v1675_v51, %v1679_v43  ;;  %v19627_v61 = vld [vmem:[#allocation43_spill] sm:$0xff]  ;;  %v19630_v58 = vld [vmem:[#allocation46_spill] sm:$0xff]  ;;  %v19632_v46 = vld [vmem:[#allocation48_spill] sm:$0xff] }
 0x438   : > { %9398 = vmatmul.mubr.bf16.gmra.mrb[52].mxu0 %v19621_v40  ;;  %10302 = vmatmul.mubr.bf16.gmra.mrb[52].mxu1 %v19621_v40  ;;  %v1698_v5 = vld [vmem:[%s16295_s2 + $0x1510] sm:$0xff] }
 0x439   : > { %9449 = vmatpush1.bf16.msra.mxu0 %v13781_v28  ;;  %10353 = vmatpush1.bf16.msra.mxu1 %v13783_v1  ;;  %v1683_v28 = vld [vmem:[%s16295_s2 + $0x1498] sm:$0xff]  ;;  %v1702_v53 = vld [vmem:[%s16295_s2 + $0x1530] sm:$0xff] }
 0x43a   : > { %9450 = vmatprep.subr.bf16.mxu0 %v13790_v44  ;;  %10354 = vmatprep.subr.bf16.mxu1 %v13792_v26  ;;  %v1687_v1 = vld [vmem:[%s16295_s2 + $0x14b8] sm:$0xff]  ;;  %v13837_v44 = vcombine.low %v1674_v27, %v1678_v42  ;;  %v13839_v26 = vcombine.low %v1675_v51, %v1679_v43  ;;  %v13862_v50 = vcombine.high %v1698_v5, %v1702_v53  ;;  %v1706_v59 = vld [vmem:[%s16295_s2 + $0x1550] sm:$0xff]  ;;  %v19633_v43 = vld [vmem:[#allocation49_spill] sm:$0xff] }
 0x43b   : > { %9407 = vmatprep.mubr.bf16.mxu0 %v19622_v54  ;;  %10311 = vmatprep.mubr.bf16.mxu1 %v19622_v54  ;;  %v13848_v40 = vcombine.high %v1683_v28, %v1687_v1  ;;  %v13847_v54 = vcombine.low %v1683_v28, %v1687_v1  ;;  %v1710_v2 = vld [vmem:[%s16295_s2 + $0x1570] sm:$0xff] }
 0x43c   : > { %v1714_v11 = vld [vmem:[%s16295_s2 + $0x1590] sm:$0xff] }
 0x43d   : > { %9451 = vmatpush1.bf16.msra.mxu0 %v13789_v41  ;;  %10355 = vmatpush1.bf16.msra.mxu1 %v13791_v22  ;;  %v1691_v41 = vld [vmem:[%s16295_s2 + $0x14d8] sm:$0xff]  ;;  %v1718_v8 = vld [vmem:[%s16295_s2 + $0x15b0] sm:$0xff] }
 0x43e   : > { %9452 = vmatprep.subr.bf16.mxu0 %v13798_v45  ;;  %10356 = vmatprep.subr.bf16.mxu1 %v13800_v39  ;;  %v1695_v22 = vld [vmem:[%s16295_s2 + $0x14f8] sm:$0xff]  ;;  %v13845_v45 = vcombine.low %v1682_v47, %v1686_v34  ;;  %v13854_v39 = vcombine.high %v1690_v48, %v1694_v52  ;;  %v13878_v9 = vcombine.high %v1714_v11, %v1718_v8  ;;  %v1722_v63 = vld [vmem:[%s16295_s2 + $0x15d0] sm:$0xff] }
 0x43f   : > { %v13856_v25 = vcombine.high %v1691_v41, %v1695_v22  ;;  %v19631_v4 = vld [vmem:[#allocation47_spill] sm:$0xff]  ;;  %v19634_v34 = vld [vmem:[#allocation50_spill] sm:$0xff] }
 0x440   : > { %9408 = vmatmul.mubr.bf16.gmra.mrb[56].mxu0 %v19623_v38  ;;  %10312 = vmatmul.mubr.bf16.gmra.mrb[56].mxu1 %v19623_v38  ;;  %v1726_v14 = vld [vmem:[%s16295_s2 + $0x15f0] sm:$0xff] }
 0x441   : > { %9453 = vmatpush1.bf16.msra.mxu0 %v13797_v13  ;;  %10357 = vmatpush1.bf16.msra.mxu1 %v13799_v0  ;;  %v1699_v13 = vld [vmem:[%s16295_s2 + $0x1518] sm:$0xff]  ;;  %v1730_v42 = vld [vmem:[%s16295_s2 + $0x1610] sm:$0xff] }
 0x442   : > { %9454 = vmatprep.subr.bf16.mxu0 %v13806_v36  ;;  %10358 = vmatprep.subr.bf16.mxu1 %v13808_v62  ;;  %v1703_v0 = vld [vmem:[%s16295_s2 + $0x1538] sm:$0xff]  ;;  %v13853_v36 = vcombine.low %v1690_v48, %v1694_v52  ;;  %v13855_v62 = vcombine.low %v1691_v41, %v1695_v22  ;;  %v1734_v51 = vld [vmem:[%s16295_s2 + $0x1630] sm:$0xff] }
 0x443   : > { %9417 = vmatprep.mubr.bf16.mxu0 %v19624_v3  ;;  %10321 = vmatprep.mubr.bf16.mxu1 %v19624_v3  ;;  %v13864_v38 = vcombine.high %v1699_v13, %v1703_v0  ;;  %v13863_v3 = vcombine.low %v1699_v13, %v1703_v0  ;;  %v13894_v47 = vcombine.high %v1730_v42, %v1734_v51  ;;  %v1738_v28 = vld [vmem:[%s16295_s2 + $0x1650] sm:$0xff] }
 0x444   : > { %v1742_v1 = vld [vmem:[%s16295_s2 + $0x1670] sm:$0xff] }
 0x445   : > { %9455 = vmatpush1.bf16.msra.mxu0 %v13805_v7  ;;  %10359 = vmatpush1.bf16.msra.mxu1 %v13807_v6  ;;  %v1707_v7 = vld [vmem:[%s16295_s2 + $0x1558] sm:$0xff]  ;;  %v1746_v52 = vld [vmem:[%s16295_s2 + $0x1690] sm:$0xff] }
 0x446   : > { %9456 = vmatprep.subr.bf16.mxu0 %v13814_v57  ;;  %10360 = vmatprep.subr.bf16.mxu1 %v13816_v19  ;;  %v1711_v6 = vld [vmem:[%s16295_s2 + $0x1578] sm:$0xff]  ;;  %v13861_v57 = vcombine.low %v1698_v5, %v1702_v53  ;;  %v13870_v19 = vcombine.high %v1706_v59, %v1710_v2  ;;  %v1750_v41 = vld [vmem:[%s16295_s2 + $0x16b0] sm:$0xff] }
 0x447   : > { %v13872_v20 = vcombine.high %v1707_v7, %v1711_v6  ;;  %v19635_v22 = vld [vmem:[#allocation51_spill] sm:$0xff]  ;;  %v13910_v5 = vcombine.high %v1746_v52, %v1750_v41  ;;  %v19636_v53 = vld [vmem:[#allocation52_spill] sm:$0xff] }
 0x448   : > { %9418 = vmatmul.mubr.bf16.gmra.mrb[60].mxu0 %v19625_v31  ;;  %10322 = vmatmul.mubr.bf16.gmra.mrb[60].mxu1 %v19625_v31  ;;  %v1754_v13 = vld [vmem:[%s16295_s2 + $0x16d0] sm:$0xff] }
 0x449   : > { %9457 = vmatpush1.bf16.msra.mxu0 %v13813_v15  ;;  %10361 = vmatpush1.bf16.msra.mxu1 %v13815_v18  ;;  %v1715_v15 = vld [vmem:[%s16295_s2 + $0x1598] sm:$0xff]  ;;  %v1758_v0 = vld [vmem:[%s16295_s2 + $0x16f0] sm:$0xff] }
 0x44a   : > { %9458 = vmatprep.subr.bf16.mxu0 %v13822_v30  ;;  %10362 = vmatprep.subr.bf16.mxu1 %v13824_v35  ;;  %v1719_v18 = vld [vmem:[%s16295_s2 + $0x15b8] sm:$0xff]  ;;  %v13869_v30 = vcombine.low %v1706_v59, %v1710_v2  ;;  %v13871_v35 = vcombine.low %v1707_v7, %v1711_v6  ;;  %v1762_v2 = vld [vmem:[%s16295_s2 + $0x1710] sm:$0xff]  ;;  %v19637_v6 = vld [vmem:[#allocation53_spill] sm:$0xff] }
 0x44b   : > { %9460 = vmatprep.mubr.bf16.mxu0 %v19626_v49  ;;  %10364 = vmatprep.mubr.bf16.mxu1 %v19626_v49  ;;  %v13880_v31 = vcombine.high %v1715_v15, %v1719_v18  ;;  %v13879_v49 = vcombine.low %v1715_v15, %v1719_v18  ;;  %v1766_v7 = vld [vmem:[%s16295_s2 + $0x1730] sm:$0xff] }
 0x44c   : > { %v1770_v15 = vld [vmem:[%s16295_s2 + $0x1750] sm:$0xff] }
 0x44d   : > { %9459 = vmatpush1.bf16.msra.mxu0 %v13821_v16  ;;  %10363 = vmatpush1.bf16.msra.mxu1 %v13823_v23  ;;  %v1723_v16 = vld [vmem:[%s16295_s2 + $0x15d8] sm:$0xff]  ;;  %v1774_v18 = vld [vmem:[%s16295_s2 + $0x1770] sm:$0xff] }
 0x44e   : > { %9541 = vmatprep.subr.bf16.mxu0 %v13830_v29  ;;  %10445 = vmatprep.subr.bf16.mxu1 %v13832_v33  ;;  %v1727_v23 = vld [vmem:[%s16295_s2 + $0x15f8] sm:$0xff]  ;;  %v13877_v29 = vcombine.low %v1714_v11, %v1718_v8  ;;  %v13886_v33 = vcombine.high %v1722_v63, %v1726_v14  ;;  %v13926_v11 = vcombine.high %v1762_v2, %v1766_v7  ;;  %v19638_v8 = vld [vmem:[#allocation54_spill] sm:$0xff] }
 0x44f   : > { %v13888_v27 = vcombine.high %v1723_v16, %v1727_v23 }
 0x450   : > { %9461 = vmatmul.mubr.bf16.vlgmr.msra.gmra.mrb[32].mxu0 %v19627_v61  ;;  %10365 = vmatmul.mubr.bf16.vlgmr.msra.gmra.mrb[32].mxu1 %v19627_v61 }
 0x451   : > { %9542 = vmatpush1.bf16.msra.mxu0 %v13829_v21  ;;  %10446 = vmatpush1.bf16.msra.mxu1 %v13831_v37  ;;  %v1731_v21 = vld [vmem:[%s16295_s2 + $0x1618] sm:$0xff] }
 0x452   : > { %9543 = vmatprep.subr.bf16.mxu0 %v13838_v32  ;;  %10447 = vmatprep.subr.bf16.mxu1 %v13840_v17  ;;  %v1735_v37 = vld [vmem:[%s16295_s2 + $0x1638] sm:$0xff]  ;;  %v13885_v32 = vcombine.low %v1722_v63, %v1726_v14  ;;  %v13887_v17 = vcombine.low %v1723_v16, %v1727_v23  ;;  %v1778_v14 = vld [vmem:[%s16295_s2 + $0x1790] sm:$0xff] }
 0x453   : > { %9470 = vmatprep.mubr.bf16.mxu0 %v19628_v10  ;;  %10374 = vmatprep.mubr.bf16.mxu1 %v19628_v10  ;;  %v13896_v61 = vcombine.high %v1731_v21, %v1735_v37  ;;  %v13895_v10 = vcombine.low %v1731_v21, %v1735_v37  ;;  %v1782_v16 = vld [vmem:[%s16295_s2 + $0x17b0] sm:$0xff] }
 0x454   : > { %v19639_v23 = vld [vmem:[#allocation55_spill] sm:$0xff] }
 0x455   : > { %9544 = vmatpush1.bf16.msra.mxu0 %v13837_v44  ;;  %10448 = vmatpush1.bf16.msra.mxu1 %v13839_v26  ;;  %v1739_v44 = vld [vmem:[%s16295_s2 + $0x1658] sm:$0xff]  ;;  %v1786_v21 = vld [vmem:[%s16295_s2 + $0x17d0] sm:$0xff] }
 0x456   : > { %9545 = vmatprep.subr.bf16.mxu0 %v13846_v24  ;;  %10449 = vmatprep.subr.bf16.mxu1 %v13848_v40  ;;  %v1743_v26 = vld [vmem:[%s16295_s2 + $0x1678] sm:$0xff]  ;;  %v13893_v24 = vcombine.low %v1730_v42, %v1734_v51  ;;  %v13902_v40 = vcombine.high %v1738_v28, %v1742_v1  ;;  %v13942_v42 = vcombine.high %v1778_v14, %v1782_v16  ;;  %v1790_v37 = vld [vmem:[%s16295_s2 + $0x17f0] sm:$0xff] }
 0x457   : > { %v13904_v48 = vcombine.high %v1739_v44, %v1743_v26  ;;  %v19640_v51 = vld [vmem:[#allocation56_spill] sm:$0xff] }
 0x458   : > { %9471 = vmatmul.mubr.bf16.gmra.mrb[36].mxu0 %v19629_v60  ;;  %10375 = vmatmul.mubr.bf16.gmra.mrb[36].mxu1 %v19629_v60 }
 0x459   : > { %9546 = vmatpush1.bf16.msra.mxu0 %v13845_v45  ;;  %10450 = vmatpush1.bf16.msra.mxu1 %v13847_v54  ;;  %v1747_v45 = vld [vmem:[%s16295_s2 + $0x1698] sm:$0xff] }
 0x45a   : > { %9547 = vmatprep.subr.bf16.mxu0 %v13854_v39  ;;  %10451 = vmatprep.subr.bf16.mxu1 %v13856_v25  ;;  %v1751_v54 = vld [vmem:[%s16295_s2 + $0x16b8] sm:$0xff]  ;;  %v13901_v39 = vcombine.low %v1738_v28, %v1742_v1  ;;  %v13903_v25 = vcombine.low %v1739_v44, %v1743_v26  ;;  %v1794_v1 = vld [vmem:[%s16295_s2 + $0x1810] sm:$0xff]  ;;  %v19641_v26 = vld [vmem:[#allocation57_spill] sm:$0xff] }
 0x45b   : > { %9480 = vmatprep.mubr.bf16.mxu0 %v19630_v58  ;;  %10384 = vmatprep.mubr.bf16.mxu1 %v19630_v58  ;;  %v13912_v60 = vcombine.high %v1747_v45, %v1751_v54  ;;  %v13911_v58 = vcombine.low %v1747_v45, %v1751_v54  ;;  %v1798_v44 = vld [vmem:[%s16295_s2 + $0x1830] sm:$0xff] }
 0x45c   : > { %v1802_v45 = vld [vmem:[%s16295_s2 + $0x1850] sm:$0xff] }
 0x45d   : > { %9548 = vmatpush1.bf16.msra.mxu0 %v13853_v36  ;;  %10452 = vmatpush1.bf16.msra.mxu1 %v13855_v62  ;;  %v1755_v36 = vld [vmem:[%s16295_s2 + $0x16d8] sm:$0xff]  ;;  %v1806_v54 = vld [vmem:[%s16295_s2 + $0x1870] sm:$0xff] }
 0x45e   : > { %9549 = vmatprep.subr.bf16.mxu0 %v13862_v50  ;;  %10453 = vmatprep.subr.bf16.mxu1 %v13864_v38  ;;  %v1759_v62 = vld [vmem:[%s16295_s2 + $0x16f8] sm:$0xff]  ;;  %v13909_v50 = vcombine.low %v1746_v52, %v1750_v41  ;;  %v13918_v38 = vcombine.high %v1754_v13, %v1758_v0  ;;  %v13958_v52 = vcombine.high %v1794_v1, %v1798_v44  ;;  %v19642_v41 = vld [vmem:[#allocation58_spill] sm:$0xff] }
 0x45f   : > { %v13920_v59 = vcombine.high %v1755_v36, %v1759_v62 }
 0x460   : > { %9481 = vmatmul.mubr.bf16.gmra.mrb[40].mxu0 %v19631_v4  ;;  %10385 = vmatmul.mubr.bf16.gmra.mrb[40].mxu1 %v19631_v4 }
 0x461   : > { %9550 = vmatpush1.bf16.msra.mxu0 %v13861_v57  ;;  %10454 = vmatpush1.bf16.msra.mxu1 %v13863_v3  ;;  %v1763_v57 = vld [vmem:[%s16295_s2 + $0x1718] sm:$0xff] }
 0x462   : > { %9551 = vmatprep.subr.bf16.mxu0 %v13870_v19  ;;  %10455 = vmatprep.subr.bf16.mxu1 %v13872_v20  ;;  %v1767_v3 = vld [vmem:[%s16295_s2 + $0x1738] sm:$0xff]  ;;  %v13917_v19 = vcombine.low %v1754_v13, %v1758_v0  ;;  %v13919_v20 = vcombine.low %v1755_v36, %v1759_v62  ;;  %v1810_v0 = vld [vmem:[%s16295_s2 + $0x1890] sm:$0xff] }
 0x463   : > { %9490 = vmatprep.mubr.bf16.mxu0 %v19632_v46  ;;  %10394 = vmatprep.mubr.bf16.mxu1 %v19632_v46  ;;  %v13928_v4 = vcombine.high %v1763_v57, %v1767_v3  ;;  %v13927_v46 = vcombine.low %v1763_v57, %v1767_v3  ;;  %v1814_v36 = vld [vmem:[%s16295_s2 + $0x18b0] sm:$0xff] }
 0x464   : > { %v19643_v62 = vld [vmem:[#allocation59_spill] sm:$0xff] }
 0x465   : > { %9552 = vmatpush1.bf16.msra.mxu0 %v13869_v30  ;;  %10456 = vmatpush1.bf16.msra.mxu1 %v13871_v35  ;;  %v1771_v30 = vld [vmem:[%s16295_s2 + $0x1758] sm:$0xff]  ;;  %v1818_v57 = vld [vmem:[%s16295_s2 + $0x18d0] sm:$0xff] }
 0x466   : > { %9553 = vmatprep.subr.bf16.mxu0 %v13878_v9  ;;  %10457 = vmatprep.subr.bf16.mxu1 %v13880_v31  ;;  %v1775_v35 = vld [vmem:[%s16295_s2 + $0x1778] sm:$0xff]  ;;  %v13925_v9 = vcombine.low %v1762_v2, %v1766_v7  ;;  %v13934_v31 = vcombine.high %v1770_v15, %v1774_v18  ;;  %v13974_v2 = vcombine.high %v1810_v0, %v1814_v36  ;;  %v1822_v3 = vld [vmem:[%s16295_s2 + $0x18f0] sm:$0xff] }
 0x467   : > { %v13936_v63 = vcombine.high %v1771_v30, %v1775_v35  ;;  %v19644_v7 = vld [vmem:[#allocation60_spill] sm:$0xff] }
 0x468   : > { %9491 = vmatmul.mubr.bf16.gmra.mrb[44].mxu0 %v19633_v43  ;;  %10395 = vmatmul.mubr.bf16.gmra.mrb[44].mxu1 %v19633_v43 }
 0x469   : > { %9554 = vmatpush1.bf16.msra.mxu0 %v13877_v29  ;;  %10458 = vmatpush1.bf16.msra.mxu1 %v13879_v49  ;;  %v1779_v29 = vld [vmem:[%s16295_s2 + $0x1798] sm:$0xff] }
 0x46a   : > { %9555 = vmatprep.subr.bf16.mxu0 %v13886_v33  ;;  %10459 = vmatprep.subr.bf16.mxu1 %v13888_v27  ;;  %v1783_v49 = vld [vmem:[%s16295_s2 + $0x17b8] sm:$0xff]  ;;  %v13933_v33 = vcombine.low %v1770_v15, %v1774_v18  ;;  %v13935_v27 = vcombine.low %v1771_v30, %v1775_v35  ;;  %v1826_v18 = vld [vmem:[%s16295_s2 + $0x1910] sm:$0xff]  ;;  %v19645_v35 = vld [vmem:[#allocation61_spill] sm:$0xff] }
 0x46b   : > { %9500 = vmatprep.mubr.bf16.mxu0 %v19634_v34  ;;  %10404 = vmatprep.mubr.bf16.mxu1 %v19634_v34  ;;  %v13944_v43 = vcombine.high %v1779_v29, %v1783_v49  ;;  %v13943_v34 = vcombine.low %v1779_v29, %v1783_v49  ;;  %v1830_v30 = vld [vmem:[%s16295_s2 + $0x1930] sm:$0xff] }
 0x46c   : > { %v1834_v29 = vld [vmem:[%s16295_s2 + $0x1950] sm:$0xff] }
 0x46d   : > { %9556 = vmatpush1.bf16.msra.mxu0 %v13885_v32  ;;  %10460 = vmatpush1.bf16.msra.mxu1 %v13887_v17  ;;  %v1787_v32 = vld [vmem:[%s16295_s2 + $0x17d8] sm:$0xff]  ;;  %v1838_v49 = vld [vmem:[%s16295_s2 + $0x1970] sm:$0xff] }
 0x46e   : > { %9557 = vmatprep.subr.bf16.mxu0 %v13894_v47  ;;  %10461 = vmatprep.subr.bf16.mxu1 %v13896_v61  ;;  %v1791_v17 = vld [vmem:[%s16295_s2 + $0x17f8] sm:$0xff]  ;;  %v13941_v47 = vcombine.low %v1778_v14, %v1782_v16  ;;  %v13950_v61 = vcombine.high %v1786_v21, %v1790_v37  ;;  %v13990_v14 = vcombine.high %v1826_v18, %v1830_v30  ;;  %v19646_v16 = vld [vmem:[#allocation62_spill] sm:$0xff] }
 0x46f   : > { %v13952_v28 = vcombine.high %v1787_v32, %v1791_v17 }
 0x470   : > { %9501 = vmatmul.mubr.bf16.gmra.mrb[48].mxu0 %v19635_v22  ;;  %10405 = vmatmul.mubr.bf16.gmra.mrb[48].mxu1 %v19635_v22 }
 0x471   : > { %9558 = vmatpush1.bf16.msra.mxu0 %v13893_v24  ;;  %10462 = vmatpush1.bf16.msra.mxu1 %v13895_v10  ;;  %v1795_v24 = vld [vmem:[%s16295_s2 + $0x1818] sm:$0xff] }
 0x472   : > { %9559 = vmatprep.subr.bf16.mxu0 %v13902_v40  ;;  %10463 = vmatprep.subr.bf16.mxu1 %v13904_v48  ;;  %v1799_v10 = vld [vmem:[%s16295_s2 + $0x1838] sm:$0xff]  ;;  %v13949_v40 = vcombine.low %v1786_v21, %v1790_v37  ;;  %v13951_v48 = vcombine.low %v1787_v32, %v1791_v17  ;;  %v1842_v37 = vld [vmem:[%s16295_s2 + $0x1990] sm:$0xff] }
 0x473   : > { %9510 = vmatprep.mubr.bf16.mxu0 %v19636_v53  ;;  %10414 = vmatprep.mubr.bf16.mxu1 %v19636_v53  ;;  %v13960_v22 = vcombine.high %v1795_v24, %v1799_v10  ;;  %v13959_v53 = vcombine.low %v1795_v24, %v1799_v10  ;;  %v1846_v32 = vld [vmem:[%s16295_s2 + $0x19b0] sm:$0xff] }
 0x474   : > { %v19647_v17 = vld [vmem:[#allocation63_spill] sm:$0xff] }
 0x475   : > { %9560 = vmatpush1.bf16.msra.mxu0 %v13901_v39  ;;  %10464 = vmatpush1.bf16.msra.mxu1 %v13903_v25  ;;  %v1803_v39 = vld [vmem:[%s16295_s2 + $0x1858] sm:$0xff]  ;;  %v1850_v24 = vld [vmem:[%s16295_s2 + $0x19d0] sm:$0xff] }
 0x476   : > { %9561 = vmatprep.subr.bf16.mxu0 %v13910_v5  ;;  %10465 = vmatprep.subr.bf16.mxu1 %v13912_v60  ;;  %v1807_v25 = vld [vmem:[%s16295_s2 + $0x1878] sm:$0xff]  ;;  %v13957_v5 = vcombine.low %v1794_v1, %v1798_v44  ;;  %v13966_v60 = vcombine.high %v1802_v45, %v1806_v54  ;;  %v14006_v1 = vcombine.high %v1842_v37, %v1846_v32  ;;  %v1854_v10 = vld [vmem:[%s16295_s2 + $0x19f0] sm:$0xff] }
 0x477   : > { %v13968_v13 = vcombine.high %v1803_v39, %v1807_v25  ;;  %v19648_v44 = vld [vmem:[#allocation64_spill] sm:$0xff] }
 0x478   : > { %9511 = vmatmul.mubr.bf16.gmra.mrb[52].mxu0 %v19637_v6  ;;  %10415 = vmatmul.mubr.bf16.gmra.mrb[52].mxu1 %v19637_v6 }
 0x479   : > { %9562 = vmatpush1.bf16.msra.mxu0 %v13909_v50  ;;  %10466 = vmatpush1.bf16.msra.mxu1 %v13911_v58  ;;  %v1811_v50 = vld [vmem:[%s16295_s2 + $0x1898] sm:$0xff] }
 0x47a   : > { %9563 = vmatprep.subr.bf16.mxu0 %v13918_v38  ;;  %10467 = vmatprep.subr.bf16.mxu1 %v13920_v59  ;;  %v1815_v58 = vld [vmem:[%s16295_s2 + $0x18b8] sm:$0xff]  ;;  %v13965_v38 = vcombine.low %v1802_v45, %v1806_v54  ;;  %v13967_v59 = vcombine.low %v1803_v39, %v1807_v25  ;;  %v1858_v54 = vld [vmem:[%s16295_s2 + $0x1a10] sm:$0xff]  ;;  %v19649_v25 = vld [vmem:[#allocation65_spill] sm:$0xff] }
 0x47b   : > { %9520 = vmatprep.mubr.bf16.mxu0 %v19638_v8  ;;  %10424 = vmatprep.mubr.bf16.mxu1 %v19638_v8  ;;  %v13976_v6 = vcombine.high %v1811_v50, %v1815_v58  ;;  %v13975_v8 = vcombine.low %v1811_v50, %v1815_v58  ;;  %v1862_v39 = vld [vmem:[%s16295_s2 + $0x1a30] sm:$0xff] }
 0x47c   : > { %v1866_v50 = vld [vmem:[%s16295_s2 + $0x1a50] sm:$0xff] }
 0x47d   : > { %9564 = vmatpush1.bf16.msra.mxu0 %v13917_v19  ;;  %10468 = vmatpush1.bf16.msra.mxu1 %v13919_v20  ;;  %v1819_v19 = vld [vmem:[%s16295_s2 + $0x18d8] sm:$0xff]  ;;  %v1870_v58 = vld [vmem:[%s16295_s2 + $0x1a70] sm:$0xff] }
 0x47e   : > { %9565 = vmatprep.subr.bf16.mxu0 %v13926_v11  ;;  %10469 = vmatprep.subr.bf16.mxu1 %v13928_v4  ;;  %v1823_v20 = vld [vmem:[%s16295_s2 + $0x18f8] sm:$0xff]  ;;  %v13973_v11 = vcombine.low %v1810_v0, %v1814_v36  ;;  %v13982_v4 = vcombine.high %v1818_v57, %v1822_v3  ;;  %v14022_v0 = vcombine.high %v1858_v54, %v1862_v39  ;;  %v19650_v36 = vld [vmem:[#allocation66_spill] sm:$0xff] }
 0x47f   : > { %v13984_v15 = vcombine.high %v1819_v19, %v1823_v20 }
 0x480   : > { %9521 = vmatmul.mubr.bf16.gmra.mrb[56].mxu0 %v19639_v23  ;;  %10425 = vmatmul.mubr.bf16.gmra.mrb[56].mxu1 %v19639_v23 }
 0x481   : > { %9566 = vmatpush1.bf16.msra.mxu0 %v13925_v9  ;;  %10470 = vmatpush1.bf16.msra.mxu1 %v13927_v46  ;;  %v1827_v9 = vld [vmem:[%s16295_s2 + $0x1918] sm:$0xff] }
 0x482   : > { %9567 = vmatprep.subr.bf16.mxu0 %v13934_v31  ;;  %10471 = vmatprep.subr.bf16.mxu1 %v13936_v63  ;;  %v1831_v46 = vld [vmem:[%s16295_s2 + $0x1938] sm:$0xff]  ;;  %v13981_v31 = vcombine.low %v1818_v57, %v1822_v3  ;;  %v13983_v63 = vcombine.low %v1819_v19, %v1823_v20  ;;  %v1874_v3 = vld [vmem:[%s16295_s2 + $0x1a90] sm:$0xff] }
 0x483   : > { %9530 = vmatprep.mubr.bf16.mxu0 %v19640_v51  ;;  %10434 = vmatprep.mubr.bf16.mxu1 %v19640_v51  ;;  %v13992_v23 = vcombine.high %v1827_v9, %v1831_v46  ;;  %v13991_v51 = vcombine.low %v1827_v9, %v1831_v46  ;;  %v1878_v19 = vld [vmem:[%s16295_s2 + $0x1ab0] sm:$0xff] }
 0x484   : > { %v19651_v20 = vld [vmem:[#allocation67_spill] sm:$0xff] }
 0x485   : > { %9568 = vmatpush1.bf16.msra.mxu0 %v13933_v33  ;;  %10472 = vmatpush1.bf16.msra.mxu1 %v13935_v27  ;;  %v1835_v33 = vld [vmem:[%s16295_s2 + $0x1958] sm:$0xff]  ;;  %v1882_v9 = vld [vmem:[%s16295_s2 + $0x1ad0] sm:$0xff] }
 0x486   : > { %9569 = vmatprep.subr.bf16.mxu0 %v13942_v42  ;;  %10473 = vmatprep.subr.bf16.mxu1 %v13944_v43  ;;  %v1839_v27 = vld [vmem:[%s16295_s2 + $0x1978] sm:$0xff]  ;;  %v13989_v42 = vcombine.low %v1826_v18, %v1830_v30  ;;  %v13998_v43 = vcombine.high %v1834_v29, %v1838_v49  ;;  %v14038_v18 = vcombine.high %v1874_v3, %v1878_v19  ;;  %v1886_v46 = vld [vmem:[%s16295_s2 + $0x1af0] sm:$0xff] }
 0x487   : > { %v14000_v21 = vcombine.high %v1835_v33, %v1839_v27  ;;  %v19652_v30 = vld [vmem:[#allocation68_spill] sm:$0xff] }
 0x488   : > { %9531 = vmatmul.mubr.bf16.gmra.mrb[60].mxu0 %v19641_v26  ;;  %10435 = vmatmul.mubr.bf16.gmra.mrb[60].mxu1 %v19641_v26 }
 0x489   : > { %9570 = vmatpush1.bf16.msra.mxu0 %v13941_v47  ;;  %10474 = vmatpush1.bf16.msra.mxu1 %v13943_v34  ;;  %v1843_v47 = vld [vmem:[%s16295_s2 + $0x1998] sm:$0xff] }
 0x48a   : > { %9571 = vmatprep.subr.bf16.mxu0 %v13950_v61  ;;  %10475 = vmatprep.subr.bf16.mxu1 %v13952_v28  ;;  %v1847_v34 = vld [vmem:[%s16295_s2 + $0x19b8] sm:$0xff]  ;;  %v13997_v61 = vcombine.low %v1834_v29, %v1838_v49  ;;  %v13999_v28 = vcombine.low %v1835_v33, %v1839_v27  ;;  %v1890_v49 = vld [vmem:[%s16295_s2 + $0x1b10] sm:$0xff]  ;;  %v19653_v27 = vld [vmem:[#allocation69_spill] sm:$0xff] }
 0x48b   : > { %9573 = vmatprep.mubr.bf16.mxu0 %v19642_v41  ;;  %10477 = vmatprep.mubr.bf16.mxu1 %v19642_v41  ;;  %v14008_v26 = vcombine.high %v1843_v47, %v1847_v34  ;;  %v14007_v41 = vcombine.low %v1843_v47, %v1847_v34  ;;  %v1894_v33 = vld [vmem:[%s16295_s2 + $0x1b30] sm:$0xff] }
 0x48c   : > { %v1898_v47 = vld [vmem:[%s16295_s2 + $0x1b50] sm:$0xff] }
 0x48d   : > { %9572 = vmatpush1.bf16.msra.mxu0 %v13949_v40  ;;  %10476 = vmatpush1.bf16.msra.mxu1 %v13951_v48  ;;  %v1851_v40 = vld [vmem:[%s16295_s2 + $0x19d8] sm:$0xff]  ;;  %v1902_v34 = vld [vmem:[%s16295_s2 + $0x1b70] sm:$0xff] }
 0x48e   : > { %9654 = vmatprep.subr.bf16.mxu0 %v13958_v52  ;;  %10558 = vmatprep.subr.bf16.mxu1 %v13960_v22  ;;  %v1855_v48 = vld [vmem:[%s16295_s2 + $0x19f8] sm:$0xff]  ;;  %v14005_v52 = vcombine.low %v1842_v37, %v1846_v32  ;;  %v14014_v22 = vcombine.high %v1850_v24, %v1854_v10  ;;  %v14054_v37 = vcombine.high %v1890_v49, %v1894_v33  ;;  %v19654_v32 = vld [vmem:[#allocation70_spill] sm:$0xff] }
 0x48f   : > { %v14016_v45 = vcombine.high %v1851_v40, %v1855_v48 }
 0x490   : > { %9574 = vmatmul.mubr.bf16.vlgmr.msra.gmra.mrb[32].mxu0 %v19643_v62  ;;  %10478 = vmatmul.mubr.bf16.vlgmr.msra.gmra.mrb[32].mxu1 %v19643_v62 }
 0x491   : > { %9655 = vmatpush1.bf16.msra.mxu0 %v13957_v5  ;;  %10559 = vmatpush1.bf16.msra.mxu1 %v13959_v53  ;;  %v1859_v5 = vld [vmem:[%s16295_s2 + $0x1a18] sm:$0xff] }
 0x492   : > { %9656 = vmatprep.subr.bf16.mxu0 %v13966_v60  ;;  %10560 = vmatprep.subr.bf16.mxu1 %v13968_v13  ;;  %v1863_v53 = vld [vmem:[%s16295_s2 + $0x1a38] sm:$0xff]  ;;  %v14013_v60 = vcombine.low %v1850_v24, %v1854_v10  ;;  %v14015_v13 = vcombine.low %v1851_v40, %v1855_v48  ;;  %v1906_v10 = vld [vmem:[%s16295_s2 + $0x1b90] sm:$0xff] }
 0x493   : > { %9583 = vmatprep.mubr.bf16.mxu0 %v19644_v7  ;;  %10487 = vmatprep.mubr.bf16.mxu1 %v19644_v7  ;;  %v14024_v62 = vcombine.high %v1859_v5, %v1863_v53  ;;  %v14023_v7 = vcombine.low %v1859_v5, %v1863_v53  ;;  %v1910_v40 = vld [vmem:[%s16295_s2 + $0x1bb0] sm:$0xff] }
 0x494   : > { %v19655_v48 = vld [vmem:[#allocation71_spill] sm:$0xff] }
 0x495   : > { %9657 = vmatpush1.bf16.msra.mxu0 %v13965_v38  ;;  %10561 = vmatpush1.bf16.msra.mxu1 %v13967_v59  ;;  %v1867_v38 = vld [vmem:[%s16295_s2 + $0x1a58] sm:$0xff]  ;;  %v1914_v5 = vld [vmem:[%s16295_s2 + $0x1bd0] sm:$0xff] }
 0x496   : > { %9658 = vmatprep.subr.bf16.mxu0 %v13974_v2  ;;  %10562 = vmatprep.subr.bf16.mxu1 %v13976_v6  ;;  %v1871_v59 = vld [vmem:[%s16295_s2 + $0x1a78] sm:$0xff]  ;;  %v14021_v2 = vcombine.low %v1858_v54, %v1862_v39  ;;  %v14030_v6 = vcombine.high %v1866_v50, %v1870_v58  ;;  %v14070_v54 = vcombine.high %v1906_v10, %v1910_v40  ;;  %v1918_v53 = vld [vmem:[%s16295_s2 + $0x1bf0] sm:$0xff] }
 0x497   : > { %v14032_v57 = vcombine.high %v1867_v38, %v1871_v59  ;;  %v19656_v39 = vld [vmem:[#allocation72_spill] sm:$0xff] }
 0x498   : > { %9584 = vmatmul.mubr.bf16.gmra.mrb[36].mxu0 %v19645_v35  ;;  %10488 = vmatmul.mubr.bf16.gmra.mrb[36].mxu1 %v19645_v35 }
 0x499   : > { %9659 = vmatpush1.bf16.msra.mxu0 %v13973_v11  ;;  %10563 = vmatpush1.bf16.msra.mxu1 %v13975_v8  ;;  %v1875_v11 = vld [vmem:[%s16295_s2 + $0x1a98] sm:$0xff] }
 0x49a   : > { %9660 = vmatprep.subr.bf16.mxu0 %v13982_v4  ;;  %10564 = vmatprep.subr.bf16.mxu1 %v13984_v15  ;;  %v1879_v8 = vld [vmem:[%s16295_s2 + $0x1ab8] sm:$0xff]  ;;  %v14029_v4 = vcombine.low %v1866_v50, %v1870_v58  ;;  %v14031_v15 = vcombine.low %v1867_v38, %v1871_v59  ;;  %v1922_v58 = vld [vmem:[%s16295_s2 + $0x1c10] sm:$0xff]  ;;  %v19657_v59 = vld [vmem:[#allocation73_spill] sm:$0xff] }
 0x49b   : > { %9593 = vmatprep.mubr.bf16.mxu0 %v19646_v16  ;;  %10497 = vmatprep.mubr.bf16.mxu1 %v19646_v16  ;;  %v14040_v35 = vcombine.high %v1875_v11, %v1879_v8  ;;  %v14039_v16 = vcombine.low %v1875_v11, %v1879_v8  ;;  %v1926_v38 = vld [vmem:[%s16295_s2 + $0x1c30] sm:$0xff] }
 0x49c   : > { %v1930_v11 = vld [vmem:[%s16295_s2 + $0x1c50] sm:$0xff] }
 0x49d   : > { %9661 = vmatpush1.bf16.msra.mxu0 %v13981_v31  ;;  %10565 = vmatpush1.bf16.msra.mxu1 %v13983_v63  ;;  %v1883_v31 = vld [vmem:[%s16295_s2 + $0x1ad8] sm:$0xff]  ;;  %v1934_v8 = vld [vmem:[%s16295_s2 + $0x1c70] sm:$0xff] }
 0x49e   : > { %9662 = vmatprep.subr.bf16.mxu0 %v13990_v14  ;;  %10566 = vmatprep.subr.bf16.mxu1 %v13992_v23  ;;  %v1887_v63 = vld [vmem:[%s16295_s2 + $0x1af8] sm:$0xff]  ;;  %v14037_v14 = vcombine.low %v1874_v3, %v1878_v19  ;;  %v14046_v23 = vcombine.high %v1882_v9, %v1886_v46  ;;  %v14086_v3 = vcombine.high %v1922_v58, %v1926_v38  ;;  %v19658_v19 = vld [vmem:[#allocation74_spill] sm:$0xff] }
 0x49f   : > { %v14048_v29 = vcombine.high %v1883_v31, %v1887_v63 }
 0x4a0   : > { %9594 = vmatmul.mubr.bf16.gmra.mrb[40].mxu0 %v19647_v17  ;;  %10498 = vmatmul.mubr.bf16.gmra.mrb[40].mxu1 %v19647_v17 }
 0x4a1   : > { %9663 = vmatpush1.bf16.msra.mxu0 %v13989_v42  ;;  %10567 = vmatpush1.bf16.msra.mxu1 %v13991_v51  ;;  %v1891_v42 = vld [vmem:[%s16295_s2 + $0x1b18] sm:$0xff] }
 0x4a2   : > { %9664 = vmatprep.subr.bf16.mxu0 %v13998_v43  ;;  %10568 = vmatprep.subr.bf16.mxu1 %v14000_v21  ;;  %v1895_v51 = vld [vmem:[%s16295_s2 + $0x1b38] sm:$0xff]  ;;  %v14045_v43 = vcombine.low %v1882_v9, %v1886_v46  ;;  %v14047_v21 = vcombine.low %v1883_v31, %v1887_v63  ;;  %v1938_v46 = vld [vmem:[%s16295_s2 + $0x1c90] sm:$0xff] }
 0x4a3   : > { %9603 = vmatprep.mubr.bf16.mxu0 %v19648_v44  ;;  %10507 = vmatprep.mubr.bf16.mxu1 %v19648_v44  ;;  %v14056_v17 = vcombine.high %v1891_v42, %v1895_v51  ;;  %v14055_v44 = vcombine.low %v1891_v42, %v1895_v51  ;;  %v1942_v31 = vld [vmem:[%s16295_s2 + $0x1cb0] sm:$0xff] }
 0x4a4   : > { %v19659_v63 = vld [vmem:[#allocation75_spill] sm:$0xff] }
 0x4a5   : > { %9665 = vmatpush1.bf16.msra.mxu0 %v13997_v61  ;;  %10569 = vmatpush1.bf16.msra.mxu1 %v13999_v28  ;;  %v1899_v61 = vld [vmem:[%s16295_s2 + $0x1b58] sm:$0xff]  ;;  %v1946_v42 = vld [vmem:[%s16295_s2 + $0x1cd0] sm:$0xff] }
 0x4a6   : > { %9666 = vmatprep.subr.bf16.mxu0 %v14006_v1  ;;  %10570 = vmatprep.subr.bf16.mxu1 %v14008_v26  ;;  %v1903_v28 = vld [vmem:[%s16295_s2 + $0x1b78] sm:$0xff]  ;;  %v14053_v1 = vcombine.low %v1890_v49, %v1894_v33  ;;  %v14062_v26 = vcombine.high %v1898_v47, %v1902_v34  ;;  %v14102_v49 = vcombine.high %v1938_v46, %v1942_v31  ;;  %v1950_v51 = vld [vmem:[%s16295_s2 + $0x1cf0] sm:$0xff] }
 0x4a7   : > { %v14064_v24 = vcombine.high %v1899_v61, %v1903_v28  ;;  %v19660_v33 = vld [vmem:[#allocation76_spill] sm:$0xff] }
 0x4a8   : > { %9604 = vmatmul.mubr.bf16.gmra.mrb[44].mxu0 %v19649_v25  ;;  %10508 = vmatmul.mubr.bf16.gmra.mrb[44].mxu1 %v19649_v25 }
 0x4a9   : > { %9667 = vmatpush1.bf16.msra.mxu0 %v14005_v52  ;;  %10571 = vmatpush1.bf16.msra.mxu1 %v14007_v41  ;;  %v1907_v52 = vld [vmem:[%s16295_s2 + $0x1b98] sm:$0xff] }
 0x4aa   : > { %9668 = vmatprep.subr.bf16.mxu0 %v14014_v22  ;;  %10572 = vmatprep.subr.bf16.mxu1 %v14016_v45  ;;  %v1911_v41 = vld [vmem:[%s16295_s2 + $0x1bb8] sm:$0xff]  ;;  %v14061_v22 = vcombine.low %v1898_v47, %v1902_v34  ;;  %v14063_v45 = vcombine.low %v1899_v61, %v1903_v28  ;;  %v1954_v34 = vld [vmem:[%s16295_s2 + $0x1d10] sm:$0xff]  ;;  %v19661_v28 = vld [vmem:[#allocation77_spill] sm:$0xff] }
 0x4ab   : > { %9613 = vmatprep.mubr.bf16.mxu0 %v19650_v36  ;;  %10517 = vmatprep.mubr.bf16.mxu1 %v19650_v36  ;;  %v14072_v25 = vcombine.high %v1907_v52, %v1911_v41  ;;  %v14071_v36 = vcombine.low %v1907_v52, %v1911_v41  ;;  %v1958_v61 = vld [vmem:[%s16295_s2 + $0x1d30] sm:$0xff] }
 0x4ac   : > { %v1962_v52 = vld [vmem:[%s16295_s2 + $0x1d50] sm:$0xff] }
 0x4ad   : > { %9669 = vmatpush1.bf16.msra.mxu0 %v14013_v60  ;;  %10573 = vmatpush1.bf16.msra.mxu1 %v14015_v13  ;;  %v1915_v60 = vld [vmem:[%s16295_s2 + $0x1bd8] sm:$0xff]  ;;  %v1966_v41 = vld [vmem:[%s16295_s2 + $0x1d70] sm:$0xff] }
 0x4ae   : > { %9670 = vmatprep.subr.bf16.mxu0 %v14022_v0  ;;  %10574 = vmatprep.subr.bf16.mxu1 %v14024_v62  ;;  %v1919_v13 = vld [vmem:[%s16295_s2 + $0x1bf8] sm:$0xff]  ;;  %v14069_v0 = vcombine.low %v1906_v10, %v1910_v40  ;;  %v14078_v62 = vcombine.high %v1914_v5, %v1918_v53  ;;  %v14118_v10 = vcombine.high %v1954_v34, %v1958_v61  ;;  %v19662_v40 = vld [vmem:[#allocation78_spill] sm:$0xff] }
 0x4af   : > { %v14080_v50 = vcombine.high %v1915_v60, %v1919_v13 }
 0x4b0   : > { %9614 = vmatmul.mubr.bf16.gmra.mrb[48].mxu0 %v19651_v20  ;;  %10518 = vmatmul.mubr.bf16.gmra.mrb[48].mxu1 %v19651_v20 }
 0x4b1   : > { %9671 = vmatpush1.bf16.msra.mxu0 %v14021_v2  ;;  %10575 = vmatpush1.bf16.msra.mxu1 %v14023_v7  ;;  %v1923_v2 = vld [vmem:[%s16295_s2 + $0x1c18] sm:$0xff] }
 0x4b2   : > { %9672 = vmatprep.subr.bf16.mxu0 %v14030_v6  ;;  %10576 = vmatprep.subr.bf16.mxu1 %v14032_v57  ;;  %v1927_v7 = vld [vmem:[%s16295_s2 + $0x1c38] sm:$0xff]  ;;  %v14077_v6 = vcombine.low %v1914_v5, %v1918_v53  ;;  %v14079_v57 = vcombine.low %v1915_v60, %v1919_v13  ;;  %v1970_v53 = vld [vmem:[%s16295_s2 + $0x1d90] sm:$0xff] }
 0x4b3   : > { %9623 = vmatprep.mubr.bf16.mxu0 %v19652_v30  ;;  %10527 = vmatprep.mubr.bf16.mxu1 %v19652_v30  ;;  %v14088_v20 = vcombine.high %v1923_v2, %v1927_v7  ;;  %v14087_v30 = vcombine.low %v1923_v2, %v1927_v7  ;;  %v1974_v60 = vld [vmem:[%s16295_s2 + $0x1db0] sm:$0xff] }
 0x4b4   : > { %v19663_v13 = vld [vmem:[#allocation79_spill] sm:$0xff] }
 0x4b5   : > { %9673 = vmatpush1.bf16.msra.mxu0 %v14029_v4  ;;  %10577 = vmatpush1.bf16.msra.mxu1 %v14031_v15  ;;  %v1931_v4 = vld [vmem:[%s16295_s2 + $0x1c58] sm:$0xff]  ;;  %v1978_v2 = vld [vmem:[%s16295_s2 + $0x1dd0] sm:$0xff] }
 0x4b6   : > { %9674 = vmatprep.subr.bf16.mxu0 %v14038_v18  ;;  %10578 = vmatprep.subr.bf16.mxu1 %v14040_v35  ;;  %v1935_v15 = vld [vmem:[%s16295_s2 + $0x1c78] sm:$0xff]  ;;  %v14085_v18 = vcombine.low %v1922_v58, %v1926_v38  ;;  %v14094_v35 = vcombine.high %v1930_v11, %v1934_v8  ;;  %v14134_v58 = vcombine.high %v1970_v53, %v1974_v60  ;;  %v1982_v7 = vld [vmem:[%s16295_s2 + $0x1df0] sm:$0xff] }
 0x4b7   : > { %v14096_v9 = vcombine.high %v1931_v4, %v1935_v15  ;;  %v19664_v38 = vld [vmem:[#allocation80_spill] sm:$0xff] }
 0x4b8   : > { %9624 = vmatmul.mubr.bf16.gmra.mrb[52].mxu0 %v19653_v27  ;;  %10528 = vmatmul.mubr.bf16.gmra.mrb[52].mxu1 %v19653_v27 }
 0x4b9   : > { %9675 = vmatpush1.bf16.msra.mxu0 %v14037_v14  ;;  %10579 = vmatpush1.bf16.msra.mxu1 %v14039_v16  ;;  %v1939_v14 = vld [vmem:[%s16295_s2 + $0x1c98] sm:$0xff] }
 0x4ba   : > { %9676 = vmatprep.subr.bf16.mxu0 %v14046_v23  ;;  %10580 = vmatprep.subr.bf16.mxu1 %v14048_v29  ;;  %v1943_v16 = vld [vmem:[%s16295_s2 + $0x1cb8] sm:$0xff]  ;;  %v14093_v23 = vcombine.low %v1930_v11, %v1934_v8  ;;  %v14095_v29 = vcombine.low %v1931_v4, %v1935_v15  ;;  %v1986_v8 = vld [vmem:[%s16295_s2 + $0x1e10] sm:$0xff]  ;;  %v19665_v15 = vld [vmem:[#allocation81_spill] sm:$0xff] }
 0x4bb   : > { %9633 = vmatprep.mubr.bf16.mxu0 %v19654_v32  ;;  %10537 = vmatprep.mubr.bf16.mxu1 %v19654_v32  ;;  %v14104_v27 = vcombine.high %v1939_v14, %v1943_v16  ;;  %v14103_v32 = vcombine.low %v1939_v14, %v1943_v16  ;;  %v1990_v4 = vld [vmem:[%s16295_s2 + $0x1e30] sm:$0xff] }
 0x4bc   : > { %v1994_v14 = vld [vmem:[%s16295_s2 + $0x1e50] sm:$0xff] }
 0x4bd   : > { %9677 = vmatpush1.bf16.msra.mxu0 %v14045_v43  ;;  %10581 = vmatpush1.bf16.msra.mxu1 %v14047_v21  ;;  %v1947_v43 = vld [vmem:[%s16295_s2 + $0x1cd8] sm:$0xff]  ;;  %v1998_v16 = vld [vmem:[%s16295_s2 + $0x1e70] sm:$0xff] }
 0x4be   : > { %9678 = vmatprep.subr.bf16.mxu0 %v14054_v37  ;;  %10582 = vmatprep.subr.bf16.mxu1 %v14056_v17  ;;  %v1951_v21 = vld [vmem:[%s16295_s2 + $0x1cf8] sm:$0xff]  ;;  %v14101_v37 = vcombine.low %v1938_v46, %v1942_v31  ;;  %v14110_v17 = vcombine.high %v1946_v42, %v1950_v51  ;;  %v14150_v46 = vcombine.high %v1986_v8, %v1990_v4  ;;  %v19666_v31 = vld [vmem:[#allocation82_spill] sm:$0xff] }
 0x4bf   : > { %v14112_v47 = vcombine.high %v1947_v43, %v1951_v21 }
 0x4c0   : > { %9634 = vmatmul.mubr.bf16.gmra.mrb[56].mxu0 %v19655_v48  ;;  %10538 = vmatmul.mubr.bf16.gmra.mrb[56].mxu1 %v19655_v48 }
 0x4c1   : > { %9679 = vmatpush1.bf16.msra.mxu0 %v14053_v1  ;;  %10583 = vmatpush1.bf16.msra.mxu1 %v14055_v44  ;;  %v1955_v1 = vld [vmem:[%s16295_s2 + $0x1d18] sm:$0xff] }
 0x4c2   : > { %9680 = vmatprep.subr.bf16.mxu0 %v14062_v26  ;;  %10584 = vmatprep.subr.bf16.mxu1 %v14064_v24  ;;  %v1959_v44 = vld [vmem:[%s16295_s2 + $0x1d38] sm:$0xff]  ;;  %v14109_v26 = vcombine.low %v1946_v42, %v1950_v51  ;;  %v14111_v24 = vcombine.low %v1947_v43, %v1951_v21  ;;  %v2002_v51 = vld [vmem:[%s16295_s2 + $0x1e90] sm:$0xff] }
 0x4c3   : > { %9643 = vmatprep.mubr.bf16.mxu0 %v19656_v39  ;;  %10547 = vmatprep.mubr.bf16.mxu1 %v19656_v39  ;;  %v14120_v48 = vcombine.high %v1955_v1, %v1959_v44  ;;  %v14119_v39 = vcombine.low %v1955_v1, %v1959_v44  ;;  %v2006_v43 = vld [vmem:[%s16295_s2 + $0x1eb0] sm:$0xff] }
 0x4c4   : > { %v19667_v21 = vld [vmem:[#allocation83_spill] sm:$0xff] }
 0x4c5   : > { %9681 = vmatpush1.bf16.msra.mxu0 %v14061_v22  ;;  %10585 = vmatpush1.bf16.msra.mxu1 %v14063_v45  ;;  %v1963_v22 = vld [vmem:[%s16295_s2 + $0x1d58] sm:$0xff]  ;;  %v2010_v1 = vld [vmem:[%s16295_s2 + $0x1ed0] sm:$0xff] }
 0x4c6   : > { %9682 = vmatprep.subr.bf16.mxu0 %v14070_v54  ;;  %10586 = vmatprep.subr.bf16.mxu1 %v14072_v25  ;;  %v1967_v45 = vld [vmem:[%s16295_s2 + $0x1d78] sm:$0xff]  ;;  %v14117_v54 = vcombine.low %v1954_v34, %v1958_v61  ;;  %v14126_v25 = vcombine.high %v1962_v52, %v1966_v41  ;;  %v14166_v34 = vcombine.high %v2002_v51, %v2006_v43  ;;  %v2014_v44 = vld [vmem:[%s16295_s2 + $0x1ef0] sm:$0xff] }
 0x4c7   : > { %v14128_v5 = vcombine.high %v1963_v22, %v1967_v45  ;;  %v19668_v61 = vld [vmem:[#allocation84_spill] sm:$0xff] }
 0x4c8   : > { %9644 = vmatmul.mubr.bf16.gmra.mrb[60].mxu0 %v19657_v59  ;;  %10548 = vmatmul.mubr.bf16.gmra.mrb[60].mxu1 %v19657_v59 }
 0x4c9   : > { %9683 = vmatpush1.bf16.msra.mxu0 %v14069_v0  ;;  %10587 = vmatpush1.bf16.msra.mxu1 %v14071_v36  ;;  %v1971_v0 = vld [vmem:[%s16295_s2 + $0x1d98] sm:$0xff] }
 0x4ca   : > { %9684 = vmatprep.subr.bf16.mxu0 %v14078_v62  ;;  %10588 = vmatprep.subr.bf16.mxu1 %v14080_v50  ;;  %v1975_v36 = vld [vmem:[%s16295_s2 + $0x1db8] sm:$0xff]  ;;  %v14125_v62 = vcombine.low %v1962_v52, %v1966_v41  ;;  %v14127_v50 = vcombine.low %v1963_v22, %v1967_v45  ;;  %v2018_v41 = vld [vmem:[%s16295_s2 + $0x1f10] sm:$0xff]  ;;  %v19669_v45 = vld [vmem:[#allocation85_spill] sm:$0xff] }
 0x4cb   : > { %9686 = vmatprep.mubr.bf16.mxu0 %v19658_v19  ;;  %10590 = vmatprep.mubr.bf16.mxu1 %v19658_v19  ;;  %v14136_v59 = vcombine.high %v1971_v0, %v1975_v36  ;;  %v14135_v19 = vcombine.low %v1971_v0, %v1975_v36  ;;  %v2022_v22 = vld [vmem:[%s16295_s2 + $0x1f30] sm:$0xff] }
 0x4cc   : > { %v2026_v0 = vld [vmem:[%s16295_s2 + $0x1f50] sm:$0xff] }
 0x4cd   : > { %9685 = vmatpush1.bf16.msra.mxu0 %v14077_v6  ;;  %10589 = vmatpush1.bf16.msra.mxu1 %v14079_v57  ;;  %v1979_v6 = vld [vmem:[%s16295_s2 + $0x1dd8] sm:$0xff]  ;;  %v2030_v36 = vld [vmem:[%s16295_s2 + $0x1f70] sm:$0xff] }
 0x4ce   : > { %9767 = vmatprep.subr.bf16.mxu0 %v14086_v3  ;;  %10671 = vmatprep.subr.bf16.mxu1 %v14088_v20  ;;  %v1983_v57 = vld [vmem:[%s16295_s2 + $0x1df8] sm:$0xff]  ;;  %v14133_v3 = vcombine.low %v1970_v53, %v1974_v60  ;;  %v14142_v20 = vcombine.high %v1978_v2, %v1982_v7  ;;  %v14182_v53 = vcombine.high %v2018_v41, %v2022_v22  ;;  %v19670_v60 = vld [vmem:[#allocation86_spill] sm:$0xff] }
 0x4cf   : > { %v14144_v11 = vcombine.high %v1979_v6, %v1983_v57 }
 0x4d0   : > { %9687 = vmatmul.mubr.bf16.vlgmr.msra.gmra.mrb[32].mxu0 %v19659_v63  ;;  %10591 = vmatmul.mubr.bf16.vlgmr.msra.gmra.mrb[32].mxu1 %v19659_v63 }
 0x4d1   : > { %9768 = vmatpush1.bf16.msra.mxu0 %v14085_v18  ;;  %10672 = vmatpush1.bf16.msra.mxu1 %v14087_v30  ;;  %v1987_v18 = vld [vmem:[%s16295_s2 + $0x1e18] sm:$0xff] }
 0x4d2   : > { %9769 = vmatprep.subr.bf16.mxu0 %v14094_v35  ;;  %10673 = vmatprep.subr.bf16.mxu1 %v14096_v9  ;;  %v1991_v30 = vld [vmem:[%s16295_s2 + $0x1e38] sm:$0xff]  ;;  %v14141_v35 = vcombine.low %v1978_v2, %v1982_v7  ;;  %v14143_v9 = vcombine.low %v1979_v6, %v1983_v57  ;;  %v2034_v7 = vld [vmem:[%s16295_s2 + $0x1f90] sm:$0xff] }
 0x4d3   : > { %9696 = vmatprep.mubr.bf16.mxu0 %v19660_v33  ;;  %10600 = vmatprep.mubr.bf16.mxu1 %v19660_v33  ;;  %v14152_v63 = vcombine.high %v1987_v18, %v1991_v30  ;;  %v14151_v33 = vcombine.low %v1987_v18, %v1991_v30  ;;  %v2038_v6 = vld [vmem:[%s16295_s2 + $0x1fb0] sm:$0xff] }
 0x4d4   : > { %v19671_v57 = vld [vmem:[#allocation87_spill] sm:$0xff] }
 0x4d5   : > { %9770 = vmatpush1.bf16.msra.mxu0 %v14093_v23  ;;  %10674 = vmatpush1.bf16.msra.mxu1 %v14095_v29  ;;  %v1995_v23 = vld [vmem:[%s16295_s2 + $0x1e58] sm:$0xff]  ;;  %v2042_v18 = vld [vmem:[%s16295_s2 + $0x1fd0] sm:$0xff] }
 0x4d6   : > { %9771 = vmatprep.subr.bf16.mxu0 %v14102_v49  ;;  %10675 = vmatprep.subr.bf16.mxu1 %v14104_v27  ;;  %v1999_v29 = vld [vmem:[%s16295_s2 + $0x1e78] sm:$0xff]  ;;  %v14149_v49 = vcombine.low %v1986_v8, %v1990_v4  ;;  %v14158_v27 = vcombine.high %v1994_v14, %v1998_v16  ;;  %v14198_v8 = vcombine.high %v2034_v7, %v2038_v6  ;;  %v2046_v30 = vld [vmem:[%s16295_s2 + $0x1ff0] sm:$0xff] }
 0x4d7   : > { %v14160_v42 = vcombine.high %v1995_v23, %v1999_v29  ;;  %v19672_v4 = vld [vmem:[#allocation88_spill] sm:$0xff] }
 0x4d8   : > { %9697 = vmatmul.mubr.bf16.gmra.mrb[36].mxu0 %v19661_v28  ;;  %10601 = vmatmul.mubr.bf16.gmra.mrb[36].mxu1 %v19661_v28 }
 0x4d9   : > { %9772 = vmatpush1.bf16.msra.mxu0 %v14101_v37  ;;  %10676 = vmatpush1.bf16.msra.mxu1 %v14103_v32  ;;  %v2003_v37 = vld [vmem:[%s16295_s2 + $0x1e98] sm:$0xff] }
 0x4da   : > { %9773 = vmatprep.subr.bf16.mxu0 %v14110_v17  ;;  %10677 = vmatprep.subr.bf16.mxu1 %v14112_v47  ;;  %v2007_v32 = vld [vmem:[%s16295_s2 + $0x1eb8] sm:$0xff]  ;;  %v14157_v17 = vcombine.low %v1994_v14, %v1998_v16  ;;  %v14159_v47 = vcombine.low %v1995_v23, %v1999_v29  ;;  %v19673_v16 = vld [vmem:[#allocation89_spill] sm:$0xff]  ;;  %v14205_v23 = vcombine.low %v2042_v18, %v2046_v30 }
 0x4db   : > { %9706 = vmatprep.mubr.bf16.mxu0 %v19662_v40  ;;  %10610 = vmatprep.mubr.bf16.mxu1 %v19662_v40  ;;  %v14168_v28 = vcombine.high %v2003_v37, %v2007_v32  ;;  %v14167_v40 = vcombine.low %v2003_v37, %v2007_v32  ;;  %v19681_v37 = vld [vmem:[#allocation97_spill] sm:$0xff]  ;;  %v19682_v32 = vld [vmem:[#allocation98_spill] sm:$0xff] }
 0x4dd   : > { %9774 = vmatpush1.bf16.msra.mxu0 %v14109_v26  ;;  %10678 = vmatpush1.bf16.msra.mxu1 %v14111_v24  ;;  %v2011_v26 = vld [vmem:[%s16295_s2 + $0x1ed8] sm:$0xff] }
 0x4de   : > { %9775 = vmatprep.subr.bf16.mxu0 %v14118_v10  ;;  %10679 = vmatprep.subr.bf16.mxu1 %v14120_v48  ;;  %v2015_v24 = vld [vmem:[%s16295_s2 + $0x1ef8] sm:$0xff]  ;;  %v14165_v10 = vcombine.low %v2002_v51, %v2006_v43  ;;  %v14174_v48 = vcombine.high %v2010_v1, %v2014_v44  ;;  %v19678_v51 = vld [vmem:[#allocation94_spill] sm:$0xff] }
 0x4df   : > { %v14176_v52 = vcombine.high %v2011_v26, %v2015_v24  ;;  %v19679_v43 = vld [vmem:[#allocation95_spill] sm:$0xff] }
 0x4e0   : > { %9707 = vmatmul.mubr.bf16.gmra.mrb[40].mxu0 %v19663_v13  ;;  %10611 = vmatmul.mubr.bf16.gmra.mrb[40].mxu1 %v19663_v13 }
 0x4e1   : > { %9776 = vmatpush1.bf16.msra.mxu0 %v14117_v54  ;;  %10680 = vmatpush1.bf16.msra.mxu1 %v14119_v39  ;;  %v2019_v54 = vld [vmem:[%s16295_s2 + $0x1f18] sm:$0xff] }
 0x4e2   : > { %9777 = vmatprep.subr.bf16.mxu0 %v14126_v25  ;;  %10681 = vmatprep.subr.bf16.mxu1 %v14128_v5  ;;  %v2023_v39 = vld [vmem:[%s16295_s2 + $0x1f38] sm:$0xff]  ;;  %v14173_v25 = vcombine.low %v2010_v1, %v2014_v44  ;;  %v14175_v5 = vcombine.low %v2011_v26, %v2015_v24  ;;  %v518_v1 = vld [vmem:[#allocation2 + $0x30] sm:$0xff]  ;;  %v517_v44 = vld [vmem:[#allocation2 + $0x28] sm:$0xff] }
 0x4e3   : > { %9716 = vmatprep.mubr.bf16.mxu0 %v19664_v38  ;;  %10620 = vmatprep.mubr.bf16.mxu1 %v19664_v38  ;;  %v14184_v13 = vcombine.high %v2019_v54, %v2023_v39  ;;  %v14183_v38 = vcombine.low %v2019_v54, %v2023_v39  ;;  %v519_v24 = vld [vmem:[#allocation2 + $0x38] sm:$0xff] }
 0x4e5   : > { %9778 = vmatpush1.bf16.msra.mxu0 %v14125_v62  ;;  %10682 = vmatpush1.bf16.msra.mxu1 %v14127_v50  ;;  %v2027_v62 = vld [vmem:[%s16295_s2 + $0x1f58] sm:$0xff] }
 0x4e6   : > { %9779 = vmatprep.subr.bf16.mxu0 %v14134_v58  ;;  %10683 = vmatprep.subr.bf16.mxu1 %v14136_v59  ;;  %v2031_v50 = vld [vmem:[%s16295_s2 + $0x1f78] sm:$0xff]  ;;  %v14181_v58 = vcombine.low %v2018_v41, %v2022_v22  ;;  %v14190_v59 = vcombine.high %v2026_v0, %v2030_v36  ;;  %v526_v41 = vld [vmem:[#allocation2 + $0x70] sm:$0xff]  ;;  %v525_v22 = vld [vmem:[#allocation2 + $0x68] sm:$0xff] }
 0x4e7   : > { %v14192_v2 = vcombine.high %v2027_v62, %v2031_v50 }
 0x4e8   : > { %9717 = vmatmul.mubr.bf16.gmra.mrb[44].mxu0 %v19665_v15  ;;  %10621 = vmatmul.mubr.bf16.gmra.mrb[44].mxu1 %v19665_v15 }
 0x4e9   : > { %9780 = vmatpush1.bf16.msra.mxu0 %v14133_v3  ;;  %10684 = vmatpush1.bf16.msra.mxu1 %v14135_v19  ;;  %v2035_v3 = vld [vmem:[%s16295_s2 + $0x1f98] sm:$0xff] }
 0x4ea   : > { %9781 = vmatprep.subr.bf16.mxu0 %v14142_v20  ;;  %10685 = vmatprep.subr.bf16.mxu1 %v14144_v11  ;;  %v2039_v19 = vld [vmem:[%s16295_s2 + $0x1fb8] sm:$0xff]  ;;  %v14189_v20 = vcombine.low %v2026_v0, %v2030_v36  ;;  %v14191_v11 = vcombine.low %v2027_v62, %v2031_v50  ;;  %v532_v62 = vld [vmem:[#allocation2 + $0xa0] sm:$0xff]  ;;  %v534_v50 = vld [vmem:[#allocation2 + $0xb0] sm:$0xff] }
 0x4eb   : > { %9726 = vmatprep.mubr.bf16.mxu0 %v19666_v31  ;;  %10630 = vmatprep.mubr.bf16.mxu1 %v19666_v31  ;;  %v14200_v15 = vcombine.high %v2035_v3, %v2039_v19  ;;  %v14199_v31 = vcombine.low %v2035_v3, %v2039_v19  ;;  %v542_v3 = vld [vmem:[#allocation2 + $0xf0] sm:$0xff]  ;;  %v541_v19 = vld [vmem:[#allocation2 + $0xe8] sm:$0xff] }
 0x4ed   : > { %9782 = vmatpush1.bf16.msra.mxu0 %v14141_v35  ;;  %10686 = vmatpush1.bf16.msra.mxu1 %v14143_v9  ;;  %v2043_v35 = vld [vmem:[%s16295_s2 + $0x1fd8] sm:$0xff] }
 0x4ee   : > { %9783 = vmatprep.subr.bf16.mxu0 %v14150_v46  ;;  %10687 = vmatprep.subr.bf16.mxu1 %v14152_v63  ;;  %v2047_v9 = vld [vmem:[%s16295_s2 + $0x1ff8] sm:$0xff]  ;;  %v14197_v46 = vcombine.low %v2034_v7, %v2038_v6  ;;  %v14206_v63 = vcombine.high %v2042_v18, %v2046_v30 }
 0x4ef   : > { %v14208_v14 = vcombine.high %v2043_v35, %v2047_v9  ;;  %v14207_v29 = vcombine.low %v2043_v35, %v2047_v9 }
 0x4f0   : > { %9727 = vmatmul.mubr.bf16.gmra.mrb[48].mxu0 %v19667_v21  ;;  %10631 = vmatmul.mubr.bf16.gmra.mrb[48].mxu1 %v19667_v21  ;;  %v19680_v21 = vld [vmem:[#allocation96_spill] sm:$0xff] }
 0x4f1   : > { %9784 = vmatpush1.bf16.msra.mxu0 %v14149_v49  ;;  %10688 = vmatpush1.bf16.msra.mxu1 %v14151_v33  ;;  %v19674_v49 = vld [vmem:[#allocation90_spill] sm:$0xff]  ;;  %v19675_v33 = vld [vmem:[#allocation91_spill] sm:$0xff] }
 0x4f2   : > { %9785 = vmatprep.subr.bf16.mxu0 %v14158_v27  ;;  %10689 = vmatprep.subr.bf16.mxu1 %v14160_v42  ;;  %v19676_v27 = vld [vmem:[#allocation92_spill] sm:$0xff]  ;;  %v19677_v42 = vld [vmem:[#allocation93_spill] sm:$0xff] }
 0x4f3   : > { %9736 = vmatprep.mubr.bf16.mxu0 %v19668_v61  ;;  %10640 = vmatprep.mubr.bf16.mxu1 %v19668_v61  ;;  %v19686_v61 = vld [vmem:[#allocation102_spill] sm:$0xff] }
 0x4f5   : > { %9786 = vmatpush1.bf16.msra.mxu0 %v14157_v17  ;;  %10690 = vmatpush1.bf16.msra.mxu1 %v14159_v47  ;;  %v19683_v17 = vld [vmem:[#allocation99_spill] sm:$0xff]  ;;  %v19684_v47 = vld [vmem:[#allocation100_spill] sm:$0xff] }
 0x4f6   : > { %9787 = vmatprep.subr.bf16.mxu0 %v14166_v34  ;;  %10691 = vmatprep.subr.bf16.mxu1 %v14168_v28  ;;  %v19685_v34 = vld [vmem:[#allocation101_spill] sm:$0xff] }
 0x4f7   : > { %v516_v28 = vld [vmem:[#allocation2 + $0x20] sm:$0xff] }
 0x4f8   : > { %9737 = vmatmul.mubr.bf16.gmra.mrb[52].mxu0 %v19669_v45  ;;  %10641 = vmatmul.mubr.bf16.gmra.mrb[52].mxu1 %v19669_v45 }
 0x4f9   : > { %9788 = vmatpush1.bf16.msra.mxu0 %v14165_v10  ;;  %10692 = vmatpush1.bf16.msra.mxu1 %v14167_v40  ;;  %v524_v10 = vld [vmem:[#allocation2 + $0x60] sm:$0xff] }
 0x4fa   : > { %9789 = vmatprep.subr.bf16.mxu0 %v14174_v48  ;;  %10693 = vmatprep.subr.bf16.mxu1 %v14176_v52 }
 0x4fb   : > { %9746 = vmatprep.mubr.bf16.mxu0 %v19670_v60  ;;  %10650 = vmatprep.mubr.bf16.mxu1 %v19670_v60 }
 0x4fd   : > { %9790 = vmatpush1.bf16.msra.mxu0 %v14173_v25  ;;  %10694 = vmatpush1.bf16.msra.mxu1 %v14175_v5 }
 0x4fe   : > { %9791 = vmatprep.subr.bf16.mxu0 %v14182_v53  ;;  %10695 = vmatprep.subr.bf16.mxu1 %v14184_v13 }
 0x500   : > { %9747 = vmatmul.mubr.bf16.gmra.mrb[56].mxu0 %v19671_v57  ;;  %10651 = vmatmul.mubr.bf16.gmra.mrb[56].mxu1 %v19671_v57 }
 0x501   : > { %9792 = vmatpush1.bf16.msra.mxu0 %v14181_v58  ;;  %10696 = vmatpush1.bf16.msra.mxu1 %v14183_v38  ;;  %v533_v58 = vld [vmem:[#allocation2 + $0xa8] sm:$0xff] }
 0x502   : > { %9793 = vmatprep.subr.bf16.mxu0 %v14190_v59  ;;  %10697 = vmatprep.subr.bf16.mxu1 %v14192_v2  ;;  %v535_v59 = vld [vmem:[#allocation2 + $0xb8] sm:$0xff]  ;;  %v540_v2 = vld [vmem:[#allocation2 + $0xe0] sm:$0xff] }
 0x503   : > { %9756 = vmatprep.mubr.bf16.mxu0 %v19672_v4  ;;  %10660 = vmatprep.mubr.bf16.mxu1 %v19672_v4 }
 0x505   : > { %9794 = vmatpush1.bf16.msra.mxu0 %v14189_v20  ;;  %10698 = vmatpush1.bf16.msra.mxu1 %v14191_v11 }
 0x506   : > { %9795 = vmatprep.subr.bf16.mxu0 %v14198_v8  ;;  %10699 = vmatprep.subr.bf16.mxu1 %v14200_v15  ;;  %v543_v15 = vld [vmem:[#allocation2 + $0xf8] sm:$0xff] }
 0x508   : > { %9757 = vmatmul.mubr.bf16.gmra.mrb[60].mxu0 %v19673_v16  ;;  %10661 = vmatmul.mubr.bf16.gmra.mrb[60].mxu1 %v19673_v16  ;;  %v548_v16 = vld [vmem:[#allocation2 + $0x120] sm:$0xff] }
 0x509   : > { %9796 = vmatpush1.bf16.msra.mxu0 %v14197_v46  ;;  %10700 = vmatpush1.bf16.msra.mxu1 %v14199_v31 }
 0x50a   : > { %9797 = vmatprep.subr.bf16.mxu0 %v14206_v63  ;;  %10701 = vmatprep.subr.bf16.mxu1 %v14208_v14 }
 0x50b   : > { %9799 = vmatprep.mubr.bf16.mxu0 %v19674_v49  ;;  %10703 = vmatprep.mubr.bf16.mxu1 %v19674_v49 }
 0x50d   : > { %9798 = vmatpush1.bf16.msra.mxu0 %v14205_v23  ;;  %10702 = vmatpush1.bf16.msra.mxu1 %v14207_v29  ;;  %v550_v23 = vld [vmem:[#allocation2 + $0x130] sm:$0xff]  ;;  %v549_v29 = vld [vmem:[#allocation2 + $0x128] sm:$0xff] }
 0x510   : > { %9800 = vmatmul.mubr.bf16.vlgmr.msra.gmra.mrb[32].mxu0 %v19675_v33  ;;  %10704 = vmatmul.mubr.bf16.vlgmr.msra.gmra.mrb[32].mxu1 %v19675_v33  ;;  %v551_v33 = vld [vmem:[#allocation2 + $0x138] sm:$0xff] }
 0x511   : > { %9809 = vmatprep.mubr.bf16.mxu0 %v19676_v27  ;;  %10713 = vmatprep.mubr.bf16.mxu1 %v19676_v27  ;;  %v556_v27 = vld [vmem:[#allocation2 + $0x160] sm:$0xff] }
 0x518   : > { %9810 = vmatmul.mubr.bf16.gmra.mrb[36].mxu0 %v19677_v42  ;;  %10714 = vmatmul.mubr.bf16.gmra.mrb[36].mxu1 %v19677_v42 }
 0x519   : > { %9819 = vmatprep.mubr.bf16.mxu0 %v19678_v51  ;;  %10723 = vmatprep.mubr.bf16.mxu1 %v19678_v51 }
 0x520   : > { %9820 = vmatmul.mubr.bf16.gmra.mrb[40].mxu0 %v19679_v43  ;;  %10724 = vmatmul.mubr.bf16.gmra.mrb[40].mxu1 %v19679_v43 }
 0x521   : > { %9829 = vmatprep.mubr.bf16.mxu0 %v19680_v21  ;;  %10733 = vmatprep.mubr.bf16.mxu1 %v19680_v21  ;;  %v558_v21 = vld [vmem:[#allocation2 + $0x170] sm:$0xff] }
 0x528   : > { %9830 = vmatmul.mubr.bf16.gmra.mrb[44].mxu0 %v19681_v37  ;;  %10734 = vmatmul.mubr.bf16.gmra.mrb[44].mxu1 %v19681_v37  ;;  %v557_v37 = vld [vmem:[#allocation2 + $0x168] sm:$0xff] }
 0x529   : > { %9839 = vmatprep.mubr.bf16.mxu0 %v19682_v32  ;;  %10743 = vmatprep.mubr.bf16.mxu1 %v19682_v32 }
 0x530   : > { %9840 = vmatmul.mubr.bf16.gmra.mrb[48].mxu0 %v19683_v17  ;;  %10744 = vmatmul.mubr.bf16.gmra.mrb[48].mxu1 %v19683_v17 }
 0x531   : > { %9849 = vmatprep.mubr.bf16.mxu0 %v19684_v47  ;;  %10753 = vmatprep.mubr.bf16.mxu1 %v19684_v47 }
 0x538   : > { %9850 = vmatmul.mubr.bf16.gmra.mrb[52].mxu0 %v19685_v34  ;;  %10754 = vmatmul.mubr.bf16.gmra.mrb[52].mxu1 %v19685_v34 }
 0x539   : > { %9859 = vmatprep.mubr.bf16.mxu0 %v19686_v61  ;;  %10763 = vmatprep.mubr.bf16.mxu1 %v19686_v61  ;;  %v559_v61 = vld [vmem:[#allocation2 + $0x178] sm:$0xff] }
 0x540   : > { %9860 = vmatmul.mubr.bf16.gmra.mrb[56].mxu0 %v17762_v55  ;;  %10764 = vmatmul.mubr.bf16.gmra.mrb[56].mxu1 %v17762_v55 }
 0x541   : > { %9869 = vmatprep.mubr.bf16.mxu0 %v17767_v56  ;;  %10773 = vmatprep.mubr.bf16.mxu1 %v17767_v56  ;;  %v527_v56 = vld [vmem:[#allocation2 + $0x78] sm:$0xff] }
 0x548   : > { %9870 = vmatmul.mubr.bf16.gmra.mrb[60].mxu0 %v17781_v12  ;;  %10774 = vmatmul.mubr.bf16.gmra.mrb[60].mxu1 %v17781_v12 }
 0x5e3   : > { %v9801_v26 = vpop.f32.mrb[32].mxu0  ;;  %v10705_v48 = vpop.f32.mrb[32].mxu1 }
 0x5e4   : > { %v10788_v40 = vadd.f32 %v9801_v26, %v516_v28  ;;  %v9803_v52 = vpop.f32.mrb[33].mxu0  ;;  %v10790_v55 = vadd.f32 %v10705_v48, %v518_v1  ;;  %v10707_v54 = vpop.f32.mrb[33].mxu1 }
 0x5e5   : > { %v10789_v45 = vadd.f32 %v9803_v52, %v517_v44  ;;  %v9805_v39 = vpop.f32.mrb[34].mxu0  ;;  %v10791_v25 = vadd.f32 %v10707_v54, %v519_v24  ;;  %v10709_v12 = vpop.f32.mrb[34].mxu1  ;;  %v564_v52 = vld [vmem:[#allocation2 + $0x1a0] sm:$0xff] }
 0x5e6   : > { %10916 = vst [vmem:[#allocation2 + $0x20] sm:$0xff] %v10788_v40  ;;  %v10796_v5 = vadd.f32 %v9805_v39, %v524_v10  ;;  %v9807_v53 = vpop.f32.mrb[35].mxu0  ;;  %10918 = vst [vmem:[#allocation2 + $0x30] sm:$0xff] %v10790_v55  ;;  %v10798_v60 = vadd.f32 %v10709_v12, %v526_v41  ;;  %v10711_v0 = vpop.f32.mrb[35].mxu1  ;;  %v566_v41 = vld [vmem:[#allocation2 + $0x1b0] sm:$0xff]  ;;  %v572_v54 = vld [vmem:[#allocation2 + $0x1e0] sm:$0xff] }
 0x5e7   : > { %10917 = vst [vmem:[#allocation2 + $0x28] sm:$0xff] %v10789_v45  ;;  %v10797_v13 = vadd.f32 %v9807_v53, %v525_v22  ;;  %10919 = vst [vmem:[#allocation2 + $0x38] sm:$0xff] %v10791_v25  ;;  %v10799_v36 = vadd.f32 %v10711_v0, %v527_v56  ;;  %v565_v22 = vld [vmem:[#allocation2 + $0x1a8] sm:$0xff]  ;;  %v567_v45 = vld [vmem:[#allocation2 + $0x1b8] sm:$0xff] }
 0x5e8   : > { %10924 = vst [vmem:[#allocation2 + $0x60] sm:$0xff] %v10796_v5  ;;  %10926 = vst [vmem:[#allocation2 + $0x70] sm:$0xff] %v10798_v60  ;;  %v574_v5 = vld [vmem:[#allocation2 + $0x1f0] sm:$0xff]  ;;  %v573_v12 = vld [vmem:[#allocation2 + $0x1e8] sm:$0xff] }
 0x5e9   : > { %10925 = vst [vmem:[#allocation2 + $0x68] sm:$0xff] %v10797_v13  ;;  %10927 = vst [vmem:[#allocation2 + $0x78] sm:$0xff] %v10799_v36  ;;  %v575_v36 = vld [vmem:[#allocation2 + $0x1f8] sm:$0xff] }
 0x5eb   : > { %v9811_v38 = vpop.f32.mrb[36].mxu0  ;;  %v10715_v6 = vpop.f32.mrb[36].mxu1 }
 0x5ec   : > { %v10804_v7 = vadd.f32 %v9811_v38, %v532_v62  ;;  %v9813_v57 = vpop.f32.mrb[37].mxu0  ;;  %v10806_v20 = vadd.f32 %v10715_v6, %v534_v50  ;;  %v10717_v8 = vpop.f32.mrb[37].mxu1 }
 0x5ed   : > { %v10805_v11 = vadd.f32 %v9813_v57, %v533_v58  ;;  %v9815_v4 = vpop.f32.mrb[38].mxu0  ;;  %v10807_v18 = vadd.f32 %v10717_v8, %v535_v59  ;;  %v10719_v35 = vpop.f32.mrb[38].mxu1  ;;  %v580_v57 = vld [vmem:[#allocation2 + $0x220] sm:$0xff] }
 0x5ee   : > { %10932 = vst [vmem:[#allocation2 + $0xa0] sm:$0xff] %v10804_v7  ;;  %v10812_v30 = vadd.f32 %v9815_v4, %v540_v2  ;;  %v9817_v9 = vpop.f32.mrb[39].mxu0  ;;  %10934 = vst [vmem:[#allocation2 + $0xb0] sm:$0xff] %v10806_v20  ;;  %v10814_v46 = vadd.f32 %v10719_v35, %v542_v3  ;;  %v10721_v63 = vpop.f32.mrb[39].mxu1  ;;  %v582_v3 = vld [vmem:[#allocation2 + $0x230] sm:$0xff]  ;;  %v588_v8 = vld [vmem:[#allocation2 + $0x260] sm:$0xff] }
 0x5ef   : > { %10933 = vst [vmem:[#allocation2 + $0xa8] sm:$0xff] %v10805_v11  ;;  %v10813_v31 = vadd.f32 %v9817_v9, %v541_v19  ;;  %10935 = vst [vmem:[#allocation2 + $0xb8] sm:$0xff] %v10807_v18  ;;  %v10815_v14 = vadd.f32 %v10721_v63, %v543_v15  ;;  %v581_v19 = vld [vmem:[#allocation2 + $0x228] sm:$0xff]  ;;  %v583_v11 = vld [vmem:[#allocation2 + $0x238] sm:$0xff] }
 0x5f0   : > { %10940 = vst [vmem:[#allocation2 + $0xe0] sm:$0xff] %v10812_v30  ;;  %10942 = vst [vmem:[#allocation2 + $0xf0] sm:$0xff] %v10814_v46  ;;  %v590_v30 = vld [vmem:[#allocation2 + $0x270] sm:$0xff]  ;;  %v589_v35 = vld [vmem:[#allocation2 + $0x268] sm:$0xff] }
 0x5f1   : > { %10941 = vst [vmem:[#allocation2 + $0xe8] sm:$0xff] %v10813_v31  ;;  %10943 = vst [vmem:[#allocation2 + $0xf8] sm:$0xff] %v10815_v14  ;;  %v591_v14 = vld [vmem:[#allocation2 + $0x278] sm:$0xff] }
 0x5f3   : > { %v9821_v49 = vpop.f32.mrb[40].mxu0  ;;  %v10725_v51 = vpop.f32.mrb[40].mxu1 }
 0x5f4   : > { %v10820_v42 = vadd.f32 %v9821_v49, %v548_v16  ;;  %v9823_v43 = vpop.f32.mrb[41].mxu0  ;;  %v10822_v32 = vadd.f32 %v10725_v51, %v550_v23  ;;  %v10727_v47 = vpop.f32.mrb[41].mxu1 }
 0x5f5   : > { %v10821_v17 = vadd.f32 %v9823_v43, %v549_v29  ;;  %v9825_v34 = vpop.f32.mrb[42].mxu0  ;;  %v10823_v28 = vadd.f32 %v10727_v47, %v551_v33  ;;  %v10729_v44 = vpop.f32.mrb[42].mxu1  ;;  %v596_v43 = vld [vmem:[#allocation2 + $0x2a0] sm:$0xff] }
 0x5f6   : > { %10948 = vst [vmem:[#allocation2 + $0x120] sm:$0xff] %v10820_v42  ;;  %v10828_v1 = vadd.f32 %v9825_v34, %v556_v27  ;;  %v9827_v26 = vpop.f32.mrb[43].mxu0  ;;  %10950 = vst [vmem:[#allocation2 + $0x130] sm:$0xff] %v10822_v32  ;;  %v10830_v24 = vadd.f32 %v10729_v44, %v558_v21  ;;  %v10731_v40 = vpop.f32.mrb[43].mxu1  ;;  %v598_v21 = vld [vmem:[#allocation2 + $0x2b0] sm:$0xff]  ;;  %v604_v47 = vld [vmem:[#allocation2 + $0x2e0] sm:$0xff] }
 0x5f7   : > { %10949 = vst [vmem:[#allocation2 + $0x128] sm:$0xff] %v10821_v17  ;;  %v10829_v10 = vadd.f32 %v9827_v26, %v557_v37  ;;  %10951 = vst [vmem:[#allocation2 + $0x138] sm:$0xff] %v10823_v28  ;;  %v10831_v48 = vadd.f32 %v10731_v40, %v559_v61  ;;  %v597_v37 = vld [vmem:[#allocation2 + $0x2a8] sm:$0xff]  ;;  %v599_v17 = vld [vmem:[#allocation2 + $0x2b8] sm:$0xff] }
 0x5f8   : > { %10956 = vst [vmem:[#allocation2 + $0x160] sm:$0xff] %v10828_v1  ;;  %10958 = vst [vmem:[#allocation2 + $0x170] sm:$0xff] %v10830_v24  ;;  %v606_v1 = vld [vmem:[#allocation2 + $0x2f0] sm:$0xff]  ;;  %v605_v44 = vld [vmem:[#allocation2 + $0x2e8] sm:$0xff] }
 0x5f9   : > { %10957 = vst [vmem:[#allocation2 + $0x168] sm:$0xff] %v10829_v10  ;;  %10959 = vst [vmem:[#allocation2 + $0x178] sm:$0xff] %v10831_v48  ;;  %v607_v48 = vld [vmem:[#allocation2 + $0x2f8] sm:$0xff] }
 0x5fb   : > { %v9831_v55 = vpop.f32.mrb[44].mxu0  ;;  %v10735_v56 = vpop.f32.mrb[44].mxu1 }
 0x5fc   : > { %v10836_v39 = vadd.f32 %v9831_v55, %v564_v52  ;;  %v9833_v25 = vpop.f32.mrb[45].mxu0  ;;  %v10838_v53 = vadd.f32 %v10735_v56, %v566_v41  ;;  %v10737_v13 = vpop.f32.mrb[45].mxu1 }
 0x5fd   : > { %v10837_v60 = vadd.f32 %v9833_v25, %v565_v22  ;;  %v9835_v0 = vpop.f32.mrb[46].mxu0  ;;  %v10839_v62 = vadd.f32 %v10737_v13, %v567_v45  ;;  %v10739_v58 = vpop.f32.mrb[46].mxu1  ;;  %v612_v25 = vld [vmem:[#allocation2 + $0x320] sm:$0xff] }
 0x5fe   : > { %10964 = vst [vmem:[#allocation2 + $0x1a0] sm:$0xff] %v10836_v39  ;;  %v10844_v50 = vadd.f32 %v9835_v0, %v572_v54  ;;  %v9837_v38 = vpop.f32.mrb[47].mxu0  ;;  %10966 = vst [vmem:[#allocation2 + $0x1b0] sm:$0xff] %v10838_v53  ;;  %v10846_v59 = vadd.f32 %v10739_v58, %v574_v5  ;;  %v10741_v7 = vpop.f32.mrb[47].mxu1  ;;  %v614_v5 = vld [vmem:[#allocation2 + $0x330] sm:$0xff]  ;;  %v620_v13 = vld [vmem:[#allocation2 + $0x360] sm:$0xff] }
 0x5ff   : > { %10965 = vst [vmem:[#allocation2 + $0x1a8] sm:$0xff] %v10837_v60  ;;  %v10845_v2 = vadd.f32 %v9837_v38, %v573_v12  ;;  %10967 = vst [vmem:[#allocation2 + $0x1b8] sm:$0xff] %v10839_v62  ;;  %v10847_v6 = vadd.f32 %v10741_v7, %v575_v36  ;;  %v613_v12 = vld [vmem:[#allocation2 + $0x328] sm:$0xff]  ;;  %v615_v60 = vld [vmem:[#allocation2 + $0x338] sm:$0xff] }
 0x600   : > { %10972 = vst [vmem:[#allocation2 + $0x1e0] sm:$0xff] %v10844_v50  ;;  %10974 = vst [vmem:[#allocation2 + $0x1f0] sm:$0xff] %v10846_v59  ;;  %v622_v50 = vld [vmem:[#allocation2 + $0x370] sm:$0xff]  ;;  %v621_v58 = vld [vmem:[#allocation2 + $0x368] sm:$0xff] }
 0x601   : > { %10973 = vst [vmem:[#allocation2 + $0x1e8] sm:$0xff] %v10845_v2  ;;  %10975 = vst [vmem:[#allocation2 + $0x1f8] sm:$0xff] %v10847_v6  ;;  %v623_v6 = vld [vmem:[#allocation2 + $0x378] sm:$0xff] }
 0x603   : > { %v9841_v20 = vpop.f32.mrb[48].mxu0  ;;  %v10745_v15 = vpop.f32.mrb[48].mxu1 }
 0x604   : > { %v10852_v4 = vadd.f32 %v9841_v20, %v580_v57  ;;  %v9843_v18 = vpop.f32.mrb[49].mxu0  ;;  %v10854_v9 = vadd.f32 %v10745_v15, %v582_v3  ;;  %v10747_v31 = vpop.f32.mrb[49].mxu1 }
 0x605   : > { %v10853_v46 = vadd.f32 %v9843_v18, %v581_v19  ;;  %v9845_v63 = vpop.f32.mrb[50].mxu0  ;;  %v10855_v16 = vadd.f32 %v10747_v31, %v583_v11  ;;  %v10749_v29 = vpop.f32.mrb[50].mxu1  ;;  %v628_v18 = vld [vmem:[#allocation2 + $0x3a0] sm:$0xff] }
 0x606   : > { %10980 = vst [vmem:[#allocation2 + $0x220] sm:$0xff] %v10852_v4  ;;  %v10860_v23 = vadd.f32 %v9845_v63, %v588_v8  ;;  %v9847_v49 = vpop.f32.mrb[51].mxu0  ;;  %10982 = vst [vmem:[#allocation2 + $0x230] sm:$0xff] %v10854_v9  ;;  %v10862_v33 = vadd.f32 %v10749_v29, %v590_v30  ;;  %v10751_v42 = vpop.f32.mrb[51].mxu1  ;;  %v630_v30 = vld [vmem:[#allocation2 + $0x3b0] sm:$0xff]  ;;  %v636_v31 = vld [vmem:[#allocation2 + $0x3e0] sm:$0xff] }
 0x607   : > { %10981 = vst [vmem:[#allocation2 + $0x228] sm:$0xff] %v10853_v46  ;;  %v10861_v27 = vadd.f32 %v9847_v49, %v589_v35  ;;  %10983 = vst [vmem:[#allocation2 + $0x238] sm:$0xff] %v10855_v16  ;;  %v10863_v51 = vadd.f32 %v10751_v42, %v591_v14  ;;  %v629_v35 = vld [vmem:[#allocation2 + $0x3a8] sm:$0xff]  ;;  %v631_v46 = vld [vmem:[#allocation2 + $0x3b8] sm:$0xff] }
 0x608   : > { %10988 = vst [vmem:[#allocation2 + $0x260] sm:$0xff] %v10860_v23  ;;  %10990 = vst [vmem:[#allocation2 + $0x270] sm:$0xff] %v10862_v33  ;;  %v638_v23 = vld [vmem:[#allocation2 + $0x3f0] sm:$0xff]  ;;  %v637_v29 = vld [vmem:[#allocation2 + $0x3e8] sm:$0xff] }
 0x609   : > { %10989 = vst [vmem:[#allocation2 + $0x268] sm:$0xff] %v10861_v27  ;;  %10991 = vst [vmem:[#allocation2 + $0x278] sm:$0xff] %v10863_v51  ;;  %v639_v51 = vld [vmem:[#allocation2 + $0x3f8] sm:$0xff] }
 0x60b   : > { %v9851_v32 = vpop.f32.mrb[52].mxu0  ;;  %v10755_v61 = vpop.f32.mrb[52].mxu1 }
 0x60c   : > { %v10868_v34 = vadd.f32 %v9851_v32, %v596_v43  ;;  %v9853_v28 = vpop.f32.mrb[53].mxu0  ;;  %v10870_v26 = vadd.f32 %v10755_v61, %v598_v21  ;;  %v10757_v10 = vpop.f32.mrb[53].mxu1 }
 0x60d   : > { %v10869_v24 = vadd.f32 %v9853_v28, %v597_v37  ;;  %v9855_v40 = vpop.f32.mrb[54].mxu0  ;;  %v10871_v52 = vadd.f32 %v10757_v10, %v599_v17  ;;  %v10759_v22 = vpop.f32.mrb[54].mxu1  ;;  %v15572_v28 = vld [vmem:[#allocation8 + $0x104] ss:$8 sps:$4 sm:$0xff] (!%p14209_p2)   ;;  %v15580_v10 = vld [vmem:[#allocation8 + $0x120] ss:$8 sps:$4 sm:$0xff] (!%p14209_p2)  }
 0x60e   : > { %10996 = vst [vmem:[#allocation2 + $0x2a0] sm:$0xff] %v10868_v34  ;;  %v10876_v41 = vadd.f32 %v9855_v40, %v604_v47  ;;  %v9857_v55 = vpop.f32.mrb[55].mxu0  ;;  %10998 = vst [vmem:[#allocation2 + $0x2b0] sm:$0xff] %v10870_v26  ;;  %v10878_v45 = vadd.f32 %v10759_v22, %v606_v1  ;;  %v10761_v39 = vpop.f32.mrb[55].mxu1  ;;  %v15574_v1 = vld [vmem:[#allocation8 + $0x100] ss:$8 sps:$4 sm:$0xff] (!%p14209_p2)   ;;  %12427 = vmatprep.subr.bf16.mxu0 (!%p14209_p2), %v15572_v28 }
 0x60f   : > { %10997 = vst [vmem:[#allocation2 + $0x2a8] sm:$0xff] %v10869_v24  ;;  %v10877_v54 = vadd.f32 %v9857_v55, %v605_v44  ;;  %10999 = vst [vmem:[#allocation2 + $0x2b8] sm:$0xff] %v10871_v52  ;;  %v10879_v56 = vadd.f32 %v10761_v39, %v607_v48  ;;  %v15575_v44 = vld [vmem:[#allocation8 + $0x114] ss:$8 sps:$4 sm:$0xff] (!%p14209_p2)   ;;  %12428 = vmatpush1.bf16.msra.mxu0 (!%p14209_p2), %v15574_v1  ;;  %v15577_v26 = vld [vmem:[#allocation8 + $0x110] ss:$8 sps:$4 sm:$0xff] (!%p14209_p2)  }
 0x610   : > { %11004 = vst [vmem:[#allocation2 + $0x2e0] sm:$0xff] %v10876_v41  ;;  %11006 = vst [vmem:[#allocation2 + $0x2f0] sm:$0xff] %v10878_v45  ;;  %12429 = vmatprep.subr.bf16.mxu0 (!%p14209_p2), %v15575_v44  ;;  %v15578_v24 = vld [vmem:[#allocation8 + $0x124] ss:$8 sps:$4 sm:$0xff] (!%p14209_p2)   ;;  %v15581_v40 = vld [vmem:[#allocation8 + $0x134] ss:$8 sps:$4 sm:$0xff] (!%p14209_p2)  }
 0x611   : > { %11005 = vst [vmem:[#allocation2 + $0x2e8] sm:$0xff] %v10877_v54  ;;  %11007 = vst [vmem:[#allocation2 + $0x2f8] sm:$0xff] %v10879_v56  ;;  %v15583_v48 = vld [vmem:[#allocation8 + $0x130] ss:$8 sps:$4 sm:$0xff] (!%p14209_p2)   ;;  %v15584_v52 = vld [vmem:[#allocation8 + $0x144] ss:$8 sps:$4 sm:$0xff] (!%p14209_p2)  }
 0x612   : > { %v15599_v41 = vld [vmem:[#allocation8 + $0x4] ss:$8 sps:$4 sm:$0xff] (!%p14209_p2)   ;;  %v15601_v22 = vld [vmem:[#allocation8] ss:$8 sps:$4 sm:$0xff] (!%p14209_p2)   ;;  %v15605_v45 = vld [vmem:[#allocation8 + $0x14] ss:$8 sps:$4 sm:$0xff] (!%p14209_p2)  }
 0x613   : > { %v9861_v53 = vpop.f32.mrb[56].mxu0  ;;  %v10765_v36 = vpop.f32.mrb[56].mxu1  ;;  %12430 = vmatpush1.bf16.msra.mxu0 (!%p14209_p2), %v15577_v26  ;;  %v15586_v55 = vld [vmem:[#allocation8 + $0x140] ss:$8 sps:$4 sm:$0xff] (!%p14209_p2)   ;;  %12314 = vmatprep.subr.bf16.mxu1 (!%p14209_p2), %v15599_v41  ;;  %v15607_v54 = vld [vmem:[#allocation8 + $0x10] ss:$8 sps:$4 sm:$0xff] (!%p14209_p2)  }
 0x614   : > { %v10884_v0 = vadd.f32 %v9861_v53, %v612_v25  ;;  %v9863_v62 = vpop.f32.mrb[57].mxu0  ;;  %v10886_v38 = vadd.f32 %v10765_v36, %v614_v5  ;;  %v10767_v2 = vpop.f32.mrb[57].mxu1  ;;  %12431 = vmatprep.subr.bf16.mxu0 (!%p14209_p2), %v15578_v24  ;;  %12315 = vmatpush1.bf16.msra.mxu1 (!%p14209_p2), %v15601_v22  ;;  %v15587_v39 = vld [vmem:[#allocation8 + $0x154] ss:$8 sps:$4 sm:$0xff] (!%p14209_p2)   ;;  %v15589_v56 = vld [vmem:[#allocation8 + $0x150] ss:$8 sps:$4 sm:$0xff] (!%p14209_p2)  }
 0x615   : > { %v10885_v59 = vadd.f32 %v9863_v62, %v613_v12  ;;  %v9865_v7 = vpop.f32.mrb[58].mxu0  ;;  %v10887_v57 = vadd.f32 %v10767_v2, %v615_v60  ;;  %v10769_v19 = vpop.f32.mrb[58].mxu1  ;;  %12316 = vmatprep.subr.bf16.mxu1 (!%p14209_p2), %v15605_v45  ;;  %v15611_v25 = vld [vmem:[#allocation8 + $0x24] ss:$8 sps:$4 sm:$0xff] (!%p14209_p2)   ;;  %v15613_v12 = vld [vmem:[#allocation8 + $0x20] ss:$8 sps:$4 sm:$0xff] (!%p14209_p2)   ;;  %v11174_v60 = vlaneseq (!%p14209_p2) }
 0x616   : > { %11012 = vst [vmem:[#allocation2 + $0x320] sm:$0xff] %v10884_v0  ;;  %v10892_v3 = vadd.f32 %v9865_v7, %v620_v13  ;;  %v9867_v20 = vpop.f32.mrb[59].mxu0  ;;  %11014 = vst [vmem:[#allocation2 + $0x330] sm:$0xff] %v10886_v38  ;;  %v10894_v11 = vadd.f32 %v10769_v19, %v622_v50  ;;  %v10771_v4 = vpop.f32.mrb[59].mxu1  ;;  %v15590_v5 = vld [vmem:[#allocation8 + $0x164] ss:$8 sps:$4 sm:$0xff] (!%p14209_p2)  }
 0x617   : > { %11013 = vst [vmem:[#allocation2 + $0x328] sm:$0xff] %v10885_v59  ;;  %v10893_v8 = vadd.f32 %v9867_v20, %v621_v58  ;;  %11015 = vst [vmem:[#allocation2 + $0x338] sm:$0xff] %v10887_v57  ;;  %v10895_v15 = vadd.f32 %v10771_v4, %v623_v6  ;;  %12432 = vmatpush1.bf16.msra.mxu0 (!%p14209_p2), %v15580_v10  ;;  %v15617_v53 = vld [vmem:[#allocation8 + $0x34] ss:$8 sps:$4 sm:$0xff] (!%p14209_p2)   ;;  %v15592_v13 = vld [vmem:[#allocation8 + $0x160] ss:$8 sps:$4 sm:$0xff] (!%p14209_p2)  }
 0x618   : > { %11020 = vst [vmem:[#allocation2 + $0x360] sm:$0xff] %v10892_v3  ;;  %11022 = vst [vmem:[#allocation2 + $0x370] sm:$0xff] %v10894_v11  ;;  %12433 = vmatprep.subr.bf16.mxu0 (!%p14209_p2), %v15581_v40  ;;  %12317 = vmatpush1.bf16.msra.mxu1 (!%p14209_p2), %v15607_v54  ;;  %v15593_v0 = vld [vmem:[#allocation8 + $0x174] ss:$8 sps:$4 sm:$0xff] (!%p14209_p2)   ;;  %v15619_v36 = vld [vmem:[#allocation8 + $0x30] ss:$8 sps:$4 sm:$0xff] (!%p14209_p2)  }
 0x619   : > { %11021 = vst [vmem:[#allocation2 + $0x368] sm:$0xff] %v10893_v8  ;;  %11023 = vst [vmem:[#allocation2 + $0x378] sm:$0xff] %v10895_v15  ;;  %12318 = vmatprep.subr.bf16.mxu1 (!%p14209_p2), %v15611_v25  ;;  %v15623_v62 = vld [vmem:[#allocation8 + $0x44] ss:$8 sps:$4 sm:$0xff] (!%p14209_p2)   ;;  %v18732_v50 = vshrl.u32 (!%p14209_p2), %v11174_v60, 7  ;;  %v11047_v15 = vld [vmem:[#allocation2 + $0x18] sm:$0xff] (!%p14209_p2) }
 0x61a   : > { %v15595_v58 = vld [vmem:[#allocation8 + $0x170] ss:$8 sps:$4 sm:$0xff] (!%p14209_p2)   ;;  %v15596_v38 = vld [vmem:[#allocation8 + $0x184] ss:$8 sps:$4 sm:$0xff] (!%p14209_p2)   ;;  %v15625_v59 = vld [vmem:[#allocation8 + $0x40] ss:$8 sps:$4 sm:$0xff] (!%p14209_p2)  }
 0x61b   : > { %v9871_v9 = vpop.f32.mrb[60].mxu0  ;;  %v10775_v14 = vpop.f32.mrb[60].mxu1  ;;  %11043 = sbr.rel (%p14209_p2) target bundleno = 2240 (0x8c0), region = 80  ;;  %12434 = vmatpush1.bf16.msra.mxu0 (!%p14209_p2), %v15583_v48  ;;  %v15629_v2 = vld [vmem:[#allocation8 + $0x54] ss:$8 sps:$4 sm:$0xff] (!%p14209_p2)   ;;  %v11188_v6 = vsub.s32 (!%p14209_p2), 3, %v18732_v50 }
 0x61c   : > { %v10900_v63 = vadd.f32 %v9871_v9, %v628_v18  ;;  %v9873_v16 = vpop.f32.mrb[61].mxu0  ;;  %v10902_v49 = vadd.f32 %v10775_v14, %v630_v30  ;;  %v10777_v27 = vpop.f32.mrb[61].mxu1  ;;  %12435 = vmatprep.subr.bf16.mxu0 (!%p14209_p2), %v15584_v52  ;;  %12319 = vmatpush1.bf16.msra.mxu1 (!%p14209_p2), %v15613_v12  ;;  %v15598_v7 = vld [vmem:[#allocation8 + $0x180] ss:$8 sps:$4 sm:$0xff] (!%p14209_p2)   ;;  %v11196_v57 = vsub.s32 (!%p14209_p2), 5, %v18732_v50  ;;  %v11192_v19 = vsub.s32 (!%p14209_p2), 4, %v18732_v50 }
 0x61d   : > { %v10901_v33 = vadd.f32 %v9873_v16, %v629_v35  ;;  %v9875_v42 = vpop.f32.mrb[62].mxu0  ;;  %v10903_v43 = vadd.f32 %v10777_v27, %v631_v46  ;;  %v10779_v37 = vpop.f32.mrb[62].mxu1  ;;  %12320 = vmatprep.subr.bf16.mxu1 (!%p14209_p2), %v15617_v53  ;;  %v15602_v3 = vld [vmem:[#allocation8 + $0x194] ss:$8 sps:$4 sm:$0xff] (!%p14209_p2)   ;;  %v11204_v20 = vsub.s32 (!%p14209_p2), 7, %v18732_v50  ;;  %v11200_v11 = vsub.s32 (!%p14209_p2), 6, %v18732_v50 }
 0x61e   : > { %11028 = vst [vmem:[#allocation2 + $0x3a0] sm:$0xff] %v10900_v63  ;;  %v10908_v21 = vadd.f32 %v9875_v42, %v636_v31  ;;  %v9877_v32 = vpop.f32.mrb[63].mxu0  ;;  %11030 = vst [vmem:[#allocation2 + $0x3b0] sm:$0xff] %v10902_v49  ;;  %v10910_v17 = vadd.f32 %v10779_v37, %v638_v23  ;;  %v10781_v34 = vpop.f32.mrb[63].mxu1  ;;  %v15631_v8 = vld [vmem:[#allocation8 + $0x50] ss:$8 sps:$4 sm:$0xff] (!%p14209_p2)  }
 0x61f   : > { %11029 = vst [vmem:[#allocation2 + $0x3a8] sm:$0xff] %v10901_v33  ;;  %v10909_v47 = vadd.f32 %v9877_v32, %v637_v29  ;;  %11031 = vst [vmem:[#allocation2 + $0x3b8] sm:$0xff] %v10903_v43  ;;  %v10911_v61 = vadd.f32 %v10781_v34, %v639_v51  ;;  %12436 = vmatpush1.bf16.msra.mxu0 (!%p14209_p2), %v15586_v55  ;;  %v15635_v4 = vld [vmem:[#allocation8 + $0x64] ss:$8 sps:$4 sm:$0xff] (!%p14209_p2)   ;;  %v11055_v18 = vld [vmem:[#allocation2 + $0x58] sm:$0xff] (!%p14209_p2)  ;;  %v11184_v1 = vsub.s32 (!%p14209_p2), 2, %v18732_v50 }
 0x620   : > { %11036 = vst [vmem:[#allocation2 + $0x3e0] sm:$0xff] %v10908_v21  ;;  %11038 = vst [vmem:[#allocation2 + $0x3f0] sm:$0xff] %v10910_v17  ;;  %12437 = vmatprep.subr.bf16.mxu0 (!%p14209_p2), %v15587_v39  ;;  %12321 = vmatpush1.bf16.msra.mxu1 (!%p14209_p2), %v15619_v36  ;;  %v18739_v30 = vld [vmem:[#allocation7] sm:$0xff] (!%p14209_p2)  ;;  %v15608_v46 = vld [vmem:[#allocation8 + $0x1a4] ss:$8 sps:$4 sm:$0xff] (!%p14209_p2)   ;;  %v11180_v60 = vsub.s32 (!%p14209_p2), 1, %v18732_v50 }
 0x621   : > { %11037 = vst [vmem:[#allocation2 + $0x3e8] sm:$0xff] %v10909_v47  ;;  %11039 = vst [vmem:[#allocation2 + $0x3f8] sm:$0xff] %v10911_v61  ;;  %12322 = vmatprep.subr.bf16.mxu1 (!%p14209_p2), %v15623_v62  ;;  %v18742_v35 = vrot.slane (!%p14209_p2), %v18739_v30, %v11188_v6  ;;  %v15604_v9 = vld [vmem:[#allocation8 + $0x190] ss:$8 sps:$4 sm:$0xff] (!%p14209_p2)   ;;  %v18745_v31 = vrot.slane (!%p14209_p2), %v18739_v30, %v11196_v57  ;;  %v18748_v63 = vrot.slane (!%p14209_p2), %v18739_v30, %v11192_v19  ;;  %v15637_v23 = vld [vmem:[#allocation8 + $0x60] ss:$8 sps:$4 sm:$0xff] (!%p14209_p2)  }
 0x622   : > { %v18751_v14 = vrot.slane %v18739_v30, %v11204_v20  ;;  %v18754_v16 = vrot.slane %v18739_v30, %v11200_v11  ;;  %v15641_v33 = vld [vmem:[#allocation8 + $0x74] ss:$8 sps:$4 sm:$0xff]   ;;  %v15610_v51 = vld [vmem:[#allocation8 + $0x1a0] ss:$8 sps:$4 sm:$0xff]   ;;  %v15643_v43 = vld [vmem:[#allocation8 + $0x70] ss:$8 sps:$4 sm:$0xff]   ;;  %v18760_v52 = vrot.slane %v18739_v30, %v11184_v1  ;;  %v18771_v19 = vrot.slane %v18739_v30, %v11180_v60 }
 0x623   : > { %12438 = vmatpush1.bf16.msra.mxu0 %v15589_v56  ;;  %v11217_v29 = vadd.f32 %v18742_v35, %v11047_v15  ;;  %v11225_v49 = vadd.f32 %v18742_v35, %v11055_v18  ;;  %v15614_v37 = vld [vmem:[#allocation8 + $0x1b4] ss:$8 sps:$4 sm:$0xff]   ;;  %v15647_v32 = vld [vmem:[#allocation8 + $0x84] ss:$8 sps:$4 sm:$0xff]   ;;  %v15616_v17 = vld [vmem:[#allocation8 + $0x1b0] ss:$8 sps:$4 sm:$0xff]  }
 0x624   : > { %12439 = vmatprep.subr.bf16.mxu0 %v15590_v5  ;;  %12323 = vmatpush1.bf16.msra.mxu1 %v15625_v59  ;;  %v15649_v47 = vld [vmem:[#allocation8 + $0x80] ss:$8 sps:$4 sm:$0xff]   ;;  %v15620_v34 = vld [vmem:[#allocation8 + $0x1c4] ss:$8 sps:$4 sm:$0xff]   ;;  %v15653_v61 = vld [vmem:[#allocation8 + $0x94] ss:$8 sps:$4 sm:$0xff]  }
 0x625   : > { %12324 = vmatprep.subr.bf16.mxu1 %v15629_v2  ;;  %v11345_v27 = vmax.f32 %v11217_v29, 0.0  ;;  %v11353_v42 = vmax.f32 %v11225_v49, 0.0  ;;  %v15622_v28 = vld [vmem:[#allocation8 + $0x1c0] ss:$8 sps:$4 sm:$0xff]   ;;  %v15655_v44 = vld [vmem:[#allocation8 + $0x90] ss:$8 sps:$4 sm:$0xff]  }
 0x626   : > { %v15626_v26 = vld [vmem:[#allocation8 + $0x1d4] ss:$8 sps:$4 sm:$0xff]   ;;  %v15659_v24 = vld [vmem:[#allocation8 + $0xa4] ss:$8 sps:$4 sm:$0xff]   ;;  %v15628_v10 = vld [vmem:[#allocation8 + $0x1d0] ss:$8 sps:$4 sm:$0xff]  }
 0x627   : > { %12440 = vmatpush1.bf16.msra.mxu0 %v15592_v13  ;;  %v11473_v21 = vpack.c.bf16 %v11353_v42, %v11345_v27  ;;  %v11046_v40 = vld [vmem:[#allocation2 + $0x10] sm:$0xff]  ;;  %v11063_v41 = vld [vmem:[#allocation2 + $0x98] sm:$0xff]  ;;  %v11176_v62 = vsub.s32 0, %v18732_v50  ;;  %v11045_v49 = vld [vmem:[#allocation2 + $0x8] sm:$0xff] }
 0x628   : > { %12441 = vmatprep.subr.bf16.mxu0 %v15593_v0  ;;  %12325 = vmatpush1.bf16.msra.mxu1 %v15631_v8  ;;  %v11054_v48 = vld [vmem:[#allocation2 + $0x50] sm:$0xff]  ;;  %v11071_v22 = vld [vmem:[#allocation2 + $0xd8] sm:$0xff]  ;;  %v11216_v39 = vadd.f32 %v18760_v52, %v11046_v40  ;;  %v11233_v25 = vadd.f32 %v18742_v35, %v11063_v41 }
 0x629   : > { %12326 = vmatprep.subr.bf16.mxu1 %v15635_v4  ;;  %12459 = vmatprep.mubr.bf16.mxu0 %v11473_v21  ;;  %v15661_v55 = vld [vmem:[#allocation8 + $0xa0] ss:$8 sps:$4 sm:$0xff]   ;;  %v15632_v45 = vld [vmem:[#allocation8 + $0x1e4] ss:$8 sps:$4 sm:$0xff]   ;;  %v15665_v54 = vld [vmem:[#allocation8 + $0xb4] ss:$8 sps:$4 sm:$0xff]   ;;  %v11224_v56 = vadd.f32 %v18760_v52, %v11054_v48  ;;  %v11241_v5 = vadd.f32 %v18742_v35, %v11071_v22  ;;  %v18776_v4 = vrot.slane %v18739_v30, %v11176_v62 }
 0x62a   : > { %v15634_v12 = vld [vmem:[#allocation8 + $0x1e0] ss:$8 sps:$4 sm:$0xff]   ;;  %v15667_v53 = vld [vmem:[#allocation8 + $0xb0] ss:$8 sps:$4 sm:$0xff]   ;;  %v15638_v13 = vld [vmem:[#allocation8 + $0x1f4] ss:$8 sps:$4 sm:$0xff]   ;;  %v11215_v30 = vadd.f32 %v18771_v19, %v11045_v49 }
 0x62b   : > { %12442 = vmatpush1.bf16.msra.mxu0 %v15595_v58  ;;  %v15671_v0 = vld [vmem:[#allocation8 + $0xc4] ss:$8 sps:$4 sm:$0xff]   ;;  %v15640_v36 = vld [vmem:[#allocation8 + $0x1f0] ss:$8 sps:$4 sm:$0xff]   ;;  %v11344_v58 = vmax.f32 %v11216_v39, 0.0  ;;  %v11361_v2 = vmax.f32 %v11233_v25, 0.0 }
 0x62c   : > { %12443 = vmatprep.subr.bf16.mxu0 %v15596_v38  ;;  %12327 = vmatpush1.bf16.msra.mxu1 %v15637_v23  ;;  %v11352_v38 = vmax.f32 %v11224_v56, 0.0  ;;  %v15646_v59 = vld [vmem:[#allocation8 + $0x204] ss:$8 sps:$4 sm:$0xff]   ;;  %v11079_v20 = vld [vmem:[#allocation2 + $0x118] sm:$0xff]  ;;  %v15644_v18 = vld [vmem:[#allocation8 + $0x200] ss:$8 sps:$4 sm:$0xff]  }
 0x62d   : > { %12328 = vmatprep.subr.bf16.mxu1 %v15641_v33  ;;  %v11062_v6 = vld [vmem:[#allocation2 + $0x90] sm:$0xff]  ;;  %v11087_v11 = vld [vmem:[#allocation2 + $0x158] sm:$0xff]  ;;  %v11249_v33 = vadd.f32 %v18742_v35, %v11079_v20 }
 0x62e   : > { %v11070_v57 = vld [vmem:[#allocation2 + $0xd0] sm:$0xff]  ;;  %v15677_v8 = vld [vmem:[#allocation8 + $0xd4] ss:$8 sps:$4 sm:$0xff]   ;;  %v11472_v15 = vpack.c.bf16 %v11352_v38, %v11344_v58  ;;  %v11232_v23 = vadd.f32 %v18760_v52, %v11062_v6  ;;  %v11257_v27 = vadd.f32 %v18742_v35, %v11087_v11  ;;  %v15679_v42 = vld [vmem:[#allocation8 + $0xd0] ss:$8 sps:$4 sm:$0xff]  }
 0x62f   : > { %12444 = vmatpush1.bf16.msra.mxu0 %v15598_v7  ;;  %v11369_v7 = vmax.f32 %v11241_v5, 0.0  ;;  %v11240_v29 = vadd.f32 %v18760_v52, %v11070_v57  ;;  %v15658_v41 = vld [vmem:[#allocation8 + $0x224] ss:$8 sps:$4 sm:$0xff]   ;;  %v11103_v22 = vld [vmem:[#allocation2 + $0x1d8] sm:$0xff] }
 0x630   : > { %12445 = vmatprep.subr.bf16.mxu0 %v15602_v3  ;;  %12329 = vmatpush1.bf16.msra.mxu1 %v15643_v43  ;;  %v15673_v3 = vld [vmem:[#allocation8 + $0xc0] ss:$8 sps:$4 sm:$0xff]   ;;  %v11044_v43 = vld [vmem:[#allocation2] sm:$0xff] }
 0x631   : > { %12330 = vmatprep.subr.bf16.mxu1 %v15647_v32  ;;  %v15683_v32 = vld [vmem:[#allocation8 + $0xe4] ss:$8 sps:$4 sm:$0xff]   ;;  %v11214_v40 = vadd.f32 %v18776_v4, %v11044_v43  ;;  %v15689_v25 = vld [vmem:[#allocation8 + $0xf4] ss:$8 sps:$4 sm:$0xff]  }
 0x632   : > { %v11119_v43 = vld [vmem:[#allocation2 + $0x258] sm:$0xff] }
 0x633   : > { %12446 = vmatpush1.bf16.msra.mxu0 %v15604_v9  ;;  %v15652_v9 = vld [vmem:[#allocation8 + $0x214] ss:$8 sps:$4 sm:$0xff]   ;;  %v11342_v58 = vmax.f32 %v11214_v40, 0.0 }
 0x634   : > { %12447 = vmatprep.subr.bf16.mxu0 %v15608_v46  ;;  %12331 = vmatpush1.bf16.msra.mxu1 %v15649_v47  ;;  %v11481_v46 = vpack.c.bf16 %v11369_v7, %v11361_v2  ;;  %v11360_v47 = vmax.f32 %v11232_v23, 0.0  ;;  %v11069_v2 = vld [vmem:[#allocation2 + $0xc8] sm:$0xff]  ;;  %v11060_v7 = vld [vmem:[#allocation2 + $0x80] sm:$0xff] }
 0x635   : > { %12332 = vmatprep.subr.bf16.mxu1 %v15653_v61  ;;  %v11078_v61 = vld [vmem:[#allocation2 + $0x110] sm:$0xff]  ;;  %v11239_v57 = vadd.f32 %v18771_v19, %v11069_v2 }
 0x636   : > { %v11248_v39 = vadd.f32 %v18760_v52, %v11078_v61 }
 0x637   : > { %12448 = vmatpush1.bf16.msra.mxu0 %v15610_v51  ;;  %v11053_v51 = vld [vmem:[#allocation2 + $0x48] sm:$0xff]  ;;  %v11367_v23 = vmax.f32 %v11239_v57, 0.0 }
 0x638   : > { %12449 = vmatprep.subr.bf16.mxu0 %v15614_v37  ;;  %12333 = vmatpush1.bf16.msra.mxu1 %v15655_v44  ;;  %v11223_v21 = vadd.f32 %v18771_v19, %v11053_v51  ;;  %v11052_v37 = vld [vmem:[#allocation2 + $0x40] sm:$0xff]  ;;  %v11376_v20 = vmax.f32 %v11248_v39, 0.0  ;;  %v15682_v57 = vld [vmem:[#allocation8 + $0x264] ss:$8 sps:$4 sm:$0xff]  }
 0x639   : > { %12334 = vmatprep.subr.bf16.mxu1 %v15659_v24  ;;  %v15650_v44 = vld [vmem:[#allocation8 + $0x210] ss:$8 sps:$4 sm:$0xff]   ;;  %v11385_v24 = vmax.f32 %v11257_v27, 0.0  ;;  %v11222_v48 = vadd.f32 %v18776_v4, %v11052_v37  ;;  %v15668_v37 = vld [vmem:[#allocation8 + $0x240] ss:$8 sps:$4 sm:$0xff]  }
 0x63a   : > { %v11351_v1 = vmax.f32 %v11223_v21, 0.0  ;;  %v18796_v21 = vld [vmem:[#allocation8 + $0x300] ss:$8 sps:$4 sm:$0xff]   ;;  %v15674_v39 = vld [vmem:[#allocation8 + $0x250] ss:$8 sps:$4 sm:$0xff]  }
 0x63b   : > { %12450 = vmatpush1.bf16.msra.mxu0 %v15616_v17  ;;  %v11343_v17 = vmax.f32 %v11215_v30, 0.0  ;;  %v11350_v38 = vmax.f32 %v11222_v48, 0.0  ;;  %v15670_v30 = vld [vmem:[#allocation8 + $0x244] ss:$8 sps:$4 sm:$0xff]  }
 0x63c   : > { %12451 = vmatprep.subr.bf16.mxu0 %v15620_v34  ;;  %12335 = vmatpush1.bf16.msra.mxu1 %v15661_v55  ;;  %v11368_v34 = vmax.f32 %v11240_v29, 0.0  ;;  %v15685_v55 = vld [vmem:[#allocation8 + $0xe0] ss:$8 sps:$4 sm:$0xff]   ;;  %v15662_v29 = vld [vmem:[#allocation8 + $0x230] ss:$8 sps:$4 sm:$0xff]  }
 0x63d   : > { %12336 = vmatprep.subr.bf16.mxu1 %v15665_v54  ;;  %v15656_v54 = vld [vmem:[#allocation8 + $0x220] ss:$8 sps:$4 sm:$0xff]   ;;  %v11470_v27 = vpack.c.bf16 %v11350_v38, %v11342_v58  ;;  %v11127_v38 = vld [vmem:[#allocation2 + $0x298] sm:$0xff] }
 0x63e   : > { %v11480_v5 = vpack.c.bf16 %v11368_v34, %v11360_v47  ;;  %v18801_v47 = vld [vmem:[#allocation8 + $0x314] ss:$8 sps:$4 sm:$0xff]   ;;  %v11077_v48 = vld [vmem:[#allocation2 + $0x108] sm:$0xff] }
 0x63f   : > { %12452 = vmatpush1.bf16.msra.mxu0 %v15622_v28  ;;  %v11086_v28 = vld [vmem:[#allocation2 + $0x150] sm:$0xff] }
 0x640   : > { %12453 = vmatprep.subr.bf16.mxu0 %v15626_v26  ;;  %12337 = vmatpush1.bf16.msra.mxu1 %v15667_v53  ;;  %v11377_v26 = vmax.f32 %v11249_v33, 0.0  ;;  %v11256_v56 = vadd.f32 %v18760_v52, %v11086_v28  ;;  %v11111_v33 = vld [vmem:[#allocation2 + $0x218] sm:$0xff] }
 0x641   : > { %12338 = vmatprep.subr.bf16.mxu1 %v15671_v0  ;;  %v15676_v28 = vld [vmem:[#allocation8 + $0x254] ss:$8 sps:$4 sm:$0xff]  }
 0x642   : > { %v11489_v0 = vpack.c.bf16 %v11385_v24, %v11377_v26  ;;  %v11384_v11 = vmax.f32 %v11256_v56, 0.0  ;;  %v11289_v24 = vadd.f32 %v18742_v35, %v11119_v43  ;;  %v11101_v43 = vld [vmem:[#allocation2 + $0x1c8] sm:$0xff] }
 0x643   : > { %12454 = vmatpush1.bf16.msra.mxu0 %v15628_v10  ;;  %v11095_v10 = vld [vmem:[#allocation2 + $0x198] sm:$0xff] }
 0x644   : > { %12455 = vmatprep.subr.bf16.mxu0 %v15632_v45  ;;  %12339 = vmatpush1.bf16.msra.mxu1 %v15673_v3  ;;  %v11471_v45 = vpack.c.bf16 %v11351_v1, %v11343_v17  ;;  %v11265_v53 = vadd.f32 %v18742_v35, %v11095_v10  ;;  %v11068_v3 = vld [vmem:[#allocation2 + $0xc0] sm:$0xff]  ;;  %v11488_v61 = vpack.c.bf16 %v11384_v11, %v11376_v20  ;;  %v11417_v58 = vmax.f32 %v11289_v24, 0.0  ;;  %v15680_v20 = vld [vmem:[#allocation8 + $0x260] ss:$8 sps:$4 sm:$0xff]   ;;  %v18831_v24 = vld [vmem:[#allocation8 + $0x344] ss:$8 sps:$4 sm:$0xff]  }
 0x645   : > { %12340 = vmatprep.subr.bf16.mxu1 %v15677_v8  ;;  %v11094_v8 = vld [vmem:[#allocation2 + $0x190] sm:$0xff]  ;;  %v11238_v51 = vadd.f32 %v18776_v4, %v11068_v3  ;;  %v11281_v1 = vadd.f32 %v18742_v35, %v11111_v33  ;;  %v18825_v33 = vld [vmem:[#allocation8 + $0x330] ss:$8 sps:$4 sm:$0xff]  }
 0x646   : > { %12346 = vmatprep.mubr.bf16.mxu1 %v11471_v45  ;;  %v18816_v3 = vld [vmem:[#allocation8 + $0x320] ss:$8 sps:$4 sm:$0xff]  }
 0x647   : > { %12456 = vmatpush1.bf16.msra.mxu0 %v15634_v12  ;;  %v15664_v12 = vld [vmem:[#allocation8 + $0x234] ss:$8 sps:$4 sm:$0xff]   ;;  %v11366_v40 = vmax.f32 %v11238_v51, 0.0 }
 0x648   : > { %12457 = vmatprep.subr.bf16.mxu0 %v15638_v13  ;;  %12341 = vmatpush1.bf16.msra.mxu1 %v15679_v42  ;;  %v15691_v13 = vld [vmem:[#allocation8 + $0xf0] ss:$8 sps:$4 sm:$0xff]   ;;  %v11230_v42 = vadd.f32 %v18776_v4, %v11060_v7 }
 0x649   : > { %12342 = vmatprep.subr.bf16.mxu1 %v15683_v32  ;;  %v11264_v32 = vadd.f32 %v18760_v52, %v11094_v8 }
 0x64a   : > { %v11358_v10 = vmax.f32 %v11230_v42, 0.0 }
 0x64b   : > { %12458 = vmatpush1.bf16.msra.mxu0 %v15640_v36  ;;  %v11273_v36 = vadd.f32 %v18742_v35, %v11103_v22  ;;  %v11076_v22 = vld [vmem:[#allocation2 + $0x100] sm:$0xff]  ;;  %v11392_v56 = vmax.f32 %v11264_v32, 0.0 }
 0x64c   : > { %12540 = vmatprep.subr.bf16.mxu0 %v15646_v59  ;;  %v11061_v59 = vld [vmem:[#allocation2 + $0x88] sm:$0xff]  ;;  %12343 = vmatpush1.bf16.msra.mxu1 %v15685_v55  ;;  %v11247_v55 = vadd.f32 %v18771_v19, %v11077_v48  ;;  %v11478_v2 = vpack.c.bf16 %v11366_v40, %v11358_v10  ;;  %v11246_v7 = vadd.f32 %v18776_v4, %v11076_v22  ;;  %v11134_v22 = vld [vmem:[#allocation2 + $0x2d0] sm:$0xff] }
 0x64d   : > { %v11231_v6 = vadd.f32 %v18771_v19, %v11061_v59  ;;  %12344 = vmatprep.subr.bf16.mxu1 %v15689_v25  ;;  %v11401_v49 = vmax.f32 %v11273_v36, 0.0  ;;  %v11135_v59 = vld [vmem:[#allocation2 + $0x2d8] sm:$0xff] }
 0x64e   : > { %12460 = vmatmul.mubr.bf16.vlgmr.msra.gmra.mrb[0].mxu0 %v11472_v15  ;;  %v18792_v15 = vld [vmem:[#allocation8 + $0x304] ss:$8 sps:$4 sm:$0xff]   ;;  %v11374_v42 = vmax.f32 %v11246_v7, 0.0  ;;  %v11304_v7 = vadd.f32 %v18760_v52, %v11134_v22  ;;  %v18856_v22 = vld [vmem:[#allocation8 + $0x360] ss:$8 sps:$4 sm:$0xff]  }
 0x64f   : > { %12541 = vmatpush1.bf16.msra.mxu0 %v15644_v18  ;;  %12469 = vmatprep.mubr.bf16.mxu0 %v11481_v46  ;;  %v11393_v18 = vmax.f32 %v11265_v53, 0.0  ;;  %v11359_v46 = vmax.f32 %v11231_v6, 0.0  ;;  %v11409_v53 = vmax.f32 %v11281_v1, 0.0 }
 0x650   : > { %12542 = vmatprep.subr.bf16.mxu0 %v15652_v9  ;;  %v11102_v9 = vld [vmem:[#allocation2 + $0x1d0] sm:$0xff]  ;;  %12345 = vmatpush1.bf16.msra.mxu1 %v15691_v13 }
 0x651   : > { %v11272_v17 = vadd.f32 %v18760_v52, %v11102_v9  ;;  %15320 = vmatprep.subr.bf16.mxu1 %v18792_v15  ;;  %v11479_v34 = vpack.c.bf16 %v11367_v23, %v11359_v46  ;;  %v11497_v26 = vpack.c.bf16 %v11401_v49, %v11393_v18  ;;  %v11118_v13 = vld [vmem:[#allocation2 + $0x250] sm:$0xff]  ;;  %v18821_v18 = vld [vmem:[#allocation8 + $0x334] ss:$8 sps:$4 sm:$0xff]   ;;  %v11305_v49 = vadd.f32 %v18742_v35, %v11135_v59 }
 0x652   : > { %v11288_v8 = vadd.f32 %v18760_v52, %v11118_v13  ;;  %v15688_v23 = vld [vmem:[#allocation8 + $0x274] ss:$8 sps:$4 sm:$0xff]  }
 0x653   : > { %12543 = vmatpush1.bf16.msra.mxu0 %v15650_v44  ;;  %v18804_v44 = vld [vmem:[#allocation8 + $0x310] ss:$8 sps:$4 sm:$0xff]   ;;  %12347 = vmatmul.mubr.bf16.vlgmr.msra.gmra.mrb[0].mxu1 %v11470_v27  ;;  %v11400_v25 = vmax.f32 %v11272_v17, 0.0  ;;  %v11505_v27 = vpack.c.bf16 %v11417_v58, %v11409_v53  ;;  %v11271_v17 = vadd.f32 %v18771_v19, %v11101_v43  ;;  %v11433_v40 = vmax.f32 %v11305_v49, 0.0  ;;  %v11109_v58 = vld [vmem:[#allocation2 + $0x208] sm:$0xff] }
 0x654   : > { %12544 = vmatprep.subr.bf16.mxu0 %v15658_v41  ;;  %v11085_v41 = vld [vmem:[#allocation2 + $0x148] sm:$0xff]  ;;  %15336 = vmatpush1.bf16.msra.mxu1 %v18796_v21  ;;  %v11416_v1 = vmax.f32 %v11288_v8, 0.0  ;;  %v15700_v59 = vld [vmem:[#allocation8 + $0x294] ss:$8 sps:$4 sm:$0xff]   ;;  %v18846_v8 = vld [vmem:[#allocation8 + $0x350] ss:$8 sps:$4 sm:$0xff]  }
 0x655   : > { %v11255_v45 = vadd.f32 %v18771_v19, %v11085_v41  ;;  %15321 = vmatprep.subr.bf16.mxu1 %v18801_v47  ;;  %12356 = vmatprep.mubr.bf16.mxu1 %v11479_v34  ;;  %v11496_v46 = vpack.c.bf16 %v11400_v25, %v11392_v56  ;;  %v11100_v34 = vld [vmem:[#allocation2 + $0x1c0] sm:$0xff]  ;;  %v11399_v41 = vmax.f32 %v11271_v17, 0.0  ;;  %v15694_v56 = vld [vmem:[#allocation8 + $0x284] ss:$8 sps:$4 sm:$0xff]   ;;  %v11151_v25 = vld [vmem:[#allocation2 + $0x358] sm:$0xff] }
 0x656   : > { %12470 = vmatmul.mubr.bf16.gmra.mrb[4].mxu0 %v11480_v5  ;;  %v11110_v5 = vld [vmem:[#allocation2 + $0x210] sm:$0xff]  ;;  %v11116_v49 = vld [vmem:[#allocation2 + $0x240] sm:$0xff] }
 0x657   : > { %12545 = vmatpush1.bf16.msra.mxu0 %v15656_v54  ;;  %12479 = vmatprep.mubr.bf16.mxu0 %v11489_v0  ;;  %v11084_v54 = vld [vmem:[#allocation2 + $0x140] sm:$0xff]  ;;  %v11375_v0 = vmax.f32 %v11247_v55, 0.0  ;;  %v11383_v36 = vmax.f32 %v11255_v45, 0.0  ;;  %v11280_v11 = vadd.f32 %v18760_v52, %v11110_v5  ;;  %v11143_v55 = vld [vmem:[#allocation2 + $0x318] sm:$0xff]  ;;  %v18836_v5 = vld [vmem:[#allocation8 + $0x340] ss:$8 sps:$4 sm:$0xff]  }
 0x658   : > { %12546 = vmatprep.subr.bf16.mxu0 %v15664_v12  ;;  %v18811_v12 = vld [vmem:[#allocation8 + $0x324] ss:$8 sps:$4 sm:$0xff]   ;;  %v11254_v6 = vadd.f32 %v18776_v4, %v11084_v54  ;;  %15337 = vmatpush1.bf16.msra.mxu1 %v18804_v44 }
 0x659   : > { %15322 = vmatprep.subr.bf16.mxu1 %v18811_v12  ;;  %v11487_v9 = vpack.c.bf16 %v11383_v36, %v11375_v0  ;;  %v18840_v0 = vld [vmem:[#allocation8 + $0x354] ss:$8 sps:$4 sm:$0xff]  }
 0x65a   : > { %v11382_v51 = vmax.f32 %v11254_v6, 0.0  ;;  %v11313_v6 = vadd.f32 %v18742_v35, %v11143_v55  ;;  %v11133_v55 = vld [vmem:[#allocation2 + $0x2c8] sm:$0xff] }
 0x65b   : > { %12547 = vmatpush1.bf16.msra.mxu0 %v15662_v29  ;;  %v11297_v29 = vadd.f32 %v18742_v35, %v11127_v38  ;;  %12357 = vmatmul.mubr.bf16.gmra.mrb[4].mxu1 %v11478_v2  ;;  %v15692_v38 = vld [vmem:[#allocation8 + $0x280] ss:$8 sps:$4 sm:$0xff]  }
 0x65c   : > { %12548 = vmatprep.subr.bf16.mxu0 %v15670_v30  ;;  %v11093_v30 = vld [vmem:[#allocation2 + $0x188] sm:$0xff]  ;;  %15338 = vmatpush1.bf16.msra.mxu1 %v18816_v3  ;;  %v11486_v45 = vpack.c.bf16 %v11382_v51, %v11374_v42  ;;  %v11441_v17 = vmax.f32 %v11313_v6, 0.0 }
 0x65d   : > { %v11263_v32 = vadd.f32 %v18771_v19, %v11093_v30  ;;  %15323 = vmatprep.subr.bf16.mxu1 %v18821_v18  ;;  %12366 = vmatprep.mubr.bf16.mxu1 %v11487_v9  ;;  %v11425_v10 = vmax.f32 %v11297_v29, 0.0  ;;  %v11108_v29 = vld [vmem:[#allocation2 + $0x200] sm:$0xff]  ;;  %v18851_v42 = vld [vmem:[#allocation8 + $0x364] ss:$8 sps:$4 sm:$0xff]  }
 0x65e   : > { %12480 = vmatmul.mubr.bf16.gmra.mrb[8].mxu0 %v11488_v61  ;;  %v15686_v61 = vld [vmem:[#allocation8 + $0x270] ss:$8 sps:$4 sm:$0xff]  }
 0x65f   : > { %12549 = vmatpush1.bf16.msra.mxu0 %v15668_v37  ;;  %12489 = vmatprep.mubr.bf16.mxu0 %v11497_v26  ;;  %v11092_v37 = vld [vmem:[#allocation2 + $0x180] sm:$0xff]  ;;  %v11126_v26 = vld [vmem:[#allocation2 + $0x290] sm:$0xff]  ;;  %v11391_v48 = vmax.f32 %v11263_v32, 0.0  ;;  %v11513_v2 = vpack.c.bf16 %v11433_v40, %v11425_v10  ;;  %v11278_v10 = vadd.f32 %v18776_v4, %v11108_v29  ;;  %v11286_v40 = vadd.f32 %v18776_v4, %v11116_v49 }
 0x660   : > { %12550 = vmatprep.subr.bf16.mxu0 %v15676_v28  ;;  %v11408_v28 = vmax.f32 %v11280_v11, 0.0  ;;  %v11262_v54 = vadd.f32 %v18776_v4, %v11092_v37  ;;  %15339 = vmatpush1.bf16.msra.mxu1 %v18825_v33  ;;  %v11296_v13 = vadd.f32 %v18760_v52, %v11126_v26  ;;  %v11321_v11 = vadd.f32 %v18742_v35, %v11151_v25  ;;  %v15706_v32 = vld [vmem:[#allocation8 + $0x2a4] ss:$8 sps:$4 sm:$0xff]  }
 0x661   : > { %15324 = vmatprep.subr.bf16.mxu1 %v18831_v24  ;;  %v11495_v36 = vpack.c.bf16 %v11399_v41, %v11391_v48  ;;  %v11432_v37 = vmax.f32 %v11304_v7, 0.0  ;;  %v11125_v48 = vld [vmem:[#allocation2 + $0x288] sm:$0xff]  ;;  %v11167_v41 = vld [vmem:[#allocation2 + $0x3d8] sm:$0xff]  ;;  %v11406_v7 = vmax.f32 %v11278_v10, 0.0  ;;  %v11414_v6 = vmax.f32 %v11286_v40, 0.0 }
 0x662   : > { %v11504_v53 = vpack.c.bf16 %v11416_v1, %v11408_v28  ;;  %v11390_v9 = vmax.f32 %v11262_v54, 0.0  ;;  %v11424_v43 = vmax.f32 %v11296_v13, 0.0  ;;  %v11150_v28 = vld [vmem:[#allocation2 + $0x350] sm:$0xff]  ;;  %v11159_v1 = vld [vmem:[#allocation2 + $0x398] sm:$0xff] }
 0x663   : > { %12551 = vmatpush1.bf16.msra.mxu0 %v15674_v39  ;;  %v11270_v39 = vadd.f32 %v18776_v4, %v11100_v34  ;;  %12367 = vmatmul.mubr.bf16.gmra.mrb[8].mxu1 %v11486_v45  ;;  %v11142_v34 = vld [vmem:[#allocation2 + $0x310] sm:$0xff]  ;;  %v18859_v45 = vld [vmem:[#allocation8 + $0x374] ss:$8 sps:$4 sm:$0xff]  }
 0x664   : > { %12552 = vmatprep.subr.bf16.mxu0 %v15682_v57  ;;  %v11117_v57 = vld [vmem:[#allocation2 + $0x248] sm:$0xff]  ;;  %15340 = vmatpush1.bf16.msra.mxu1 %v18836_v5  ;;  %v11512_v25 = vpack.c.bf16 %v11432_v37, %v11424_v43  ;;  %v11312_v13 = vadd.f32 %v18760_v52, %v11142_v34  ;;  %v11166_v43 = vld [vmem:[#allocation2 + $0x3d0] sm:$0xff]  ;;  %v18879_v40 = vld [vmem:[#allocation8 + $0x394] ss:$8 sps:$4 sm:$0xff]  }
 0x665   : > { %15325 = vmatprep.subr.bf16.mxu1 %v18840_v0  ;;  %12376 = vmatprep.mubr.bf16.mxu1 %v11495_v36  ;;  %v11320_v36 = vadd.f32 %v18760_v52, %v11150_v28  ;;  %v11141_v37 = vld [vmem:[#allocation2 + $0x308] sm:$0xff] }
 0x666   : > { %12490 = vmatmul.mubr.bf16.gmra.mrb[12].mxu0 %v11496_v46  ;;  %v11398_v46 = vmax.f32 %v11270_v39, 0.0  ;;  %v11295_v39 = vadd.f32 %v18771_v19, %v11125_v48  ;;  %v11049_v34 = vld [vmem:[#allocation2 + $0x28] sm:$0xff] }
 0x667   : > { %12553 = vmatpush1.bf16.msra.mxu0 %v15680_v20  ;;  %12499 = vmatprep.mubr.bf16.mxu0 %v11505_v27  ;;  %v11279_v20 = vadd.f32 %v18771_v19, %v11109_v58  ;;  %v15698_v27 = vld [vmem:[#allocation8 + $0x290] ss:$8 sps:$4 sm:$0xff]   ;;  %v11329_v58 = vadd.f32 %v18742_v35, %v11159_v1  ;;  %v18876_v10 = vld [vmem:[#allocation8 + $0x380] ss:$8 sps:$4 sm:$0xff]  }
 0x668   : > { %12554 = vmatprep.subr.bf16.mxu0 %v15688_v23  ;;  %v11287_v23 = vadd.f32 %v18771_v19, %v11117_v57  ;;  %v11494_v26 = vpack.c.bf16 %v11398_v46, %v11390_v9  ;;  %15341 = vmatpush1.bf16.msra.mxu1 %v18846_v8  ;;  %v18868_v57 = vld [vmem:[#allocation8 + $0x370] ss:$8 sps:$4 sm:$0xff]   ;;  %v11158_v46 = vld [vmem:[#allocation2 + $0x390] sm:$0xff]  ;;  %v11423_v29 = vmax.f32 %v11295_v39, 0.0 }
 0x669   : > { %v11407_v51 = vmax.f32 %v11279_v20, 0.0  ;;  %15326 = vmatprep.subr.bf16.mxu1 %v18851_v42  ;;  %v11124_v20 = vld [vmem:[#allocation2 + $0x280] sm:$0xff]  ;;  %v15716_v39 = vld [vmem:[#allocation8 + $0x2c0] ss:$8 sps:$4 sm:$0xff]  }
 0x66a   : > { %v11415_v30 = vmax.f32 %v11287_v23, 0.0  ;;  %v15710_v9 = vld [vmem:[#allocation8 + $0x2b0] ss:$8 sps:$4 sm:$0xff]   ;;  %v18871_v23 = vld [vmem:[#allocation8 + $0x384] ss:$8 sps:$4 sm:$0xff]   ;;  %v11294_v28 = vadd.f32 %v18776_v4, %v11124_v20 }
 0x66b   : > { %12555 = vmatpush1.bf16.msra.mxu0 %v15686_v61  ;;  %v11449_v61 = vmax.f32 %v11321_v11, 0.0  ;;  %12377 = vmatmul.mubr.bf16.gmra.mrb[12].mxu1 %v11494_v26  ;;  %v11132_v11 = vld [vmem:[#allocation2 + $0x2c0] sm:$0xff]  ;;  %v11057_v26 = vld [vmem:[#allocation2 + $0x68] sm:$0xff] }
 0x66c   : > { %12556 = vmatprep.subr.bf16.mxu0 %v15694_v56  ;;  %v11503_v54 = vpack.c.bf16 %v11415_v30, %v11407_v51  ;;  %v11303_v56 = vadd.f32 %v18771_v19, %v11133_v55  ;;  %15342 = vmatpush1.bf16.msra.mxu1 %v18856_v22  ;;  %v15718_v51 = vld [vmem:[#allocation8 + $0x2c4] ss:$8 sps:$4 sm:$0xff]   ;;  %v11457_v30 = vmax.f32 %v11329_v58, 0.0  ;;  %v11302_v1 = vadd.f32 %v18776_v4, %v11132_v11  ;;  %v11140_v20 = vld [vmem:[#allocation2 + $0x300] sm:$0xff] }
 0x66d   : > { %15327 = vmatprep.subr.bf16.mxu1 %v18859_v45  ;;  %v11227_v58 = vadd.f32 %v18745_v31, %v11057_v26  ;;  %v11148_v11 = vld [vmem:[#allocation2 + $0x340] sm:$0xff]  ;;  %v18897_v26 = vld [vmem:[#allocation8 + $0x3a0] ss:$8 sps:$4 sm:$0xff]  }
 0x66e   : > { %12500 = vmatmul.mubr.bf16.gmra.mrb[16].mxu0 %v11504_v53  ;;  %v15704_v53 = vld [vmem:[#allocation8 + $0x2a0] ss:$8 sps:$4 sm:$0xff]   ;;  %12386 = vmatprep.mubr.bf16.mxu1 %v11503_v54  ;;  %v11431_v49 = vmax.f32 %v11303_v56, 0.0  ;;  %v15724_v56 = vld [vmem:[#allocation8 + $0x2d4] ss:$8 sps:$4 sm:$0xff]  }
 0x66f   : > { %12557 = vmatpush1.bf16.msra.mxu0 %v15692_v38  ;;  %12509 = vmatprep.mubr.bf16.mxu0 %v11513_v2  ;;  %v15712_v38 = vld [vmem:[#allocation8 + $0x2b4] ss:$8 sps:$4 sm:$0xff]   ;;  %v11337_v2 = vadd.f32 %v18742_v35, %v11167_v41  ;;  %v11440_v35 = vmax.f32 %v11312_v13, 0.0  ;;  %v11311_v41 = vadd.f32 %v18771_v19, %v11141_v37  ;;  %v11219_v13 = vadd.f32 %v18745_v31, %v11049_v34  ;;  %v11065_v37 = vld [vmem:[#allocation2 + $0xa8] sm:$0xff] }
 0x670   : > { %12558 = vmatprep.subr.bf16.mxu0 %v15700_v59  ;;  %v11521_v59 = vpack.c.bf16 %v11449_v61, %v11441_v17  ;;  %v11502_v61 = vpack.c.bf16 %v11414_v6, %v11406_v7  ;;  %15343 = vmatpush1.bf16.msra.mxu1 %v18868_v57  ;;  %v11511_v48 = vpack.c.bf16 %v11431_v49, %v11423_v29  ;;  %v11430_v7 = vmax.f32 %v11302_v1, 0.0  ;;  %v11056_v6 = vld [vmem:[#allocation2 + $0x60] sm:$0xff] }
 0x671   : > { %v11465_v17 = vmax.f32 %v11337_v2, 0.0  ;;  %15328 = vmatprep.subr.bf16.mxu1 %v18871_v23  ;;  %v11422_v2 = vmax.f32 %v11294_v28, 0.0  ;;  %v11310_v34 = vadd.f32 %v18776_v4, %v11140_v20  ;;  %v15730_v28 = vld [vmem:[#allocation8 + $0x2e4] ss:$8 sps:$4 sm:$0xff]   ;;  %v11164_v20 = vld [vmem:[#allocation2 + $0x3c0] sm:$0xff] }
 0x673   : > { %12559 = vmatpush1.bf16.msra.mxu0 %v15698_v27  ;;  %v11448_v27 = vmax.f32 %v11320_v36, 0.0  ;;  %v11529_v36 = vpack.c.bf16 %v11465_v17, %v11457_v30  ;;  %12387 = vmatmul.mubr.bf16.gmra.mrb[16].mxu1 %v11502_v61  ;;  %v11165_v30 = vld [vmem:[#allocation2 + $0x3c8] sm:$0xff]  ;;  %v11510_v17 = vpack.c.bf16 %v11430_v7, %v11422_v2  ;;  %v11318_v61 = vadd.f32 %v18776_v4, %v11148_v11  ;;  %v18908_v7 = vld [vmem:[#allocation8 + $0x3b0] ss:$8 sps:$4 sm:$0xff]  }
 0x674   : > { %12560 = vmatprep.subr.bf16.mxu0 %v15706_v32  ;;  %v11149_v32 = vld [vmem:[#allocation2 + $0x348] sm:$0xff]  ;;  %15344 = vmatpush1.bf16.msra.mxu1 %v18876_v10 }
 0x675   : > { %v11319_v55 = vadd.f32 %v18771_v19, %v11149_v32  ;;  %v11520_v54 = vpack.c.bf16 %v11448_v27, %v11440_v35  ;;  %15329 = vmatprep.subr.bf16.mxu1 %v18879_v40  ;;  %12396 = vmatprep.mubr.bf16.mxu1 %v11511_v48  ;;  %v11347_v35 = vmax.f32 %v11219_v13, 0.0  ;;  %v11157_v27 = vld [vmem:[#allocation2 + $0x388] sm:$0xff]  ;;  %v11226_v48 = vadd.f32 %v18748_v63, %v11056_v6  ;;  %v11156_v6 = vld [vmem:[#allocation2 + $0x380] sm:$0xff] }
 0x676   : > { %12510 = vmatmul.mubr.bf16.gmra.mrb[20].mxu0 %v11512_v25  ;;  %v11328_v25 = vadd.f32 %v18760_v52, %v11158_v46  ;;  %v11073_v32 = vld [vmem:[#allocation2 + $0xe8] sm:$0xff]  ;;  %v11446_v2 = vmax.f32 %v11318_v61, 0.0  ;;  %v11334_v61 = vadd.f32 %v18776_v4, %v11164_v20  ;;  %v11114_v20 = vld [vmem:[#allocation2 + $0x230] sm:$0xff] }
 0x677   : > { %12561 = vmatpush1.bf16.msra.mxu0 %v15704_v53  ;;  %12519 = vmatprep.mubr.bf16.mxu0 %v11521_v59  ;;  %v11336_v53 = vadd.f32 %v18760_v52, %v11166_v43  ;;  %v18887_v59 = vld [vmem:[#allocation8 + $0x390] ss:$8 sps:$4 sm:$0xff]   ;;  %v18891_v52 = vld [vmem:[#allocation8 + $0x3a4] ss:$8 sps:$4 sm:$0xff]   ;;  %v11447_v46 = vmax.f32 %v11319_v55, 0.0  ;;  %v11355_v43 = vmax.f32 %v11227_v58, 0.0 }
 0x678   : > { %12562 = vmatprep.subr.bf16.mxu0 %v15712_v38  ;;  %v11048_v38 = vld [vmem:[#allocation2 + $0x20] sm:$0xff]  ;;  %v11456_v29 = vmax.f32 %v11328_v25, 0.0  ;;  %15345 = vmatpush1.bf16.msra.mxu1 %v18887_v59  ;;  %v15728_v13 = vld [vmem:[#allocation8 + $0x2e0] ss:$8 sps:$4 sm:$0xff]   ;;  %v11354_v11 = vmax.f32 %v11226_v48, 0.0 }
 0x679   : > { %v11464_v49 = vmax.f32 %v11336_v53, 0.0  ;;  %v11218_v1 = vadd.f32 %v18748_v63, %v11048_v38  ;;  %15330 = vmatprep.subr.bf16.mxu1 %v18891_v52  ;;  %v11243_v53 = vadd.f32 %v18745_v31, %v11073_v32  ;;  %v11475_v58 = vpack.c.bf16 %v11355_v43, %v11347_v35  ;;  %v11064_v43 = vld [vmem:[#allocation2 + $0xa0] sm:$0xff]  ;;  %v11081_v32 = vld [vmem:[#allocation2 + $0x128] sm:$0xff] }
 0x67a   : > { %v11438_v38 = vmax.f32 %v11310_v34, 0.0  ;;  %v11326_v34 = vadd.f32 %v18776_v4, %v11156_v6  ;;  %v18916_v48 = vld [vmem:[#allocation8 + $0x3c0] ss:$8 sps:$4 sm:$0xff]   ;;  %v11234_v4 = vadd.f32 %v18748_v63, %v11064_v43  ;;  %v11462_v6 = vmax.f32 %v11334_v61, 0.0 }
 0x67b   : > { %12563 = vmatpush1.bf16.msra.mxu0 %v15710_v9  ;;  %v11439_v9 = vmax.f32 %v11311_v41, 0.0  ;;  %v18901_v41 = vld [vmem:[#allocation8 + $0x3b4] ss:$8 sps:$4 sm:$0xff]   ;;  %v11528_v25 = vpack.c.bf16 %v11464_v49, %v11456_v29  ;;  %12397 = vmatmul.mubr.bf16.gmra.mrb[20].mxu1 %v11510_v17  ;;  %v15734_v49 = vld [vmem:[#allocation8 + $0x2f0] ss:$8 sps:$4 sm:$0xff]   ;;  %v11105_v61 = vld [vmem:[#allocation2 + $0x1e8] sm:$0xff] }
 0x67c   : > { %12564 = vmatprep.subr.bf16.mxu0 %v15718_v51  ;;  %v15722_v51 = vld [vmem:[#allocation8 + $0x2d0] ss:$8 sps:$4 sm:$0xff]   ;;  %15346 = vmatpush1.bf16.msra.mxu1 %v18897_v26  ;;  %v11518_v17 = vpack.c.bf16 %v11446_v2, %v11438_v38  ;;  %v11454_v2 = vmax.f32 %v11326_v34, 0.0  ;;  %v11097_v34 = vld [vmem:[#allocation2 + $0x1a8] sm:$0xff] }
 0x67d   : > { %v11519_v55 = vpack.c.bf16 %v11447_v46, %v11439_v9  ;;  %15331 = vmatprep.subr.bf16.mxu1 %v18901_v41  ;;  %v18911_v9 = vld [vmem:[#allocation8 + $0x3c4] ss:$8 sps:$4 sm:$0xff]  }
 0x67e   : > { %12520 = vmatmul.mubr.bf16.gmra.mrb[24].mxu0 %v11520_v54  ;;  %v11327_v54 = vadd.f32 %v18771_v19, %v11157_v27  ;;  %v11371_v27 = vmax.f32 %v11243_v53, 0.0 }
 0x67f   : > { %12565 = vmatpush1.bf16.msra.mxu0 %v15716_v39  ;;  %12529 = vmatprep.mubr.bf16.mxu0 %v11529_v36  ;;  %v11335_v39 = vadd.f32 %v18771_v19, %v11165_v30  ;;  %v15736_v36 = vld [vmem:[#allocation8 + $0x2f4] ss:$8 sps:$4 sm:$0xff]   ;;  %v11346_v19 = vmax.f32 %v11218_v1, 0.0 }
 0x680   : > { %12566 = vmatprep.subr.bf16.mxu0 %v15724_v56  ;;  %v11235_v56 = vadd.f32 %v18745_v31, %v11065_v37  ;;  %12406 = vmatprep.mubr.bf16.mxu1 %v11519_v55  ;;  %v11455_v46 = vmax.f32 %v11327_v54, 0.0  ;;  %v11115_v30 = vld [vmem:[#allocation2 + $0x238] sm:$0xff]  ;;  %v11072_v37 = vld [vmem:[#allocation2 + $0xe0] sm:$0xff] }
 0x681   : > { %v11463_v29 = vmax.f32 %v11335_v39, 0.0  ;;  %15347 = vmatpush1.bf16.msra.mxu1 %v18908_v7  ;;  %v11080_v1 = vld [vmem:[#allocation2 + $0x120] sm:$0xff]  ;;  %v11474_v55 = vpack.c.bf16 %v11354_v11, %v11346_v19  ;;  %v11122_v11 = vld [vmem:[#allocation2 + $0x270] sm:$0xff] }
 0x682   : > { %v11363_v35 = vmax.f32 %v11235_v56, 0.0  ;;  %15332 = vmatprep.subr.bf16.mxu1 %v18911_v9  ;;  %v18919_v54 = vld [vmem:[#allocation8 + $0x3d4] ss:$8 sps:$4 sm:$0xff]   ;;  %v18928_v38 = vadd.f32 %v18748_v63, %v11080_v1  ;;  %v18932_v19 = vld [vmem:[#allocation8 + $0x3d0] ss:$8 sps:$4 sm:$0xff]   ;;  %v11292_v1 = vadd.f32 %v18754_v16, %v11122_v11 }
 0x683   : > { %12567 = vmatpush1.bf16.msra.mxu0 %v15722_v51  ;;  %v11123_v51 = vld [vmem:[#allocation2 + $0x278] sm:$0xff]  ;;  %v11527_v39 = vpack.c.bf16 %v11463_v29, %v11455_v46  ;;  %12407 = vmatmul.mubr.bf16.gmra.mrb[24].mxu1 %v11518_v17  ;;  %v18935_v46 = vld [vmem:[#allocation8 + $0x3e4] ss:$8 sps:$4 sm:$0xff]  }
 0x684   : > { %12568 = vmatprep.subr.bf16.mxu0 %v15730_v28  ;;  %v11089_v28 = vld [vmem:[#allocation2 + $0x168] sm:$0xff]  ;;  %v11293_v56 = vadd.f32 %v18751_v14, %v11123_v51  ;;  %v11483_v53 = vpack.c.bf16 %v11371_v27, %v11363_v35  ;;  %v11131_v35 = vld [vmem:[#allocation2 + $0x2b8] sm:$0xff]  ;;  %v11378_v17 = vmax.f32 %v18928_v38, 0.0  ;;  %v11130_v38 = vld [vmem:[#allocation2 + $0x2b0] sm:$0xff]  ;;  %v11420_v11 = vmax.f32 %v11292_v1, 0.0 }
 0x685   : > { %15348 = vmatpush1.bf16.msra.mxu1 %v18916_v48  ;;  %12416 = vmatprep.mubr.bf16.mxu1 %v11527_v39  ;;  %v11139_v27 = vld [vmem:[#allocation2 + $0x2f8] sm:$0xff]  ;;  %v11301_v39 = vadd.f32 %v18751_v14, %v11131_v35 }
 0x686   : > { %12530 = vmatmul.mubr.bf16.gmra.mrb[28].mxu0 %v11528_v25  ;;  %v11285_v25 = vadd.f32 %v18751_v14, %v11115_v30  ;;  %15333 = vmatprep.subr.bf16.mxu1 %v18919_v54  ;;  %v11362_v30 = vmax.f32 %v11234_v4, 0.0  ;;  %v11147_v35 = vld [vmem:[#allocation2 + $0x338] sm:$0xff] }
 0x687   : > { %12569 = vmatpush1.bf16.msra.mxu0 %v15728_v13  ;;  %12572 = vmatprep.mubr.bf16.mxu0 %v11475_v58  ;;  %v11242_v13 = vadd.f32 %v18748_v63, %v11072_v37  ;;  %v11259_v58 = vadd.f32 %v18745_v31, %v11089_v28  ;;  %v11088_v37 = vld [vmem:[#allocation2 + $0x160] sm:$0xff]  ;;  %v11526_v28 = vpack.c.bf16 %v11462_v6, %v11454_v2  ;;  %v11138_v2 = vld [vmem:[#allocation2 + $0x2f0] sm:$0xff] }
 0x688   : > { %12570 = vmatprep.subr.bf16.mxu0 %v15736_v36  ;;  %v11251_v36 = vadd.f32 %v18745_v31, %v11081_v32  ;;  %v11413_v29 = vmax.f32 %v11285_v25, 0.0  ;;  %v11309_v25 = vadd.f32 %v18751_v14, %v11139_v27  ;;  %v11317_v1 = vadd.f32 %v18751_v14, %v11147_v35  ;;  %v11120_v35 = vld [vmem:[#allocation2 + $0x260] sm:$0xff] }
 0x689   : > { %v11370_v51 = vmax.f32 %v11242_v13, 0.0  ;;  %v11387_v32 = vmax.f32 %v11259_v58, 0.0  ;;  %15349 = vmatpush1.bf16.msra.mxu1 %v18932_v19 }
 0x68a   : > { %v11379_v43 = vmax.f32 %v11251_v36, 0.0  ;;  %15334 = vmatprep.subr.bf16.mxu1 %v18935_v46  ;;  %v11267_v36 = vadd.f32 %v18745_v31, %v11097_v34  ;;  %v11308_v34 = vadd.f32 %v18754_v16, %v11138_v2  ;;  %v11163_v2 = vld [vmem:[#allocation2 + $0x3b8] sm:$0xff] }
 0x68b   : > { %12571 = vmatpush1.bf16.msra.mxu0 %v15734_v49  ;;  %v11421_v49 = vmax.f32 %v11293_v56, 0.0  ;;  %v11096_v56 = vld [vmem:[#allocation2 + $0x1a0] sm:$0xff]  ;;  %v11482_v13 = vpack.c.bf16 %v11370_v51, %v11362_v30  ;;  %12417 = vmatmul.mubr.bf16.gmra.mrb[28].mxu1 %v11526_v28  ;;  %v11155_v30 = vld [vmem:[#allocation2 + $0x378] sm:$0xff] }
 0x68c   : > { %12653 = vmatprep.subr.bf16.mxu0 %v18792_v15  ;;  %v11284_v15 = vadd.f32 %v18754_v16, %v11114_v20  ;;  %v11491_v6 = vpack.c.bf16 %v11387_v32, %v11379_v43  ;;  %v11275_v20 = vadd.f32 %v18745_v31, %v11105_v61  ;;  %v11395_v51 = vmax.f32 %v11267_v36, 0.0  ;;  %v11121_v61 = vld [vmem:[#allocation2 + $0x268] sm:$0xff] }
 0x68d   : > { %v11509_v4 = vpack.c.bf16 %v11421_v49, %v11413_v29  ;;  %v11429_v29 = vmax.f32 %v11301_v39, 0.0  ;;  %v11437_v49 = vmax.f32 %v11309_v25, 0.0  ;;  %v11266_v43 = vadd.f32 %v18748_v63, %v11096_v56 }
 0x68e   : > { %12573 = vmatmul.mubr.bf16.vlgmr.msra.gmra.mrb[0].mxu0 %v11474_v55  ;;  %v18943_v55 = vld [vmem:[#allocation8 + $0x3e0] ss:$8 sps:$4 sm:$0xff]   ;;  %v11412_v58 = vmax.f32 %v11284_v15, 0.0  ;;  %v11300_v32 = vadd.f32 %v18754_v16, %v11130_v38  ;;  %v11325_v39 = vadd.f32 %v18751_v14, %v11155_v30  ;;  %v11436_v38 = vmax.f32 %v11308_v34, 0.0 }
 0x68f   : > { %12654 = vmatpush1.bf16.msra.mxu0 %v18796_v21  ;;  %12582 = vmatprep.mubr.bf16.mxu0 %v11483_v53  ;;  %v11258_v21 = vadd.f32 %v18748_v63, %v11088_v37  ;;  %v18949_v53 = vld [vmem:[#allocation8 + $0x3f4] ss:$8 sps:$4 sm:$0xff]   ;;  %v11403_v37 = vmax.f32 %v11275_v20, 0.0  ;;  %v11113_v15 = vld [vmem:[#allocation2 + $0x228] sm:$0xff]  ;;  %v11517_v28 = vpack.c.bf16 %v11437_v49, %v11429_v29 }
 0x690   : > { %12655 = vmatprep.subr.bf16.mxu0 %v18801_v47  ;;  %v18952_v47 = vld [vmem:[#allocation8 + $0x3f0] ss:$8 sps:$4 sm:$0xff]   ;;  %15350 = vmatpush1.bf16.msra.mxu1 %v18943_v55  ;;  %v11283_v56 = vadd.f32 %v18745_v31, %v11113_v15  ;;  %v11453_v20 = vmax.f32 %v11325_v39, 0.0  ;;  %v11137_v30 = vld [vmem:[#allocation2 + $0x2e8] sm:$0xff] }
 0x691   : > { %v11386_v27 = vmax.f32 %v11258_v21, 0.0  ;;  %15335 = vmatprep.subr.bf16.mxu1 %v18949_v53  ;;  %12725 = vmatprep.mubr.bf16.mxu1 %v11509_v4  ;;  %v11394_v21 = vmax.f32 %v11266_v43, 0.0  ;;  %v11146_v4 = vld [vmem:[#allocation2 + $0x330] sm:$0xff]  ;;  %v11499_v36 = vpack.c.bf16 %v11403_v37, %v11395_v51  ;;  %v11171_v29 = vld [vmem:[#allocation2 + $0x3f8] sm:$0xff]  ;;  %v11333_v37 = vadd.f32 %v18751_v14, %v11163_v2  ;;  %v11145_v2 = vld [vmem:[#allocation2 + $0x328] sm:$0xff] }
 0x692   : > { %v11411_v49 = vmax.f32 %v11283_v56, 0.0  ;;  %v11341_v15 = vadd.f32 %v18751_v14, %v11171_v29 }
 0x693   : > { %12656 = vmatpush1.bf16.msra.mxu0 %v18804_v44  ;;  %v11104_v44 = vld [vmem:[#allocation2 + $0x1e0] sm:$0xff]  ;;  %v11490_v25 = vpack.c.bf16 %v11386_v27, %v11378_v17  ;;  %v11129_v27 = vld [vmem:[#allocation2 + $0x2a8] sm:$0xff]  ;;  %v11461_v39 = vmax.f32 %v11333_v37, 0.0 }
 0x694   : > { %12657 = vmatprep.subr.bf16.mxu0 %v18811_v12  ;;  %v11508_v12 = vpack.c.bf16 %v11420_v11, %v11412_v58  ;;  %15351 = vmatpush1.bf16.msra.mxu1 %v18952_v47  ;;  %v11428_v58 = vmax.f32 %v11300_v32, 0.0  ;;  %v11112_v11 = vld [vmem:[#allocation2 + $0x220] sm:$0xff]  ;;  %v11299_v34 = vadd.f32 %v18745_v31, %v11129_v27  ;;  %v11161_v37 = vld [vmem:[#allocation2 + $0x3a8] sm:$0xff] }
 0x695   : > { %v11282_v32 = vadd.f32 %v18748_v63, %v11112_v11 }
 0x696   : > { %12583 = vmatmul.mubr.bf16.gmra.mrb[4].mxu0 %v11482_v13  ;;  %v11154_v13 = vld [vmem:[#allocation2 + $0x370] sm:$0xff]  ;;  %v11516_v51 = vpack.c.bf16 %v11436_v38, %v11428_v58 }
 0x697   : > { %12658 = vmatpush1.bf16.msra.mxu0 %v18816_v3  ;;  %12592 = vmatprep.mubr.bf16.mxu0 %v11491_v6  ;;  %v11274_v3 = vadd.f32 %v18748_v63, %v11104_v44  ;;  %v11445_v6 = vmax.f32 %v11317_v1, 0.0  ;;  %v11316_v44 = vadd.f32 %v18754_v16, %v11146_v4  ;;  %v11410_v56 = vmax.f32 %v11282_v32, 0.0 }
 0x698   : > { %12659 = vmatprep.subr.bf16.mxu0 %v18821_v18  ;;  %v11291_v18 = vadd.f32 %v18745_v31, %v11121_v61  ;;  %12726 = vmatmul.mubr.bf16.vlgmr.msra.gmra.mrb[32].mxu1 %v11508_v12  ;;  %v11307_v61 = vadd.f32 %v18745_v31, %v11137_v30 }
 0x699   : > { %12735 = vmatprep.mubr.bf16.mxu1 %v11517_v28  ;;  %v11402_v17 = vmax.f32 %v11274_v3, 0.0  ;;  %v11525_v43 = vpack.c.bf16 %v11453_v20, %v11445_v6  ;;  %v11444_v1 = vmax.f32 %v11316_v44, 0.0  ;;  %v11469_v3 = vmax.f32 %v11341_v15, 0.0  ;;  %v11153_v6 = vld [vmem:[#allocation2 + $0x368] sm:$0xff] }
 0x69a   : > { %v11169_v15 = vld [vmem:[#allocation2 + $0x3e8] sm:$0xff] }
 0x69b   : > { %12660 = vmatpush1.bf16.msra.mxu0 %v18825_v33  ;;  %v11419_v33 = vmax.f32 %v11291_v18, 0.0  ;;  %v11498_v12 = vpack.c.bf16 %v11402_v17, %v11394_v21  ;;  %v11170_v21 = vld [vmem:[#allocation2 + $0x3f0] sm:$0xff]  ;;  %v11136_v18 = vld [vmem:[#allocation2 + $0x2e0] sm:$0xff]  ;;  %v11533_v20 = vpack.c.bf16 %v11469_v3, %v11461_v39  ;;  %v11059_v3 = vld [vmem:[#allocation2 + $0x78] sm:$0xff] }
 0x69c   : > { %12661 = vmatprep.subr.bf16.mxu0 %v18831_v24  ;;  %v11324_v24 = vadd.f32 %v18754_v16, %v11154_v13  ;;  %v11427_v13 = vmax.f32 %v11299_v34, 0.0  ;;  %v11306_v29 = vadd.f32 %v18748_v63, %v11136_v18  ;;  %v11339_v34 = vadd.f32 %v18745_v31, %v11169_v15  ;;  %v11168_v39 = vld [vmem:[#allocation2 + $0x3e0] sm:$0xff]  ;;  %v11058_v18 = vld [vmem:[#allocation2 + $0x70] sm:$0xff] }
 0x69d   : > { %v11507_v28 = vpack.c.bf16 %v11419_v33, %v11411_v49  ;;  %v11323_v49 = vadd.f32 %v18745_v31, %v11153_v6 }
 0x69e   : > { %12593 = vmatmul.mubr.bf16.gmra.mrb[8].mxu0 %v11490_v25  ;;  %v11162_v25 = vld [vmem:[#allocation2 + $0x3b0] sm:$0xff]  ;;  %v11434_v30 = vmax.f32 %v11306_v29, 0.0  ;;  %v11091_v29 = vld [vmem:[#allocation2 + $0x178] sm:$0xff] }
 0x69f   : > { %12662 = vmatpush1.bf16.msra.mxu0 %v18836_v5  ;;  %12602 = vmatprep.mubr.bf16.mxu0 %v11499_v36  ;;  %v11290_v5 = vadd.f32 %v18748_v63, %v11120_v35  ;;  %v11435_v36 = vmax.f32 %v11307_v61, 0.0  ;;  %v11332_v38 = vadd.f32 %v18754_v16, %v11162_v25  ;;  %v11451_v44 = vmax.f32 %v11323_v49, 0.0 }
 0x6a0   : > { %12663 = vmatprep.subr.bf16.mxu0 %v18840_v0  ;;  %12736 = vmatmul.mubr.bf16.gmra.mrb[36].mxu1 %v11516_v51  ;;  %v11452_v0 = vmax.f32 %v11324_v24, 0.0  ;;  %v11144_v24 = vld [vmem:[#allocation2 + $0x320] sm:$0xff] }
 0x6a1   : > { %12745 = vmatprep.mubr.bf16.mxu1 %v11525_v43  ;;  %v11418_v4 = vmax.f32 %v11290_v5, 0.0  ;;  %v11515_v11 = vpack.c.bf16 %v11435_v36, %v11427_v13  ;;  %v11460_v27 = vmax.f32 %v11332_v38, 0.0  ;;  %v11314_v32 = vadd.f32 %v18748_v63, %v11144_v24  ;;  %v11090_v24 = vld [vmem:[#allocation2 + $0x170] sm:$0xff] }
 0x6a2   : > { %v11524_v58 = vpack.c.bf16 %v11452_v0, %v11444_v1  ;;  %v11467_v1 = vmax.f32 %v11339_v34, 0.0  ;;  %v11160_v0 = vld [vmem:[#allocation2 + $0x3a0] sm:$0xff] }
 0x6a3   : > { %12664 = vmatpush1.bf16.msra.mxu0 %v18846_v8  ;;  %v11128_v8 = vld [vmem:[#allocation2 + $0x2a0] sm:$0xff]  ;;  %v11506_v17 = vpack.c.bf16 %v11418_v4, %v11410_v56  ;;  %v11442_v61 = vmax.f32 %v11314_v32, 0.0 }
 0x6a4   : > { %12665 = vmatprep.subr.bf16.mxu0 %v18851_v42  ;;  %v11340_v42 = vadd.f32 %v18754_v16, %v11170_v21  ;;  %v11298_v35 = vadd.f32 %v18748_v63, %v11128_v8  ;;  %v11338_v21 = vadd.f32 %v18748_v63, %v11168_v39  ;;  %v11050_v8 = vld [vmem:[#allocation2 + $0x30] sm:$0xff] }
 0x6a5   : > { %v11220_v38 = vadd.f32 %v18754_v16, %v11050_v8  ;;  %v15774_v8 = vld [vmem:[%s19321_s5 + $0x68] sm:$0xff]  }
 0x6a6   : > { %12603 = vmatmul.mubr.bf16.gmra.mrb[12].mxu0 %v11498_v12  ;;  %v11468_v33 = vmax.f32 %v11340_v42, 0.0  ;;  %v11466_v13 = vmax.f32 %v11338_v21, 0.0  ;;  %v11228_v42 = vadd.f32 %v18754_v16, %v11058_v18  ;;  %v15765_v21 = vld [vmem:[%s19321_s5] sm:$0xff]   ;;  %v15775_v18 = vld [vmem:[%s19321_s5 + $0x28] sm:$0xff]  }
 0x6a7   : > { %12666 = vmatpush1.bf16.msra.mxu0 %v18856_v22  ;;  %12612 = vmatprep.mubr.bf16.mxu0 %v11507_v28  ;;  %v11315_v22 = vadd.f32 %v18745_v31, %v11145_v2  ;;  %v11348_v6 = vmax.f32 %v11220_v38, 0.0  ;;  %v15779_v38 = vld [vmem:[%s19321_s5 + $0x38] sm:$0xff]  }
 0x6a8   : > { %12667 = vmatprep.subr.bf16.mxu0 %v18859_v45  ;;  %12746 = vmatmul.mubr.bf16.gmra.mrb[40].mxu1 %v11524_v58  ;;  %v11426_v45 = vmax.f32 %v11298_v35, 0.0  ;;  %v11532_v43 = vpack.c.bf16 %v11468_v33, %v11460_v27  ;;  %v11074_v35 = vld [vmem:[#allocation2 + $0xf0] sm:$0xff] }
 0x6a9   : > { %12755 = vmatprep.mubr.bf16.mxu1 %v11533_v20  ;;  %v11443_v51 = vmax.f32 %v11315_v22, 0.0  ;;  %v11356_v20 = vmax.f32 %v11228_v42, 0.0  ;;  %v11244_v27 = vadd.f32 %v18754_v16, %v11074_v35 }
 0x6aa   : > { %v11514_v12 = vpack.c.bf16 %v11434_v30, %v11426_v45 }
 0x6ab   : > { %12668 = vmatpush1.bf16.msra.mxu0 %v18868_v57  ;;  %v11152_v57 = vld [vmem:[#allocation2 + $0x360] sm:$0xff]  ;;  %v11523_v5 = vpack.c.bf16 %v11451_v44, %v11443_v51  ;;  %v11476_v22 = vpack.c.bf16 %v11356_v20, %v11348_v6  ;;  %v11372_v30 = vmax.f32 %v11244_v27, 0.0  ;;  %v11082_v44 = vld [vmem:[#allocation2 + $0x130] sm:$0xff] }
 0x6ac   : > { %12669 = vmatprep.subr.bf16.mxu0 %v18871_v23  ;;  %v11322_v23 = vadd.f32 %v18748_v63, %v11152_v57  ;;  %v11099_v57 = vld [vmem:[#allocation2 + $0x1b8] sm:$0xff]  ;;  %v11252_v15 = vadd.f32 %v18754_v16, %v11082_v44 }
 0x6ad   : > { %v11269_v32 = vadd.f32 %v18751_v14, %v11099_v57 }
 0x6ae   : > { %12613 = vmatmul.mubr.bf16.gmra.mrb[16].mxu0 %v11506_v17 }
 0x6af   : > { %12670 = vmatpush1.bf16.msra.mxu0 %v18876_v10  ;;  %12622 = vmatprep.mubr.bf16.mxu0 %v11515_v11  ;;  %v11331_v10 = vadd.f32 %v18745_v31, %v11161_v37  ;;  %v11330_v31 = vadd.f32 %v18748_v63, %v11160_v0  ;;  %v11067_v63 = vld [vmem:[#allocation2 + $0xb8] sm:$0xff]  ;;  %v11066_v11 = vld [vmem:[#allocation2 + $0xb0] sm:$0xff]  ;;  %v11397_v34 = vmax.f32 %v11269_v32, 0.0 }
 0x6b0   : > { %12671 = vmatprep.subr.bf16.mxu0 %v18879_v40  ;;  %12756 = vmatmul.mubr.bf16.gmra.mrb[44].mxu1 %v11532_v43  ;;  %v11450_v40 = vmax.f32 %v11322_v23, 0.0  ;;  %v11237_v2 = vadd.f32 %v18751_v14, %v11067_v63  ;;  %v11236_v49 = vadd.f32 %v18754_v16, %v11066_v11  ;;  %v11107_v43 = vld [vmem:[#allocation2 + $0x1f8] sm:$0xff]  ;;  %v15776_v63 = vld [vmem:[%s19321_s5 + $0x70] sm:$0xff]  }
 0x6b1   : > { %v11459_v28 = vmax.f32 %v11331_v10, 0.0  ;;  %v11458_v4 = vmax.f32 %v11330_v31, 0.0  ;;  %v11277_v23 = vadd.f32 %v18751_v14, %v11107_v43 }
 0x6b2   : > { %v11522_v25 = vpack.c.bf16 %v11450_v40, %v11442_v61  ;;  %v11364_v45 = vmax.f32 %v11236_v49, 0.0  ;;  %v11098_v40 = vld [vmem:[#allocation2 + $0x1b0] sm:$0xff] }
 0x6b3   : > { %12672 = vmatpush1.bf16.msra.mxu0 %v18887_v59  ;;  %v11051_v59 = vld [vmem:[#allocation2 + $0x38] sm:$0xff]  ;;  %v11530_v58 = vpack.c.bf16 %v11466_v13, %v11458_v4  ;;  %v11405_v61 = vmax.f32 %v11277_v23, 0.0  ;;  %v11268_v0 = vadd.f32 %v18754_v16, %v11098_v40 }
 0x6b4   : > { %12673 = vmatprep.subr.bf16.mxu0 %v18891_v52  ;;  %v11531_v52 = vpack.c.bf16 %v11467_v1, %v11459_v28  ;;  %v11221_v56 = vadd.f32 %v18751_v14, %v11051_v59  ;;  %v11484_v37 = vpack.c.bf16 %v11372_v30, %v11364_v45  ;;  %v11106_v28 = vld [vmem:[#allocation2 + $0x1f0] sm:$0xff]  ;;  %v15770_v4 = vld [vmem:[%s19321_s5 + $0x58] sm:$0xff]  }
 0x6b5   : > { %v11276_v39 = vadd.f32 %v18754_v16, %v11106_v28  ;;  %v11501_v59 = vpack.c.bf16 %v11405_v61, %v11397_v34  ;;  %v15771_v13 = vld [vmem:[%s19321_s5 + $0x18] sm:$0xff]   ;;  %v11662_v28 = vld [vmem:[#allocation10] sm:$0x3] }
 0x6b6   : > { %12623 = vmatmul.mubr.bf16.gmra.mrb[20].mxu0 %v11514_v12 }
 0x6b7   : > { %12674 = vmatpush1.bf16.msra.mxu0 %v18897_v26  ;;  %12632 = vmatprep.mubr.bf16.mxu0 %v11523_v5  ;;  %v11229_v26 = vadd.f32 %v18751_v14, %v11059_v3  ;;  %v11380_v5 = vmax.f32 %v11252_v15, 0.0  ;;  %v11396_v3 = vmax.f32 %v11268_v0, 0.0 }
 0x6b8   : > { %12675 = vmatprep.subr.bf16.mxu0 %v18901_v41  ;;  %v11349_v41 = vmax.f32 %v11221_v56, 0.0  ;;  %v15768_v56 = vld [vmem:[%s19321_s5 + $0x50] sm:$0xff]  }
 0x6b9   : > { %v11357_v36 = vmax.f32 %v11229_v26, 0.0  ;;  %v15769_v26 = vld [vmem:[%s19321_s5 + $0x10] sm:$0xff]  }
 0x6bb   : > { %12676 = vmatpush1.bf16.msra.mxu0 %v18908_v7  ;;  %v11075_v7 = vld [vmem:[#allocation2 + $0xf8] sm:$0xff] }
 0x6bc   : > { %12677 = vmatprep.subr.bf16.mxu0 %v18911_v9  ;;  %v11477_v9 = vpack.c.bf16 %v11357_v36, %v11349_v41  ;;  %v15772_v41 = vld [vmem:[%s19321_s5 + $0x60] sm:$0xff]  }
 0x6bd   : > { %v15773_v36 = vld [vmem:[%s19321_s5 + $0x20] sm:$0xff]  }
 0x6be   : > { %12633 = vmatmul.mubr.bf16.gmra.mrb[24].mxu0 %v11522_v25  ;;  %v11404_v25 = vmax.f32 %v11276_v39, 0.0 }
 0x6bf   : > { %12678 = vmatpush1.bf16.msra.mxu0 %v18916_v48  ;;  %12642 = vmatprep.mubr.bf16.mxu0 %v11531_v52  ;;  %v11245_v48 = vadd.f32 %v18751_v14, %v11075_v7  ;;  %v15767_v52 = vld [vmem:[%s19321_s5 + $0x8] sm:$0xff]   ;;  %v15777_v7 = vld [vmem:[%s19321_s5 + $0x30] sm:$0xff]  }
 0x6c0   : > { %12679 = vmatprep.subr.bf16.mxu0 %v18919_v54  ;;  %v11365_v54 = vmax.f32 %v11237_v2, 0.0  ;;  %v11500_v31 = vpack.c.bf16 %v11404_v25, %v11396_v3  ;;  %v19133_v3 = vrot.slane %v11662_v28, %v11180_v60 }
 0x6c1   : > { %v11373_v17 = vmax.f32 %v11245_v48, 0.0 }
 0x6c3   : > { %12680 = vmatpush1.bf16.msra.mxu0 %v18932_v19  ;;  %v11083_v19 = vld [vmem:[#allocation2 + $0x138] sm:$0xff] }
 0x6c4   : > { %12681 = vmatprep.subr.bf16.mxu0 %v18935_v46  ;;  %v11485_v46 = vpack.c.bf16 %v11373_v17, %v11365_v54  ;;  %v11253_v33 = vadd.f32 %v18751_v14, %v11083_v19 }
 0x6c6   : > { %12643 = vmatmul.mubr.bf16.gmra.mrb[28].mxu0 %v11530_v58  ;;  %v11381_v51 = vmax.f32 %v11253_v33, 0.0  ;;  %v15778_v58 = vld [vmem:[%s19321_s5 + $0x78] sm:$0xff]  }
 0x6c7   : > { %12682 = vmatpush1.bf16.msra.mxu0 %v18943_v55  ;;  %12685 = vmatprep.mubr.bf16.mxu0 %v11477_v9  ;;  %v11261_v55 = vadd.f32 %v18751_v14, %v11091_v29  ;;  %v15764_v14 = vld [vmem:[%s19321_s5 + $0x40] sm:$0xff]  }
 0x6c8   : > { %12683 = vmatprep.subr.bf16.mxu0 %v18949_v53  ;;  %14360 = vmatprep.subr.bf16.mxu1 %v15764_v14 }
 0x6c9   : > { %v11389_v53 = vmax.f32 %v11261_v55, 0.0  ;;  %14361 = vmatpush3.bf16.msra.mxu1 %v15765_v21 }
 0x6cb   : > { %12684 = vmatpush1.bf16.msra.mxu0 %v18952_v47  ;;  %v11260_v47 = vadd.f32 %v18754_v16, %v11090_v24  ;;  %v11493_v12 = vpack.c.bf16 %v11389_v53, %v11381_v51  ;;  %v15766_v16 = vld [vmem:[%s19321_s5 + $0x48] sm:$0xff]  }
 0x6cc   : > { %14362 = vmatprep.subr.bf16.mxu1 %v15766_v16 }
 0x6cd   : > { %v11388_v10 = vmax.f32 %v11260_v47, 0.0  ;;  %14363 = vmatpush3.bf16.msra.mxu1 %v15767_v52 }
 0x6ce   : > { %12686 = vmatmul.mubr.bf16.vlgmr.msra.gmra.mrb[0].mxu0 %v11476_v22  ;;  %14364 = vmatprep.subr.bf16.mxu1 %v15768_v56 }
 0x6cf   : > { %12695 = vmatprep.mubr.bf16.mxu0 %v11485_v46  ;;  %v11492_v1 = vpack.c.bf16 %v11388_v10, %v11380_v5 }
 0x6d1   : > { %14365 = vmatpush3.bf16.msra.mxu1 %v15769_v26 }
 0x6d2   : > { %14366 = vmatprep.subr.bf16.mxu1 %v15770_v4 }
 0x6d5   : > { %14367 = vmatpush3.bf16.msra.mxu1 %v15771_v13 }
 0x6d6   : > { %12696 = vmatmul.mubr.bf16.gmra.mrb[4].mxu0 %v11484_v37  ;;  %14368 = vmatprep.subr.bf16.mxu1 %v15772_v41 }
 0x6d7   : > { %12705 = vmatprep.mubr.bf16.mxu0 %v11493_v12 }
 0x6d9   : > { %14369 = vmatpush3.bf16.msra.mxu1 %v15773_v36 }
 0x6da   : > { %14370 = vmatprep.subr.bf16.mxu1 %v15774_v8 }
 0x6dd   : > { %14371 = vmatpush3.bf16.msra.mxu1 %v15775_v18 }
 0x6de   : > { %12706 = vmatmul.mubr.bf16.gmra.mrb[8].mxu0 %v11492_v1  ;;  %14372 = vmatprep.subr.bf16.mxu1 %v15776_v63 }
 0x6df   : > { %12715 = vmatprep.mubr.bf16.mxu0 %v11501_v59  ;;  %v19129_v59 = vrot.slane %v11662_v28, %v11176_v62 }
 0x6e1   : > { %14373 = vmatpush3.bf16.msra.mxu1 %v15777_v7 }
 0x6e2   : > { %14374 = vmatprep.subr.bf16.mxu1 %v15778_v58 }
 0x6e5   : > { %14375 = vmatpush3.bf16.msra.mxu1 %v15779_v38 }
 0x6e6   : > { %12716 = vmatmul.mubr.bf16.gmra.mrb[12].mxu0 %v11500_v31 }
 0x726   : > { %v19079_v42 = vpop.f32.mrb[0].mxu1 }
 0x727   : > { %v19081_v9 = vpop.f32.mrb[1].mxu1 }
 0x728   : > { %v19083_v2 = vpop.f32.mrb[2].mxu1 }
 0x729   : > { %v19085_v48 = vpop.f32.mrb[3].mxu1 }
 0x72e   : > { %v19087_v6 = vpop.f32.mrb[4].mxu1 }
 0x72f   : > { %v19089_v20 = vpop.f32.mrb[5].mxu1 }
 0x730   : > { %v19091_v54 = vpop.f32.mrb[6].mxu1 }
 0x731   : > { %v19093_v17 = vpop.f32.mrb[7].mxu1 }
 0x736   : > { %v19095_v11 = vpop.f32.mrb[8].mxu1 }
 0x737   : > { %v19097_v35 = vpop.f32.mrb[9].mxu1 }
 0x738   : > { %v19099_v19 = vpop.f32.mrb[10].mxu1 }
 0x739   : > { %v19101_v29 = vpop.f32.mrb[11].mxu1 }
 0x73e   : > { %v19103_v22 = vpop.f32.mrb[12].mxu1 }
 0x73f   : > { %v19105_v49 = vpop.f32.mrb[13].mxu1 }
 0x740   : > { %v19107_v27 = vpop.f32.mrb[14].mxu1 }
 0x741   : > { %v19109_v46 = vpop.f32.mrb[15].mxu1 }
 0x746   : > { %v12388_v33 = vpop.f32.mrb[16].mxu1 }
 0x747   : > { %v12390_v55 = vpop.f32.mrb[17].mxu1  ;;  %v12389_v25 = vadd.f32 %v12388_v33, %v19129_v59 }
 0x748   : > { %v12392_v45 = vpop.f32.mrb[18].mxu1  ;;  %v12391_v14 = vadd.f32 %v12390_v55, %v19133_v3 }
 0x749   : > { %v12394_v30 = vpop.f32.mrb[19].mxu1  ;;  %v12393_v16 = vadd.f32 %v12392_v45, %v19129_v59 }
 0x74a   : > { %v12395_v56 = vadd.f32 %v12394_v30, %v19133_v3 }
 0x74e   : > { %v12398_v51 = vpop.f32.mrb[20].mxu1 }
 0x74f   : > { %v12400_v53 = vpop.f32.mrb[21].mxu1  ;;  %v12399_v7 = vadd.f32 %v12398_v51, %v19129_v59 }
 0x750   : > { %v12402_v44 = vpop.f32.mrb[22].mxu1  ;;  %v12401_v33 = vadd.f32 %v12400_v53, %v19133_v3 }
 0x751   : > { %v12404_v24 = vpop.f32.mrb[23].mxu1  ;;  %v12403_v30 = vadd.f32 %v12402_v44, %v19129_v59 }
 0x756   : > { %v19111_v57 = vpop.f32.mrb[24].mxu1 }
 0x757   : > { %v19113_v43 = vpop.f32.mrb[25].mxu1 }
 0x758   : > { %v19115_v37 = vpop.f32.mrb[26].mxu1 }
 0x759   : > { %v19117_v15 = vpop.f32.mrb[27].mxu1 }
 0x75e   : > { %v19119_v47 = vpop.f32.mrb[28].mxu1 }
 0x75f   : > { %v19121_v12 = vpop.f32.mrb[29].mxu1 }
 0x760   : > { %v19123_v32 = vpop.f32.mrb[30].mxu1 }
 0x761   : > { %v19125_v23 = vpop.f32.mrb[31].mxu1 }
 0x76b   : > { %v12727_v5 = vpop.f32.mrb[32].mxu1 }
 0x76c   : > { %v12729_v10 = vpop.f32.mrb[33].mxu1 }
 0x76d   : > { %v12731_v34 = vpop.f32.mrb[34].mxu1 }
 0x76e   : > { %v12733_v61 = vpop.f32.mrb[35].mxu1 }
 0x773   : > { %v12737_v40 = vpop.f32.mrb[36].mxu1 }
 0x774   : > { %v12739_v1 = vpop.f32.mrb[37].mxu1 }
 0x775   : > { %v12741_v0 = vpop.f32.mrb[38].mxu1 }
 0x776   : > { %v12743_v39 = vpop.f32.mrb[39].mxu1 }
 0x77b   : > { %v12747_v31 = vpop.f32.mrb[40].mxu1 }
 0x77c   : > { %v12749_v21 = vpop.f32.mrb[41].mxu1 }
 0x77d   : > { %v12751_v52 = vpop.f32.mrb[42].mxu1 }
 0x77e   : > { %v12753_v4 = vpop.f32.mrb[43].mxu1 }
 0x781   : > { %v12614_v26 = vpop.f32.mrb[16].mxu0 }
 0x782   : > { %v15385_v13 = vadd.f32 %v12614_v26, %v12389_v25  ;;  %v12616_v62 = vpop.f32.mrb[17].mxu0 }
 0x783   : > { %v15388_v41 = vadd.f32 %v12616_v62, %v12391_v14  ;;  %v12618_v36 = vpop.f32.mrb[18].mxu0  ;;  %v19140_v38 = vpop.f32.mrb[44].mxu1 }
 0x784   : > { %v15391_v50 = vadd.f32 %v12618_v36, %v12393_v16  ;;  %v15386_v60 = vadd.f32 %v15385_v13, %v12727_v5  ;;  %v12620_v8 = vpop.f32.mrb[19].mxu0  ;;  %v19143_v45 = vpop.f32.mrb[45].mxu1  ;;  %v12405_v5 = vadd.f32 %v12404_v24, %v19133_v3  ;;  %v12409_v24 = vadd.f32 %v19111_v57, %v19129_v59 }
 0x785   : > { %v15394_v18 = vadd.f32 %v12620_v8, %v12395_v56  ;;  %v15389_v63 = vadd.f32 %v15388_v41, %v12729_v10  ;;  %v12761_v14 = vpop.f32.mrb[46].mxu1 }
 0x786   : > { %v15392_v58 = vadd.f32 %v15391_v50, %v12731_v34  ;;  %v12782_v28 = vmax.f32 %v15386_v60, 0.0  ;;  %v12763_v26 = vpop.f32.mrb[47].mxu1 }
 0x787   : > { %v15395_v55 = vadd.f32 %v15394_v18, %v12733_v61  ;;  %v12783_v16 = vmax.f32 %v15389_v63, 0.0  ;;  %v12411_v18 = vadd.f32 %v19113_v43, %v19133_v3 }
 0x788   : > { %v12784_v25 = vmax.f32 %v15392_v58, 0.0 }
 0x789   : > { %v12785_v56 = vmax.f32 %v15395_v55, 0.0  ;;  %v12624_v10 = vpop.f32.mrb[20].mxu0 }
 0x78a   : > { %v19147_v51 = vpack.c.bf16 %v12784_v25, %v12782_v28  ;;  %v15397_v34 = vadd.f32 %v12624_v10, %v12399_v7  ;;  %v12626_v13 = vpop.f32.mrb[21].mxu0  ;;  %v12413_v7 = vadd.f32 %v19115_v37, %v19129_v59 }
 0x78b   : > { %v19149_v62 = vpack.c.bf16 %v12785_v56, %v12783_v16  ;;  %v15400_v53 = vadd.f32 %v12626_v13, %v12401_v33  ;;  %v12628_v61 = vpop.f32.mrb[22].mxu0  ;;  %v12415_v33 = vadd.f32 %v19117_v15, %v19133_v3  ;;  %v12421_v13 = vadd.f32 %v19121_v12, %v19133_v3 }
 0x78c   : > { %v15403_v41 = vadd.f32 %v12628_v61, %v12403_v30  ;;  %v15398_v36 = vadd.f32 %v15397_v34, %v12737_v40  ;;  %v12630_v44 = vpop.f32.mrb[23].mxu0  ;;  %v12419_v34 = vadd.f32 %v19119_v47, %v19129_v59  ;;  %v12423_v61 = vadd.f32 %v19123_v32, %v19129_v59 }
 0x78d   : > { %v15406_v50 = vadd.f32 %v12630_v44, %v12405_v5  ;;  %v15401_v60 = vadd.f32 %v15400_v53, %v12739_v1  ;;  %v12425_v44 = vadd.f32 %v19125_v23, %v19133_v3 }
 0x78e   : > { %v15404_v8 = vadd.f32 %v15403_v41, %v12741_v0  ;;  %v12786_v58 = vmax.f32 %v15398_v36, 0.0 }
 0x78f   : > { %v15407_v63 = vadd.f32 %v15406_v50, %v12743_v39  ;;  %v12787_v40 = vmax.f32 %v15401_v60, 0.0 }
 0x790   : > { %v12788_v55 = vmax.f32 %v15404_v8, 0.0 }
 0x791   : > { %v12789_v30 = vmax.f32 %v15407_v63, 0.0  ;;  %v12634_v28 = vpop.f32.mrb[24].mxu0 }
 0x792   : > { %v19159_v1 = vpack.c.bf16 %v12788_v55, %v12786_v58  ;;  %v15409_v25 = vadd.f32 %v12634_v28, %v12409_v24  ;;  %v12636_v57 = vpop.f32.mrb[25].mxu0  ;;  %v12349_v55 = vadd.f32 %v19079_v42, %v19129_v59 }
 0x793   : > { %v19161_v0 = vpack.c.bf16 %v12789_v30, %v12787_v40  ;;  %v15412_v5 = vadd.f32 %v12636_v57, %v12411_v18  ;;  %v12638_v43 = vpop.f32.mrb[26].mxu0  ;;  %v12351_v30 = vadd.f32 %v19081_v9, %v19133_v3 }
 0x794   : > { %v15415_v39 = vadd.f32 %v12638_v43, %v12413_v7  ;;  %v15410_v16 = vadd.f32 %v15409_v25, %v12747_v31  ;;  %v12640_v56 = vpop.f32.mrb[27].mxu0 }
 0x795   : > { %v15418_v37 = vadd.f32 %v12640_v56, %v12415_v33  ;;  %v15413_v10 = vadd.f32 %v15412_v5, %v12749_v21 }
 0x796   : > { %v15416_v15 = vadd.f32 %v15415_v39, %v12751_v52  ;;  %v12790_v41 = vmax.f32 %v15410_v16, 0.0 }
 0x797   : > { %v15419_v53 = vadd.f32 %v15418_v37, %v12753_v4  ;;  %v12791_v31 = vmax.f32 %v15413_v10, 0.0 }
 0x798   : > { %v12792_v36 = vmax.f32 %v15416_v15, 0.0 }
 0x799   : > { %v12793_v50 = vmax.f32 %v15419_v53, 0.0  ;;  %v12644_v60 = vpop.f32.mrb[28].mxu0  ;;  %v12361_v53 = vadd.f32 %v19089_v20, %v19133_v3 }
 0x79a   : > { %v19171_v21 = vpack.c.bf16 %v12792_v36, %v12790_v41  ;;  %v15421_v24 = vadd.f32 %v12644_v60, %v12419_v34  ;;  %v12646_v47 = vpop.f32.mrb[29].mxu0  ;;  %v12363_v41 = vadd.f32 %v19091_v54, %v19129_v59 }
 0x79b   : > { %v19173_v52 = vpack.c.bf16 %v12793_v50, %v12791_v31  ;;  %v15424_v8 = vadd.f32 %v12646_v47, %v12421_v13  ;;  %v12648_v12 = vpop.f32.mrb[30].mxu0  ;;  %v12365_v31 = vadd.f32 %v19093_v17, %v19133_v3 }
 0x79c   : > { %v15427_v4 = vadd.f32 %v12648_v12, %v12423_v61  ;;  %v15422_v18 = vadd.f32 %v15421_v24, %v19140_v38  ;;  %v12650_v32 = vpop.f32.mrb[31].mxu0  ;;  %v12353_v38 = vadd.f32 %v19083_v2, %v19129_v59  ;;  %v12359_v2 = vadd.f32 %v19087_v6, %v19129_v59 }
 0x79d   : > { %v15430_v63 = vadd.f32 %v12650_v32, %v12425_v44  ;;  %v15425_v7 = vadd.f32 %v15424_v8, %v19143_v45  ;;  %v12371_v32 = vadd.f32 %v19097_v35, %v19133_v3 }
 0x79e   : > { %v15428_v58 = vadd.f32 %v15427_v4, %v12761_v14  ;;  %v12794_v33 = vmax.f32 %v15422_v18, 0.0  ;;  %v12355_v14 = vadd.f32 %v19085_v48, %v19133_v3  ;;  %v12369_v18 = vadd.f32 %v19095_v11, %v19129_v59 }
 0x79f   : > { %v15431_v23 = vadd.f32 %v15430_v63, %v12763_v26  ;;  %v12795_v28 = vmax.f32 %v15425_v7, 0.0  ;;  %v12373_v7 = vadd.f32 %v19099_v19, %v19129_v59 }
 0x7a0   : > { %v12796_v40 = vmax.f32 %v15428_v58, 0.0 }
 0x7a1   : > { %v12797_v25 = vmax.f32 %v15431_v23, 0.0  ;;  %v12687_v57 = vpop.f32.mrb[0].mxu0 }
 0x7a2   : > { %v19183_v5 = vpack.c.bf16 %v12796_v40, %v12794_v33  ;;  %v15353_v43 = vadd.f32 %v12687_v57, %v12349_v55  ;;  %v12689_v45 = vpop.f32.mrb[1].mxu0  ;;  %v12375_v55 = vadd.f32 %v19101_v29, %v19133_v3 }
 0x7a3   : > { %v19187_v26 = vpack.c.bf16 %v12797_v25, %v12795_v28  ;;  %v15355_v42 = vadd.f32 %v12689_v45, %v12351_v30  ;;  %v12691_v39 = vpop.f32.mrb[2].mxu0  ;;  %v12381_v45 = vadd.f32 %v19105_v49, %v19133_v3 }
 0x7a4   : > { %v15357_v16 = vadd.f32 %v12691_v39, %v12353_v38  ;;  %v12693_v56 = vpop.f32.mrb[3].mxu0  ;;  %v12766_v37 = vmax.f32 %v15353_v43, 0.0  ;;  %v12379_v43 = vadd.f32 %v19103_v22, %v19129_v59 }
 0x7a5   : > { %v15359_v9 = vadd.f32 %v12693_v56, %v12355_v14  ;;  %v12767_v34 = vmax.f32 %v15355_v42, 0.0  ;;  %v12383_v42 = vadd.f32 %v19107_v27, %v19129_v59  ;;  %v12385_v56 = vadd.f32 %v19109_v46, %v19133_v3  ;;  %v19221_v46 = vld [vmem:[#allocation11] ss:$0 sm:$0xff] }
 0x7a6   : > { %v12768_v10 = vmax.f32 %v15357_v16, 0.0 }
 0x7a7   : > { %v12769_v15 = vmax.f32 %v15359_v9, 0.0 }
 0x7a8   : > { %v12798_v13 = vpack.c.bf16 %v12768_v10, %v12766_v37 }
 0x7a9   : > { %v12799_v61 = vpack.c.bf16 %v12769_v15, %v12767_v34  ;;  %v12697_v48 = vpop.f32.mrb[4].mxu0 }
 0x7aa   : > { %v15361_v36 = vadd.f32 %v12697_v48, %v12359_v2  ;;  %v12699_v44 = vpop.f32.mrb[5].mxu0 }
 0x7ab   : > { %v15363_v50 = vadd.f32 %v12699_v44, %v12361_v53  ;;  %v12701_v60 = vpop.f32.mrb[6].mxu0  ;;  %12981 = vmatprep.mubr.bf16.mxu1 %v12799_v61 }
 0x7ac   : > { %v15365_v24 = vadd.f32 %v12701_v60, %v12363_v41  ;;  %v12703_v47 = vpop.f32.mrb[7].mxu0  ;;  %12982 = vmatmul.mubr.bf16.vlgmr.msra.gmra.mrb[48].mxu1 %v12798_v13  ;;  %v12770_v8 = vmax.f32 %v15361_v36, 0.0 }
 0x7ad   : > { %v15367_v6 = vadd.f32 %v12703_v47, %v12365_v31  ;;  %v12771_v20 = vmax.f32 %v15363_v50, 0.0 }
 0x7ae   : > { %v12772_v12 = vmax.f32 %v15365_v24, 0.0 }
 0x7af   : > { %v12773_v4 = vmax.f32 %v15367_v6, 0.0 }
 0x7b0   : > { %v12800_v54 = vpack.c.bf16 %v12772_v12, %v12770_v8 }
 0x7b1   : > { %v12801_v63 = vpack.c.bf16 %v12773_v4, %v12771_v20  ;;  %v12707_v17 = vpop.f32.mrb[8].mxu0 }
 0x7b2   : > { %v15369_v58 = vadd.f32 %v12707_v17, %v12369_v18  ;;  %v12709_v23 = vpop.f32.mrb[9].mxu0 }
 0x7b3   : > { %v15371_v33 = vadd.f32 %v12709_v23, %v12371_v32  ;;  %v12711_v40 = vpop.f32.mrb[10].mxu0  ;;  %12989 = vmatprep.mubr.bf16.mxu1 %v12801_v63 }
 0x7b4   : > { %v15373_v30 = vadd.f32 %v12711_v40, %v12373_v7  ;;  %v12713_v28 = vpop.f32.mrb[11].mxu0  ;;  %12990 = vmatmul.mubr.bf16.gmra.mrb[52].mxu1 %v12800_v54  ;;  %v12774_v25 = vmax.f32 %v15369_v58, 0.0 }
 0x7b5   : > { %v15375_v11 = vadd.f32 %v12713_v28, %v12375_v55  ;;  %v12775_v35 = vmax.f32 %v15371_v33, 0.0 }
 0x7b6   : > { %v12776_v57 = vmax.f32 %v15373_v30, 0.0 }
 0x7b7   : > { %v12777_v38 = vmax.f32 %v15375_v11, 0.0 }
 0x7b8   : > { %v12802_v19 = vpack.c.bf16 %v12776_v57, %v12774_v25 }
 0x7b9   : > { %v12803_v14 = vpack.c.bf16 %v12777_v38, %v12775_v35  ;;  %v12717_v29 = vpop.f32.mrb[12].mxu0 }
 0x7ba   : > { %v15377_v39 = vadd.f32 %v12717_v29, %v12379_v43  ;;  %v12719_v16 = vpop.f32.mrb[13].mxu0 }
 0x7bb   : > { %v15379_v9 = vadd.f32 %v12719_v16, %v12381_v45  ;;  %v12721_v37 = vpop.f32.mrb[14].mxu0  ;;  %12997 = vmatprep.mubr.bf16.mxu1 %v12803_v14 }
 0x7bc   : > { %v15381_v10 = vadd.f32 %v12721_v37, %v12383_v42  ;;  %v12723_v34 = vpop.f32.mrb[15].mxu0  ;;  %12998 = vmatmul.mubr.bf16.gmra.mrb[56].mxu1 %v12802_v19  ;;  %v12778_v15 = vmax.f32 %v15377_v39, 0.0 }
 0x7bd   : > { %v15383_v22 = vadd.f32 %v12723_v34, %v12385_v56  ;;  %v12779_v49 = vmax.f32 %v15379_v9, 0.0 }
 0x7be   : > { %v12780_v2 = vmax.f32 %v15381_v10, 0.0 }
 0x7bf   : > { %v12781_v13 = vmax.f32 %v15383_v22, 0.0 }
 0x7c0   : > { %v12804_v53 = vpack.c.bf16 %v12780_v2, %v12778_v15 }
 0x7c1   : > { %v12805_v61 = vpack.c.bf16 %v12781_v13, %v12779_v49 }
 0x7c3   : > { %13005 = vmatprep.mubr.bf16.mxu1 %v12805_v61 }
 0x7c4   : > { %13006 = vmatmul.mubr.bf16.gmra.mrb[60].mxu1 %v12804_v53 }
 0x7c5   : > { %13013 = vmatprep.mubr.bf16.mxu1 %v19149_v62 }
 0x7cc   : > { %13014 = vmatmul.mubr.bf16.gmra.mrb[64].mxu1 %v19147_v51 }
 0x7cd   : > { %13021 = vmatprep.mubr.bf16.mxu1 %v19161_v0 }
 0x7d4   : > { %13022 = vmatmul.mubr.bf16.gmra.mrb[68].mxu1 %v19159_v1 }
 0x7d5   : > { %13029 = vmatprep.mubr.bf16.mxu1 %v19173_v52 }
 0x7dc   : > { %13030 = vmatmul.mubr.bf16.gmra.mrb[72].mxu1 %v19171_v21 }
 0x7dd   : > { %13037 = vmatprep.mubr.bf16.mxu1 %v19187_v26 }
 0x7e4   : > { %13038 = vmatmul.mubr.bf16.gmra.mrb[76].mxu1 %v19183_v5 }
 0x87f   : > { %v14376_v27 = vpop.f32.mrb[48].mxu1 }
 0x880   : > { %v14377_v59 = vpop.f32.mrb[49].mxu1 }
 0x881   : > { %v14378_v3 = vadd.f32 %v14377_v59, %v14376_v27  ;;  %v14379_v62 = vpop.f32.mrb[50].mxu1 }
 0x882   : > { %v14380_v51 = vpop.f32.mrb[51].mxu1 }
 0x883   : > { %v12984_v0 = vadd.f32 %v14378_v3, %v19221_v46  ;;  %v14381_v48 = vadd.f32 %v14380_v51, %v14379_v62 }
 0x885   : > { %13047 = vst.msk [vmem:[%s19323_s7] sm:$0xff] %vm13046_vm0, %v12984_v0  ;;  %v12987_v1 = vadd.f32 %v14381_v48, %v19221_v46 }
 0x887   : > { %13048 = vst.msk [vmem:[%s19323_s7 + $0x8] sm:$0xff] %vm13046_vm0, %v12987_v1  ;;  %v14382_v21 = vpop.f32.mrb[52].mxu1 }
 0x888   : > { %v14383_v52 = vpop.f32.mrb[53].mxu1 }
 0x889   : > { %v14384_v5 = vadd.f32 %v14383_v52, %v14382_v21  ;;  %v14385_v26 = vpop.f32.mrb[54].mxu1 }
 0x88a   : > { %v14386_v41 = vpop.f32.mrb[55].mxu1 }
 0x88b   : > { %v12992_v36 = vadd.f32 %v14384_v5, %v19221_v46  ;;  %v14387_v44 = vadd.f32 %v14386_v41, %v14385_v26 }
 0x88d   : > { %13049 = vst.msk [vmem:[%s19323_s7 + $0x10] sm:$0xff] %vm13046_vm0, %v12992_v36  ;;  %v12995_v31 = vadd.f32 %v14387_v44, %v19221_v46 }
 0x88f   : > { %13050 = vst.msk [vmem:[%s19323_s7 + $0x18] sm:$0xff] %vm13046_vm0, %v12995_v31  ;;  %v14388_v50 = vpop.f32.mrb[56].mxu1 }
 0x890   : > { %v14389_v60 = vpop.f32.mrb[57].mxu1 }
 0x891   : > { %v14390_v24 = vadd.f32 %v14389_v60, %v14388_v50  ;;  %v14391_v47 = vpop.f32.mrb[58].mxu1 }
 0x892   : > { %v14392_v6 = vpop.f32.mrb[59].mxu1 }
 0x893   : > { %v13000_v8 = vadd.f32 %v14390_v24, %v19221_v46  ;;  %v14393_v12 = vadd.f32 %v14392_v6, %v14391_v47 }
 0x895   : > { %13051 = vst.msk [vmem:[%s19323_s7 + $0x20] sm:$0xff] %vm13046_vm0, %v13000_v8  ;;  %v13003_v20 = vadd.f32 %v14393_v12, %v19221_v46 }
 0x897   : > { %13052 = vst.msk [vmem:[%s19323_s7 + $0x28] sm:$0xff] %vm13046_vm0, %v13003_v20  ;;  %v14394_v4 = vpop.f32.mrb[60].mxu1 }
 0x898   : > { %v14395_v18 = vpop.f32.mrb[61].mxu1 }
 0x899   : > { %v14396_v54 = vadd.f32 %v14395_v18, %v14394_v4  ;;  %v14397_v32 = vpop.f32.mrb[62].mxu1 }
 0x89a   : > { %v14398_v63 = vpop.f32.mrb[63].mxu1 }
 0x89b   : > { %v13008_v17 = vadd.f32 %v14396_v54, %v19221_v46  ;;  %v14399_v7 = vadd.f32 %v14398_v63, %v14397_v32 }
 0x89d   : > { %13053 = vst.msk [vmem:[%s19323_s7 + $0x30] sm:$0xff] %vm13046_vm0, %v13008_v17  ;;  %v13011_v58 = vadd.f32 %v14399_v7, %v19221_v46 }
 0x89f   : > { %13054 = vst.msk [vmem:[%s19323_s7 + $0x38] sm:$0xff] %vm13046_vm0, %v13011_v58  ;;  %v14400_v23 = vpop.f32.mrb[64].mxu1 }
 0x8a0   : > { %v14401_v55 = vpop.f32.mrb[65].mxu1 }
 0x8a1   : > { %v14402_v33 = vadd.f32 %v14401_v55, %v14400_v23  ;;  %v14403_v40 = vpop.f32.mrb[66].mxu1 }
 0x8a2   : > { %v14404_v30 = vpop.f32.mrb[67].mxu1 }
 0x8a3   : > { %v13016_v28 = vadd.f32 %v14402_v33, %v19221_v46  ;;  %v14405_v11 = vadd.f32 %v14404_v30, %v14403_v40 }
 0x8a5   : > { %13055 = vst.msk [vmem:[%s19323_s7 + $0x40] sm:$0xff] %vm13046_vm0, %v13016_v28  ;;  %v13019_v25 = vadd.f32 %v14405_v11, %v19221_v46 }
 0x8a7   : > { %13056 = vst.msk [vmem:[%s19323_s7 + $0x48] sm:$0xff] %vm13046_vm0, %v13019_v25  ;;  %v14406_v57 = vpop.f32.mrb[68].mxu1 }
 0x8a8   : > { %v14407_v35 = vpop.f32.mrb[69].mxu1 }
 0x8a9   : > { %v14408_v38 = vadd.f32 %v14407_v35, %v14406_v57  ;;  %v14409_v43 = vpop.f32.mrb[70].mxu1 }
 0x8aa   : > { %v14410_v19 = vpop.f32.mrb[71].mxu1 }
 0x8ab   : > { %v13024_v45 = vadd.f32 %v14408_v38, %v19221_v46  ;;  %v14411_v14 = vadd.f32 %v14410_v19, %v14409_v43 }
 0x8ad   : > { %13057 = vst.msk [vmem:[%s19323_s7 + $0x50] sm:$0xff] %vm13046_vm0, %v13024_v45  ;;  %v13027_v29 = vadd.f32 %v14411_v14, %v19221_v46 }
 0x8af   : > { %13058 = vst.msk [vmem:[%s19323_s7 + $0x58] sm:$0xff] %vm13046_vm0, %v13027_v29  ;;  %v14412_v42 = vpop.f32.mrb[72].mxu1 }
 0x8b0   : > { %v14413_v39 = vpop.f32.mrb[73].mxu1 }
 0x8b1   : > { %v14414_v16 = vadd.f32 %v14413_v39, %v14412_v42  ;;  %v14415_v56 = vpop.f32.mrb[74].mxu1 }
 0x8b2   : > { %v14416_v9 = vpop.f32.mrb[75].mxu1 }
 0x8b3   : > { %v13032_v37 = vadd.f32 %v14414_v16, %v19221_v46  ;;  %v14417_v10 = vadd.f32 %v14416_v9, %v14415_v56 }
 0x8b5   : > { %13059 = vst.msk [vmem:[%s19323_s7 + $0x60] sm:$0xff] %vm13046_vm0, %v13032_v37  ;;  %v13035_v34 = vadd.f32 %v14417_v10, %v19221_v46 }
 0x8b7   : > { %13060 = vst.msk [vmem:[%s19323_s7 + $0x68] sm:$0xff] %vm13046_vm0, %v13035_v34  ;;  %v14418_v22 = vpop.f32.mrb[76].mxu1 }
 0x8b8   : > { %v14419_v15 = vpop.f32.mrb[77].mxu1 }
 0x8b9   : > { %v14420_v2 = vadd.f32 %v14419_v15, %v14418_v22  ;;  %v14421_v49 = vpop.f32.mrb[78].mxu1 }
 0x8ba   : > { %v14422_v13 = vpop.f32.mrb[79].mxu1 }
 0x8bb   : > { %v13040_v53 = vadd.f32 %v14420_v2, %v19221_v46  ;;  %v14423_v61 = vadd.f32 %v14422_v13, %v14421_v49 }
 0x8bd   : > { %13061 = vst.msk [vmem:[%s19323_s7 + $0x70] sm:$0xff] %vm13046_vm0, %v13040_v53  ;;  %v13043_v27 = vadd.f32 %v14423_v61, %v19221_v46 }
 0x8bf   : > { %13062 = vst.msk [vmem:[%s19323_s7 + $0x78] sm:$0xff] %vm13046_vm0, %v13043_v27 }
 0x8c0 PF: > { %s19687_s0 = smov %s16205_s24  ;;  %p22_p13 = scmp.ge.s32.totalorder %s16192_s20, 4  }
 0x8c1   : > { %s19688_s24 = smov %s15994_s25  ;;  %s19689_s25 = smov %s15998_s26 }
 0x8c2   : > { %s19690_s26 = smov %s19687_s0  ;;  %s19691_s27 = smov %s16192_s20 }
 0x8c3   :  { %24 = sbr.rel (!%p22_p13) target bundleno = 11 (0xb), region = 121 }
 0x8ca   :  { %13074 = vsyncpa [#allocation4], 1 }
 0x8cb   :  { %13076 = vsyncpa [#allocation4 + $0x1], 1 }
 0x8cc   :  { %13077 = vsyncpa [#allocation6], 1 }
 0x8cd   :  { %13079 = vsyncpa [#allocation6 + $0x1], 1 }
 0x8ce   :  { %13080 = vsyncpa [#allocation9], 1 }
 0x8cf   :  { %13081 = vsyncpa [#allocation12], 1 }

</bundles_post_ra>
